<compile_context>
chip_gen: v7x
topology: tpu7x:2x2x1
jax: 0.10.0
libtpu: 0.0.40
codegen_flags: <defaults>
</compile_context>

<pallas_src>
import jax
import jax.numpy as jnp
import numpy as np
from jax.experimental import pallas as pl
from jax.experimental.pallas import tpu as pltpu

K = 3            # kernel_size=3, stride=1, padding=1
NEG_SLOPE = 0.2  # LeakyReLU negative_slope
EPS = 1e-5       # nn.InstanceNorm2d default eps


def _bilinear_up_matrix_padded(in_size: int, out_size: int) -> np.ndarray:
    """(out_size + 2, in_size) matrix M with  M @ x == zero_pad1(bilinear_up_x2(x)).

    Bilinear upsample matches nn.UpsamplingBilinear2d (align_corners=True).
    Rows 0 and out_size+1 are all-zero -> they realize the conv's padding=1.
    """
    m = np.zeros((out_size + 2, in_size), np.float64)
    if in_size == 1:
        m[1:-1, 0] = 1.0
        return m.astype(np.float32)
    src = np.arange(out_size, dtype=np.float64) * (in_size - 1) / (out_size - 1)
    i0 = np.clip(np.floor(src).astype(np.int64), 0, in_size - 1)
    i1 = np.clip(i0 + 1, 0, in_size - 1)
    frac = src - i0
    for o in range(out_size):
        m[o + 1, i0[o]] += 1.0 - frac[o]
        m[o + 1, i1[o]] += frac[o]
    return m.astype(np.float32)


def _upconv_kernel(x_ref, uh_ref, uwt_ref, w_ref, o_ref):
    """One batch element.

    x_ref:   (Cin, H, W)       low-res input              (VMEM, W on lanes)
    uh_ref:  (Ho+2, H)         padded H-upsample matrix   (VMEM)
    uwt_ref: (W, Wo+2)         padded W-upsample matrix^T (VMEM)
    w_ref:   (Cout, Cin*9)     conv weights, minor order (ci, kh, kw)  (SMEM)
    o_ref:   (Cout, Ho, Wo)    output                     (VMEM, Wo on lanes)
    """
    cin = x_ref.shape[0]
    cout, ho, wo = o_ref.shape

    uh = uh_ref[...]      # (Ho+2, H)
    uwt = uwt_ref[...]    # (W, Wo+2)

    accs = [jnp.zeros((ho, wo), jnp.float32) for _ in range(cout)]

    for ci in range(cin):
        # Fused upsample(align_corners=True) + zero-pad as two small MXU matmuls.
        t = jnp.dot(uh, x_ref[ci].astype(jnp.float32),
                    preferred_element_type=jnp.float32,
                    precision=jax.lax.Precision.HIGHEST)            # (Ho+2, W)
        xp = jnp.dot(t, uwt,
                     preferred_element_type=jnp.float32,
                     precision=jax.lax.Precision.HIGHEST)           # (Ho+2, Wo+2)

        # 3x3 conv taps on the VPU (W on lanes). One lane-shifted slice per kw,
        # sublane-only slice per kh, scalar weight broadcast from SMEM.
        # TODO(synk): for large Cin/Cout switch to a single (Cout,9Cin)x(9Cin,Ho*Wo)
        # MXU contraction instead of VPU FMAs.
        for kw in range(K):
            xp_w = xp[:, kw:kw + wo]                                # (Ho+2, Wo)
            for kh in range(K):
                tap = xp_w[kh:kh + ho, :]                           # (Ho, Wo)
                for co in range(cout):
                    wscal = w_ref[co, ci * (K * K) + kh * K + kw]
                    accs[co] = accs[co] + wscal * tap

    # InstanceNorm2d (no affine, biased var) + LeakyReLU(0.2), per output channel.
    for co in range(cout):
        y = accs[co]
        mean = jnp.mean(y)
        var = jnp.mean((y - mean) * (y - mean))
        y = (y - mean) * jax.lax.rsqrt(var + EPS)
        y = jnp.maximum(y, NEG_SLOPE * y)
        o_ref[co, :, :] = y.astype(o_ref.dtype)


def up_conv_forward(x_nchw, weight_oihw):
    """UpConv forward pass.

    x_nchw:      (N, Cin, H, W)     float32
    weight_oihw: (Cout, Cin, 3, 3)  float32 (PyTorch Conv2d weight layout)
    returns:     (N, Cout, 2H, 2W)  float32
    """
    N, Cin, H, W = x_nchw.shape
    Cout = weight_oihw.shape[0]
    Ho, Wo = 2 * H, 2 * W

    uh = jnp.asarray(_bilinear_up_matrix_padded(H, Ho))         # (Ho+2, H)
    uwt = jnp.asarray(_bilinear_up_matrix_padded(W, Wo).T)      # (W, Wo+2)
    w2d = weight_oihw.astype(jnp.float32).reshape(Cout, Cin * K * K)

    # TODO(synk): for very large images (e.g. Ho=Wo=512, Cin=64 on v7x's 64 MiB VMEM)
    # add spatial row tiling + a two-pass (sum/sumsq then normalize) instance norm;
    # not needed at these sizes, where one image fits comfortably in VMEM.
    kernel = pl.pallas_call(
        _upconv_kernel,
        out_shape=jax.ShapeDtypeStruct((N, Cout, Ho, Wo), x_nchw.dtype),
        grid_spec=pltpu.PrefetchScalarGridSpec(
            num_scalar_prefetch=0,
            grid=(N,),
            in_specs=[
                pl.BlockSpec((None, Cin, H, W), lambda n: (n, 0, 0, 0)),
                pl.BlockSpec((Ho + 2, H), lambda n: (0, 0)),
                pl.BlockSpec((W, Wo + 2), lambda n: (0, 0)),
                pl.BlockSpec(memory_space=pltpu.MemorySpace.SMEM),
            ],
            out_specs=pl.BlockSpec((None, Cout, Ho, Wo), lambda n: (n, 0, 0, 0)),
        ),
        compiler_params=pltpu.CompilerParams(
            dimension_semantics=("parallel",),
            vmem_limit_bytes=48 * 1024 * 1024,
        ),
    )
    return kernel(x_nchw, uh, uwt, w2d)


def _reference_forward(x_nchw, weight_oihw):
    """Pure-JAX reference: upsample -> conv -> instance norm -> leaky relu."""
    N, Cin, H, W = x_nchw.shape
    Ho, Wo = 2 * H, 2 * W

    def axis_idx(in_size, out_size):
        src = jnp.arange(out_size, dtype=jnp.float32) * (in_size - 1) / max(out_size - 1, 1)
        i0 = jnp.clip(jnp.floor(src).astype(jnp.int32), 0, in_size - 1)
        i1 = jnp.clip(i0 + 1, 0, in_size - 1)
        frac = src - i0.astype(jnp.float32)
        return i0, i1, frac

    h0, h1, fh = axis_idx(H, Ho)
    w0, w1, fw = axis_idx(W, Wo)
    t = (x_nchw[:, :, h0, :] * (1.0 - fh)[None, None, :, None]
         + x_nchw[:, :, h1, :] * fh[None, None, :, None])
    x_up = (t[:, :, :, w0] * (1.0 - fw)[None, None, None, :]
            + t[:, :, :, w1] * fw[None, None, None, :])

    y = jax.lax.conv_general_dilated(
        x_up, weight_oihw, window_strides=(1, 1), padding=((1, 1), (1, 1)),
        dimension_numbers=("NCHW", "OIHW", "NCHW"),
        precision=jax.lax.Precision.HIGHEST)
    mean = y.mean(axis=(2, 3), keepdims=True)
    var = ((y - mean) ** 2).mean(axis=(2, 3), keepdims=True)
    y = (y - mean) / jnp.sqrt(var + EPS)
    return jnp.where(y >= 0, y, NEG_SLOPE * y)


if __name__ == "__main__":
    key = jax.random.PRNGKey(0)
    k_x, k_w = jax.random.split(key)

    N, Cin, Cout, H, W = 2, 4, 4, 16, 16
    x = jax.random.normal(k_x, (N, Cin, H, W), dtype=jnp.float32)
    weight = 0.1 * jax.random.normal(k_w, (Cout, Cin, K, K), dtype=jnp.float32)

    out = jax.block_until_ready(up_conv_forward(x, weight))
    ref = jax.block_until_ready(_reference_forward(x, weight))

    assert out.shape == (N, Cout, 2 * H, 2 * W), out.shape
    np.testing.assert_allclose(np.asarray(out), np.asarray(ref), rtol=1e-3, atol=1e-3)

    print("KERNEL_OK")
</pallas_src>

<mosaic_0001>
module attributes {stable_mosaic.version = 11 : i64} {
  func.func @_upconv_kernel(%arg0: i32, %arg1: memref<1x4x16x16xf32, #tpu.memory_space<vmem>>, %arg2: memref<34x16xf32, #tpu.memory_space<vmem>>, %arg3: memref<16x34xf32, #tpu.memory_space<vmem>>, %arg4: memref<4x36xf32, #tpu.memory_space<smem>>, %arg5: memref<1x4x32x32xf32, #tpu.memory_space<vmem>>) attributes {dimension_semantics = [#tpu.dimension_semantics<parallel>], iteration_bounds = array<i64: 2>, scalar_prefetch = 0 : i64, scratch_operands = 0 : i64, tpu.core_type = #tpu.core_type<tc>, window_params = [{transform_indices = @transform_0, window_bounds = array<i64: 1, 4, 16, 16>}, {pipeline_mode = #tpu.pipeline_mode<synchronous>, transform_indices = @transform_1, window_bounds = array<i64: 34, 16>}, {pipeline_mode = #tpu.pipeline_mode<synchronous>, transform_indices = @transform_2, window_bounds = array<i64: 16, 34>}, {transform_indices = @transform_3, window_bounds = array<i64: 4, 36>}, {transform_indices = @transform_4, window_bounds = array<i64: 1, 4, 32, 32>}]} {
    %c0 = arith.constant 0 : index
    %c0_0 = arith.constant 0 : index
    %0 = vector.load %arg2[%c0, %c0_0] : memref<34x16xf32, #tpu.memory_space<vmem>>, vector<34x16xf32>
    %c0_1 = arith.constant 0 : index
    %c0_2 = arith.constant 0 : index
    %1 = vector.load %arg3[%c0_1, %c0_2] : memref<16x34xf32, #tpu.memory_space<vmem>>, vector<16x34xf32>
    %cst = arith.constant 0.000000e+00 : f32
    %2 = vector.broadcast %cst : f32 to vector<32x32xf32>
    %cst_3 = arith.constant 0.000000e+00 : f32
    %3 = vector.broadcast %cst_3 : f32 to vector<32x32xf32>
    %cst_4 = arith.constant 0.000000e+00 : f32
    %4 = vector.broadcast %cst_4 : f32 to vector<32x32xf32>
    %cst_5 = arith.constant 0.000000e+00 : f32
    %5 = vector.broadcast %cst_5 : f32 to vector<32x32xf32>
    %c0_6 = arith.constant 0 : index
    %c0_7 = arith.constant 0 : index
    %c0_8 = arith.constant 0 : index
    %c0_9 = arith.constant 0 : index
    %6 = vector.load %arg1[%c0_6, %c0_7, %c0_8, %c0_9] : memref<1x4x16x16xf32, #tpu.memory_space<vmem>>, vector<1x1x16x16xf32>
    %7 = vector.shape_cast %6 : vector<1x1x16x16xf32> to vector<16x16xf32>
    %cst_10 = arith.constant dense<0.000000e+00> : vector<34x16xf32>
    %8 = tpu.matmul %0, %7, %cst_10 {dimension_numbers = #tpu.dot_dimension_numbers<[1], [0], [0], [1], [0, 0, 1, 1], [], []>, precision = #tpu.contract_precision<fp32>} : vector<34x16xf32>, vector<16x16xf32>, vector<34x16xf32> -> vector<34x16xf32>
    %cst_11 = arith.constant dense<0.000000e+00> : vector<34x34xf32>
    %9 = tpu.matmul %8, %1, %cst_11 {dimension_numbers = #tpu.dot_dimension_numbers<[1], [0], [0], [1], [0, 0, 1, 1], [], []>, precision = #tpu.contract_precision<fp32>} : vector<34x16xf32>, vector<16x34xf32>, vector<34x34xf32> -> vector<34x34xf32>
    %10 = vector.extract_strided_slice %9 {offsets = [0, 0], sizes = [34, 32], strides = [1, 1]} : vector<34x34xf32> to vector<34x32xf32>
    %11 = vector.extract_strided_slice %10 {offsets = [0, 0], sizes = [32, 32], strides = [1, 1]} : vector<34x32xf32> to vector<32x32xf32>
    %c0_12 = arith.constant 0 : index
    %c0_13 = arith.constant 0 : index
    %12 = memref.load %arg4[%c0_12, %c0_13] : memref<4x36xf32, #tpu.memory_space<smem>>
    %13 = vector.broadcast %12 : f32 to vector<32x32xf32>
    %14 = arith.mulf %13, %11 : vector<32x32xf32>
    %15 = arith.addf %2, %14 : vector<32x32xf32>
    %c1 = arith.constant 1 : index
    %c0_14 = arith.constant 0 : index
    %16 = memref.load %arg4[%c1, %c0_14] : memref<4x36xf32, #tpu.memory_space<smem>>
    %17 = vector.broadcast %16 : f32 to vector<32x32xf32>
    %18 = arith.mulf %17, %11 : vector<32x32xf32>
    %19 = arith.addf %3, %18 : vector<32x32xf32>
    %c2 = arith.constant 2 : index
    %c0_15 = arith.constant 0 : index
    %20 = memref.load %arg4[%c2, %c0_15] : memref<4x36xf32, #tpu.memory_space<smem>>
    %21 = vector.broadcast %20 : f32 to vector<32x32xf32>
    %22 = arith.mulf %21, %11 : vector<32x32xf32>
    %23 = arith.addf %4, %22 : vector<32x32xf32>
    %c3 = arith.constant 3 : index
    %c0_16 = arith.constant 0 : index
    %24 = memref.load %arg4[%c3, %c0_16] : memref<4x36xf32, #tpu.memory_space<smem>>
    %25 = vector.broadcast %24 : f32 to vector<32x32xf32>
    %26 = arith.mulf %25, %11 : vector<32x32xf32>
    %27 = arith.addf %5, %26 : vector<32x32xf32>
    %28 = vector.extract_strided_slice %10 {offsets = [1, 0], sizes = [32, 32], strides = [1, 1]} : vector<34x32xf32> to vector<32x32xf32>
    %c0_17 = arith.constant 0 : index
    %c3_18 = arith.constant 3 : index
    %29 = memref.load %arg4[%c0_17, %c3_18] : memref<4x36xf32, #tpu.memory_space<smem>>
    %30 = vector.broadcast %29 : f32 to vector<32x32xf32>
    %31 = arith.mulf %30, %28 : vector<32x32xf32>
    %32 = arith.addf %15, %31 : vector<32x32xf32>
    %c1_19 = arith.constant 1 : index
    %c3_20 = arith.constant 3 : index
    %33 = memref.load %arg4[%c1_19, %c3_20] : memref<4x36xf32, #tpu.memory_space<smem>>
    %34 = vector.broadcast %33 : f32 to vector<32x32xf32>
    %35 = arith.mulf %34, %28 : vector<32x32xf32>
    %36 = arith.addf %19, %35 : vector<32x32xf32>
    %c2_21 = arith.constant 2 : index
    %c3_22 = arith.constant 3 : index
    %37 = memref.load %arg4[%c2_21, %c3_22] : memref<4x36xf32, #tpu.memory_space<smem>>
    %38 = vector.broadcast %37 : f32 to vector<32x32xf32>
    %39 = arith.mulf %38, %28 : vector<32x32xf32>
    %40 = arith.addf %23, %39 : vector<32x32xf32>
    %c3_23 = arith.constant 3 : index
    %c3_24 = arith.constant 3 : index
    %41 = memref.load %arg4[%c3_23, %c3_24] : memref<4x36xf32, #tpu.memory_space<smem>>
    %42 = vector.broadcast %41 : f32 to vector<32x32xf32>
    %43 = arith.mulf %42, %28 : vector<32x32xf32>
    %44 = arith.addf %27, %43 : vector<32x32xf32>
    %45 = vector.extract_strided_slice %10 {offsets = [2, 0], sizes = [32, 32], strides = [1, 1]} : vector<34x32xf32> to vector<32x32xf32>
    %c0_25 = arith.constant 0 : index
    %c6 = arith.constant 6 : index
    %46 = memref.load %arg4[%c0_25, %c6] : memref<4x36xf32, #tpu.memory_space<smem>>
    %47 = vector.broadcast %46 : f32 to vector<32x32xf32>
    %48 = arith.mulf %47, %45 : vector<32x32xf32>
    %49 = arith.addf %32, %48 : vector<32x32xf32>
    %c1_26 = arith.constant 1 : index
    %c6_27 = arith.constant 6 : index
    %50 = memref.load %arg4[%c1_26, %c6_27] : memref<4x36xf32, #tpu.memory_space<smem>>
    %51 = vector.broadcast %50 : f32 to vector<32x32xf32>
    %52 = arith.mulf %51, %45 : vector<32x32xf32>
    %53 = arith.addf %36, %52 : vector<32x32xf32>
    %c2_28 = arith.constant 2 : index
    %c6_29 = arith.constant 6 : index
    %54 = memref.load %arg4[%c2_28, %c6_29] : memref<4x36xf32, #tpu.memory_space<smem>>
    %55 = vector.broadcast %54 : f32 to vector<32x32xf32>
    %56 = arith.mulf %55, %45 : vector<32x32xf32>
    %57 = arith.addf %40, %56 : vector<32x32xf32>
    %c3_30 = arith.constant 3 : index
    %c6_31 = arith.constant 6 : index
    %58 = memref.load %arg4[%c3_30, %c6_31] : memref<4x36xf32, #tpu.memory_space<smem>>
    %59 = vector.broadcast %58 : f32 to vector<32x32xf32>
    %60 = arith.mulf %59, %45 : vector<32x32xf32>
    %61 = arith.addf %44, %60 : vector<32x32xf32>
    %62 = vector.extract_strided_slice %9 {offsets = [0, 1], sizes = [34, 32], strides = [1, 1]} : vector<34x34xf32> to vector<34x32xf32>
    %63 = vector.extract_strided_slice %62 {offsets = [0, 0], sizes = [32, 32], strides = [1, 1]} : vector<34x32xf32> to vector<32x32xf32>
    %c0_32 = arith.constant 0 : index
    %c1_33 = arith.constant 1 : index
    %64 = memref.load %arg4[%c0_32, %c1_33] : memref<4x36xf32, #tpu.memory_space<smem>>
    %65 = vector.broadcast %64 : f32 to vector<32x32xf32>
    %66 = arith.mulf %65, %63 : vector<32x32xf32>
    %67 = arith.addf %49, %66 : vector<32x32xf32>
    %c1_34 = arith.constant 1 : index
    %c1_35 = arith.constant 1 : index
    %68 = memref.load %arg4[%c1_34, %c1_35] : memref<4x36xf32, #tpu.memory_space<smem>>
    %69 = vector.broadcast %68 : f32 to vector<32x32xf32>
    %70 = arith.mulf %69, %63 : vector<32x32xf32>
    %71 = arith.addf %53, %70 : vector<32x32xf32>
    %c2_36 = arith.constant 2 : index
    %c1_37 = arith.constant 1 : index
    %72 = memref.load %arg4[%c2_36, %c1_37] : memref<4x36xf32, #tpu.memory_space<smem>>
    %73 = vector.broadcast %72 : f32 to vector<32x32xf32>
    %74 = arith.mulf %73, %63 : vector<32x32xf32>
    %75 = arith.addf %57, %74 : vector<32x32xf32>
    %c3_38 = arith.constant 3 : index
    %c1_39 = arith.constant 1 : index
    %76 = memref.load %arg4[%c3_38, %c1_39] : memref<4x36xf32, #tpu.memory_space<smem>>
    %77 = vector.broadcast %76 : f32 to vector<32x32xf32>
    %78 = arith.mulf %77, %63 : vector<32x32xf32>
    %79 = arith.addf %61, %78 : vector<32x32xf32>
    %80 = vector.extract_strided_slice %62 {offsets = [1, 0], sizes = [32, 32], strides = [1, 1]} : vector<34x32xf32> to vector<32x32xf32>
    %c0_40 = arith.constant 0 : index
    %c4 = arith.constant 4 : index
    %81 = memref.load %arg4[%c0_40, %c4] : memref<4x36xf32, #tpu.memory_space<smem>>
    %82 = vector.broadcast %81 : f32 to vector<32x32xf32>
    %83 = arith.mulf %82, %80 : vector<32x32xf32>
    %84 = arith.addf %67, %83 : vector<32x32xf32>
    %c1_41 = arith.constant 1 : index
    %c4_42 = arith.constant 4 : index
    %85 = memref.load %arg4[%c1_41, %c4_42] : memref<4x36xf32, #tpu.memory_space<smem>>
    %86 = vector.broadcast %85 : f32 to vector<32x32xf32>
    %87 = arith.mulf %86, %80 : vector<32x32xf32>
    %88 = arith.addf %71, %87 : vector<32x32xf32>
    %c2_43 = arith.constant 2 : index
    %c4_44 = arith.constant 4 : index
    %89 = memref.load %arg4[%c2_43, %c4_44] : memref<4x36xf32, #tpu.memory_space<smem>>
    %90 = vector.broadcast %89 : f32 to vector<32x32xf32>
    %91 = arith.mulf %90, %80 : vector<32x32xf32>
    %92 = arith.addf %75, %91 : vector<32x32xf32>
    %c3_45 = arith.constant 3 : index
    %c4_46 = arith.constant 4 : index
    %93 = memref.load %arg4[%c3_45, %c4_46] : memref<4x36xf32, #tpu.memory_space<smem>>
    %94 = vector.broadcast %93 : f32 to vector<32x32xf32>
    %95 = arith.mulf %94, %80 : vector<32x32xf32>
    %96 = arith.addf %79, %95 : vector<32x32xf32>
    %97 = vector.extract_strided_slice %62 {offsets = [2, 0], sizes = [32, 32], strides = [1, 1]} : vector<34x32xf32> to vector<32x32xf32>
    %c0_47 = arith.constant 0 : index
    %c7 = arith.constant 7 : index
    %98 = memref.load %arg4[%c0_47, %c7] : memref<4x36xf32, #tpu.memory_space<smem>>
    %99 = vector.broadcast %98 : f32 to vector<32x32xf32>
    %100 = arith.mulf %99, %97 : vector<32x32xf32>
    %101 = arith.addf %84, %100 : vector<32x32xf32>
    %c1_48 = arith.constant 1 : index
    %c7_49 = arith.constant 7 : index
    %102 = memref.load %arg4[%c1_48, %c7_49] : memref<4x36xf32, #tpu.memory_space<smem>>
    %103 = vector.broadcast %102 : f32 to vector<32x32xf32>
    %104 = arith.mulf %103, %97 : vector<32x32xf32>
    %105 = arith.addf %88, %104 : vector<32x32xf32>
    %c2_50 = arith.constant 2 : index
    %c7_51 = arith.constant 7 : index
    %106 = memref.load %arg4[%c2_50, %c7_51] : memref<4x36xf32, #tpu.memory_space<smem>>
    %107 = vector.broadcast %106 : f32 to vector<32x32xf32>
    %108 = arith.mulf %107, %97 : vector<32x32xf32>
    %109 = arith.addf %92, %108 : vector<32x32xf32>
    %c3_52 = arith.constant 3 : index
    %c7_53 = arith.constant 7 : index
    %110 = memref.load %arg4[%c3_52, %c7_53] : memref<4x36xf32, #tpu.memory_space<smem>>
    %111 = vector.broadcast %110 : f32 to vector<32x32xf32>
    %112 = arith.mulf %111, %97 : vector<32x32xf32>
    %113 = arith.addf %96, %112 : vector<32x32xf32>
    %114 = vector.extract_strided_slice %9 {offsets = [0, 2], sizes = [34, 32], strides = [1, 1]} : vector<34x34xf32> to vector<34x32xf32>
    %115 = vector.extract_strided_slice %114 {offsets = [0, 0], sizes = [32, 32], strides = [1, 1]} : vector<34x32xf32> to vector<32x32xf32>
    %c0_54 = arith.constant 0 : index
    %c2_55 = arith.constant 2 : index
    %116 = memref.load %arg4[%c0_54, %c2_55] : memref<4x36xf32, #tpu.memory_space<smem>>
    %117 = vector.broadcast %116 : f32 to vector<32x32xf32>
    %118 = arith.mulf %117, %115 : vector<32x32xf32>
    %119 = arith.addf %101, %118 : vector<32x32xf32>
    %c1_56 = arith.constant 1 : index
    %c2_57 = arith.constant 2 : index
    %120 = memref.load %arg4[%c1_56, %c2_57] : memref<4x36xf32, #tpu.memory_space<smem>>
    %121 = vector.broadcast %120 : f32 to vector<32x32xf32>
    %122 = arith.mulf %121, %115 : vector<32x32xf32>
    %123 = arith.addf %105, %122 : vector<32x32xf32>
    %c2_58 = arith.constant 2 : index
    %c2_59 = arith.constant 2 : index
    %124 = memref.load %arg4[%c2_58, %c2_59] : memref<4x36xf32, #tpu.memory_space<smem>>
    %125 = vector.broadcast %124 : f32 to vector<32x32xf32>
    %126 = arith.mulf %125, %115 : vector<32x32xf32>
    %127 = arith.addf %109, %126 : vector<32x32xf32>
    %c3_60 = arith.constant 3 : index
    %c2_61 = arith.constant 2 : index
    %128 = memref.load %arg4[%c3_60, %c2_61] : memref<4x36xf32, #tpu.memory_space<smem>>
    %129 = vector.broadcast %128 : f32 to vector<32x32xf32>
    %130 = arith.mulf %129, %115 : vector<32x32xf32>
    %131 = arith.addf %113, %130 : vector<32x32xf32>
    %132 = vector.extract_strided_slice %114 {offsets = [1, 0], sizes = [32, 32], strides = [1, 1]} : vector<34x32xf32> to vector<32x32xf32>
    %c0_62 = arith.constant 0 : index
    %c5 = arith.constant 5 : index
    %133 = memref.load %arg4[%c0_62, %c5] : memref<4x36xf32, #tpu.memory_space<smem>>
    %134 = vector.broadcast %133 : f32 to vector<32x32xf32>
    %135 = arith.mulf %134, %132 : vector<32x32xf32>
    %136 = arith.addf %119, %135 : vector<32x32xf32>
    %c1_63 = arith.constant 1 : index
    %c5_64 = arith.constant 5 : index
    %137 = memref.load %arg4[%c1_63, %c5_64] : memref<4x36xf32, #tpu.memory_space<smem>>
    %138 = vector.broadcast %137 : f32 to vector<32x32xf32>
    %139 = arith.mulf %138, %132 : vector<32x32xf32>
    %140 = arith.addf %123, %139 : vector<32x32xf32>
    %c2_65 = arith.constant 2 : index
    %c5_66 = arith.constant 5 : index
    %141 = memref.load %arg4[%c2_65, %c5_66] : memref<4x36xf32, #tpu.memory_space<smem>>
    %142 = vector.broadcast %141 : f32 to vector<32x32xf32>
    %143 = arith.mulf %142, %132 : vector<32x32xf32>
    %144 = arith.addf %127, %143 : vector<32x32xf32>
    %c3_67 = arith.constant 3 : index
    %c5_68 = arith.constant 5 : index
    %145 = memref.load %arg4[%c3_67, %c5_68] : memref<4x36xf32, #tpu.memory_space<smem>>
    %146 = vector.broadcast %145 : f32 to vector<32x32xf32>
    %147 = arith.mulf %146, %132 : vector<32x32xf32>
    %148 = arith.addf %131, %147 : vector<32x32xf32>
    %149 = vector.extract_strided_slice %114 {offsets = [2, 0], sizes = [32, 32], strides = [1, 1]} : vector<34x32xf32> to vector<32x32xf32>
    %c0_69 = arith.constant 0 : index
    %c8 = arith.constant 8 : index
    %150 = memref.load %arg4[%c0_69, %c8] : memref<4x36xf32, #tpu.memory_space<smem>>
    %151 = vector.broadcast %150 : f32 to vector<32x32xf32>
    %152 = arith.mulf %151, %149 : vector<32x32xf32>
    %153 = arith.addf %136, %152 : vector<32x32xf32>
    %c1_70 = arith.constant 1 : index
    %c8_71 = arith.constant 8 : index
    %154 = memref.load %arg4[%c1_70, %c8_71] : memref<4x36xf32, #tpu.memory_space<smem>>
    %155 = vector.broadcast %154 : f32 to vector<32x32xf32>
    %156 = arith.mulf %155, %149 : vector<32x32xf32>
    %157 = arith.addf %140, %156 : vector<32x32xf32>
    %c2_72 = arith.constant 2 : index
    %c8_73 = arith.constant 8 : index
    %158 = memref.load %arg4[%c2_72, %c8_73] : memref<4x36xf32, #tpu.memory_space<smem>>
    %159 = vector.broadcast %158 : f32 to vector<32x32xf32>
    %160 = arith.mulf %159, %149 : vector<32x32xf32>
    %161 = arith.addf %144, %160 : vector<32x32xf32>
    %c3_74 = arith.constant 3 : index
    %c8_75 = arith.constant 8 : index
    %162 = memref.load %arg4[%c3_74, %c8_75] : memref<4x36xf32, #tpu.memory_space<smem>>
    %163 = vector.broadcast %162 : f32 to vector<32x32xf32>
    %164 = arith.mulf %163, %149 : vector<32x32xf32>
    %165 = arith.addf %148, %164 : vector<32x32xf32>
    %c0_76 = arith.constant 0 : index
    %c1_77 = arith.constant 1 : index
    %c0_78 = arith.constant 0 : index
    %c0_79 = arith.constant 0 : index
    %166 = vector.load %arg1[%c0_76, %c1_77, %c0_78, %c0_79] : memref<1x4x16x16xf32, #tpu.memory_space<vmem>>, vector<1x1x16x16xf32>
    %167 = vector.shape_cast %166 : vector<1x1x16x16xf32> to vector<16x16xf32>
    %cst_80 = arith.constant dense<0.000000e+00> : vector<34x16xf32>
    %168 = tpu.matmul %0, %167, %cst_80 {dimension_numbers = #tpu.dot_dimension_numbers<[1], [0], [0], [1], [0, 0, 1, 1], [], []>, precision = #tpu.contract_precision<fp32>} : vector<34x16xf32>, vector<16x16xf32>, vector<34x16xf32> -> vector<34x16xf32>
    %cst_81 = arith.constant dense<0.000000e+00> : vector<34x34xf32>
    %169 = tpu.matmul %168, %1, %cst_81 {dimension_numbers = #tpu.dot_dimension_numbers<[1], [0], [0], [1], [0, 0, 1, 1], [], []>, precision = #tpu.contract_precision<fp32>} : vector<34x16xf32>, vector<16x34xf32>, vector<34x34xf32> -> vector<34x34xf32>
    %170 = vector.extract_strided_slice %169 {offsets = [0, 0], sizes = [34, 32], strides = [1, 1]} : vector<34x34xf32> to vector<34x32xf32>
    %171 = vector.extract_strided_slice %170 {offsets = [0, 0], sizes = [32, 32], strides = [1, 1]} : vector<34x32xf32> to vector<32x32xf32>
    %c0_82 = arith.constant 0 : index
    %c9 = arith.constant 9 : index
    %172 = memref.load %arg4[%c0_82, %c9] : memref<4x36xf32, #tpu.memory_space<smem>>
    %173 = vector.broadcast %172 : f32 to vector<32x32xf32>
    %174 = arith.mulf %173, %171 : vector<32x32xf32>
    %175 = arith.addf %153, %174 : vector<32x32xf32>
    %c1_83 = arith.constant 1 : index
    %c9_84 = arith.constant 9 : index
    %176 = memref.load %arg4[%c1_83, %c9_84] : memref<4x36xf32, #tpu.memory_space<smem>>
    %177 = vector.broadcast %176 : f32 to vector<32x32xf32>
    %178 = arith.mulf %177, %171 : vector<32x32xf32>
    %179 = arith.addf %157, %178 : vector<32x32xf32>
    %c2_85 = arith.constant 2 : index
    %c9_86 = arith.constant 9 : index
    %180 = memref.load %arg4[%c2_85, %c9_86] : memref<4x36xf32, #tpu.memory_space<smem>>
    %181 = vector.broadcast %180 : f32 to vector<32x32xf32>
    %182 = arith.mulf %181, %171 : vector<32x32xf32>
    %183 = arith.addf %161, %182 : vector<32x32xf32>
    %c3_87 = arith.constant 3 : index
    %c9_88 = arith.constant 9 : index
    %184 = memref.load %arg4[%c3_87, %c9_88] : memref<4x36xf32, #tpu.memory_space<smem>>
    %185 = vector.broadcast %184 : f32 to vector<32x32xf32>
    %186 = arith.mulf %185, %171 : vector<32x32xf32>
    %187 = arith.addf %165, %186 : vector<32x32xf32>
    %188 = vector.extract_strided_slice %170 {offsets = [1, 0], sizes = [32, 32], strides = [1, 1]} : vector<34x32xf32> to vector<32x32xf32>
    %c0_89 = arith.constant 0 : index
    %c12 = arith.constant 12 : index
    %189 = memref.load %arg4[%c0_89, %c12] : memref<4x36xf32, #tpu.memory_space<smem>>
    %190 = vector.broadcast %189 : f32 to vector<32x32xf32>
    %191 = arith.mulf %190, %188 : vector<32x32xf32>
    %192 = arith.addf %175, %191 : vector<32x32xf32>
    %c1_90 = arith.constant 1 : index
    %c12_91 = arith.constant 12 : index
    %193 = memref.load %arg4[%c1_90, %c12_91] : memref<4x36xf32, #tpu.memory_space<smem>>
    %194 = vector.broadcast %193 : f32 to vector<32x32xf32>
    %195 = arith.mulf %194, %188 : vector<32x32xf32>
    %196 = arith.addf %179, %195 : vector<32x32xf32>
    %c2_92 = arith.constant 2 : index
    %c12_93 = arith.constant 12 : index
    %197 = memref.load %arg4[%c2_92, %c12_93] : memref<4x36xf32, #tpu.memory_space<smem>>
    %198 = vector.broadcast %197 : f32 to vector<32x32xf32>
    %199 = arith.mulf %198, %188 : vector<32x32xf32>
    %200 = arith.addf %183, %199 : vector<32x32xf32>
    %c3_94 = arith.constant 3 : index
    %c12_95 = arith.constant 12 : index
    %201 = memref.load %arg4[%c3_94, %c12_95] : memref<4x36xf32, #tpu.memory_space<smem>>
    %202 = vector.broadcast %201 : f32 to vector<32x32xf32>
    %203 = arith.mulf %202, %188 : vector<32x32xf32>
    %204 = arith.addf %187, %203 : vector<32x32xf32>
    %205 = vector.extract_strided_slice %170 {offsets = [2, 0], sizes = [32, 32], strides = [1, 1]} : vector<34x32xf32> to vector<32x32xf32>
    %c0_96 = arith.constant 0 : index
    %c15 = arith.constant 15 : index
    %206 = memref.load %arg4[%c0_96, %c15] : memref<4x36xf32, #tpu.memory_space<smem>>
    %207 = vector.broadcast %206 : f32 to vector<32x32xf32>
    %208 = arith.mulf %207, %205 : vector<32x32xf32>
    %209 = arith.addf %192, %208 : vector<32x32xf32>
    %c1_97 = arith.constant 1 : index
    %c15_98 = arith.constant 15 : index
    %210 = memref.load %arg4[%c1_97, %c15_98] : memref<4x36xf32, #tpu.memory_space<smem>>
    %211 = vector.broadcast %210 : f32 to vector<32x32xf32>
    %212 = arith.mulf %211, %205 : vector<32x32xf32>
    %213 = arith.addf %196, %212 : vector<32x32xf32>
    %c2_99 = arith.constant 2 : index
    %c15_100 = arith.constant 15 : index
    %214 = memref.load %arg4[%c2_99, %c15_100] : memref<4x36xf32, #tpu.memory_space<smem>>
    %215 = vector.broadcast %214 : f32 to vector<32x32xf32>
    %216 = arith.mulf %215, %205 : vector<32x32xf32>
    %217 = arith.addf %200, %216 : vector<32x32xf32>
    %c3_101 = arith.constant 3 : index
    %c15_102 = arith.constant 15 : index
    %218 = memref.load %arg4[%c3_101, %c15_102] : memref<4x36xf32, #tpu.memory_space<smem>>
    %219 = vector.broadcast %218 : f32 to vector<32x32xf32>
    %220 = arith.mulf %219, %205 : vector<32x32xf32>
    %221 = arith.addf %204, %220 : vector<32x32xf32>
    %222 = vector.extract_strided_slice %169 {offsets = [0, 1], sizes = [34, 32], strides = [1, 1]} : vector<34x34xf32> to vector<34x32xf32>
    %223 = vector.extract_strided_slice %222 {offsets = [0, 0], sizes = [32, 32], strides = [1, 1]} : vector<34x32xf32> to vector<32x32xf32>
    %c0_103 = arith.constant 0 : index
    %c10 = arith.constant 10 : index
    %224 = memref.load %arg4[%c0_103, %c10] : memref<4x36xf32, #tpu.memory_space<smem>>
    %225 = vector.broadcast %224 : f32 to vector<32x32xf32>
    %226 = arith.mulf %225, %223 : vector<32x32xf32>
    %227 = arith.addf %209, %226 : vector<32x32xf32>
    %c1_104 = arith.constant 1 : index
    %c10_105 = arith.constant 10 : index
    %228 = memref.load %arg4[%c1_104, %c10_105] : memref<4x36xf32, #tpu.memory_space<smem>>
    %229 = vector.broadcast %228 : f32 to vector<32x32xf32>
    %230 = arith.mulf %229, %223 : vector<32x32xf32>
    %231 = arith.addf %213, %230 : vector<32x32xf32>
    %c2_106 = arith.constant 2 : index
    %c10_107 = arith.constant 10 : index
    %232 = memref.load %arg4[%c2_106, %c10_107] : memref<4x36xf32, #tpu.memory_space<smem>>
    %233 = vector.broadcast %232 : f32 to vector<32x32xf32>
    %234 = arith.mulf %233, %223 : vector<32x32xf32>
    %235 = arith.addf %217, %234 : vector<32x32xf32>
    %c3_108 = arith.constant 3 : index
    %c10_109 = arith.constant 10 : index
    %236 = memref.load %arg4[%c3_108, %c10_109] : memref<4x36xf32, #tpu.memory_space<smem>>
    %237 = vector.broadcast %236 : f32 to vector<32x32xf32>
    %238 = arith.mulf %237, %223 : vector<32x32xf32>
    %239 = arith.addf %221, %238 : vector<32x32xf32>
    %240 = vector.extract_strided_slice %222 {offsets = [1, 0], sizes = [32, 32], strides = [1, 1]} : vector<34x32xf32> to vector<32x32xf32>
    %c0_110 = arith.constant 0 : index
    %c13 = arith.constant 13 : index
    %241 = memref.load %arg4[%c0_110, %c13] : memref<4x36xf32, #tpu.memory_space<smem>>
    %242 = vector.broadcast %241 : f32 to vector<32x32xf32>
    %243 = arith.mulf %242, %240 : vector<32x32xf32>
    %244 = arith.addf %227, %243 : vector<32x32xf32>
    %c1_111 = arith.constant 1 : index
    %c13_112 = arith.constant 13 : index
    %245 = memref.load %arg4[%c1_111, %c13_112] : memref<4x36xf32, #tpu.memory_space<smem>>
    %246 = vector.broadcast %245 : f32 to vector<32x32xf32>
    %247 = arith.mulf %246, %240 : vector<32x32xf32>
    %248 = arith.addf %231, %247 : vector<32x32xf32>
    %c2_113 = arith.constant 2 : index
    %c13_114 = arith.constant 13 : index
    %249 = memref.load %arg4[%c2_113, %c13_114] : memref<4x36xf32, #tpu.memory_space<smem>>
    %250 = vector.broadcast %249 : f32 to vector<32x32xf32>
    %251 = arith.mulf %250, %240 : vector<32x32xf32>
    %252 = arith.addf %235, %251 : vector<32x32xf32>
    %c3_115 = arith.constant 3 : index
    %c13_116 = arith.constant 13 : index
    %253 = memref.load %arg4[%c3_115, %c13_116] : memref<4x36xf32, #tpu.memory_space<smem>>
    %254 = vector.broadcast %253 : f32 to vector<32x32xf32>
    %255 = arith.mulf %254, %240 : vector<32x32xf32>
    %256 = arith.addf %239, %255 : vector<32x32xf32>
    %257 = vector.extract_strided_slice %222 {offsets = [2, 0], sizes = [32, 32], strides = [1, 1]} : vector<34x32xf32> to vector<32x32xf32>
    %c0_117 = arith.constant 0 : index
    %c16 = arith.constant 16 : index
    %258 = memref.load %arg4[%c0_117, %c16] : memref<4x36xf32, #tpu.memory_space<smem>>
    %259 = vector.broadcast %258 : f32 to vector<32x32xf32>
    %260 = arith.mulf %259, %257 : vector<32x32xf32>
    %261 = arith.addf %244, %260 : vector<32x32xf32>
    %c1_118 = arith.constant 1 : index
    %c16_119 = arith.constant 16 : index
    %262 = memref.load %arg4[%c1_118, %c16_119] : memref<4x36xf32, #tpu.memory_space<smem>>
    %263 = vector.broadcast %262 : f32 to vector<32x32xf32>
    %264 = arith.mulf %263, %257 : vector<32x32xf32>
    %265 = arith.addf %248, %264 : vector<32x32xf32>
    %c2_120 = arith.constant 2 : index
    %c16_121 = arith.constant 16 : index
    %266 = memref.load %arg4[%c2_120, %c16_121] : memref<4x36xf32, #tpu.memory_space<smem>>
    %267 = vector.broadcast %266 : f32 to vector<32x32xf32>
    %268 = arith.mulf %267, %257 : vector<32x32xf32>
    %269 = arith.addf %252, %268 : vector<32x32xf32>
    %c3_122 = arith.constant 3 : index
    %c16_123 = arith.constant 16 : index
    %270 = memref.load %arg4[%c3_122, %c16_123] : memref<4x36xf32, #tpu.memory_space<smem>>
    %271 = vector.broadcast %270 : f32 to vector<32x32xf32>
    %272 = arith.mulf %271, %257 : vector<32x32xf32>
    %273 = arith.addf %256, %272 : vector<32x32xf32>
    %274 = vector.extract_strided_slice %169 {offsets = [0, 2], sizes = [34, 32], strides = [1, 1]} : vector<34x34xf32> to vector<34x32xf32>
    %275 = vector.extract_strided_slice %274 {offsets = [0, 0], sizes = [32, 32], strides = [1, 1]} : vector<34x32xf32> to vector<32x32xf32>
    %c0_124 = arith.constant 0 : index
    %c11 = arith.constant 11 : index
    %276 = memref.load %arg4[%c0_124, %c11] : memref<4x36xf32, #tpu.memory_space<smem>>
    %277 = vector.broadcast %276 : f32 to vector<32x32xf32>
    %278 = arith.mulf %277, %275 : vector<32x32xf32>
    %279 = arith.addf %261, %278 : vector<32x32xf32>
    %c1_125 = arith.constant 1 : index
    %c11_126 = arith.constant 11 : index
    %280 = memref.load %arg4[%c1_125, %c11_126] : memref<4x36xf32, #tpu.memory_space<smem>>
    %281 = vector.broadcast %280 : f32 to vector<32x32xf32>
    %282 = arith.mulf %281, %275 : vector<32x32xf32>
    %283 = arith.addf %265, %282 : vector<32x32xf32>
    %c2_127 = arith.constant 2 : index
    %c11_128 = arith.constant 11 : index
    %284 = memref.load %arg4[%c2_127, %c11_128] : memref<4x36xf32, #tpu.memory_space<smem>>
    %285 = vector.broadcast %284 : f32 to vector<32x32xf32>
    %286 = arith.mulf %285, %275 : vector<32x32xf32>
    %287 = arith.addf %269, %286 : vector<32x32xf32>
    %c3_129 = arith.constant 3 : index
    %c11_130 = arith.constant 11 : index
    %288 = memref.load %arg4[%c3_129, %c11_130] : memref<4x36xf32, #tpu.memory_space<smem>>
    %289 = vector.broadcast %288 : f32 to vector<32x32xf32>
    %290 = arith.mulf %289, %275 : vector<32x32xf32>
    %291 = arith.addf %273, %290 : vector<32x32xf32>
    %292 = vector.extract_strided_slice %274 {offsets = [1, 0], sizes = [32, 32], strides = [1, 1]} : vector<34x32xf32> to vector<32x32xf32>
    %c0_131 = arith.constant 0 : index
    %c14 = arith.constant 14 : index
    %293 = memref.load %arg4[%c0_131, %c14] : memref<4x36xf32, #tpu.memory_space<smem>>
    %294 = vector.broadcast %293 : f32 to vector<32x32xf32>
    %295 = arith.mulf %294, %292 : vector<32x32xf32>
    %296 = arith.addf %279, %295 : vector<32x32xf32>
    %c1_132 = arith.constant 1 : index
    %c14_133 = arith.constant 14 : index
    %297 = memref.load %arg4[%c1_132, %c14_133] : memref<4x36xf32, #tpu.memory_space<smem>>
    %298 = vector.broadcast %297 : f32 to vector<32x32xf32>
    %299 = arith.mulf %298, %292 : vector<32x32xf32>
    %300 = arith.addf %283, %299 : vector<32x32xf32>
    %c2_134 = arith.constant 2 : index
    %c14_135 = arith.constant 14 : index
    %301 = memref.load %arg4[%c2_134, %c14_135] : memref<4x36xf32, #tpu.memory_space<smem>>
    %302 = vector.broadcast %301 : f32 to vector<32x32xf32>
    %303 = arith.mulf %302, %292 : vector<32x32xf32>
    %304 = arith.addf %287, %303 : vector<32x32xf32>
    %c3_136 = arith.constant 3 : index
    %c14_137 = arith.constant 14 : index
    %305 = memref.load %arg4[%c3_136, %c14_137] : memref<4x36xf32, #tpu.memory_space<smem>>
    %306 = vector.broadcast %305 : f32 to vector<32x32xf32>
    %307 = arith.mulf %306, %292 : vector<32x32xf32>
    %308 = arith.addf %291, %307 : vector<32x32xf32>
    %309 = vector.extract_strided_slice %274 {offsets = [2, 0], sizes = [32, 32], strides = [1, 1]} : vector<34x32xf32> to vector<32x32xf32>
    %c0_138 = arith.constant 0 : index
    %c17 = arith.constant 17 : index
    %310 = memref.load %arg4[%c0_138, %c17] : memref<4x36xf32, #tpu.memory_space<smem>>
    %311 = vector.broadcast %310 : f32 to vector<32x32xf32>
    %312 = arith.mulf %311, %309 : vector<32x32xf32>
    %313 = arith.addf %296, %312 : vector<32x32xf32>
    %c1_139 = arith.constant 1 : index
    %c17_140 = arith.constant 17 : index
    %314 = memref.load %arg4[%c1_139, %c17_140] : memref<4x36xf32, #tpu.memory_space<smem>>
    %315 = vector.broadcast %314 : f32 to vector<32x32xf32>
    %316 = arith.mulf %315, %309 : vector<32x32xf32>
    %317 = arith.addf %300, %316 : vector<32x32xf32>
    %c2_141 = arith.constant 2 : index
    %c17_142 = arith.constant 17 : index
    %318 = memref.load %arg4[%c2_141, %c17_142] : memref<4x36xf32, #tpu.memory_space<smem>>
    %319 = vector.broadcast %318 : f32 to vector<32x32xf32>
    %320 = arith.mulf %319, %309 : vector<32x32xf32>
    %321 = arith.addf %304, %320 : vector<32x32xf32>
    %c3_143 = arith.constant 3 : index
    %c17_144 = arith.constant 17 : index
    %322 = memref.load %arg4[%c3_143, %c17_144] : memref<4x36xf32, #tpu.memory_space<smem>>
    %323 = vector.broadcast %322 : f32 to vector<32x32xf32>
    %324 = arith.mulf %323, %309 : vector<32x32xf32>
    %325 = arith.addf %308, %324 : vector<32x32xf32>
    %c0_145 = arith.constant 0 : index
    %c2_146 = arith.constant 2 : index
    %c0_147 = arith.constant 0 : index
    %c0_148 = arith.constant 0 : index
    %326 = vector.load %arg1[%c0_145, %c2_146, %c0_147, %c0_148] : memref<1x4x16x16xf32, #tpu.memory_space<vmem>>, vector<1x1x16x16xf32>
    %327 = vector.shape_cast %326 : vector<1x1x16x16xf32> to vector<16x16xf32>
    %cst_149 = arith.constant dense<0.000000e+00> : vector<34x16xf32>
    %328 = tpu.matmul %0, %327, %cst_149 {dimension_numbers = #tpu.dot_dimension_numbers<[1], [0], [0], [1], [0, 0, 1, 1], [], []>, precision = #tpu.contract_precision<fp32>} : vector<34x16xf32>, vector<16x16xf32>, vector<34x16xf32> -> vector<34x16xf32>
    %cst_150 = arith.constant dense<0.000000e+00> : vector<34x34xf32>
    %329 = tpu.matmul %328, %1, %cst_150 {dimension_numbers = #tpu.dot_dimension_numbers<[1], [0], [0], [1], [0, 0, 1, 1], [], []>, precision = #tpu.contract_precision<fp32>} : vector<34x16xf32>, vector<16x34xf32>, vector<34x34xf32> -> vector<34x34xf32>
    %330 = vector.extract_strided_slice %329 {offsets = [0, 0], sizes = [34, 32], strides = [1, 1]} : vector<34x34xf32> to vector<34x32xf32>
    %331 = vector.extract_strided_slice %330 {offsets = [0, 0], sizes = [32, 32], strides = [1, 1]} : vector<34x32xf32> to vector<32x32xf32>
    %c0_151 = arith.constant 0 : index
    %c18 = arith.constant 18 : index
    %332 = memref.load %arg4[%c0_151, %c18] : memref<4x36xf32, #tpu.memory_space<smem>>
    %333 = vector.broadcast %332 : f32 to vector<32x32xf32>
    %334 = arith.mulf %333, %331 : vector<32x32xf32>
    %335 = arith.addf %313, %334 : vector<32x32xf32>
    %c1_152 = arith.constant 1 : index
    %c18_153 = arith.constant 18 : index
    %336 = memref.load %arg4[%c1_152, %c18_153] : memref<4x36xf32, #tpu.memory_space<smem>>
    %337 = vector.broadcast %336 : f32 to vector<32x32xf32>
    %338 = arith.mulf %337, %331 : vector<32x32xf32>
    %339 = arith.addf %317, %338 : vector<32x32xf32>
    %c2_154 = arith.constant 2 : index
    %c18_155 = arith.constant 18 : index
    %340 = memref.load %arg4[%c2_154, %c18_155] : memref<4x36xf32, #tpu.memory_space<smem>>
    %341 = vector.broadcast %340 : f32 to vector<32x32xf32>
    %342 = arith.mulf %341, %331 : vector<32x32xf32>
    %343 = arith.addf %321, %342 : vector<32x32xf32>
    %c3_156 = arith.constant 3 : index
    %c18_157 = arith.constant 18 : index
    %344 = memref.load %arg4[%c3_156, %c18_157] : memref<4x36xf32, #tpu.memory_space<smem>>
    %345 = vector.broadcast %344 : f32 to vector<32x32xf32>
    %346 = arith.mulf %345, %331 : vector<32x32xf32>
    %347 = arith.addf %325, %346 : vector<32x32xf32>
    %348 = vector.extract_strided_slice %330 {offsets = [1, 0], sizes = [32, 32], strides = [1, 1]} : vector<34x32xf32> to vector<32x32xf32>
    %c0_158 = arith.constant 0 : index
    %c21 = arith.constant 21 : index
    %349 = memref.load %arg4[%c0_158, %c21] : memref<4x36xf32, #tpu.memory_space<smem>>
    %350 = vector.broadcast %349 : f32 to vector<32x32xf32>
    %351 = arith.mulf %350, %348 : vector<32x32xf32>
    %352 = arith.addf %335, %351 : vector<32x32xf32>
    %c1_159 = arith.constant 1 : index
    %c21_160 = arith.constant 21 : index
    %353 = memref.load %arg4[%c1_159, %c21_160] : memref<4x36xf32, #tpu.memory_space<smem>>
    %354 = vector.broadcast %353 : f32 to vector<32x32xf32>
    %355 = arith.mulf %354, %348 : vector<32x32xf32>
    %356 = arith.addf %339, %355 : vector<32x32xf32>
    %c2_161 = arith.constant 2 : index
    %c21_162 = arith.constant 21 : index
    %357 = memref.load %arg4[%c2_161, %c21_162] : memref<4x36xf32, #tpu.memory_space<smem>>
    %358 = vector.broadcast %357 : f32 to vector<32x32xf32>
    %359 = arith.mulf %358, %348 : vector<32x32xf32>
    %360 = arith.addf %343, %359 : vector<32x32xf32>
    %c3_163 = arith.constant 3 : index
    %c21_164 = arith.constant 21 : index
    %361 = memref.load %arg4[%c3_163, %c21_164] : memref<4x36xf32, #tpu.memory_space<smem>>
    %362 = vector.broadcast %361 : f32 to vector<32x32xf32>
    %363 = arith.mulf %362, %348 : vector<32x32xf32>
    %364 = arith.addf %347, %363 : vector<32x32xf32>
    %365 = vector.extract_strided_slice %330 {offsets = [2, 0], sizes = [32, 32], strides = [1, 1]} : vector<34x32xf32> to vector<32x32xf32>
    %c0_165 = arith.constant 0 : index
    %c24 = arith.constant 24 : index
    %366 = memref.load %arg4[%c0_165, %c24] : memref<4x36xf32, #tpu.memory_space<smem>>
    %367 = vector.broadcast %366 : f32 to vector<32x32xf32>
    %368 = arith.mulf %367, %365 : vector<32x32xf32>
    %369 = arith.addf %352, %368 : vector<32x32xf32>
    %c1_166 = arith.constant 1 : index
    %c24_167 = arith.constant 24 : index
    %370 = memref.load %arg4[%c1_166, %c24_167] : memref<4x36xf32, #tpu.memory_space<smem>>
    %371 = vector.broadcast %370 : f32 to vector<32x32xf32>
    %372 = arith.mulf %371, %365 : vector<32x32xf32>
    %373 = arith.addf %356, %372 : vector<32x32xf32>
    %c2_168 = arith.constant 2 : index
    %c24_169 = arith.constant 24 : index
    %374 = memref.load %arg4[%c2_168, %c24_169] : memref<4x36xf32, #tpu.memory_space<smem>>
    %375 = vector.broadcast %374 : f32 to vector<32x32xf32>
    %376 = arith.mulf %375, %365 : vector<32x32xf32>
    %377 = arith.addf %360, %376 : vector<32x32xf32>
    %c3_170 = arith.constant 3 : index
    %c24_171 = arith.constant 24 : index
    %378 = memref.load %arg4[%c3_170, %c24_171] : memref<4x36xf32, #tpu.memory_space<smem>>
    %379 = vector.broadcast %378 : f32 to vector<32x32xf32>
    %380 = arith.mulf %379, %365 : vector<32x32xf32>
    %381 = arith.addf %364, %380 : vector<32x32xf32>
    %382 = vector.extract_strided_slice %329 {offsets = [0, 1], sizes = [34, 32], strides = [1, 1]} : vector<34x34xf32> to vector<34x32xf32>
    %383 = vector.extract_strided_slice %382 {offsets = [0, 0], sizes = [32, 32], strides = [1, 1]} : vector<34x32xf32> to vector<32x32xf32>
    %c0_172 = arith.constant 0 : index
    %c19 = arith.constant 19 : index
    %384 = memref.load %arg4[%c0_172, %c19] : memref<4x36xf32, #tpu.memory_space<smem>>
    %385 = vector.broadcast %384 : f32 to vector<32x32xf32>
    %386 = arith.mulf %385, %383 : vector<32x32xf32>
    %387 = arith.addf %369, %386 : vector<32x32xf32>
    %c1_173 = arith.constant 1 : index
    %c19_174 = arith.constant 19 : index
    %388 = memref.load %arg4[%c1_173, %c19_174] : memref<4x36xf32, #tpu.memory_space<smem>>
    %389 = vector.broadcast %388 : f32 to vector<32x32xf32>
    %390 = arith.mulf %389, %383 : vector<32x32xf32>
    %391 = arith.addf %373, %390 : vector<32x32xf32>
    %c2_175 = arith.constant 2 : index
    %c19_176 = arith.constant 19 : index
    %392 = memref.load %arg4[%c2_175, %c19_176] : memref<4x36xf32, #tpu.memory_space<smem>>
    %393 = vector.broadcast %392 : f32 to vector<32x32xf32>
    %394 = arith.mulf %393, %383 : vector<32x32xf32>
    %395 = arith.addf %377, %394 : vector<32x32xf32>
    %c3_177 = arith.constant 3 : index
    %c19_178 = arith.constant 19 : index
    %396 = memref.load %arg4[%c3_177, %c19_178] : memref<4x36xf32, #tpu.memory_space<smem>>
    %397 = vector.broadcast %396 : f32 to vector<32x32xf32>
    %398 = arith.mulf %397, %383 : vector<32x32xf32>
    %399 = arith.addf %381, %398 : vector<32x32xf32>
    %400 = vector.extract_strided_slice %382 {offsets = [1, 0], sizes = [32, 32], strides = [1, 1]} : vector<34x32xf32> to vector<32x32xf32>
    %c0_179 = arith.constant 0 : index
    %c22 = arith.constant 22 : index
    %401 = memref.load %arg4[%c0_179, %c22] : memref<4x36xf32, #tpu.memory_space<smem>>
    %402 = vector.broadcast %401 : f32 to vector<32x32xf32>
    %403 = arith.mulf %402, %400 : vector<32x32xf32>
    %404 = arith.addf %387, %403 : vector<32x32xf32>
    %c1_180 = arith.constant 1 : index
    %c22_181 = arith.constant 22 : index
    %405 = memref.load %arg4[%c1_180, %c22_181] : memref<4x36xf32, #tpu.memory_space<smem>>
    %406 = vector.broadcast %405 : f32 to vector<32x32xf32>
    %407 = arith.mulf %406, %400 : vector<32x32xf32>
    %408 = arith.addf %391, %407 : vector<32x32xf32>
    %c2_182 = arith.constant 2 : index
    %c22_183 = arith.constant 22 : index
    %409 = memref.load %arg4[%c2_182, %c22_183] : memref<4x36xf32, #tpu.memory_space<smem>>
    %410 = vector.broadcast %409 : f32 to vector<32x32xf32>
    %411 = arith.mulf %410, %400 : vector<32x32xf32>
    %412 = arith.addf %395, %411 : vector<32x32xf32>
    %c3_184 = arith.constant 3 : index
    %c22_185 = arith.constant 22 : index
    %413 = memref.load %arg4[%c3_184, %c22_185] : memref<4x36xf32, #tpu.memory_space<smem>>
    %414 = vector.broadcast %413 : f32 to vector<32x32xf32>
    %415 = arith.mulf %414, %400 : vector<32x32xf32>
    %416 = arith.addf %399, %415 : vector<32x32xf32>
    %417 = vector.extract_strided_slice %382 {offsets = [2, 0], sizes = [32, 32], strides = [1, 1]} : vector<34x32xf32> to vector<32x32xf32>
    %c0_186 = arith.constant 0 : index
    %c25 = arith.constant 25 : index
    %418 = memref.load %arg4[%c0_186, %c25] : memref<4x36xf32, #tpu.memory_space<smem>>
    %419 = vector.broadcast %418 : f32 to vector<32x32xf32>
    %420 = arith.mulf %419, %417 : vector<32x32xf32>
    %421 = arith.addf %404, %420 : vector<32x32xf32>
    %c1_187 = arith.constant 1 : index
    %c25_188 = arith.constant 25 : index
    %422 = memref.load %arg4[%c1_187, %c25_188] : memref<4x36xf32, #tpu.memory_space<smem>>
    %423 = vector.broadcast %422 : f32 to vector<32x32xf32>
    %424 = arith.mulf %423, %417 : vector<32x32xf32>
    %425 = arith.addf %408, %424 : vector<32x32xf32>
    %c2_189 = arith.constant 2 : index
    %c25_190 = arith.constant 25 : index
    %426 = memref.load %arg4[%c2_189, %c25_190] : memref<4x36xf32, #tpu.memory_space<smem>>
    %427 = vector.broadcast %426 : f32 to vector<32x32xf32>
    %428 = arith.mulf %427, %417 : vector<32x32xf32>
    %429 = arith.addf %412, %428 : vector<32x32xf32>
    %c3_191 = arith.constant 3 : index
    %c25_192 = arith.constant 25 : index
    %430 = memref.load %arg4[%c3_191, %c25_192] : memref<4x36xf32, #tpu.memory_space<smem>>
    %431 = vector.broadcast %430 : f32 to vector<32x32xf32>
    %432 = arith.mulf %431, %417 : vector<32x32xf32>
    %433 = arith.addf %416, %432 : vector<32x32xf32>
    %434 = vector.extract_strided_slice %329 {offsets = [0, 2], sizes = [34, 32], strides = [1, 1]} : vector<34x34xf32> to vector<34x32xf32>
    %435 = vector.extract_strided_slice %434 {offsets = [0, 0], sizes = [32, 32], strides = [1, 1]} : vector<34x32xf32> to vector<32x32xf32>
    %c0_193 = arith.constant 0 : index
    %c20 = arith.constant 20 : index
    %436 = memref.load %arg4[%c0_193, %c20] : memref<4x36xf32, #tpu.memory_space<smem>>
    %437 = vector.broadcast %436 : f32 to vector<32x32xf32>
    %438 = arith.mulf %437, %435 : vector<32x32xf32>
    %439 = arith.addf %421, %438 : vector<32x32xf32>
    %c1_194 = arith.constant 1 : index
    %c20_195 = arith.constant 20 : index
    %440 = memref.load %arg4[%c1_194, %c20_195] : memref<4x36xf32, #tpu.memory_space<smem>>
    %441 = vector.broadcast %440 : f32 to vector<32x32xf32>
    %442 = arith.mulf %441, %435 : vector<32x32xf32>
    %443 = arith.addf %425, %442 : vector<32x32xf32>
    %c2_196 = arith.constant 2 : index
    %c20_197 = arith.constant 20 : index
    %444 = memref.load %arg4[%c2_196, %c20_197] : memref<4x36xf32, #tpu.memory_space<smem>>
    %445 = vector.broadcast %444 : f32 to vector<32x32xf32>
    %446 = arith.mulf %445, %435 : vector<32x32xf32>
    %447 = arith.addf %429, %446 : vector<32x32xf32>
    %c3_198 = arith.constant 3 : index
    %c20_199 = arith.constant 20 : index
    %448 = memref.load %arg4[%c3_198, %c20_199] : memref<4x36xf32, #tpu.memory_space<smem>>
    %449 = vector.broadcast %448 : f32 to vector<32x32xf32>
    %450 = arith.mulf %449, %435 : vector<32x32xf32>
    %451 = arith.addf %433, %450 : vector<32x32xf32>
    %452 = vector.extract_strided_slice %434 {offsets = [1, 0], sizes = [32, 32], strides = [1, 1]} : vector<34x32xf32> to vector<32x32xf32>
    %c0_200 = arith.constant 0 : index
    %c23 = arith.constant 23 : index
    %453 = memref.load %arg4[%c0_200, %c23] : memref<4x36xf32, #tpu.memory_space<smem>>
    %454 = vector.broadcast %453 : f32 to vector<32x32xf32>
    %455 = arith.mulf %454, %452 : vector<32x32xf32>
    %456 = arith.addf %439, %455 : vector<32x32xf32>
    %c1_201 = arith.constant 1 : index
    %c23_202 = arith.constant 23 : index
    %457 = memref.load %arg4[%c1_201, %c23_202] : memref<4x36xf32, #tpu.memory_space<smem>>
    %458 = vector.broadcast %457 : f32 to vector<32x32xf32>
    %459 = arith.mulf %458, %452 : vector<32x32xf32>
    %460 = arith.addf %443, %459 : vector<32x32xf32>
    %c2_203 = arith.constant 2 : index
    %c23_204 = arith.constant 23 : index
    %461 = memref.load %arg4[%c2_203, %c23_204] : memref<4x36xf32, #tpu.memory_space<smem>>
    %462 = vector.broadcast %461 : f32 to vector<32x32xf32>
    %463 = arith.mulf %462, %452 : vector<32x32xf32>
    %464 = arith.addf %447, %463 : vector<32x32xf32>
    %c3_205 = arith.constant 3 : index
    %c23_206 = arith.constant 23 : index
    %465 = memref.load %arg4[%c3_205, %c23_206] : memref<4x36xf32, #tpu.memory_space<smem>>
    %466 = vector.broadcast %465 : f32 to vector<32x32xf32>
    %467 = arith.mulf %466, %452 : vector<32x32xf32>
    %468 = arith.addf %451, %467 : vector<32x32xf32>
    %469 = vector.extract_strided_slice %434 {offsets = [2, 0], sizes = [32, 32], strides = [1, 1]} : vector<34x32xf32> to vector<32x32xf32>
    %c0_207 = arith.constant 0 : index
    %c26 = arith.constant 26 : index
    %470 = memref.load %arg4[%c0_207, %c26] : memref<4x36xf32, #tpu.memory_space<smem>>
    %471 = vector.broadcast %470 : f32 to vector<32x32xf32>
    %472 = arith.mulf %471, %469 : vector<32x32xf32>
    %473 = arith.addf %456, %472 : vector<32x32xf32>
    %c1_208 = arith.constant 1 : index
    %c26_209 = arith.constant 26 : index
    %474 = memref.load %arg4[%c1_208, %c26_209] : memref<4x36xf32, #tpu.memory_space<smem>>
    %475 = vector.broadcast %474 : f32 to vector<32x32xf32>
    %476 = arith.mulf %475, %469 : vector<32x32xf32>
    %477 = arith.addf %460, %476 : vector<32x32xf32>
    %c2_210 = arith.constant 2 : index
    %c26_211 = arith.constant 26 : index
    %478 = memref.load %arg4[%c2_210, %c26_211] : memref<4x36xf32, #tpu.memory_space<smem>>
    %479 = vector.broadcast %478 : f32 to vector<32x32xf32>
    %480 = arith.mulf %479, %469 : vector<32x32xf32>
    %481 = arith.addf %464, %480 : vector<32x32xf32>
    %c3_212 = arith.constant 3 : index
    %c26_213 = arith.constant 26 : index
    %482 = memref.load %arg4[%c3_212, %c26_213] : memref<4x36xf32, #tpu.memory_space<smem>>
    %483 = vector.broadcast %482 : f32 to vector<32x32xf32>
    %484 = arith.mulf %483, %469 : vector<32x32xf32>
    %485 = arith.addf %468, %484 : vector<32x32xf32>
    %c0_214 = arith.constant 0 : index
    %c3_215 = arith.constant 3 : index
    %c0_216 = arith.constant 0 : index
    %c0_217 = arith.constant 0 : index
    %486 = vector.load %arg1[%c0_214, %c3_215, %c0_216, %c0_217] : memref<1x4x16x16xf32, #tpu.memory_space<vmem>>, vector<1x1x16x16xf32>
    %487 = vector.shape_cast %486 : vector<1x1x16x16xf32> to vector<16x16xf32>
    %cst_218 = arith.constant dense<0.000000e+00> : vector<34x16xf32>
    %488 = tpu.matmul %0, %487, %cst_218 {dimension_numbers = #tpu.dot_dimension_numbers<[1], [0], [0], [1], [0, 0, 1, 1], [], []>, precision = #tpu.contract_precision<fp32>} : vector<34x16xf32>, vector<16x16xf32>, vector<34x16xf32> -> vector<34x16xf32>
    %cst_219 = arith.constant dense<0.000000e+00> : vector<34x34xf32>
    %489 = tpu.matmul %488, %1, %cst_219 {dimension_numbers = #tpu.dot_dimension_numbers<[1], [0], [0], [1], [0, 0, 1, 1], [], []>, precision = #tpu.contract_precision<fp32>} : vector<34x16xf32>, vector<16x34xf32>, vector<34x34xf32> -> vector<34x34xf32>
    %490 = vector.extract_strided_slice %489 {offsets = [0, 0], sizes = [34, 32], strides = [1, 1]} : vector<34x34xf32> to vector<34x32xf32>
    %491 = vector.extract_strided_slice %490 {offsets = [0, 0], sizes = [32, 32], strides = [1, 1]} : vector<34x32xf32> to vector<32x32xf32>
    %c0_220 = arith.constant 0 : index
    %c27 = arith.constant 27 : index
    %492 = memref.load %arg4[%c0_220, %c27] : memref<4x36xf32, #tpu.memory_space<smem>>
    %493 = vector.broadcast %492 : f32 to vector<32x32xf32>
    %494 = arith.mulf %493, %491 : vector<32x32xf32>
    %495 = arith.addf %473, %494 : vector<32x32xf32>
    %c1_221 = arith.constant 1 : index
    %c27_222 = arith.constant 27 : index
    %496 = memref.load %arg4[%c1_221, %c27_222] : memref<4x36xf32, #tpu.memory_space<smem>>
    %497 = vector.broadcast %496 : f32 to vector<32x32xf32>
    %498 = arith.mulf %497, %491 : vector<32x32xf32>
    %499 = arith.addf %477, %498 : vector<32x32xf32>
    %c2_223 = arith.constant 2 : index
    %c27_224 = arith.constant 27 : index
    %500 = memref.load %arg4[%c2_223, %c27_224] : memref<4x36xf32, #tpu.memory_space<smem>>
    %501 = vector.broadcast %500 : f32 to vector<32x32xf32>
    %502 = arith.mulf %501, %491 : vector<32x32xf32>
    %503 = arith.addf %481, %502 : vector<32x32xf32>
    %c3_225 = arith.constant 3 : index
    %c27_226 = arith.constant 27 : index
    %504 = memref.load %arg4[%c3_225, %c27_226] : memref<4x36xf32, #tpu.memory_space<smem>>
    %505 = vector.broadcast %504 : f32 to vector<32x32xf32>
    %506 = arith.mulf %505, %491 : vector<32x32xf32>
    %507 = arith.addf %485, %506 : vector<32x32xf32>
    %508 = vector.extract_strided_slice %490 {offsets = [1, 0], sizes = [32, 32], strides = [1, 1]} : vector<34x32xf32> to vector<32x32xf32>
    %c0_227 = arith.constant 0 : index
    %c30 = arith.constant 30 : index
    %509 = memref.load %arg4[%c0_227, %c30] : memref<4x36xf32, #tpu.memory_space<smem>>
    %510 = vector.broadcast %509 : f32 to vector<32x32xf32>
    %511 = arith.mulf %510, %508 : vector<32x32xf32>
    %512 = arith.addf %495, %511 : vector<32x32xf32>
    %c1_228 = arith.constant 1 : index
    %c30_229 = arith.constant 30 : index
    %513 = memref.load %arg4[%c1_228, %c30_229] : memref<4x36xf32, #tpu.memory_space<smem>>
    %514 = vector.broadcast %513 : f32 to vector<32x32xf32>
    %515 = arith.mulf %514, %508 : vector<32x32xf32>
    %516 = arith.addf %499, %515 : vector<32x32xf32>
    %c2_230 = arith.constant 2 : index
    %c30_231 = arith.constant 30 : index
    %517 = memref.load %arg4[%c2_230, %c30_231] : memref<4x36xf32, #tpu.memory_space<smem>>
    %518 = vector.broadcast %517 : f32 to vector<32x32xf32>
    %519 = arith.mulf %518, %508 : vector<32x32xf32>
    %520 = arith.addf %503, %519 : vector<32x32xf32>
    %c3_232 = arith.constant 3 : index
    %c30_233 = arith.constant 30 : index
    %521 = memref.load %arg4[%c3_232, %c30_233] : memref<4x36xf32, #tpu.memory_space<smem>>
    %522 = vector.broadcast %521 : f32 to vector<32x32xf32>
    %523 = arith.mulf %522, %508 : vector<32x32xf32>
    %524 = arith.addf %507, %523 : vector<32x32xf32>
    %525 = vector.extract_strided_slice %490 {offsets = [2, 0], sizes = [32, 32], strides = [1, 1]} : vector<34x32xf32> to vector<32x32xf32>
    %c0_234 = arith.constant 0 : index
    %c33 = arith.constant 33 : index
    %526 = memref.load %arg4[%c0_234, %c33] : memref<4x36xf32, #tpu.memory_space<smem>>
    %527 = vector.broadcast %526 : f32 to vector<32x32xf32>
    %528 = arith.mulf %527, %525 : vector<32x32xf32>
    %529 = arith.addf %512, %528 : vector<32x32xf32>
    %c1_235 = arith.constant 1 : index
    %c33_236 = arith.constant 33 : index
    %530 = memref.load %arg4[%c1_235, %c33_236] : memref<4x36xf32, #tpu.memory_space<smem>>
    %531 = vector.broadcast %530 : f32 to vector<32x32xf32>
    %532 = arith.mulf %531, %525 : vector<32x32xf32>
    %533 = arith.addf %516, %532 : vector<32x32xf32>
    %c2_237 = arith.constant 2 : index
    %c33_238 = arith.constant 33 : index
    %534 = memref.load %arg4[%c2_237, %c33_238] : memref<4x36xf32, #tpu.memory_space<smem>>
    %535 = vector.broadcast %534 : f32 to vector<32x32xf32>
    %536 = arith.mulf %535, %525 : vector<32x32xf32>
    %537 = arith.addf %520, %536 : vector<32x32xf32>
    %c3_239 = arith.constant 3 : index
    %c33_240 = arith.constant 33 : index
    %538 = memref.load %arg4[%c3_239, %c33_240] : memref<4x36xf32, #tpu.memory_space<smem>>
    %539 = vector.broadcast %538 : f32 to vector<32x32xf32>
    %540 = arith.mulf %539, %525 : vector<32x32xf32>
    %541 = arith.addf %524, %540 : vector<32x32xf32>
    %542 = vector.extract_strided_slice %489 {offsets = [0, 1], sizes = [34, 32], strides = [1, 1]} : vector<34x34xf32> to vector<34x32xf32>
    %543 = vector.extract_strided_slice %542 {offsets = [0, 0], sizes = [32, 32], strides = [1, 1]} : vector<34x32xf32> to vector<32x32xf32>
    %c0_241 = arith.constant 0 : index
    %c28 = arith.constant 28 : index
    %544 = memref.load %arg4[%c0_241, %c28] : memref<4x36xf32, #tpu.memory_space<smem>>
    %545 = vector.broadcast %544 : f32 to vector<32x32xf32>
    %546 = arith.mulf %545, %543 : vector<32x32xf32>
    %547 = arith.addf %529, %546 : vector<32x32xf32>
    %c1_242 = arith.constant 1 : index
    %c28_243 = arith.constant 28 : index
    %548 = memref.load %arg4[%c1_242, %c28_243] : memref<4x36xf32, #tpu.memory_space<smem>>
    %549 = vector.broadcast %548 : f32 to vector<32x32xf32>
    %550 = arith.mulf %549, %543 : vector<32x32xf32>
    %551 = arith.addf %533, %550 : vector<32x32xf32>
    %c2_244 = arith.constant 2 : index
    %c28_245 = arith.constant 28 : index
    %552 = memref.load %arg4[%c2_244, %c28_245] : memref<4x36xf32, #tpu.memory_space<smem>>
    %553 = vector.broadcast %552 : f32 to vector<32x32xf32>
    %554 = arith.mulf %553, %543 : vector<32x32xf32>
    %555 = arith.addf %537, %554 : vector<32x32xf32>
    %c3_246 = arith.constant 3 : index
    %c28_247 = arith.constant 28 : index
    %556 = memref.load %arg4[%c3_246, %c28_247] : memref<4x36xf32, #tpu.memory_space<smem>>
    %557 = vector.broadcast %556 : f32 to vector<32x32xf32>
    %558 = arith.mulf %557, %543 : vector<32x32xf32>
    %559 = arith.addf %541, %558 : vector<32x32xf32>
    %560 = vector.extract_strided_slice %542 {offsets = [1, 0], sizes = [32, 32], strides = [1, 1]} : vector<34x32xf32> to vector<32x32xf32>
    %c0_248 = arith.constant 0 : index
    %c31 = arith.constant 31 : index
    %561 = memref.load %arg4[%c0_248, %c31] : memref<4x36xf32, #tpu.memory_space<smem>>
    %562 = vector.broadcast %561 : f32 to vector<32x32xf32>
    %563 = arith.mulf %562, %560 : vector<32x32xf32>
    %564 = arith.addf %547, %563 : vector<32x32xf32>
    %c1_249 = arith.constant 1 : index
    %c31_250 = arith.constant 31 : index
    %565 = memref.load %arg4[%c1_249, %c31_250] : memref<4x36xf32, #tpu.memory_space<smem>>
    %566 = vector.broadcast %565 : f32 to vector<32x32xf32>
    %567 = arith.mulf %566, %560 : vector<32x32xf32>
    %568 = arith.addf %551, %567 : vector<32x32xf32>
    %c2_251 = arith.constant 2 : index
    %c31_252 = arith.constant 31 : index
    %569 = memref.load %arg4[%c2_251, %c31_252] : memref<4x36xf32, #tpu.memory_space<smem>>
    %570 = vector.broadcast %569 : f32 to vector<32x32xf32>
    %571 = arith.mulf %570, %560 : vector<32x32xf32>
    %572 = arith.addf %555, %571 : vector<32x32xf32>
    %c3_253 = arith.constant 3 : index
    %c31_254 = arith.constant 31 : index
    %573 = memref.load %arg4[%c3_253, %c31_254] : memref<4x36xf32, #tpu.memory_space<smem>>
    %574 = vector.broadcast %573 : f32 to vector<32x32xf32>
    %575 = arith.mulf %574, %560 : vector<32x32xf32>
    %576 = arith.addf %559, %575 : vector<32x32xf32>
    %577 = vector.extract_strided_slice %542 {offsets = [2, 0], sizes = [32, 32], strides = [1, 1]} : vector<34x32xf32> to vector<32x32xf32>
    %c0_255 = arith.constant 0 : index
    %c34 = arith.constant 34 : index
    %578 = memref.load %arg4[%c0_255, %c34] : memref<4x36xf32, #tpu.memory_space<smem>>
    %579 = vector.broadcast %578 : f32 to vector<32x32xf32>
    %580 = arith.mulf %579, %577 : vector<32x32xf32>
    %581 = arith.addf %564, %580 : vector<32x32xf32>
    %c1_256 = arith.constant 1 : index
    %c34_257 = arith.constant 34 : index
    %582 = memref.load %arg4[%c1_256, %c34_257] : memref<4x36xf32, #tpu.memory_space<smem>>
    %583 = vector.broadcast %582 : f32 to vector<32x32xf32>
    %584 = arith.mulf %583, %577 : vector<32x32xf32>
    %585 = arith.addf %568, %584 : vector<32x32xf32>
    %c2_258 = arith.constant 2 : index
    %c34_259 = arith.constant 34 : index
    %586 = memref.load %arg4[%c2_258, %c34_259] : memref<4x36xf32, #tpu.memory_space<smem>>
    %587 = vector.broadcast %586 : f32 to vector<32x32xf32>
    %588 = arith.mulf %587, %577 : vector<32x32xf32>
    %589 = arith.addf %572, %588 : vector<32x32xf32>
    %c3_260 = arith.constant 3 : index
    %c34_261 = arith.constant 34 : index
    %590 = memref.load %arg4[%c3_260, %c34_261] : memref<4x36xf32, #tpu.memory_space<smem>>
    %591 = vector.broadcast %590 : f32 to vector<32x32xf32>
    %592 = arith.mulf %591, %577 : vector<32x32xf32>
    %593 = arith.addf %576, %592 : vector<32x32xf32>
    %594 = vector.extract_strided_slice %489 {offsets = [0, 2], sizes = [34, 32], strides = [1, 1]} : vector<34x34xf32> to vector<34x32xf32>
    %595 = vector.extract_strided_slice %594 {offsets = [0, 0], sizes = [32, 32], strides = [1, 1]} : vector<34x32xf32> to vector<32x32xf32>
    %c0_262 = arith.constant 0 : index
    %c29 = arith.constant 29 : index
    %596 = memref.load %arg4[%c0_262, %c29] : memref<4x36xf32, #tpu.memory_space<smem>>
    %597 = vector.broadcast %596 : f32 to vector<32x32xf32>
    %598 = arith.mulf %597, %595 : vector<32x32xf32>
    %599 = arith.addf %581, %598 : vector<32x32xf32>
    %c1_263 = arith.constant 1 : index
    %c29_264 = arith.constant 29 : index
    %600 = memref.load %arg4[%c1_263, %c29_264] : memref<4x36xf32, #tpu.memory_space<smem>>
    %601 = vector.broadcast %600 : f32 to vector<32x32xf32>
    %602 = arith.mulf %601, %595 : vector<32x32xf32>
    %603 = arith.addf %585, %602 : vector<32x32xf32>
    %c2_265 = arith.constant 2 : index
    %c29_266 = arith.constant 29 : index
    %604 = memref.load %arg4[%c2_265, %c29_266] : memref<4x36xf32, #tpu.memory_space<smem>>
    %605 = vector.broadcast %604 : f32 to vector<32x32xf32>
    %606 = arith.mulf %605, %595 : vector<32x32xf32>
    %607 = arith.addf %589, %606 : vector<32x32xf32>
    %c3_267 = arith.constant 3 : index
    %c29_268 = arith.constant 29 : index
    %608 = memref.load %arg4[%c3_267, %c29_268] : memref<4x36xf32, #tpu.memory_space<smem>>
    %609 = vector.broadcast %608 : f32 to vector<32x32xf32>
    %610 = arith.mulf %609, %595 : vector<32x32xf32>
    %611 = arith.addf %593, %610 : vector<32x32xf32>
    %612 = vector.extract_strided_slice %594 {offsets = [1, 0], sizes = [32, 32], strides = [1, 1]} : vector<34x32xf32> to vector<32x32xf32>
    %c0_269 = arith.constant 0 : index
    %c32 = arith.constant 32 : index
    %613 = memref.load %arg4[%c0_269, %c32] : memref<4x36xf32, #tpu.memory_space<smem>>
    %614 = vector.broadcast %613 : f32 to vector<32x32xf32>
    %615 = arith.mulf %614, %612 : vector<32x32xf32>
    %616 = arith.addf %599, %615 : vector<32x32xf32>
    %c1_270 = arith.constant 1 : index
    %c32_271 = arith.constant 32 : index
    %617 = memref.load %arg4[%c1_270, %c32_271] : memref<4x36xf32, #tpu.memory_space<smem>>
    %618 = vector.broadcast %617 : f32 to vector<32x32xf32>
    %619 = arith.mulf %618, %612 : vector<32x32xf32>
    %620 = arith.addf %603, %619 : vector<32x32xf32>
    %c2_272 = arith.constant 2 : index
    %c32_273 = arith.constant 32 : index
    %621 = memref.load %arg4[%c2_272, %c32_273] : memref<4x36xf32, #tpu.memory_space<smem>>
    %622 = vector.broadcast %621 : f32 to vector<32x32xf32>
    %623 = arith.mulf %622, %612 : vector<32x32xf32>
    %624 = arith.addf %607, %623 : vector<32x32xf32>
    %c3_274 = arith.constant 3 : index
    %c32_275 = arith.constant 32 : index
    %625 = memref.load %arg4[%c3_274, %c32_275] : memref<4x36xf32, #tpu.memory_space<smem>>
    %626 = vector.broadcast %625 : f32 to vector<32x32xf32>
    %627 = arith.mulf %626, %612 : vector<32x32xf32>
    %628 = arith.addf %611, %627 : vector<32x32xf32>
    %629 = vector.extract_strided_slice %594 {offsets = [2, 0], sizes = [32, 32], strides = [1, 1]} : vector<34x32xf32> to vector<32x32xf32>
    %c0_276 = arith.constant 0 : index
    %c35 = arith.constant 35 : index
    %630 = memref.load %arg4[%c0_276, %c35] : memref<4x36xf32, #tpu.memory_space<smem>>
    %631 = vector.broadcast %630 : f32 to vector<32x32xf32>
    %632 = arith.mulf %631, %629 : vector<32x32xf32>
    %633 = arith.addf %616, %632 : vector<32x32xf32>
    %c1_277 = arith.constant 1 : index
    %c35_278 = arith.constant 35 : index
    %634 = memref.load %arg4[%c1_277, %c35_278] : memref<4x36xf32, #tpu.memory_space<smem>>
    %635 = vector.broadcast %634 : f32 to vector<32x32xf32>
    %636 = arith.mulf %635, %629 : vector<32x32xf32>
    %637 = arith.addf %620, %636 : vector<32x32xf32>
    %c2_279 = arith.constant 2 : index
    %c35_280 = arith.constant 35 : index
    %638 = memref.load %arg4[%c2_279, %c35_280] : memref<4x36xf32, #tpu.memory_space<smem>>
    %639 = vector.broadcast %638 : f32 to vector<32x32xf32>
    %640 = arith.mulf %639, %629 : vector<32x32xf32>
    %641 = arith.addf %624, %640 : vector<32x32xf32>
    %c3_281 = arith.constant 3 : index
    %c35_282 = arith.constant 35 : index
    %642 = memref.load %arg4[%c3_281, %c35_282] : memref<4x36xf32, #tpu.memory_space<smem>>
    %643 = vector.broadcast %642 : f32 to vector<32x32xf32>
    %644 = arith.mulf %643, %629 : vector<32x32xf32>
    %645 = arith.addf %628, %644 : vector<32x32xf32>
    %646 = vector.shape_cast %633 : vector<32x32xf32> to vector<1x32x32xf32>
    %cst_283 = arith.constant dense<0.000000e+00> : vector<1xf32>
    %647 = vector.multi_reduction <add>, %646, %cst_283 [1, 2] : vector<1x32x32xf32> to vector<1xf32>
    %648 = vector.shape_cast %647 : vector<1xf32> to vector<1x1x1xf32>
    %649 = vector.extract %648[0, 0, 0] : f32 from vector<1x1x1xf32>
    %cst_284 = arith.constant 1.024000e+03 : f32
    %650 = arith.divf %649, %cst_284 : f32
    %651 = vector.broadcast %650 : f32 to vector<32x32xf32>
    %652 = arith.subf %633, %651 : vector<32x32xf32>
    %653 = vector.broadcast %650 : f32 to vector<32x32xf32>
    %654 = arith.subf %633, %653 : vector<32x32xf32>
    %655 = arith.mulf %652, %654 : vector<32x32xf32>
    %656 = vector.shape_cast %655 : vector<32x32xf32> to vector<1x32x32xf32>
    %cst_285 = arith.constant dense<0.000000e+00> : vector<1xf32>
    %657 = vector.multi_reduction <add>, %656, %cst_285 [1, 2] : vector<1x32x32xf32> to vector<1xf32>
    %658 = vector.shape_cast %657 : vector<1xf32> to vector<1x1x1xf32>
    %659 = vector.extract %658[0, 0, 0] : f32 from vector<1x1x1xf32>
    %cst_286 = arith.constant 1.024000e+03 : f32
    %660 = arith.divf %659, %cst_286 : f32
    %661 = vector.broadcast %650 : f32 to vector<32x32xf32>
    %662 = arith.subf %633, %661 : vector<32x32xf32>
    %cst_287 = arith.constant 9.99999974E-6 : f32
    %663 = arith.addf %660, %cst_287 : f32
    %664 = math.rsqrt %663 : f32
    %665 = vector.broadcast %664 : f32 to vector<32x32xf32>
    %666 = arith.mulf %662, %665 : vector<32x32xf32>
    %cst_288 = arith.constant 2.000000e-01 : f32
    %667 = vector.broadcast %cst_288 : f32 to vector<32x32xf32>
    %668 = arith.mulf %667, %666 : vector<32x32xf32>
    %669 = arith.maximumf %666, %668 : vector<32x32xf32>
    %c0_289 = arith.constant 0 : index
    %c0_290 = arith.constant 0 : index
    %c0_291 = arith.constant 0 : index
    %c0_292 = arith.constant 0 : index
    %670 = vector.load %arg5[%c0_289, %c0_290, %c0_291, %c0_292] : memref<1x4x32x32xf32, #tpu.memory_space<vmem>>, vector<1x1x32x32xf32>
    %671 = vector.shape_cast %670 : vector<1x1x32x32xf32> to vector<32x32xf32>
    %672 = vector.shape_cast %669 : vector<32x32xf32> to vector<1x1x32x32xf32>
    tpu.vector_store %arg5[%c0_289, %c0_290, %c0_291, %c0_292], %672 {strides = array<i32>} : memref<1x4x32x32xf32, #tpu.memory_space<vmem>>, vector<1x1x32x32xf32>,
    %673 = vector.shape_cast %637 : vector<32x32xf32> to vector<1x32x32xf32>
    %cst_293 = arith.constant dense<0.000000e+00> : vector<1xf32>
    %674 = vector.multi_reduction <add>, %673, %cst_293 [1, 2] : vector<1x32x32xf32> to vector<1xf32>
    %675 = vector.shape_cast %674 : vector<1xf32> to vector<1x1x1xf32>
    %676 = vector.extract %675[0, 0, 0] : f32 from vector<1x1x1xf32>
    %cst_294 = arith.constant 1.024000e+03 : f32
    %677 = arith.divf %676, %cst_294 : f32
    %678 = vector.broadcast %677 : f32 to vector<32x32xf32>
    %679 = arith.subf %637, %678 : vector<32x32xf32>
    %680 = vector.broadcast %677 : f32 to vector<32x32xf32>
    %681 = arith.subf %637, %680 : vector<32x32xf32>
    %682 = arith.mulf %679, %681 : vector<32x32xf32>
    %683 = vector.shape_cast %682 : vector<32x32xf32> to vector<1x32x32xf32>
    %cst_295 = arith.constant dense<0.000000e+00> : vector<1xf32>
    %684 = vector.multi_reduction <add>, %683, %cst_295 [1, 2] : vector<1x32x32xf32> to vector<1xf32>
    %685 = vector.shape_cast %684 : vector<1xf32> to vector<1x1x1xf32>
    %686 = vector.extract %685[0, 0, 0] : f32 from vector<1x1x1xf32>
    %cst_296 = arith.constant 1.024000e+03 : f32
    %687 = arith.divf %686, %cst_296 : f32
    %688 = vector.broadcast %677 : f32 to vector<32x32xf32>
    %689 = arith.subf %637, %688 : vector<32x32xf32>
    %cst_297 = arith.constant 9.99999974E-6 : f32
    %690 = arith.addf %687, %cst_297 : f32
    %691 = math.rsqrt %690 : f32
    %692 = vector.broadcast %691 : f32 to vector<32x32xf32>
    %693 = arith.mulf %689, %692 : vector<32x32xf32>
    %cst_298 = arith.constant 2.000000e-01 : f32
    %694 = vector.broadcast %cst_298 : f32 to vector<32x32xf32>
    %695 = arith.mulf %694, %693 : vector<32x32xf32>
    %696 = arith.maximumf %693, %695 : vector<32x32xf32>
    %c0_299 = arith.constant 0 : index
    %c1_300 = arith.constant 1 : index
    %c0_301 = arith.constant 0 : index
    %c0_302 = arith.constant 0 : index
    %697 = vector.load %arg5[%c0_299, %c1_300, %c0_301, %c0_302] : memref<1x4x32x32xf32, #tpu.memory_space<vmem>>, vector<1x1x32x32xf32>
    %698 = vector.shape_cast %697 : vector<1x1x32x32xf32> to vector<32x32xf32>
    %699 = vector.shape_cast %696 : vector<32x32xf32> to vector<1x1x32x32xf32>
    tpu.vector_store %arg5[%c0_299, %c1_300, %c0_301, %c0_302], %699 {strides = array<i32>} : memref<1x4x32x32xf32, #tpu.memory_space<vmem>>, vector<1x1x32x32xf32>,
    %700 = vector.shape_cast %641 : vector<32x32xf32> to vector<1x32x32xf32>
    %cst_303 = arith.constant dense<0.000000e+00> : vector<1xf32>
    %701 = vector.multi_reduction <add>, %700, %cst_303 [1, 2] : vector<1x32x32xf32> to vector<1xf32>
    %702 = vector.shape_cast %701 : vector<1xf32> to vector<1x1x1xf32>
    %703 = vector.extract %702[0, 0, 0] : f32 from vector<1x1x1xf32>
    %cst_304 = arith.constant 1.024000e+03 : f32
    %704 = arith.divf %703, %cst_304 : f32
    %705 = vector.broadcast %704 : f32 to vector<32x32xf32>
    %706 = arith.subf %641, %705 : vector<32x32xf32>
    %707 = vector.broadcast %704 : f32 to vector<32x32xf32>
    %708 = arith.subf %641, %707 : vector<32x32xf32>
    %709 = arith.mulf %706, %708 : vector<32x32xf32>
    %710 = vector.shape_cast %709 : vector<32x32xf32> to vector<1x32x32xf32>
    %cst_305 = arith.constant dense<0.000000e+00> : vector<1xf32>
    %711 = vector.multi_reduction <add>, %710, %cst_305 [1, 2] : vector<1x32x32xf32> to vector<1xf32>
    %712 = vector.shape_cast %711 : vector<1xf32> to vector<1x1x1xf32>
    %713 = vector.extract %712[0, 0, 0] : f32 from vector<1x1x1xf32>
    %cst_306 = arith.constant 1.024000e+03 : f32
    %714 = arith.divf %713, %cst_306 : f32
    %715 = vector.broadcast %704 : f32 to vector<32x32xf32>
    %716 = arith.subf %641, %715 : vector<32x32xf32>
    %cst_307 = arith.constant 9.99999974E-6 : f32
    %717 = arith.addf %714, %cst_307 : f32
    %718 = math.rsqrt %717 : f32
    %719 = vector.broadcast %718 : f32 to vector<32x32xf32>
    %720 = arith.mulf %716, %719 : vector<32x32xf32>
    %cst_308 = arith.constant 2.000000e-01 : f32
    %721 = vector.broadcast %cst_308 : f32 to vector<32x32xf32>
    %722 = arith.mulf %721, %720 : vector<32x32xf32>
    %723 = arith.maximumf %720, %722 : vector<32x32xf32>
    %c0_309 = arith.constant 0 : index
    %c2_310 = arith.constant 2 : index
    %c0_311 = arith.constant 0 : index
    %c0_312 = arith.constant 0 : index
    %724 = vector.load %arg5[%c0_309, %c2_310, %c0_311, %c0_312] : memref<1x4x32x32xf32, #tpu.memory_space<vmem>>, vector<1x1x32x32xf32>
    %725 = vector.shape_cast %724 : vector<1x1x32x32xf32> to vector<32x32xf32>
    %726 = vector.shape_cast %723 : vector<32x32xf32> to vector<1x1x32x32xf32>
    tpu.vector_store %arg5[%c0_309, %c2_310, %c0_311, %c0_312], %726 {strides = array<i32>} : memref<1x4x32x32xf32, #tpu.memory_space<vmem>>, vector<1x1x32x32xf32>,
    %727 = vector.shape_cast %645 : vector<32x32xf32> to vector<1x32x32xf32>
    %cst_313 = arith.constant dense<0.000000e+00> : vector<1xf32>
    %728 = vector.multi_reduction <add>, %727, %cst_313 [1, 2] : vector<1x32x32xf32> to vector<1xf32>
    %729 = vector.shape_cast %728 : vector<1xf32> to vector<1x1x1xf32>
    %730 = vector.extract %729[0, 0, 0] : f32 from vector<1x1x1xf32>
    %cst_314 = arith.constant 1.024000e+03 : f32
    %731 = arith.divf %730, %cst_314 : f32
    %732 = vector.broadcast %731 : f32 to vector<32x32xf32>
    %733 = arith.subf %645, %732 : vector<32x32xf32>
    %734 = vector.broadcast %731 : f32 to vector<32x32xf32>
    %735 = arith.subf %645, %734 : vector<32x32xf32>
    %736 = arith.mulf %733, %735 : vector<32x32xf32>
    %737 = vector.shape_cast %736 : vector<32x32xf32> to vector<1x32x32xf32>
    %cst_315 = arith.constant dense<0.000000e+00> : vector<1xf32>
    %738 = vector.multi_reduction <add>, %737, %cst_315 [1, 2] : vector<1x32x32xf32> to vector<1xf32>
    %739 = vector.shape_cast %738 : vector<1xf32> to vector<1x1x1xf32>
    %740 = vector.extract %739[0, 0, 0] : f32 from vector<1x1x1xf32>
    %cst_316 = arith.constant 1.024000e+03 : f32
    %741 = arith.divf %740, %cst_316 : f32
    %742 = vector.broadcast %731 : f32 to vector<32x32xf32>
    %743 = arith.subf %645, %742 : vector<32x32xf32>
    %cst_317 = arith.constant 9.99999974E-6 : f32
    %744 = arith.addf %741, %cst_317 : f32
    %745 = math.rsqrt %744 : f32
    %746 = vector.broadcast %745 : f32 to vector<32x32xf32>
    %747 = arith.mulf %743, %746 : vector<32x32xf32>
    %cst_318 = arith.constant 2.000000e-01 : f32
    %748 = vector.broadcast %cst_318 : f32 to vector<32x32xf32>
    %749 = arith.mulf %748, %747 : vector<32x32xf32>
    %750 = arith.maximumf %747, %749 : vector<32x32xf32>
    %c0_319 = arith.constant 0 : index
    %c3_320 = arith.constant 3 : index
    %c0_321 = arith.constant 0 : index
    %c0_322 = arith.constant 0 : index
    %751 = vector.load %arg5[%c0_319, %c3_320, %c0_321, %c0_322] : memref<1x4x32x32xf32, #tpu.memory_space<vmem>>, vector<1x1x32x32xf32>
    %752 = vector.shape_cast %751 : vector<1x1x32x32xf32> to vector<32x32xf32>
    %753 = vector.shape_cast %750 : vector<32x32xf32> to vector<1x1x32x32xf32>
    tpu.vector_store %arg5[%c0_319, %c3_320, %c0_321, %c0_322], %753 {strides = array<i32>} : memref<1x4x32x32xf32, #tpu.memory_space<vmem>>, vector<1x1x32x32xf32>,
    return
  }
  func.func @transform_0(%arg0: i32) -> (i32, i32, i32, i32) {
    %c0_i32 = arith.constant 0 : i32
    %c0_i32_0 = arith.constant 0 : i32
    %c0_i32_1 = arith.constant 0 : i32
    %c0_i32_2 = arith.constant 0 : i32
    return %arg0, %c0_i32, %c0_i32_0, %c0_i32_1 : i32, i32, i32, i32
  }
  func.func @transform_1(%arg0: i32) -> (i32, i32) {
    %c0_i32 = arith.constant 0 : i32
    %c0_i32_0 = arith.constant 0 : i32
    %c0_i32_1 = arith.constant 0 : i32
    return %c0_i32, %c0_i32_0 : i32, i32
  }
  func.func @transform_2(%arg0: i32) -> (i32, i32) {
    %c0_i32 = arith.constant 0 : i32
    %c0_i32_0 = arith.constant 0 : i32
    %c0_i32_1 = arith.constant 0 : i32
    return %c0_i32, %c0_i32_0 : i32, i32
  }
  func.func @transform_3(%arg0: i32) -> (i32, i32) {
    %c0_i32 = arith.constant 0 : i32
    %c0_i32_0 = arith.constant 0 : i32
    %c0_i32_1 = arith.constant 0 : i32
    return %c0_i32, %c0_i32_0 : i32, i32
  }
  func.func @transform_4(%arg0: i32) -> (i32, i32, i32, i32) {
    %c0_i32 = arith.constant 0 : i32
    %c0_i32_0 = arith.constant 0 : i32
    %c0_i32_1 = arith.constant 0 : i32
    %c0_i32_2 = arith.constant 0 : i32
    return %arg0, %c0_i32, %c0_i32_0, %c0_i32_1 : i32, i32, i32, i32
  }
}

</mosaic_0001>

<bundles_post_ra>
// kernel: tpu_custom_call.1
= control target key start
LH: loop header
LB: loop body
LE: loop exit
PB: predicated region body
PF: predicated region fallthrough
CT: control target
= control target key end

     0   :  { %9 = vsyncpa [#allocation3], 0  ;;  %s17473_s0 = inlined_call_operand.hbm [shape: f32[2,4,16,16], index: 0, kind: input, shape index: {}]   ;;  %s17474_s1 = inlined_call_operand.vmem [shape: f32[34,16], index: 1, kind: input, shape index: {}]   ;;  %s17475_s2 = inlined_call_operand.vmem [shape: f32[16,34], index: 2, kind: input, shape index: {}]   ;;  %s17476_s3 = inlined_call_operand.vmem [shape: f32[4,36], index: 3, kind: input, shape index: {}]   ;;  %s17477_s4 = inlined_call_operand.hbm [shape: f32[2,4,32,32], index: 4, kind: output, shape index: {}]  }
   0x1   :  { %11 = vsyncpa [#allocation3 + $0x1], 0 }
   0x2   :  { %12 = vsyncpa [#allocation5], 0 }
   0x3   :  { %13 = vsyncpa [#allocation4], 0 }
   0x4   :  { %15 = vsyncpa [#allocation4 + $0x1], 0  ;;  %s12260_s15 = smov 0   ;;  %s12262_s16 = smov 0  }
   0x5   :  { %s12264_s17 = smov 0   ;;  %s12266_s18 = smov 0  }
   0x6 LB: > { %s12281_s19 = sadd.s32 4294967295, %s12221_s18   ;;  %s10037_s20 = sadd.s32 4294967294, %s12221_s18   ;;  %s12221_s18 = sphi %s12266_s18, %s18130_s18   ;;  %s12217_s17 = sphi %s12264_s17, %s18129_s17   ;;  %s12213_s16 = sphi %s12262_s16, %s18128_s16   ;;  %s12209_s15 = sphi %s12260_s15, %s18127_s15  }
   0x7   : > { %s12285_s21 = sadd.s32 1, %s12221_s18   ;;  %s28_s22 = sadd.s32 1, %s12217_s17 }
   0x8   : > { %s25_s23 = ssub.s32 %s12221_s18, %s12285_s21  ;;  %p35_p0 = scmp.ne.s32.totalorder %s12217_s17, %s12213_s16 }
   0x9   : > { %p26_p1 = scmp.eq.s32.totalorder %s25_s23, 0  ;;  %p36_p2 = scmp.eq.s32.totalorder %s12221_s18, 0 }
   0xa   : > { %p41_p3 = scmp.ne.s32.totalorder %s12213_s16, %s12209_s15  ;;  %p17479_p4 = scmp.eq.s32.totalorder %s12281_s19, 0 }
   0xb   : > { %s12297_s24 = scalar_select %p26_p1, %s12217_s17, %s28_s22  }
   0xc   : > { %p12299_p5 = por %p36_p2, %p35_p0  ;;  %p12305_p6 = por %p17479_p4, %p41_p3 }
   0xd   : > { %p128_p7 = scmp.eq.s32.totalorder %s12281_s19, 1  ;;  %p134_p8 = scmp.eq.s32.totalorder %s10037_s20, 1 }
   0xe   : > { %s17527_s26 = scalar_select %p12305_p6, 1, 0 }
   0xf   : > { %p10038_p9 = scmp.ge.s32.totalorder %s12221_s18, 1  ;;  %p141_p10 = scmp.lt.s32.totalorder %s12221_s18, 3 }
  0x10   : > { %p12312_p11 = por %p128_p7, %p35_p0  ;;  %p12316_p12 = por %p134_p8, %p41_p3 }
  0x11   : > { %p12320_p13 = pnand %p10038_p9, %p141_p10  ;;  %s160_s6 = sshll.u32 %s17476_s3, 4  ;;  %s161_s6 = int_to_ptr.vmem [resolvable:$true] %s160_s6 }
  0x12   : > { %s17528_s27 = scalar_select %p12312_p11, 1, 0 }
  0x13   : > { %s17529_s28 = scalar_select %p12316_p12, 1, 0 }
  0x14   : > { %p12040_p1 = pneg %p12320_p13  ;;  %p12053_p2 = scmp.lt.s32.totalorder %s12221_s18, 2 }
  0x15   : > { %s171_s8 = sand.u32 1, %s12217_s17   ;;  %s12106_s11 = scalar_lea.vmem %s161_s6, 64 }
  0x16   : > { %p12333_p7 = pnand %p12040_p1, %p17479_p4  ;;  %p12340_p3 = pnand %p12053_p2, %p12299_p5 }
  0x17   : > { %s10041_s10 = sshll.u32 %s171_s8, 6  ;;  %p12107_p8 = scmp.ne.s32.totalorder %s161_s6, %s12106_s11 }
  0x18   : > { %p12108_p9 = pneg %p12333_p7  ;;  %p12114_p12 = scmp.lt.s32.totalorder %s161_s6, %s161_s6 }
  0x19   : > { %p12115_p11 = scmp.lt.s32.totalorder %s12106_s11, %s12106_s11 }
  0x1a   : > { %p12109_p10 = pnand %p12108_p9, %p12107_p8 }
  0x1b   : > { %p12116_p1 = por %p12115_p11, %p12114_p12 }
  0x1c   : > { %p12110_p0 = pneg %p12109_p10 }
  0x1e   : > { %p12117_p4 = pnand %p12116_p1, %p12110_p0 }
  0x20   : > { %12120 = shalt.err (!%p12117_p4)
}
  0x21   : > { %s12223_s12 = smov [#allocation6]   ;;  %s10214_s13 = sshll.u32 %s12221_s18, 10 }
  0x22   : > { %12043 = dma.vmem_to_smem (!%p12333_p7), %s161_s6, 64, %s12223_s12, [#allocation5]  }
  0x23   : > { %s175_s14 = scalar_lea.vmem [#allocation2], %s10041_s10  ;;  %s12352_s25 = scalar_lea.hbm %s17473_s0, %s10214_s13 }
  0x24   : > { %s182_s20 = sshll.u32 %s175_s14, 4  ;;  %s12356_s30 = scalar_lea.sflag [#allocation3], %s171_s8  ;;  %s12354_s20 = int_to_ptr.vmem [resolvable:$true] %s182_s20 }
  0x25   : > { %s12121_s5 = scalar_lea.hbm %s12352_s25, 1024  ;;  %p12123_p5 = pneg %p12340_p3 }
  0x26   : > { %p12122_p4 = scmp.ne.s32.totalorder %s12352_s25, %s12121_s5  ;;  %s12126_s10 = scalar_lea.hbm %s17473_s0, 2048 }
  0x27   : > { %p12127_p0 = scmp.lt.u32.totalorder %s12352_s25, %s17473_s0  ;;  %p12128_p2 = scmp.lt.u32.totalorder %s12126_s10, %s12121_s5 }
  0x28   : > { %p12124_p11 = pnand %p12123_p5, %p12122_p4  ;;  %p12130_p8 = scmp.lt.u32.totalorder %s12121_s5, %s12352_s25 }
  0x29   : > { %p12129_p7 = por %p12128_p2, %p12127_p0 }
  0x2a   : > { %p12125_p12 = pneg %p12124_p11 }
  0x2b   : > { %p12131_p9 = por %p12130_p8, %p12129_p7 }
  0x2d   : > { %p12132_p10 = pnand %p12131_p9, %p12125_p12 }
  0x2f   : > { %12135 = shalt.err (!%p12132_p10)
}
  0x30   : > { %s12136_s8 = scalar_lea.vmem %s12354_s20, 1024  ;;  %s12224_s13 = smov [#allocation2]  }
  0x31   : > { %p12137_p1 = scmp.ne.s32.totalorder %s12354_s20, %s12136_s8  ;;  %s12141_s14 = sshll.u32 %s12224_s13, 4  ;;  %s12142_s14 = int_to_ptr.vmem [resolvable:$false] %s12141_s14 }
  0x32   : > { %s12143_s22 = scalar_lea.vmem %s12142_s14, 2048  ;;  %p12144_p6 = scmp.lt.s32.totalorder %s12354_s20, %s12142_s14 }
  0x33   : > { %p12139_p4 = pnand %p12137_p1, %p12123_p5  ;;  %p12145_p0 = scmp.lt.s32.totalorder %s12143_s22, %s12136_s8 }
  0x35   : > { %p12140_p11 = pneg %p12139_p4  ;;  %p12146_p2 = por %p12145_p0, %p12144_p6 }
  0x37   : > { %p12147_p7 = pnand %p12146_p2, %p12140_p11 }
  0x39   : > { %12150 = shalt.err (!%p12147_p7)
}
  0x3a   : > { %s12225_s23 = smov 128   ;;  %s12226_s5 = smov 8  }
  0x3b   : > { %12047 = dma.hbm_to_vmem [thread:$0]  (!%p12340_p3), %s12352_s25, 1024, %s12354_s20, %s12356_s30, %s12225_s23, %s12225_s23, %s12226_s5  }
  0x3c   : > { %194 = sbr.rel (%p12320_p13) target bundleno = 2627 (0xa43), region = 36 }
  0x43   : > { %s12387_s6 = sand.u32 1, %s12213_s16   ;;  %p17533_p6 = scmp.ne.s32.totalorder %s17527_s26, 0 }
  0x44   : > { %s10045_s7 = sshll.u32 %s12387_s6, 6  ;;  %s197_s10 = scalar_lea.sflag [#allocation3], %s12387_s6 }
  0x45   : > { %s12391_s11 = scalar_lea.vmem [#allocation2], %s10045_s7 }
  0x46   : > { %12196 = dma.done.wait (%p17533_p6), %s197_s10, 1024  }
  0x47   : > { %12198 = vsyncadd (%p17533_p6), %s197_s10, 4294966272  ;;  %p17534_p3 = scmp.eq.s32.totalorder %s12281_s19, 0 }
  0x49   : > { %12200 = dma.done.wait (%p17534_p3), [#allocation5], 64   ;;  %p17535_p13 = pmov %p17534_p3 }
  0x4b   : > { %12202 = vsyncadd (%p17535_p13), [#allocation5], 4294967232 }
  0x4c   : > { %209 = sfence }
  0x4d   : > { %v237_v0 = vld [vmem:[%s12391_s11] sm:$0xff]  ;;  %v238_v1 = vld [vmem:[%s12391_s11 + $0x8] sm:$0xff]  ;;  %v17482_v3 = vmov 0.0|0.0   ;;  %vm12228_vm0 = vmmov 0   ;;  %v17485_v6 = vmov 0.0   ;;  %vm239_vm1 = vcmask 130048  }
  0x4e   : > { %v230_v2 = vld [vmem:[%s17474_s1] sm:$0xff]  ;;  %11464 = vmatprep.subr.bf16.mxu0 %v17482_v3  ;;  %v256_v4 = vand.u32 4294901760, %v237_v0  ;;  %v259_v5 = vand.u32 4294901760, %v238_v1  ;;  %10556 = vmatprep.mubr.msk.f32.mxu0 %vm12228_vm0, %v17485_v6  ;;  %v231_v7 = vld [vmem:[%s17474_s1 + $0x8] sm:$0xff]  ;;  %v232_v8 = vld [vmem:[%s17474_s1 + $0x10] sm:$0xff]  ;;  %s10071_s10 = sld [smem:[#allocation6 + $0x2]] }
  0x4f   : > { %v233_v9 = vld [vmem:[%s17474_s1 + $0x18] sm:$0xff]  ;;  %v241_v10 = vsel %vm239_vm1, %v230_v2, 0  ;;  %v244_v11 = vsel %vm239_vm1, %v231_v7, 0  ;;  %v247_v12 = vsel %vm239_vm1, %v232_v8, 0  ;;  %v234_v14 = vld [vmem:[%s17474_s1 + $0x20] sm:$0x3]  ;;  %11482 = vmatprep.subr.bf16.mxu1 %v17482_v3  ;;  %10670 = vmatprep.mubr.msk.f32.mxu1 %vm12228_vm0, %v17485_v6 }
  0x50   : > { %v250_v13 = vsel %vm239_vm1, %v233_v9, 0  ;;  %v12428_v15 = vpack.c.bf16 %v259_v5, %v256_v4  ;;  %v374_v16 = vsub.f32 %v237_v0, %v256_v4  ;;  %v381_v17 = vsub.f32 %v238_v1, %v259_v5  ;;  %v10083_v53 = vld [vmem:[%s12391_s11 + $0x10] sm:$0xff]  ;;  %v10084_v54 = vld [vmem:[%s12391_s11 + $0x18] sm:$0xff]  ;;  %v10121_v7 = vld [vmem:[%s12391_s11 + $0x20] sm:$0xff]  ;;  %s10060_s29 = sld [smem:[#allocation6 + $0x81]]  ;;  %s10072_s9 = sld [smem:[#allocation6 + $0x82]] }
  0x51   : > { %v12430_v18 = vand.u32 4294901760, %v241_v10  ;;  %v12432_v19 = vand.u32 4294901760, %v244_v11  ;;  %v12434_v20 = vand.u32 4294901760, %v247_v12  ;;  %v12436_v21 = vand.u32 4294901760, %v250_v13  ;;  %v10122_v8 = vld [vmem:[%s12391_s11 + $0x28] sm:$0xff]  ;;  %s10076_s26 = sld [smem:[#allocation6 + $0x85]] }
  0x52   : > { %11466 = vmatpush3.bf16.msra.mxu0 %v12428_v15  ;;  %v375_v23 = vand.u32 4294901760, %v374_v16  ;;  %v382_v24 = vand.u32 4294901760, %v381_v17  ;;  %v253_v25 = vsel %vm239_vm1, %v234_v14, 0  ;;  %v11471_v52 = vpack.c.bf16 %v381_v17, %v374_v16  ;;  %s10080_s20 = sld [smem:[#allocation6 + $0x88]]  ;;  %s10063_s25 = sld [smem:[#allocation6 + $0x4]] }
  0x53   : > { %v12440_v22 = vsub.f32 %v241_v10, %v12430_v18  ;;  %11467 = vmatprep.subr.bf16.mxu0 %v17482_v3  ;;  %v12445_v26 = vsub.f32 %v244_v11, %v12432_v19  ;;  %v12448_v27 = vsub.f32 %v247_v12, %v12434_v20  ;;  %v12457_v32 = vsub.f32 %v250_v13, %v12436_v21  ;;  %s10067_s30 = sld [smem:[#allocation6 + $0x7]]  ;;  %s10075_s12 = sld [smem:[#allocation6 + $0x5]] }
  0x54   : > { %v376_v29 = vsub.f32 %v374_v16, %v375_v23  ;;  %v383_v30 = vsub.f32 %v381_v17, %v382_v24  ;;  %v12459_v33 = vand.u32 4294901760, %v253_v25  ;;  %v12461_v34 = vpack.c.bf16 %v382_v24, %v375_v23  ;;  %v235_v16 = vld [vmem:[%s17475_s2] sm:$0xff]  ;;  %v236_v17 = vld [vmem:[%s17475_s2 + $0x8] sm:$0xff]  ;;  %s10079_s8 = sld [smem:[#allocation6 + $0x8]]  ;;  %s10064_s13 = sld [smem:[#allocation6 + $0x84]] }
  0x55   : > { %v12451_v28 = vand.u32 4294901760, %v12440_v22  ;;  %v12454_v31 = vand.u32 4294901760, %v12445_v26  ;;  %v12466_v38 = vand.u32 4294901760, %v12448_v27  ;;  %v12478_v44 = vand.u32 4294901760, %v12457_v32  ;;  %s10068_s14 = sld [smem:[#allocation6 + $0x87]]  ;;  %s1532_s22 = sld [smem:[#allocation6]] }
  0x56   : > { %v377_v36 = vand.u32 4294901760, %v376_v29  ;;  %v384_v37 = vand.u32 4294901760, %v383_v30  ;;  %v12481_v45 = vsub.f32 %v253_v25, %v12459_v33  ;;  %v2610_v55 = vand.u32 4294901760, %v10083_v53  ;;  %s13375_s23 = sld [smem:[#allocation6 + $0x3]]  ;;  %s12230_s5 = smov 126  }
  0x57   : > { %v325_v35 = vsub.f32 %v12440_v22, %v12451_v28  ;;  %v335_v39 = vsub.f32 %v12445_v26, %v12454_v31  ;;  %v345_v43 = vsub.f32 %v12448_v27, %v12466_v38  ;;  %v355_v47 = vsub.f32 %v12457_v32, %v12478_v44  ;;  %s12231_s7 = smov 127   ;;  %p18124_p12 = scmp.ne.s32.totalorder %s17528_s27, 0 }
  0x58   : > { %v11468_v41 = vpack.c.bf16 %v384_v37, %v377_v36  ;;  %v12492_v48 = vand.u32 4294901760, %v12481_v45  ;;  %v2613_v56 = vand.u32 4294901760, %v10084_v54  ;;  %v12537_v57 = vsub.f32 %v10083_v53, %v2610_v55 }
  0x59   : > { %v12470_v40 = vand.u32 4294901760, %v325_v35  ;;  %v12473_v42 = vand.u32 4294901760, %v335_v39  ;;  %v12487_v46 = vand.u32 4294901760, %v345_v43  ;;  %v12497_v49 = vand.u32 4294901760, %v355_v47 }
  0x5a   : > { %v365_v50 = vsub.f32 %v12481_v45, %v12492_v48  ;;  %v12539_v58 = vsub.f32 %v10084_v54, %v2613_v56  ;;  %v2729_v59 = vand.u32 4294901760, %v12537_v57  ;;  %v12588_v62 = vpack.c.bf16 %v2613_v56, %v2610_v55 }
  0x5b   : > { %10557 = vmatmul.mubr.f32.vlgmr.msra.gmra.mrb[0].mxu0 %v12470_v40  ;;  %v4962_v9 = vand.u32 4294901760, %v10121_v7  ;;  %v4965_v10 = vand.u32 4294901760, %v10122_v8  ;;  %v902_v23 = vand.u32 4294901760, %v235_v16  ;;  %v905_v24 = vand.u32 4294901760, %v236_v17 }
  0x5c   : > { %11469 = vmatpush3.bf16.msra.mxu0 %v11468_v41  ;;  %10559 = vmatprep.mubr.msk.f32.mxu0 %vm12228_vm0, %v17485_v6  ;;  %v12504_v51 = vand.u32 4294901760, %v365_v50  ;;  %v2736_v60 = vand.u32 4294901760, %v12539_v58  ;;  %v2730_v63 = vsub.f32 %v12537_v57, %v2729_v59  ;;  %v11507_v5 = vpack.c.bf16 %v12539_v58, %v12537_v57 }
  0x5d   : > { %11470 = vmatprep.subr.bf16.mxu0 %v17482_v3  ;;  %v12653_v11 = vsub.f32 %v10121_v7, %v4962_v9  ;;  %v12655_v12 = vsub.f32 %v10122_v8, %v4965_v10  ;;  %v12687_v25 = vpack.c.bf16 %v905_v24, %v902_v23  ;;  %v1020_v29 = vsub.f32 %v235_v16, %v902_v23 }
  0x5e   : > { %v12547_v61 = vpack.c.bf16 %v2736_v60, %v2729_v59  ;;  %v2737_v0 = vsub.f32 %v12539_v58, %v2736_v60  ;;  %v2731_v1 = vand.u32 4294901760, %v2730_v63  ;;  %v1027_v30 = vsub.f32 %v236_v17, %v905_v24  ;;  %v12780_v59 = vld [vmem:[%s12391_s11 + $0x30] sm:$0xff]  ;;  %v12783_v60 = vld [vmem:[%s12391_s11 + $0x38] sm:$0xff]  ;;  %s10059_s11 = sld [smem:[#allocation6 + $0x1]] }
  0x5f   : > { %10560 = vmatmul.mubr.f32.gmra.mrb[2].mxu0 %v12473_v42  ;;  %v5081_v13 = vand.u32 4294901760, %v12653_v11  ;;  %v5088_v14 = vand.u32 4294901760, %v12655_v12  ;;  %11484 = vmatpush3.bf16.msra.mxu1 %v12687_v25  ;;  %v12718_v50 = vpack.c.bf16 %v4965_v10, %v4962_v9  ;;  %v11543_v58 = vpack.c.bf16 %v12655_v12, %v12653_v11 }
  0x60   : > { %10562 = vmatprep.mubr.msk.f32.mxu0 %vm12228_vm0, %v17485_v6  ;;  %v2738_v2 = vand.u32 4294901760, %v2737_v0  ;;  %11485 = vmatprep.subr.bf16.mxu1 %v17482_v3  ;;  %v1028_v35 = vand.u32 4294901760, %v1027_v30  ;;  %v12713_v47 = vpack.c.bf16 %v1027_v30, %v1020_v29  ;;  %vm1584_vm2 = vcmask 1046528  }
  0x61   : > { %v5089_v53 = vsub.f32 %v12655_v12, %v5088_v14  ;;  %vm1701_vm3 = vcmask 1045504   ;;  %vm9662_vm4 = vcmask 261120  }
  0x62   : > { %v11504_v4 = vpack.c.bf16 %v2738_v2, %v2731_v1  ;;  %v1029_v37 = vsub.f32 %v1027_v30, %v1028_v35  ;;  %17536 = vst [vmem:[#allocation11_spill] sm:$0xff] %v12713_v47 }
  0x63   : > { %10563 = vmatmul.mubr.f32.gmra.mrb[4].mxu0 %v12487_v46  ;;  %v5090_v55 = vand.u32 4294901760, %v5089_v53 }
  0x64   : > { %10565 = vmatprep.mubr.msk.f32.mxu0 %vm12228_vm0, %v17485_v6  ;;  %v1030_v41 = vand.u32 4294901760, %v1029_v37 }
  0x67   : > { %10566 = vmatmul.mubr.f32.gmra.mrb[6].mxu0 %v12497_v49 }
  0x68   : > { %10568 = vmatprep.mubr.msk.f32.mxu0 %vm12228_vm0, %v17485_v6 }
  0x6b   : > { %10569 = vmatmul.mubr.f32.gmra.mrb[8].mxu0 %v12504_v51 }
  0x6c   : > { %10575 = vmatprep.mubr.msk.f32.mxu0 %vm12228_vm0, %v17485_v6 }
  0x6f   : > { %10576 = vmatmul.mubr.f32.vlgmr.msra.gmra.mrb[0].mxu0 %v12430_v18 }
  0x70   : > { %11472 = vmatpush3.bf16.msra.mxu0 %v11471_v52  ;;  %10578 = vmatprep.mubr.msk.f32.mxu0 %vm12228_vm0, %v17485_v6  ;;  %v5082_v52 = vsub.f32 %v12653_v11, %v5081_v13 }
  0x71   : > { %11473 = vmatprep.subr.bf16.mxu0 %v17482_v3 }
  0x72   : > { %v5083_v54 = vand.u32 4294901760, %v5082_v52 }
  0x73   : > { %10579 = vmatmul.mubr.f32.gmra.mrb[2].mxu0 %v12432_v19 }
  0x74   : > { %10581 = vmatprep.mubr.msk.f32.mxu0 %vm12228_vm0, %v17485_v6  ;;  %v11540_v56 = vpack.c.bf16 %v5090_v55, %v5083_v54 }
  0x77   : > { %10582 = vmatmul.mubr.f32.gmra.mrb[4].mxu0 %v12434_v20 }
  0x78   : > { %10584 = vmatprep.mubr.msk.f32.mxu0 %vm12228_vm0, %v17485_v6 }
  0x7b   : > { %10585 = vmatmul.mubr.f32.gmra.mrb[6].mxu0 %v12436_v21 }
  0x7c   : > { %10587 = vmatprep.mubr.msk.f32.mxu0 %vm12228_vm0, %v17485_v6 }
  0x7f   : > { %10588 = vmatmul.mubr.f32.gmra.mrb[8].mxu0 %v12459_v33 }
  0x80   : > { %10594 = vmatprep.mubr.msk.f32.mxu0 %vm12228_vm0, %v17485_v6 }
  0x83   : > { %10595 = vmatmul.mubr.f32.vlgmr.msra.gmra.mrb[0].mxu0 %v12440_v22 }
  0x84   : > { %11475 = vmatpush3.bf16.msra.mxu0 %v12428_v15  ;;  %10597 = vmatprep.mubr.msk.f32.mxu0 %vm12228_vm0, %v17485_v6 }
  0x85   : > { %11476 = vmatprep.subr.bf16.mxu0 %v17482_v3 }
  0x87   : > { %10598 = vmatmul.mubr.f32.gmra.mrb[2].mxu0 %v12445_v26 }
  0x88   : > { %10600 = vmatprep.mubr.msk.f32.mxu0 %vm12228_vm0, %v17485_v6 }
  0x8b   : > { %10601 = vmatmul.mubr.f32.gmra.mrb[4].mxu0 %v12448_v27 }
  0x8c   : > { %10603 = vmatprep.mubr.msk.f32.mxu0 %vm12228_vm0, %v17485_v6 }
  0x8f   : > { %10604 = vmatmul.mubr.f32.gmra.mrb[6].mxu0 %v12457_v32 }
  0x90   : > { %10606 = vmatprep.mubr.msk.f32.mxu0 %vm12228_vm0, %v17485_v6 }
  0x93   : > { %10607 = vmatmul.mubr.f32.gmra.mrb[8].mxu0 %v12481_v45 }
  0x94   : > { %10613 = vmatprep.mubr.msk.f32.mxu0 %vm12228_vm0, %v17485_v6 }
  0x97   : > { %10614 = vmatmul.mubr.f32.vlgmr.msra.gmra.mrb[0].mxu0 %v12451_v28 }
  0x98   : > { %11478 = vmatpush3.bf16.msra.mxu0 %v12461_v34  ;;  %10616 = vmatprep.mubr.msk.f32.mxu0 %vm12228_vm0, %v17485_v6  ;;  %v1021_v34 = vand.u32 4294901760, %v1020_v29 }
  0x99   : > { %11479 = vmatprep.subr.bf16.mxu0 %v17482_v3 }
  0x9a   : > { %v1022_v36 = vsub.f32 %v1020_v29, %v1021_v34  ;;  %v12752_v57 = vpack.c.bf16 %v1028_v35, %v1021_v34 }
  0x9b   : > { %10617 = vmatmul.mubr.f32.gmra.mrb[2].mxu0 %v12454_v31 }
  0x9c   : > { %10619 = vmatprep.mubr.msk.f32.mxu0 %vm12228_vm0, %v17485_v6  ;;  %v1023_v39 = vand.u32 4294901760, %v1022_v36  ;;  %17537 = vst [vmem:[#allocation12_spill] sm:$0xff] %v12752_v57 }
  0x9e   : > { %v12708_v43 = vpack.c.bf16 %v1030_v41, %v1023_v39 }
  0x9f   : > { %10620 = vmatmul.mubr.f32.gmra.mrb[4].mxu0 %v12466_v38 }
  0xa0   : > { %10622 = vmatprep.mubr.msk.f32.mxu0 %vm12228_vm0, %v17485_v6 }
  0xa3   : > { %10623 = vmatmul.mubr.f32.gmra.mrb[6].mxu0 %v12478_v44 }
  0xa4   : > { %10625 = vmatprep.mubr.msk.f32.mxu0 %vm12228_vm0, %v17485_v6 }
  0xa7   : > { %10626 = vmatmul.mubr.f32.gmra.mrb[8].mxu0 %v12492_v48 }
  0xa8   : > { %10632 = vmatprep.mubr.msk.f32.mxu0 %vm12228_vm0, %v17485_v6 }
  0xab   : > { %10633 = vmatmul.mubr.f32.vlgmr.msra.gmra.mrb[0].mxu0 %v12430_v18 }
  0xac   : > { %11481 = vmatpush3.bf16.msra.mxu0 %v12428_v15  ;;  %10635 = vmatprep.mubr.msk.f32.mxu0 %vm12228_vm0, %v17485_v6  ;;  %v12663_v15 = vpack.c.bf16 %v5088_v14, %v5081_v13 }
  0xad   : > { %11500 = vmatprep.subr.bf16.mxu0 %v17482_v3 }
  0xaf   : > { %10636 = vmatmul.mubr.f32.gmra.mrb[2].mxu0 %v12432_v19 }
  0xb0   : > { %10638 = vmatprep.mubr.msk.f32.mxu0 %vm12228_vm0, %v17485_v6 }
  0xb3   : > { %10639 = vmatmul.mubr.f32.gmra.mrb[4].mxu0 %v12434_v20 }
  0xb4   : > { %10641 = vmatprep.mubr.msk.f32.mxu0 %vm12228_vm0, %v17485_v6 }
  0xb7   : > { %10642 = vmatmul.mubr.f32.gmra.mrb[6].mxu0 %v12436_v21 }
  0xb8   : > { %10644 = vmatprep.mubr.msk.f32.mxu0 %vm12228_vm0, %v17485_v6 }
  0xbb   : > { %10645 = vmatmul.mubr.f32.gmra.mrb[8].mxu0 %v12459_v33 }
  0xbc   : > { %10651 = vmatprep.mubr.msk.f32.mxu0 %vm12228_vm0, %v17485_v6 }
  0xbf   : > { %10652 = vmatmul.mubr.f32.vlgmr.msra.gmra.mrb[0].mxu0 %v12430_v18 }
  0xc0   : > { %11502 = vmatpush3.bf16.msra.mxu0 %v12588_v62  ;;  %10654 = vmatprep.mubr.msk.f32.mxu0 %vm12228_vm0, %v17485_v6 }
  0xc1   : > { %11503 = vmatprep.subr.bf16.mxu0 %v17482_v3 }
  0xc3   : > { %10655 = vmatmul.mubr.f32.gmra.mrb[2].mxu0 %v12432_v19 }
  0xc4   : > { %10657 = vmatprep.mubr.msk.f32.mxu0 %vm12228_vm0, %v17485_v6 }
  0xc7   : > { %10658 = vmatmul.mubr.f32.gmra.mrb[4].mxu0 %v12434_v20 }
  0xc8   : > { %10660 = vmatprep.mubr.msk.f32.mxu0 %vm12228_vm0, %v17485_v6 }
  0xcb   : > { %10661 = vmatmul.mubr.f32.gmra.mrb[6].mxu0 %v12436_v21 }
  0xcc   : > { %10663 = vmatprep.mubr.msk.f32.mxu0 %vm12228_vm0, %v17485_v6 }
  0xcf   : > { %10664 = vmatmul.mubr.f32.gmra.mrb[8].mxu0 %v12459_v33 }
  0xd0   : > { %10784 = vmatprep.mubr.msk.f32.mxu0 %vm12228_vm0, %v17485_v6 }
  0xd3   : > { %10785 = vmatmul.mubr.f32.vlgmr.msra.gmra.mrb[10].mxu0 %v12470_v40 }
  0xd4   : > { %11505 = vmatpush3.bf16.msra.mxu0 %v11504_v4  ;;  %10787 = vmatprep.mubr.msk.f32.mxu0 %vm12228_vm0, %v17485_v6 }
  0xd5   : > { %11506 = vmatprep.subr.bf16.mxu0 %v17482_v3 }
  0xd7   : > { %10788 = vmatmul.mubr.f32.gmra.mrb[12].mxu0 %v12473_v42 }
  0xd8   : > { %10790 = vmatprep.mubr.msk.f32.mxu0 %vm12228_vm0, %v17485_v6 }
  0xdb   : > { %10791 = vmatmul.mubr.f32.gmra.mrb[14].mxu0 %v12487_v46 }
  0xdc   : > { %10793 = vmatprep.mubr.msk.f32.mxu0 %vm12228_vm0, %v17485_v6 }
  0xdf   : > { %10794 = vmatmul.mubr.f32.gmra.mrb[16].mxu0 %v12497_v49 }
  0xe0   : > { %10796 = vmatprep.mubr.msk.f32.mxu0 %vm12228_vm0, %v17485_v6 }
  0xe3   : > { %10797 = vmatmul.mubr.f32.gmra.mrb[18].mxu0 %v12504_v51 }
  0xe4   : > { %10803 = vmatprep.mubr.msk.f32.mxu0 %vm12228_vm0, %v17485_v6 }
  0xe7   : > { %10804 = vmatmul.mubr.f32.vlgmr.msra.gmra.mrb[10].mxu0 %v12430_v18 }
  0xe8   : > { %11508 = vmatpush3.bf16.msra.mxu0 %v11507_v5  ;;  %10806 = vmatprep.mubr.msk.f32.mxu0 %vm12228_vm0, %v17485_v6 }
  0xe9   : > { %11509 = vmatprep.subr.bf16.mxu0 %v17482_v3 }
  0xeb   : > { %10807 = vmatmul.mubr.f32.gmra.mrb[12].mxu0 %v12432_v19 }
  0xec   : > { %10809 = vmatprep.mubr.msk.f32.mxu0 %vm12228_vm0, %v17485_v6 }
  0xef   : > { %10810 = vmatmul.mubr.f32.gmra.mrb[14].mxu0 %v12434_v20 }
  0xf0   : > { %10812 = vmatprep.mubr.msk.f32.mxu0 %vm12228_vm0, %v17485_v6 }
  0xf3   : > { %10813 = vmatmul.mubr.f32.gmra.mrb[16].mxu0 %v12436_v21 }
  0xf4   : > { %10815 = vmatprep.mubr.msk.f32.mxu0 %vm12228_vm0, %v17485_v6 }
  0xf7   : > { %10816 = vmatmul.mubr.f32.gmra.mrb[18].mxu0 %v12459_v33 }
  0xf8   : > { %10822 = vmatprep.mubr.msk.f32.mxu0 %vm12228_vm0, %v17485_v6 }
  0xfb   : > { %10823 = vmatmul.mubr.f32.vlgmr.msra.gmra.mrb[10].mxu0 %v12440_v22 }
  0xfc   : > { %11511 = vmatpush3.bf16.msra.mxu0 %v12588_v62  ;;  %10825 = vmatprep.mubr.msk.f32.mxu0 %vm12228_vm0, %v17485_v6 }
  0xfd   : > { %11512 = vmatprep.subr.bf16.mxu0 %v17482_v3 }
  0xff   : > { %10826 = vmatmul.mubr.f32.gmra.mrb[12].mxu0 %v12445_v26 }
 0x100   : > { %10828 = vmatprep.mubr.msk.f32.mxu0 %vm12228_vm0, %v17485_v6 }
 0x103   : > { %10829 = vmatmul.mubr.f32.gmra.mrb[14].mxu0 %v12448_v27 }
 0x104   : > { %10831 = vmatprep.mubr.msk.f32.mxu0 %vm12228_vm0, %v17485_v6 }
 0x107   : > { %10832 = vmatmul.mubr.f32.gmra.mrb[16].mxu0 %v12457_v32 }
 0x108   : > { %10834 = vmatprep.mubr.msk.f32.mxu0 %vm12228_vm0, %v17485_v6 }
 0x10b   : > { %10835 = vmatmul.mubr.f32.gmra.mrb[18].mxu0 %v12481_v45 }
 0x10c   : > { %10841 = vmatprep.mubr.msk.f32.mxu0 %vm12228_vm0, %v17485_v6 }
 0x10f   : > { %10842 = vmatmul.mubr.f32.vlgmr.msra.gmra.mrb[10].mxu0 %v12451_v28 }
 0x110   : > { %11514 = vmatpush3.bf16.msra.mxu0 %v12547_v61  ;;  %10844 = vmatprep.mubr.msk.f32.mxu0 %vm12228_vm0, %v17485_v6  ;;  %v7314_v61 = vand.u32 4294901760, %v12780_v59 }
 0x111   : > { %11515 = vmatprep.subr.bf16.mxu0 %v17482_v3 }
 0x112   : > { %v12794_v63 = vsub.f32 %v12780_v59, %v7314_v61 }
 0x113   : > { %10845 = vmatmul.mubr.f32.gmra.mrb[12].mxu0 %v12454_v31 }
 0x114   : > { %10847 = vmatprep.mubr.msk.f32.mxu0 %vm12228_vm0, %v17485_v6  ;;  %v7433_v1 = vand.u32 4294901760, %v12794_v63 }
 0x116   : > { %v7434_v59 = vsub.f32 %v12794_v63, %v7433_v1 }
 0x117   : > { %10848 = vmatmul.mubr.f32.gmra.mrb[14].mxu0 %v12466_v38 }
 0x118   : > { %10850 = vmatprep.mubr.msk.f32.mxu0 %vm12228_vm0, %v17485_v6 }
 0x11b   : > { %10851 = vmatmul.mubr.f32.gmra.mrb[16].mxu0 %v12478_v44 }
 0x11c   : > { %10853 = vmatprep.mubr.msk.f32.mxu0 %vm12228_vm0, %v17485_v6 }
 0x11f   : > { %10854 = vmatmul.mubr.f32.gmra.mrb[18].mxu0 %v12492_v48 }
 0x120   : > { %10860 = vmatprep.mubr.msk.f32.mxu0 %vm12228_vm0, %v17485_v6 }
 0x123   : > { %10861 = vmatmul.mubr.f32.vlgmr.msra.gmra.mrb[10].mxu0 %v12430_v18 }
 0x124   : > { %11517 = vmatpush3.bf16.msra.mxu0 %v12588_v62  ;;  %10863 = vmatprep.mubr.msk.f32.mxu0 %vm12228_vm0, %v17485_v6  ;;  %v7317_v62 = vand.u32 4294901760, %v12783_v60 }
 0x125   : > { %11536 = vmatprep.subr.bf16.mxu0 %v17482_v3 }
 0x126   : > { %v12799_v0 = vsub.f32 %v12783_v60, %v7317_v62 }
 0x127   : > { %10864 = vmatmul.mubr.f32.gmra.mrb[12].mxu0 %v12432_v19 }
 0x128   : > { %10866 = vmatprep.mubr.msk.f32.mxu0 %vm12228_vm0, %v17485_v6  ;;  %v7440_v2 = vand.u32 4294901760, %v12799_v0 }
 0x12a   : > { %v12811_v4 = vpack.c.bf16 %v7440_v2, %v7433_v1  ;;  %v7441_v60 = vsub.f32 %v12799_v0, %v7440_v2 }
 0x12b   : > { %10867 = vmatmul.mubr.f32.gmra.mrb[14].mxu0 %v12434_v20 }
 0x12c   : > { %10869 = vmatprep.mubr.msk.f32.mxu0 %vm12228_vm0, %v17485_v6 }
 0x12f   : > { %10870 = vmatmul.mubr.f32.gmra.mrb[16].mxu0 %v12436_v21 }
 0x130   : > { %10872 = vmatprep.mubr.msk.f32.mxu0 %vm12228_vm0, %v17485_v6 }
 0x133   : > { %10873 = vmatmul.mubr.f32.gmra.mrb[18].mxu0 %v12459_v33 }
 0x134   : > { %10879 = vmatprep.mubr.msk.f32.mxu0 %vm12228_vm0, %v17485_v6 }
 0x137   : > { %10880 = vmatmul.mubr.f32.vlgmr.msra.gmra.mrb[10].mxu0 %v12430_v18 }
 0x138   : > { %11538 = vmatpush3.bf16.msra.mxu0 %v12718_v50  ;;  %10882 = vmatprep.mubr.msk.f32.mxu0 %vm12228_vm0, %v17485_v6 }
 0x139   : > { %11539 = vmatprep.subr.bf16.mxu0 %v17482_v3 }
 0x13b   : > { %10883 = vmatmul.mubr.f32.gmra.mrb[12].mxu0 %v12432_v19 }
 0x13c   : > { %10885 = vmatprep.mubr.msk.f32.mxu0 %vm12228_vm0, %v17485_v6 }
 0x13f   : > { %10886 = vmatmul.mubr.f32.gmra.mrb[14].mxu0 %v12434_v20 }
 0x140   : > { %10888 = vmatprep.mubr.msk.f32.mxu0 %vm12228_vm0, %v17485_v6 }
 0x143   : > { %10889 = vmatmul.mubr.f32.gmra.mrb[16].mxu0 %v12436_v21 }
 0x144   : > { %10891 = vmatprep.mubr.msk.f32.mxu0 %vm12228_vm0, %v17485_v6 }
 0x147   : > { %10892 = vmatmul.mubr.f32.gmra.mrb[18].mxu0 %v12459_v33 }
 0x148   : > { %11012 = vmatprep.mubr.msk.f32.mxu0 %vm12228_vm0, %v17485_v6 }
 0x14b   : > { %11013 = vmatmul.mubr.f32.vlgmr.msra.gmra.mrb[20].mxu0 %v12470_v40 }
 0x14c   : > { %11541 = vmatpush3.bf16.msra.mxu0 %v11540_v56  ;;  %11015 = vmatprep.mubr.msk.f32.mxu0 %vm12228_vm0, %v17485_v6 }
 0x14d   : > { %11542 = vmatprep.subr.bf16.mxu0 %v17482_v3 }
 0x14f   : > { %11016 = vmatmul.mubr.f32.gmra.mrb[22].mxu0 %v12473_v42 }
 0x150   : > { %11018 = vmatprep.mubr.msk.f32.mxu0 %vm12228_vm0, %v17485_v6 }
 0x153   : > { %11019 = vmatmul.mubr.f32.gmra.mrb[24].mxu0 %v12487_v46 }
 0x154   : > { %11021 = vmatprep.mubr.msk.f32.mxu0 %vm12228_vm0, %v17485_v6 }
 0x157   : > { %11022 = vmatmul.mubr.f32.gmra.mrb[26].mxu0 %v12497_v49 }
 0x158   : > { %11024 = vmatprep.mubr.msk.f32.mxu0 %vm12228_vm0, %v17485_v6 }
 0x15b   : > { %11025 = vmatmul.mubr.f32.gmra.mrb[28].mxu0 %v12504_v51 }
 0x15c   : > { %11031 = vmatprep.mubr.msk.f32.mxu0 %vm12228_vm0, %v17485_v6 }
 0x15f   : > { %11032 = vmatmul.mubr.f32.vlgmr.msra.gmra.mrb[20].mxu0 %v12430_v18 }
 0x160   : > { %11544 = vmatpush3.bf16.msra.mxu0 %v11543_v58  ;;  %11034 = vmatprep.mubr.msk.f32.mxu0 %vm12228_vm0, %v17485_v6 }
 0x161   : > { %11545 = vmatprep.subr.bf16.mxu0 %v17482_v3 }
 0x163   : > { %11035 = vmatmul.mubr.f32.gmra.mrb[22].mxu0 %v12432_v19 }
 0x164   : > { %11037 = vmatprep.mubr.msk.f32.mxu0 %vm12228_vm0, %v17485_v6 }
 0x167   : > { %11038 = vmatmul.mubr.f32.gmra.mrb[24].mxu0 %v12434_v20 }
 0x168   : > { %11040 = vmatprep.mubr.msk.f32.mxu0 %vm12228_vm0, %v17485_v6 }
 0x16b   : > { %11041 = vmatmul.mubr.f32.gmra.mrb[26].mxu0 %v12436_v21 }
 0x16c   : > { %11043 = vmatprep.mubr.msk.f32.mxu0 %vm12228_vm0, %v17485_v6 }
 0x16f   : > { %11044 = vmatmul.mubr.f32.gmra.mrb[28].mxu0 %v12459_v33 }
 0x170   : > { %11050 = vmatprep.mubr.msk.f32.mxu0 %vm12228_vm0, %v17485_v6 }
 0x173   : > { %11051 = vmatmul.mubr.f32.vlgmr.msra.gmra.mrb[20].mxu0 %v12440_v22 }
 0x174   : > { %11547 = vmatpush3.bf16.msra.mxu0 %v12718_v50  ;;  %11053 = vmatprep.mubr.msk.f32.mxu0 %vm12228_vm0, %v17485_v6 }
 0x175   : > { %11548 = vmatprep.subr.bf16.mxu0 %v17482_v3 }
 0x177   : > { %11054 = vmatmul.mubr.f32.gmra.mrb[22].mxu0 %v12445_v26 }
 0x178   : > { %11056 = vmatprep.mubr.msk.f32.mxu0 %vm12228_vm0, %v17485_v6 }
 0x17b   : > { %11057 = vmatmul.mubr.f32.gmra.mrb[24].mxu0 %v12448_v27 }
 0x17c   : > { %11059 = vmatprep.mubr.msk.f32.mxu0 %vm12228_vm0, %v17485_v6 }
 0x17f   : > { %11060 = vmatmul.mubr.f32.gmra.mrb[26].mxu0 %v12457_v32 }
 0x180   : > { %11062 = vmatprep.mubr.msk.f32.mxu0 %vm12228_vm0, %v17485_v6 }
 0x183   : > { %11063 = vmatmul.mubr.f32.gmra.mrb[28].mxu0 %v12481_v45 }
 0x184   : > { %11069 = vmatprep.mubr.msk.f32.mxu0 %vm12228_vm0, %v17485_v6 }
 0x187   : > { %11070 = vmatmul.mubr.f32.vlgmr.msra.gmra.mrb[20].mxu0 %v12451_v28 }
 0x188   : > { %11550 = vmatpush3.bf16.msra.mxu0 %v12663_v15  ;;  %11072 = vmatprep.mubr.msk.f32.mxu0 %vm12228_vm0, %v17485_v6 }
 0x189   : > { %11551 = vmatprep.subr.bf16.mxu0 %v17482_v3 }
 0x18b   : > { %11073 = vmatmul.mubr.f32.gmra.mrb[22].mxu0 %v12454_v31 }
 0x18c   : > { %11075 = vmatprep.mubr.msk.f32.mxu0 %vm12228_vm0, %v17485_v6 }
 0x18f   : > { %11076 = vmatmul.mubr.f32.gmra.mrb[24].mxu0 %v12466_v38 }
 0x190   : > { %11078 = vmatprep.mubr.msk.f32.mxu0 %vm12228_vm0, %v17485_v6 }
 0x192   : > { %v858_v5 = vpop.f32.mrb[0].mxu0 }
 0x193   : > { %v887_v7 = vsel %vm239_vm1, %v858_v5, 0  ;;  %v10653_v8 = vpop.f32.mrb[1].mxu0  ;;  %11079 = vmatmul.mubr.f32.gmra.mrb[26].mxu0 %v12478_v44 }
 0x194   : > { %v12831_v9 = vand.u32 4294901760, %v887_v7  ;;  %11081 = vmatprep.mubr.msk.f32.mxu0 %vm12228_vm0, %v17485_v6 }
 0x196   : > { %v12836_v10 = vsub.f32 %v887_v7, %v12831_v9  ;;  %v864_v11 = vpop.f32.mrb[2].mxu0 }
 0x197   : > { %v890_v12 = vsel %vm239_vm1, %v864_v11, 0  ;;  %v10656_v13 = vpop.f32.mrb[3].mxu0  ;;  %11082 = vmatmul.mubr.f32.gmra.mrb[28].mxu0 %v12492_v48 }
 0x198   : > { %v970_v14 = vand.u32 4294901760, %v12836_v10  ;;  %v12841_v15 = vand.u32 4294901760, %v890_v12  ;;  %11088 = vmatprep.mubr.msk.f32.mxu0 %vm12228_vm0, %v17485_v6 }
 0x19a   : > { %v12846_v16 = vsub.f32 %v890_v12, %v12841_v15  ;;  %v870_v17 = vpop.f32.mrb[4].mxu0  ;;  %v971_v23 = vsub.f32 %v12836_v10, %v970_v14 }
 0x19b   : > { %v893_v24 = vsel %vm239_vm1, %v870_v17, 0  ;;  %v10659_v29 = vpop.f32.mrb[5].mxu0  ;;  %11089 = vmatmul.mubr.f32.vlgmr.msra.gmra.mrb[20].mxu0 %v12430_v18 }
 0x19c   : > { %v980_v30 = vand.u32 4294901760, %v12846_v16  ;;  %v12854_v34 = vand.u32 4294901760, %v893_v24  ;;  %11553 = vmatpush3.bf16.msra.mxu0 %v12718_v50  ;;  %v972_v35 = vand.u32 4294901760, %v971_v23  ;;  %11091 = vmatprep.mubr.msk.f32.mxu0 %vm12228_vm0, %v17485_v6 }
 0x19d   : > { %11572 = vmatprep.subr.bf16.mxu0 %v17482_v3 }
 0x19e   : > { %v12861_v36 = vsub.f32 %v893_v24, %v12854_v34  ;;  %v876_v37 = vpop.f32.mrb[6].mxu0  ;;  %10671 = vmatmul.mubr.f32.vlgmr.msra.gmra.mrb[0].mxu1 %v972_v35  ;;  %v981_v39 = vsub.f32 %v12846_v16, %v980_v30 }
 0x19f   : > { %v896_v41 = vsel %vm239_vm1, %v876_v37, 0  ;;  %v10662_v52 = vpop.f32.mrb[7].mxu0  ;;  %11487 = vmatpush3.bf16.msra.mxu1 %v12708_v43  ;;  %11092 = vmatmul.mubr.f32.gmra.mrb[22].mxu0 %v12432_v19  ;;  %v12916_v37 = vpack.c.bf16 %v7317_v62, %v7314_v61  ;;  %v7435_v61 = vand.u32 4294901760, %v7434_v59  ;;  %v7442_v62 = vand.u32 4294901760, %v7441_v60 }
 0x1a0   : > { %v990_v50 = vand.u32 4294901760, %v12861_v36  ;;  %v12870_v53 = vand.u32 4294901760, %v896_v41  ;;  %10673 = vmatprep.mubr.msk.f32.mxu1 %vm12228_vm0, %v17485_v6  ;;  %v982_v54 = vand.u32 4294901760, %v981_v39  ;;  %11094 = vmatprep.mubr.msk.f32.mxu0 %vm12228_vm0, %v17485_v6 }
 0x1a1   : > { %11488 = vmatprep.subr.bf16.mxu1 %v17482_v3  ;;  %v11576_v1 = vpack.c.bf16 %v7442_v62, %v7435_v61 }
 0x1a2   : > { %v12878_v55 = vsub.f32 %v896_v41, %v12870_v53  ;;  %v882_v56 = vpop.f32.mrb[8].mxu0  ;;  %10674 = vmatmul.mubr.f32.gmra.mrb[2].mxu1 %v982_v54  ;;  %v991_v58 = vsub.f32 %v12861_v36, %v990_v50 }
 0x1a3   : > { %v899_v5 = vsel %vm239_vm1, %v882_v56, 0  ;;  %v10665_v7 = vpop.f32.mrb[9].mxu0  ;;  %11095 = vmatmul.mubr.f32.gmra.mrb[24].mxu0 %v12434_v20  ;;  %10676 = vmatprep.mubr.msk.f32.mxu1 %vm12228_vm0, %v17485_v6 }
 0x1a4   : > { %v1000_v8 = vand.u32 4294901760, %v12878_v55  ;;  %v12888_v11 = vand.u32 4294901760, %v899_v5  ;;  %v992_v12 = vand.u32 4294901760, %v991_v58  ;;  %11097 = vmatprep.mubr.msk.f32.mxu0 %vm12228_vm0, %v17485_v6 }
 0x1a6   : > { %v12893_v13 = vsub.f32 %v899_v5, %v12888_v11  ;;  %10677 = vmatmul.mubr.f32.gmra.mrb[4].mxu1 %v992_v12  ;;  %v1001_v17 = vsub.f32 %v12878_v55, %v1000_v8 }
 0x1a7   : > { %11098 = vmatmul.mubr.f32.gmra.mrb[26].mxu0 %v12436_v21  ;;  %10679 = vmatprep.mubr.msk.f32.mxu1 %vm12228_vm0, %v17485_v6 }
 0x1a8   : > { %v1010_v23 = vand.u32 4294901760, %v12893_v13  ;;  %v1002_v24 = vand.u32 4294901760, %v1001_v17  ;;  %11100 = vmatprep.mubr.msk.f32.mxu0 %vm12228_vm0, %v17485_v6 }
 0x1aa   : > { %10680 = vmatmul.mubr.f32.gmra.mrb[6].mxu1 %v1002_v24  ;;  %v1011_v29 = vsub.f32 %v12893_v13, %v1010_v23 }
 0x1ab   : > { %11101 = vmatmul.mubr.f32.gmra.mrb[28].mxu0 %v12459_v33  ;;  %10682 = vmatprep.mubr.msk.f32.mxu1 %vm12228_vm0, %v17485_v6 }
 0x1ac   : > { %v1012_v35 = vand.u32 4294901760, %v1011_v29  ;;  %11107 = vmatprep.mubr.msk.f32.mxu0 %vm12228_vm0, %v17485_v6 }
 0x1ae   : > { %10683 = vmatmul.mubr.f32.gmra.mrb[8].mxu1 %v1012_v35 }
 0x1af   : > { %11108 = vmatmul.mubr.f32.vlgmr.msra.gmra.mrb[20].mxu0 %v12430_v18  ;;  %10689 = vmatprep.mubr.msk.f32.mxu1 %vm12228_vm0, %v17485_v6 }
 0x1b0   : > { %11574 = vmatpush3.bf16.msra.mxu0 %v12916_v37  ;;  %11110 = vmatprep.mubr.msk.f32.mxu0 %vm12228_vm0, %v17485_v6 }
 0x1b1   : > { %11575 = vmatprep.subr.bf16.mxu0 %v17482_v3 }
 0x1b2   : > { %10690 = vmatmul.mubr.f32.vlgmr.msra.gmra.mrb[0].mxu1 %v12831_v9 }
 0x1b3   : > { %11490 = vmatpush3.bf16.msra.mxu1 %v12713_v47  ;;  %11111 = vmatmul.mubr.f32.gmra.mrb[22].mxu0 %v12432_v19 }
 0x1b4   : > { %10692 = vmatprep.mubr.msk.f32.mxu1 %vm12228_vm0, %v17485_v6  ;;  %11113 = vmatprep.mubr.msk.f32.mxu0 %vm12228_vm0, %v17485_v6 }
 0x1b5   : > { %11491 = vmatprep.subr.bf16.mxu1 %v17482_v3 }
 0x1b6   : > { %10693 = vmatmul.mubr.f32.gmra.mrb[2].mxu1 %v12841_v15 }
 0x1b7   : > { %11114 = vmatmul.mubr.f32.gmra.mrb[24].mxu0 %v12434_v20  ;;  %10695 = vmatprep.mubr.msk.f32.mxu1 %vm12228_vm0, %v17485_v6 }
 0x1b8   : > { %11116 = vmatprep.mubr.msk.f32.mxu0 %vm12228_vm0, %v17485_v6 }
 0x1ba   : > { %10696 = vmatmul.mubr.f32.gmra.mrb[4].mxu1 %v12854_v34 }
 0x1bb   : > { %11117 = vmatmul.mubr.f32.gmra.mrb[26].mxu0 %v12436_v21  ;;  %10698 = vmatprep.mubr.msk.f32.mxu1 %vm12228_vm0, %v17485_v6 }
 0x1bc   : > { %11119 = vmatprep.mubr.msk.f32.mxu0 %vm12228_vm0, %v17485_v6 }
 0x1be   : > { %10699 = vmatmul.mubr.f32.gmra.mrb[6].mxu1 %v12870_v53 }
 0x1bf   : > { %11120 = vmatmul.mubr.f32.gmra.mrb[28].mxu0 %v12459_v33  ;;  %10701 = vmatprep.mubr.msk.f32.mxu1 %vm12228_vm0, %v17485_v6 }
 0x1c0   : > { %11240 = vmatprep.mubr.msk.f32.mxu0 %vm12228_vm0, %v17485_v6 }
 0x1c2   : > { %10702 = vmatmul.mubr.f32.gmra.mrb[8].mxu1 %v12888_v11 }
 0x1c3   : > { %11241 = vmatmul.mubr.f32.vlgmr.msra.gmra.mrb[30].mxu0 %v12470_v40  ;;  %10708 = vmatprep.mubr.msk.f32.mxu1 %vm12228_vm0, %v17485_v6  ;;  %v11579_v40 = vpack.c.bf16 %v12799_v0, %v12794_v63 }
 0x1c4   : > { %11577 = vmatpush3.bf16.msra.mxu0 %v11576_v1  ;;  %11243 = vmatprep.mubr.msk.f32.mxu0 %vm12228_vm0, %v17485_v6 }
 0x1c5   : > { %11578 = vmatprep.subr.bf16.mxu0 %v17482_v3 }
 0x1c6   : > { %10709 = vmatmul.mubr.f32.vlgmr.msra.gmra.mrb[0].mxu1 %v12836_v10 }
 0x1c7   : > { %11493 = vmatpush3.bf16.msra.mxu1 %v12687_v25  ;;  %11244 = vmatmul.mubr.f32.gmra.mrb[32].mxu0 %v12473_v42 }
 0x1c8   : > { %10711 = vmatprep.mubr.msk.f32.mxu1 %vm12228_vm0, %v17485_v6  ;;  %11246 = vmatprep.mubr.msk.f32.mxu0 %vm12228_vm0, %v17485_v6 }
 0x1c9   : > { %11494 = vmatprep.subr.bf16.mxu1 %v17482_v3 }
 0x1ca   : > { %10712 = vmatmul.mubr.f32.gmra.mrb[2].mxu1 %v12846_v16 }
 0x1cb   : > { %11247 = vmatmul.mubr.f32.gmra.mrb[34].mxu0 %v12487_v46  ;;  %10714 = vmatprep.mubr.msk.f32.mxu1 %vm12228_vm0, %v17485_v6 }
 0x1cc   : > { %11249 = vmatprep.mubr.msk.f32.mxu0 %vm12228_vm0, %v17485_v6 }
 0x1ce   : > { %10715 = vmatmul.mubr.f32.gmra.mrb[4].mxu1 %v12861_v36 }
 0x1cf   : > { %11250 = vmatmul.mubr.f32.gmra.mrb[36].mxu0 %v12497_v49  ;;  %10717 = vmatprep.mubr.msk.f32.mxu1 %vm12228_vm0, %v17485_v6 }
 0x1d0   : > { %11252 = vmatprep.mubr.msk.f32.mxu0 %vm12228_vm0, %v17485_v6 }
 0x1d2   : > { %10718 = vmatmul.mubr.f32.gmra.mrb[6].mxu1 %v12878_v55 }
 0x1d3   : > { %11253 = vmatmul.mubr.f32.gmra.mrb[38].mxu0 %v12504_v51  ;;  %10720 = vmatprep.mubr.msk.f32.mxu1 %vm12228_vm0, %v17485_v6 }
 0x1d4   : > { %11259 = vmatprep.mubr.msk.f32.mxu0 %vm12228_vm0, %v17485_v6 }
 0x1d6   : > { %10721 = vmatmul.mubr.f32.gmra.mrb[8].mxu1 %v12893_v13 }
 0x1d7   : > { %11260 = vmatmul.mubr.f32.vlgmr.msra.gmra.mrb[30].mxu0 %v12430_v18  ;;  %10727 = vmatprep.mubr.msk.f32.mxu1 %vm12228_vm0, %v17485_v6 }
 0x1d8   : > { %11580 = vmatpush3.bf16.msra.mxu0 %v11579_v40  ;;  %11262 = vmatprep.mubr.msk.f32.mxu0 %vm12228_vm0, %v17485_v6 }
 0x1d9   : > { %11581 = vmatprep.subr.bf16.mxu0 %v17482_v3 }
 0x1da   : > { %10728 = vmatmul.mubr.f32.vlgmr.msra.gmra.mrb[0].mxu1 %v970_v14 }
 0x1db   : > { %11496 = vmatpush3.bf16.msra.mxu1 %v12752_v57  ;;  %11263 = vmatmul.mubr.f32.gmra.mrb[32].mxu0 %v12432_v19 }
 0x1dc   : > { %10730 = vmatprep.mubr.msk.f32.mxu1 %vm12228_vm0, %v17485_v6  ;;  %11265 = vmatprep.mubr.msk.f32.mxu0 %vm12228_vm0, %v17485_v6 }
 0x1dd   : > { %11497 = vmatprep.subr.bf16.mxu1 %v17482_v3 }
 0x1de   : > { %10731 = vmatmul.mubr.f32.gmra.mrb[2].mxu1 %v980_v30 }
 0x1df   : > { %11266 = vmatmul.mubr.f32.gmra.mrb[34].mxu0 %v12434_v20  ;;  %10733 = vmatprep.mubr.msk.f32.mxu1 %vm12228_vm0, %v17485_v6 }
 0x1e0   : > { %11268 = vmatprep.mubr.msk.f32.mxu0 %vm12228_vm0, %v17485_v6 }
 0x1e2   : > { %10734 = vmatmul.mubr.f32.gmra.mrb[4].mxu1 %v990_v50 }
 0x1e3   : > { %11269 = vmatmul.mubr.f32.gmra.mrb[36].mxu0 %v12436_v21  ;;  %10736 = vmatprep.mubr.msk.f32.mxu1 %vm12228_vm0, %v17485_v6 }
 0x1e4   : > { %11271 = vmatprep.mubr.msk.f32.mxu0 %vm12228_vm0, %v17485_v6 }
 0x1e6   : > { %10737 = vmatmul.mubr.f32.gmra.mrb[6].mxu1 %v1000_v8 }
 0x1e7   : > { %11272 = vmatmul.mubr.f32.gmra.mrb[38].mxu0 %v12459_v33  ;;  %10739 = vmatprep.mubr.msk.f32.mxu1 %vm12228_vm0, %v17485_v6 }
 0x1e8   : > { %11278 = vmatprep.mubr.msk.f32.mxu0 %vm12228_vm0, %v17485_v6 }
 0x1ea   : > { %10740 = vmatmul.mubr.f32.gmra.mrb[8].mxu1 %v1010_v23 }
 0x1eb   : > { %11279 = vmatmul.mubr.f32.vlgmr.msra.gmra.mrb[30].mxu0 %v12440_v22  ;;  %10746 = vmatprep.mubr.msk.f32.mxu1 %vm12228_vm0, %v17485_v6 }
 0x1ec   : > { %11583 = vmatpush3.bf16.msra.mxu0 %v12916_v37  ;;  %11281 = vmatprep.mubr.msk.f32.mxu0 %vm12228_vm0, %v17485_v6 }
 0x1ed   : > { %11584 = vmatprep.subr.bf16.mxu0 %v17482_v3 }
 0x1ee   : > { %10747 = vmatmul.mubr.f32.vlgmr.msra.gmra.mrb[0].mxu1 %v12831_v9 }
 0x1ef   : > { %11499 = vmatpush3.bf16.msra.mxu1 %v12687_v25  ;;  %11282 = vmatmul.mubr.f32.gmra.mrb[32].mxu0 %v12445_v26 }
 0x1f0   : > { %10749 = vmatprep.mubr.msk.f32.mxu1 %vm12228_vm0, %v17485_v6  ;;  %11284 = vmatprep.mubr.msk.f32.mxu0 %vm12228_vm0, %v17485_v6 }
 0x1f1   : > { %11518 = vmatprep.subr.bf16.mxu1 %v17482_v3 }
 0x1f2   : > { %10750 = vmatmul.mubr.f32.gmra.mrb[2].mxu1 %v12841_v15 }
 0x1f3   : > { %11285 = vmatmul.mubr.f32.gmra.mrb[34].mxu0 %v12448_v27  ;;  %10752 = vmatprep.mubr.msk.f32.mxu1 %vm12228_vm0, %v17485_v6 }
 0x1f4   : > { %11287 = vmatprep.mubr.msk.f32.mxu0 %vm12228_vm0, %v17485_v6 }
 0x1f6   : > { %10753 = vmatmul.mubr.f32.gmra.mrb[4].mxu1 %v12854_v34 }
 0x1f7   : > { %11288 = vmatmul.mubr.f32.gmra.mrb[36].mxu0 %v12457_v32  ;;  %10755 = vmatprep.mubr.msk.f32.mxu1 %vm12228_vm0, %v17485_v6 }
 0x1f8   : > { %11290 = vmatprep.mubr.msk.f32.mxu0 %vm12228_vm0, %v17485_v6 }
 0x1fa   : > { %10756 = vmatmul.mubr.f32.gmra.mrb[6].mxu1 %v12870_v53 }
 0x1fb   : > { %11291 = vmatmul.mubr.f32.gmra.mrb[38].mxu0 %v12481_v45  ;;  %10758 = vmatprep.mubr.msk.f32.mxu1 %vm12228_vm0, %v17485_v6 }
 0x1fc   : > { %11297 = vmatprep.mubr.msk.f32.mxu0 %vm12228_vm0, %v17485_v6 }
 0x1fe   : > { %10759 = vmatmul.mubr.f32.gmra.mrb[8].mxu1 %v12888_v11 }
 0x1ff   : > { %11298 = vmatmul.mubr.f32.vlgmr.msra.gmra.mrb[30].mxu0 %v12451_v28  ;;  %10765 = vmatprep.mubr.msk.f32.mxu1 %vm12228_vm0, %v17485_v6 }
 0x200   : > { %11586 = vmatpush3.bf16.msra.mxu0 %v12811_v4  ;;  %11300 = vmatprep.mubr.msk.f32.mxu0 %vm12228_vm0, %v17485_v6 }
 0x201   : > { %11587 = vmatprep.subr.bf16.mxu0 %v17482_v3 }
 0x202   : > { %10766 = vmatmul.mubr.f32.vlgmr.msra.gmra.mrb[0].mxu1 %v12831_v9 }
 0x203   : > { %11520 = vmatpush3.bf16.msra.mxu1 %v12687_v25  ;;  %11301 = vmatmul.mubr.f32.gmra.mrb[32].mxu0 %v12454_v31 }
 0x204   : > { %10768 = vmatprep.mubr.msk.f32.mxu1 %vm12228_vm0, %v17485_v6  ;;  %11303 = vmatprep.mubr.msk.f32.mxu0 %vm12228_vm0, %v17485_v6 }
 0x205   : > { %11521 = vmatprep.subr.bf16.mxu1 %v17482_v3 }
 0x206   : > { %10769 = vmatmul.mubr.f32.gmra.mrb[2].mxu1 %v12841_v15 }
 0x207   : > { %11304 = vmatmul.mubr.f32.gmra.mrb[34].mxu0 %v12466_v38  ;;  %10771 = vmatprep.mubr.msk.f32.mxu1 %vm12228_vm0, %v17485_v6 }
 0x208   : > { %11306 = vmatprep.mubr.msk.f32.mxu0 %vm12228_vm0, %v17485_v6 }
 0x20a   : > { %10772 = vmatmul.mubr.f32.gmra.mrb[4].mxu1 %v12854_v34  ;;  %v3212_v22 = vpop.f32.mrb[10].mxu0 }
 0x20b   : > { %v3241_v26 = vsel %vm239_vm1, %v3212_v22, 0  ;;  %v10881_v27 = vpop.f32.mrb[11].mxu0  ;;  %11307 = vmatmul.mubr.f32.gmra.mrb[36].mxu0 %v12478_v44  ;;  %10774 = vmatprep.mubr.msk.f32.mxu1 %vm12228_vm0, %v17485_v6 }
 0x20c   : > { %v13091_v28 = vand.u32 4294901760, %v3241_v26  ;;  %11309 = vmatprep.mubr.msk.f32.mxu0 %vm12228_vm0, %v17485_v6 }
 0x20e   : > { %v13096_v31 = vsub.f32 %v3241_v26, %v13091_v28  ;;  %10775 = vmatmul.mubr.f32.gmra.mrb[6].mxu1 %v12870_v53  ;;  %v3218_v32 = vpop.f32.mrb[12].mxu0 }
 0x20f   : > { %v3244_v38 = vsel %vm239_vm1, %v3218_v32, 0  ;;  %v10884_v42 = vpop.f32.mrb[13].mxu0  ;;  %11310 = vmatmul.mubr.f32.gmra.mrb[38].mxu0 %v12492_v48  ;;  %10777 = vmatprep.mubr.msk.f32.mxu1 %vm12228_vm0, %v17485_v6 }
 0x210   : > { %v3324_v44 = vand.u32 4294901760, %v13096_v31  ;;  %v13104_v45 = vand.u32 4294901760, %v3244_v38  ;;  %11316 = vmatprep.mubr.msk.f32.mxu0 %vm12228_vm0, %v17485_v6 }
 0x212   : > { %v3325_v46 = vsub.f32 %v13096_v31, %v3324_v44  ;;  %v13112_v49 = vsub.f32 %v3244_v38, %v13104_v45  ;;  %10778 = vmatmul.mubr.f32.gmra.mrb[8].mxu1 %v12888_v11  ;;  %v3224_v48 = vpop.f32.mrb[14].mxu0 }
 0x213   : > { %v3247_v51 = vsel %vm239_vm1, %v3224_v48, 0  ;;  %v10887_v63 = vpop.f32.mrb[15].mxu0  ;;  %11317 = vmatmul.mubr.f32.vlgmr.msra.gmra.mrb[30].mxu0 %v12430_v18  ;;  %10898 = vmatprep.mubr.msk.f32.mxu1 %vm12228_vm0, %v17485_v6 }
 0x214   : > { %v3326_v0 = vand.u32 4294901760, %v3325_v46  ;;  %v3334_v2 = vand.u32 4294901760, %v13112_v49  ;;  %v13120_v4 = vand.u32 4294901760, %v3247_v51  ;;  %11589 = vmatpush3.bf16.msra.mxu0 %v12916_v37  ;;  %11319 = vmatprep.mubr.msk.f32.mxu0 %vm12228_vm0, %v17485_v6 }
 0x216   : > { %v13126_v9 = vsub.f32 %v3247_v51, %v13120_v4  ;;  %v3230_v10 = vpop.f32.mrb[16].mxu0  ;;  %10899 = vmatmul.mubr.f32.vlgmr.msra.gmra.mrb[10].mxu1 %v3326_v0  ;;  %v3335_v14 = vsub.f32 %v13112_v49, %v3334_v2 }
 0x217   : > { %v3250_v15 = vsel %vm239_vm1, %v3230_v10, 0  ;;  %v10890_v16 = vpop.f32.mrb[17].mxu0  ;;  %11523 = vmatpush3.bf16.msra.mxu1 %v12708_v43  ;;  %11320 = vmatmul.mubr.f32.gmra.mrb[32].mxu0 %v12432_v19 }
 0x218   : > { %v3344_v30 = vand.u32 4294901760, %v13126_v9  ;;  %v13135_v34 = vand.u32 4294901760, %v3250_v15  ;;  %10901 = vmatprep.mubr.msk.f32.mxu1 %vm12228_vm0, %v17485_v6  ;;  %v3336_v36 = vand.u32 4294901760, %v3335_v14  ;;  %11322 = vmatprep.mubr.msk.f32.mxu0 %vm12228_vm0, %v17485_v6  ;;  %v13379_v16 = vstv %s10071_s10  ;;  %s13473_s10 = sld [smem:[#allocation6 + $0x6]] }
 0x219   : > { %11524 = vmatprep.subr.bf16.mxu1 %v17482_v3 }
 0x21a   : > { %v13143_v39 = vsub.f32 %v3250_v15, %v13135_v34  ;;  %v3236_v41 = vpop.f32.mrb[18].mxu0  ;;  %10902 = vmatmul.mubr.f32.gmra.mrb[12].mxu1 %v3336_v36  ;;  %v3345_v52 = vsub.f32 %v13126_v9, %v3344_v30  ;;  %v13387_v36 = vstv %s10072_s9  ;;  %s13630_s9 = sld [smem:[#allocation6 + $0x80]] }
 0x21b   : > { %v3253_v50 = vsel %vm239_vm1, %v3236_v41, 0  ;;  %v10893_v53 = vpop.f32.mrb[19].mxu0  ;;  %11323 = vmatmul.mubr.f32.gmra.mrb[34].mxu0 %v12434_v20  ;;  %10904 = vmatprep.mubr.msk.f32.mxu1 %vm12228_vm0, %v17485_v6  ;;  %v13391_v41 = vstv %s10080_s20  ;;  %s13898_s20 = sld [smem:[#allocation6 + $0x107]] }
 0x21c   : > { %v3354_v54 = vand.u32 4294901760, %v13143_v39  ;;  %v13153_v55 = vand.u32 4294901760, %v3253_v50  ;;  %v3346_v56 = vand.u32 4294901760, %v3345_v52  ;;  %11325 = vmatprep.mubr.msk.f32.mxu0 %vm12228_vm0, %v17485_v6  ;;  %v13393_v52 = vstv %s10063_s25  ;;  %s13900_s25 = sld [smem:[#allocation6 + $0x105]] }
 0x21d   : > { %v13397_v53 = vstv %s10075_s12  ;;  %s13974_s12 = sld [smem:[#allocation6 + $0x100]] }
 0x21e   : > { %v3363_v58 = vsub.f32 %v3253_v50, %v13153_v55  ;;  %10905 = vmatmul.mubr.f32.gmra.mrb[14].mxu1 %v3346_v56  ;;  %v3355_v5 = vsub.f32 %v13143_v39, %v3354_v54  ;;  %v13395_v50 = vstv %s10067_s30  ;;  %v13403_v56 = vstv %s10064_s13  ;;  %s13932_s30 = sld [smem:[#allocation6 + $0x108]]  ;;  %s14010_s13 = sld [smem:[#allocation6 + $0x106]] }
 0x21f   : > { %11326 = vmatmul.mubr.f32.gmra.mrb[36].mxu0 %v12436_v21  ;;  %10907 = vmatprep.mubr.msk.f32.mxu1 %vm12228_vm0, %v17485_v6 }
 0x220   : > { %v3364_v7 = vand.u32 4294901760, %v3363_v58  ;;  %v3356_v8 = vand.u32 4294901760, %v3355_v5  ;;  %11328 = vmatprep.mubr.msk.f32.mxu0 %vm12228_vm0, %v17485_v6 }
 0x222   : > { %10908 = vmatmul.mubr.f32.gmra.mrb[16].mxu1 %v3356_v8  ;;  %v3365_v11 = vsub.f32 %v3363_v58, %v3364_v7  ;;  %v13411_v8 = vstv %s10068_s14  ;;  %s14095_s14 = sld [smem:[#allocation6 + $0x184]] }
 0x223   : > { %11329 = vmatmul.mubr.f32.gmra.mrb[38].mxu0 %v12459_v33  ;;  %10910 = vmatprep.mubr.msk.f32.mxu1 %vm12228_vm0, %v17485_v6 }
 0x224   : > { %v3366_v12 = vand.u32 4294901760, %v3365_v11  ;;  %11335 = vmatprep.mubr.msk.f32.mxu0 %vm12228_vm0, %v17485_v6  ;;  %v13413_v11 = vstv %s1532_s22  ;;  %s14103_s22 = sld [smem:[#allocation6 + $0x181]] }
 0x226   : > { %10911 = vmatmul.mubr.f32.gmra.mrb[18].mxu1 %v3366_v12 }
 0x227   : > { %11336 = vmatmul.mubr.f32.vlgmr.msra.gmra.mrb[30].mxu0 %v12430_v18  ;;  %10917 = vmatprep.mubr.msk.f32.mxu1 %vm12228_vm0, %v17485_v6 }
 0x228   : > { %11338 = vmatprep.mubr.msk.f32.mxu0 %vm12228_vm0, %v17485_v6 }
 0x22a   : > { %10918 = vmatmul.mubr.f32.vlgmr.msra.gmra.mrb[10].mxu1 %v13091_v28 }
 0x22b   : > { %11526 = vmatpush3.bf16.msra.mxu1 %v12713_v47  ;;  %11339 = vmatmul.mubr.f32.gmra.mrb[32].mxu0 %v12432_v19 }
 0x22c   : > { %10920 = vmatprep.mubr.msk.f32.mxu1 %vm12228_vm0, %v17485_v6  ;;  %11341 = vmatprep.mubr.msk.f32.mxu0 %vm12228_vm0, %v17485_v6 }
 0x22d   : > { %11527 = vmatprep.subr.bf16.mxu1 %v17482_v3 }
 0x22e   : > { %10921 = vmatmul.mubr.f32.gmra.mrb[12].mxu1 %v13104_v45 }
 0x22f   : > { %11342 = vmatmul.mubr.f32.gmra.mrb[34].mxu0 %v12434_v20  ;;  %10923 = vmatprep.mubr.msk.f32.mxu1 %vm12228_vm0, %v17485_v6 }
 0x230   : > { %11344 = vmatprep.mubr.msk.f32.mxu0 %vm12228_vm0, %v17485_v6 }
 0x232   : > { %10924 = vmatmul.mubr.f32.gmra.mrb[14].mxu1 %v13120_v4 }
 0x233   : > { %11345 = vmatmul.mubr.f32.gmra.mrb[36].mxu0 %v12436_v21  ;;  %10926 = vmatprep.mubr.msk.f32.mxu1 %vm12228_vm0, %v17485_v6 }
 0x234   : > { %11347 = vmatprep.mubr.msk.f32.mxu0 %vm12228_vm0, %v17485_v6 }
 0x236   : > { %10927 = vmatmul.mubr.f32.gmra.mrb[16].mxu1 %v13135_v34 }
 0x237   : > { %11348 = vmatmul.mubr.f32.gmra.mrb[38].mxu0 %v12459_v33  ;;  %10929 = vmatprep.mubr.msk.f32.mxu1 %vm12228_vm0, %v17485_v6 }
 0x23a   : > { %10930 = vmatmul.mubr.f32.gmra.mrb[18].mxu1 %v13153_v55 }
 0x23b   : > { %10936 = vmatprep.mubr.msk.f32.mxu1 %vm12228_vm0, %v17485_v6 }
 0x23e   : > { %10937 = vmatmul.mubr.f32.vlgmr.msra.gmra.mrb[10].mxu1 %v13096_v31 }
 0x23f   : > { %11529 = vmatpush3.bf16.msra.mxu1 %v12687_v25  ;;  %10939 = vmatprep.mubr.msk.f32.mxu1 %vm12228_vm0, %v17485_v6 }
 0x240   : > { %11530 = vmatprep.subr.bf16.mxu1 %v17482_v3 }
 0x242   : > { %10940 = vmatmul.mubr.f32.gmra.mrb[12].mxu1 %v13112_v49 }
 0x243   : > { %10942 = vmatprep.mubr.msk.f32.mxu1 %vm12228_vm0, %v17485_v6 }
 0x246   : > { %10943 = vmatmul.mubr.f32.gmra.mrb[14].mxu1 %v13126_v9 }
 0x247   : > { %10945 = vmatprep.mubr.msk.f32.mxu1 %vm12228_vm0, %v17485_v6 }
 0x24a   : > { %10946 = vmatmul.mubr.f32.gmra.mrb[16].mxu1 %v13143_v39  ;;  %v13389_v39 = vstv %s10076_s26  ;;  %s13891_s26 = sld [smem:[#allocation6 + $0x104]] }
 0x24b   : > { %10948 = vmatprep.mubr.msk.f32.mxu1 %vm12228_vm0, %v17485_v6 }
 0x24e   : > { %10949 = vmatmul.mubr.f32.gmra.mrb[18].mxu1 %v3363_v58 }
 0x24f   : > { %10955 = vmatprep.mubr.msk.f32.mxu1 %vm12228_vm0, %v17485_v6 }
 0x252   : > { %10956 = vmatmul.mubr.f32.vlgmr.msra.gmra.mrb[10].mxu1 %v3324_v44 }
 0x253   : > { %11532 = vmatpush3.bf16.msra.mxu1 %v12752_v57  ;;  %10958 = vmatprep.mubr.msk.f32.mxu1 %vm12228_vm0, %v17485_v6 }
 0x254   : > { %11533 = vmatprep.subr.bf16.mxu1 %v17482_v3 }
 0x256   : > { %10959 = vmatmul.mubr.f32.gmra.mrb[12].mxu1 %v3334_v2 }
 0x257   : > { %10961 = vmatprep.mubr.msk.f32.mxu1 %vm12228_vm0, %v17485_v6 }
 0x25a   : > { %10962 = vmatmul.mubr.f32.gmra.mrb[14].mxu1 %v3344_v30  ;;  %v13383_v30 = vstv %s10059_s11  ;;  %s13486_s11 = sld [smem:[#allocation6 + $0x83]] }
 0x25b   : > { %10964 = vmatprep.mubr.msk.f32.mxu1 %vm12228_vm0, %v17485_v6 }
 0x25e   : > { %10965 = vmatmul.mubr.f32.gmra.mrb[16].mxu1 %v3354_v54 }
 0x25f   : > { %10967 = vmatprep.mubr.msk.f32.mxu1 %vm12228_vm0, %v17485_v6 }
 0x262   : > { %10968 = vmatmul.mubr.f32.gmra.mrb[18].mxu1 %v3364_v7 }
 0x263   : > { %10974 = vmatprep.mubr.msk.f32.mxu1 %vm12228_vm0, %v17485_v6 }
 0x266   : > { %10975 = vmatmul.mubr.f32.vlgmr.msra.gmra.mrb[10].mxu1 %v13091_v28 }
 0x267   : > { %11535 = vmatpush3.bf16.msra.mxu1 %v12687_v25  ;;  %10977 = vmatprep.mubr.msk.f32.mxu1 %vm12228_vm0, %v17485_v6 }
 0x268   : > { %11554 = vmatprep.subr.bf16.mxu1 %v17482_v3 }
 0x26a   : > { %10978 = vmatmul.mubr.f32.gmra.mrb[12].mxu1 %v13104_v45 }
 0x26b   : > { %10980 = vmatprep.mubr.msk.f32.mxu1 %vm12228_vm0, %v17485_v6 }
 0x26e   : > { %10981 = vmatmul.mubr.f32.gmra.mrb[14].mxu1 %v13120_v4 }
 0x26f   : > { %10983 = vmatprep.mubr.msk.f32.mxu1 %vm12228_vm0, %v17485_v6 }
 0x272   : > { %10984 = vmatmul.mubr.f32.gmra.mrb[16].mxu1 %v13135_v34 }
 0x273   : > { %10986 = vmatprep.mubr.msk.f32.mxu1 %vm12228_vm0, %v17485_v6 }
 0x276   : > { %10987 = vmatmul.mubr.f32.gmra.mrb[18].mxu1 %v13153_v55 }
 0x277   : > { %10993 = vmatprep.mubr.msk.f32.mxu1 %vm12228_vm0, %v17485_v6 }
 0x27a   : > { %10994 = vmatmul.mubr.f32.vlgmr.msra.gmra.mrb[10].mxu1 %v13091_v28 }
 0x27b   : > { %11556 = vmatpush3.bf16.msra.mxu1 %v12687_v25  ;;  %10996 = vmatprep.mubr.msk.f32.mxu1 %vm12228_vm0, %v17485_v6 }
 0x27c   : > { %11557 = vmatprep.subr.bf16.mxu1 %v17482_v3 }
 0x27e   : > { %10997 = vmatmul.mubr.f32.gmra.mrb[12].mxu1 %v13104_v45 }
 0x27f   : > { %10999 = vmatprep.mubr.msk.f32.mxu1 %vm12228_vm0, %v17485_v6 }
 0x282   : > { %11000 = vmatmul.mubr.f32.gmra.mrb[14].mxu1 %v13120_v4  ;;  %v5564_v18 = vpop.f32.mrb[20].mxu0 }
 0x283   : > { %v5593_v19 = vsel %vm239_vm1, %v5564_v18, 0  ;;  %v11109_v20 = vpop.f32.mrb[21].mxu0  ;;  %11002 = vmatprep.mubr.msk.f32.mxu1 %vm12228_vm0, %v17485_v6 }
 0x284   : > { %v13264_v21 = vand.u32 4294901760, %v5593_v19 }
 0x286   : > { %v13267_v33 = vsub.f32 %v5593_v19, %v13264_v21  ;;  %11003 = vmatmul.mubr.f32.gmra.mrb[16].mxu1 %v13135_v34  ;;  %v5570_v13 = vpop.f32.mrb[22].mxu0  ;;  %v13385_v34 = vstv %s10060_s29  ;;  %s13549_s29 = sld [smem:[#allocation6 + $0x86]] }
 0x287   : > { %v5596_v17 = vsel %vm239_vm1, %v5570_v13, 0  ;;  %v11112_v23 = vpop.f32.mrb[23].mxu0  ;;  %11005 = vmatprep.mubr.msk.f32.mxu1 %vm12228_vm0, %v17485_v6 }
 0x288   : > { %v5676_v24 = vand.u32 4294901760, %v13267_v33  ;;  %v13274_v29 = vand.u32 4294901760, %v5596_v17  ;;  %v13434_v23 = vstv %s13375_s23  ;;  %s14105_s23 = sld [smem:[#allocation6 + $0x187]] }
 0x28a   : > { %v5677_v35 = vsub.f32 %v13267_v33, %v5676_v24  ;;  %v13280_v37 = vsub.f32 %v5596_v17, %v13274_v29  ;;  %11006 = vmatmul.mubr.f32.gmra.mrb[18].mxu1 %v13153_v55  ;;  %v5576_v59 = vpop.f32.mrb[24].mxu0  ;;  %v13401_v55 = vstv %s10079_s8  ;;  %s13989_s8 = sld [smem:[#allocation6 + $0x103]] }
 0x28b   : > { %v5599_v60 = vsel %vm239_vm1, %v5576_v59, 0  ;;  %v11115_v61 = vpop.f32.mrb[25].mxu0  ;;  %11126 = vmatprep.mubr.msk.f32.mxu1 %vm12228_vm0, %v17485_v6 }
 0x28c   : > { %v5678_v62 = vand.u32 4294901760, %v5677_v35  ;;  %v5686_v1 = vand.u32 4294901760, %v13280_v37  ;;  %v13287_v40 = vand.u32 4294901760, %v5599_v60 }
 0x28e   : > { %v13290_v22 = vsub.f32 %v5599_v60, %v13287_v40  ;;  %v5582_v26 = vpop.f32.mrb[26].mxu0  ;;  %11127 = vmatmul.mubr.f32.vlgmr.msra.gmra.mrb[20].mxu1 %v5678_v62  ;;  %v5687_v27 = vsub.f32 %v13280_v37, %v5686_v1 }
 0x28f   : > { %v5602_v28 = vsel %vm239_vm1, %v5582_v26, 0  ;;  %v11118_v31 = vpop.f32.mrb[27].mxu0  ;;  %11559 = vmatpush3.bf16.msra.mxu1 %v12708_v43  ;;  %11129 = vmatprep.mubr.msk.f32.mxu1 %vm12228_vm0, %v17485_v6 }
 0x290   : > { %v5696_v32 = vand.u32 4294901760, %v13290_v22  ;;  %v13300_v38 = vand.u32 4294901760, %v5602_v28  ;;  %v5688_v42 = vand.u32 4294901760, %v5687_v27  ;;  %11560 = vmatprep.subr.bf16.mxu1 %v17482_v3 }
 0x292   : > { %v13304_v44 = vsub.f32 %v5602_v28, %v13300_v38  ;;  %v5588_v45 = vpop.f32.mrb[28].mxu0  ;;  %11130 = vmatmul.mubr.f32.gmra.mrb[22].mxu1 %v5688_v42  ;;  %v5697_v46 = vsub.f32 %v13290_v22, %v5696_v32 }
 0x293   : > { %v5605_v49 = vsel %vm239_vm1, %v5588_v45, 0  ;;  %v11121_v48 = vpop.f32.mrb[29].mxu0  ;;  %11132 = vmatprep.mubr.msk.f32.mxu1 %vm12228_vm0, %v17485_v6 }
 0x294   : > { %v5706_v51 = vand.u32 4294901760, %v13304_v44  ;;  %v13313_v63 = vand.u32 4294901760, %v5605_v49  ;;  %v5698_v0 = vand.u32 4294901760, %v5697_v46 }
 0x296   : > { %v13316_v2 = vsub.f32 %v5605_v49, %v13313_v63  ;;  %11133 = vmatmul.mubr.f32.gmra.mrb[24].mxu1 %v5698_v0  ;;  %v5707_v4 = vsub.f32 %v13304_v44, %v5706_v51 }
 0x297   : > { %11135 = vmatprep.mubr.msk.f32.mxu1 %vm12228_vm0, %v17485_v6 }
 0x298   : > { %v5716_v9 = vand.u32 4294901760, %v13316_v2  ;;  %v5708_v10 = vand.u32 4294901760, %v5707_v4 }
 0x29a   : > { %11136 = vmatmul.mubr.f32.gmra.mrb[26].mxu1 %v5708_v10  ;;  %v5717_v14 = vsub.f32 %v13316_v2, %v5716_v9 }
 0x29b   : > { %11138 = vmatprep.mubr.msk.f32.mxu1 %vm12228_vm0, %v17485_v6 }
 0x29c   : > { %v5718_v15 = vand.u32 4294901760, %v5717_v14 }
 0x29e   : > { %11139 = vmatmul.mubr.f32.gmra.mrb[28].mxu1 %v5718_v15 }
 0x29f   : > { %11145 = vmatprep.mubr.msk.f32.mxu1 %vm12228_vm0, %v17485_v6 }
 0x2a2   : > { %11146 = vmatmul.mubr.f32.vlgmr.msra.gmra.mrb[20].mxu1 %v13264_v21 }
 0x2a3   : > { %11562 = vmatpush3.bf16.msra.mxu1 %v12713_v47  ;;  %11148 = vmatprep.mubr.msk.f32.mxu1 %vm12228_vm0, %v17485_v6 }
 0x2a4   : > { %11563 = vmatprep.subr.bf16.mxu1 %v17482_v3 }
 0x2a6   : > { %11149 = vmatmul.mubr.f32.gmra.mrb[22].mxu1 %v13274_v29 }
 0x2a7   : > { %11151 = vmatprep.mubr.msk.f32.mxu1 %vm12228_vm0, %v17485_v6 }
 0x2aa   : > { %11152 = vmatmul.mubr.f32.gmra.mrb[24].mxu1 %v13287_v40 }
 0x2ab   : > { %11154 = vmatprep.mubr.msk.f32.mxu1 %vm12228_vm0, %v17485_v6 }
 0x2ae   : > { %11155 = vmatmul.mubr.f32.gmra.mrb[26].mxu1 %v13300_v38 }
 0x2af   : > { %11157 = vmatprep.mubr.msk.f32.mxu1 %vm12228_vm0, %v17485_v6 }
 0x2b2   : > { %11158 = vmatmul.mubr.f32.gmra.mrb[28].mxu1 %v13313_v63 }
 0x2b3   : > { %11164 = vmatprep.mubr.msk.f32.mxu1 %vm12228_vm0, %v17485_v6 }
 0x2b6   : > { %11165 = vmatmul.mubr.f32.vlgmr.msra.gmra.mrb[20].mxu1 %v13267_v33 }
 0x2b7   : > { %11565 = vmatpush3.bf16.msra.mxu1 %v12687_v25  ;;  %11167 = vmatprep.mubr.msk.f32.mxu1 %vm12228_vm0, %v17485_v6 }
 0x2b8   : > { %11566 = vmatprep.subr.bf16.mxu1 %v17482_v3 }
 0x2ba   : > { %11168 = vmatmul.mubr.f32.gmra.mrb[22].mxu1 %v13280_v37 }
 0x2bb   : > { %11170 = vmatprep.mubr.msk.f32.mxu1 %vm12228_vm0, %v17485_v6 }
 0x2be   : > { %11171 = vmatmul.mubr.f32.gmra.mrb[24].mxu1 %v13290_v22 }
 0x2bf   : > { %11173 = vmatprep.mubr.msk.f32.mxu1 %vm12228_vm0, %v17485_v6 }
 0x2c2   : > { %11174 = vmatmul.mubr.f32.gmra.mrb[26].mxu1 %v13304_v44 }
 0x2c3   : > { %11176 = vmatprep.mubr.msk.f32.mxu1 %vm12228_vm0, %v17485_v6 }
 0x2c6   : > { %11177 = vmatmul.mubr.f32.gmra.mrb[28].mxu1 %v13316_v2 }
 0x2c7   : > { %11183 = vmatprep.mubr.msk.f32.mxu1 %vm12228_vm0, %v17485_v6 }
 0x2ca   : > { %11184 = vmatmul.mubr.f32.vlgmr.msra.gmra.mrb[20].mxu1 %v5676_v24 }
 0x2cb   : > { %11568 = vmatpush3.bf16.msra.mxu1 %v12752_v57  ;;  %11186 = vmatprep.mubr.msk.f32.mxu1 %vm12228_vm0, %v17485_v6  ;;  %v17544_v57 = vmov 0.0  }
 0x2cc   : > { %11569 = vmatprep.subr.bf16.mxu1 %v17482_v3 }
 0x2ce   : > { %11187 = vmatmul.mubr.f32.gmra.mrb[22].mxu1 %v5686_v1 }
 0x2cf   : > { %11189 = vmatprep.mubr.msk.f32.mxu1 %vm12228_vm0, %v17485_v6 }
 0x2d2   : > { %11190 = vmatmul.mubr.f32.gmra.mrb[24].mxu1 %v5696_v32 }
 0x2d3   : > { %11192 = vmatprep.mubr.msk.f32.mxu1 %vm12228_vm0, %v17485_v6 }
 0x2d5   : > { %v13399_v54 = vpop.f32.mrb[0].mxu1 }
 0x2d6   : > { %17538 = vst [vmem:[#allocation13_spill] sm:$0xff] %v13399_v54  ;;  %v10767_v58 = vpop.f32.mrb[1].mxu1  ;;  %11193 = vmatmul.mubr.f32.gmra.mrb[26].mxu1 %v5706_v51  ;;  %v2208_v5 = vmul.f32 %v13379_v16, %v13399_v54  ;;  %v1808_v7 = vmul.f32 %v13383_v30, %v13399_v54  ;;  %v2349_v12 = vmul.f32 %v13389_v39, %v13399_v54 }
 0x2d7   : > { %11195 = vmatprep.mubr.msk.f32.mxu1 %vm12228_vm0, %v17485_v6  ;;  %v2497_v18 = vmul.f32 %v13391_v41, %v13399_v54  ;;  %v1912_v19 = vmul.f32 %v13393_v52, %v13399_v54  ;;  %v2060_v20 = vmul.f32 %v13395_v50, %v13399_v54  ;;  %v1834_v33 = vmul.f32 %v13385_v34, %v13399_v54 }
 0x2d8   : > { %2216 = vrot.lane.b32.xlu1 %v2208_v5, %s12230_s5  ;;  %1816 = vrot.lane.b32.xlu0 %v1808_v7, %s12231_s7  ;;  %v2234_v13 = vmul.f32 %v13387_v36, %v13399_v54  ;;  %v2312_v17 = vmul.f32 %v13397_v53, %v13399_v54  ;;  %v2359_v35 = vrot.slane %v2349_v12, 1  ;;  %v2460_v59 = vmul.f32 %v13401_v55, %v13399_v54 }
 0x2d9   : > { %v13436_v24 = vpop.f32.mrb[2].mxu1  ;;  %v2507_v37 = vrot.slane %v2497_v18, 2  ;;  %v13442_v60 = vmul.f32 %v13403_v56, %v13399_v54  ;;  %v1922_v22 = vrot.slane %v1912_v19, 1  ;;  %v2070_v26 = vrot.slane %v2060_v20, 2 }
 0x2da   : > { %17539 = vst [vmem:[#allocation14_spill] sm:$0xff] %v13436_v24  ;;  %v10770_v61 = vpop.f32.mrb[3].mxu1  ;;  %11196 = vmatmul.mubr.f32.gmra.mrb[28].mxu1 %v5716_v9  ;;  %v1809_v62 = vmul.f32 %v13383_v30, %v13436_v24  ;;  %v13450_v1 = vmul.f32 %v13389_v39, %v13436_v24  ;;  %v2209_v27 = vmul.f32 %v13379_v16, %v13436_v24  ;;  %v2322_v2 = vrot.slane %v2312_v17, 1 }
 0x2db   : > { %11202 = vmatprep.mubr.msk.f32.mxu1 %vm12228_vm0, %v17485_v6  ;;  %v13458_v28 = vmul.f32 %v13391_v41, %v13436_v24  ;;  %v1913_v31 = vmul.f32 %v13393_v52, %v13436_v24  ;;  %v2061_v32 = vmul.f32 %v13395_v50, %v13436_v24  ;;  %v1835_v42 = vmul.f32 %v13385_v34, %v13436_v24 }
 0x2dc   : > { %1842 = vrot.lane.b32.xlu1 %v1834_v33, %s12231_s7  ;;  %1818 = vrot.lane.b32.xlu0 %v1809_v62, %s12231_s7  ;;  %v17484_v44 = vrot.slane %v13450_v1, 1  ;;  %v2313_v45 = vmul.f32 %v13397_v53, %v13436_v24  ;;  %v2461_v46 = vmul.f32 %v13401_v55, %v13436_v24  ;;  %v2470_v15 = vrot.slane %v2460_v59, 2 }
 0x2dd   : > { %v13475_v49 = vpop.f32.mrb[4].mxu1  ;;  %v17481_v48 = vrot.slane %v13458_v28, 2  ;;  %v1923_v51 = vrot.slane %v1913_v31, 1  ;;  %v2071_v0 = vrot.slane %v2061_v32, 2  ;;  %v2098_v32 = vmul.f32 %v13411_v8, %v13436_v24 }
 0x2de   : > { %17540 = vst [vmem:[#allocation15_spill] sm:$0xff] %v13475_v49  ;;  %v10773_v4 = vpop.f32.mrb[5].mxu1  ;;  %11203 = vmatmul.mubr.f32.vlgmr.msra.gmra.mrb[20].mxu1 %v13264_v21  ;;  %v2361_v9 = vsel %vm1584_vm2, %v2359_v35, %v17484_v44  ;;  %v13484_v10 = vmul.f32 %v13393_v52, %v13475_v49  ;;  %v2323_v14 = vrot.slane %v2313_v45, 1  ;;  %v2471_v12 = vrot.slane %v2461_v46, 2 }
 0x2df   : > { %11571 = vmatpush3.bf16.msra.mxu1 %v12687_v25  ;;  %11205 = vmatprep.mubr.msk.f32.mxu1 %vm12228_vm0, %v17485_v6  ;;  %v2509_v58 = vsel %vm1701_vm3, %v2507_v37, %v17481_v48  ;;  %v13495_v5 = vsel %vm1584_vm2, %v1922_v22, %v1923_v51  ;;  %v13498_v7 = vsel %vm1701_vm3, %v2070_v26, %v2071_v0  ;;  %v1959_v37 = vrot.slane %v13442_v60, 1 }
 0x2e0   : > { %2242 = vrot.lane.b32.xlu1 %v2234_v13, %s12230_s5  ;;  %2218 = vrot.lane.b32.xlu0 %v2209_v27, %s12230_s5  ;;  %v1925_v18 = vrot.slane %v13484_v10, 1  ;;  %v13504_v19 = vsel %vm1584_vm2, %v2322_v2, %v2323_v14  ;;  %v2062_v20 = vmul.f32 %v13395_v50, %v13475_v49  ;;  %v13510_v33 = vmul.f32 %v13397_v53, %v13475_v49 }
 0x2e1   : > { %v13512_v17 = vpop.f32.mrb[6].mxu1  ;;  %11590 = vmatprep.subr.bf16.mxu1 %v17482_v3  ;;  %v13516_v13 = vsel %vm1701_vm3, %v2470_v15, %v2471_v12  ;;  %v1950_v35 = vmul.f32 %v13403_v56, %v13436_v24  ;;  %v2462_v59 = vmul.f32 %v13401_v55, %v13475_v49  ;;  %v2097_v27 = vmul.f32 %v13411_v8, %v13399_v54 }
 0x2e2   : > { %17541 = vst [vmem:[#allocation16_spill] sm:$0xff] %v13512_v17  ;;  %v10776_v61 = vpop.f32.mrb[7].mxu1  ;;  %11206 = vmatmul.mubr.f32.gmra.mrb[22].mxu1 %v13274_v29  ;;  %v13525_v62 = vsel %vm1584_vm2, %v1923_v51, %v1925_v18  ;;  %v2073_v22 = vrot.slane %v2062_v20, 2  ;;  %v2325_v26 = vrot.slane %v13510_v33, 1  ;;  %v13536_v45 = vmul.f32 %v13411_v8, %v13475_v49 }
 0x2e3   : > { %11208 = vmatprep.mubr.msk.f32.mxu1 %vm12228_vm0, %v17485_v6  ;;  %v1960_v60 = vrot.slane %v1950_v35, 1  ;;  %v2473_v31 = vrot.slane %v2462_v59, 2  ;;  %v2107_v2 = vrot.slane %v2097_v27, 2  ;;  %v13547_v4 = vstv %s13473_s10  ;;  %s14109_s10 = sld [smem:[#allocation6 + $0x180]] }
 0x2e4   : > { %1844 = vrot.lane.b32.xlu1 %v1835_v42, %s12231_s7  ;;  %2368 = vrot.lane.b32.xlu0 %v2361_v9, %s12230_s5  ;;  %v13541_v46 = vsel %vm1701_vm3, %v2071_v0, %v2073_v22  ;;  %v13544_v51 = vsel %vm1584_vm2, %v2323_v14, %v2325_v26  ;;  %v2108_v9 = vrot.slane %v2098_v32, 2  ;;  %v2110_v0 = vrot.slane %v13536_v45, 2 }
 0x2e5   : > { %v13551_v10 = vpop.f32.mrb[8].mxu1  ;;  %v13554_v15 = vsel %vm1584_vm2, %v1959_v37, %v1960_v60  ;;  %v13557_v42 = vsel %vm1701_vm3, %v2471_v12, %v2473_v31  ;;  %v2235_v14 = vmul.f32 %v13387_v36, %v13436_v24  ;;  %v2210_v33 = vmul.f32 %v13379_v16, %v13475_v49 }
 0x2e6   : > { %v10779_v20 = vpop.f32.mrb[9].mxu1  ;;  %11209 = vmatmul.mubr.f32.gmra.mrb[24].mxu1 %v13287_v40  ;;  %v1915_v35 = vmul.f32 %v13393_v52, %v13512_v17  ;;  %v13568_v37 = vstv %s13486_s11  ;;  %v13573_v12 = vsel %vm1701_vm3, %v2107_v2, %v2108_v9  ;;  %v13576_v59 = vsel %vm1701_vm3, %v2108_v9, %v2110_v0  ;;  %s14111_s11 = sld [smem:[#allocation6 + $0x183]] }
 0x2e7   : > { %11211 = vmatprep.mubr.msk.f32.mxu1 %vm12228_vm0, %v17485_v6  ;;  %v2063_v61 = vmul.f32 %v13395_v50, %v13512_v17  ;;  %v1951_v27 = vmul.f32 %v13403_v56, %v13475_v49  ;;  %v2315_v45 = vmul.f32 %v13397_v53, %v13512_v17  ;;  %v2351_v2 = vmul.f32 %v13389_v39, %v13475_v49 }
 0x2e8   : > { %2244 = vrot.lane.b32.xlu1 %v2235_v14, %s12230_s5  ;;  %2516 = vrot.lane.b32.xlu0 %v2509_v58, %s12230_s5  ;;  %v1927_v32 = vrot.slane %v1915_v35, 1  ;;  %v2463_v9 = vmul.f32 %v13401_v55, %v13512_v17  ;;  %v13592_v3 = vmul.f32 %v13383_v30, %v13512_v17  ;;  %v13596_v14 = vmul.f32 %v13379_v16, %v13512_v17 }
 0x2e9   : > { %v2075_v20 = vrot.slane %v2063_v61, 2  ;;  %v1962_v48 = vrot.slane %v1951_v27, 1  ;;  %v2327_v35 = vrot.slane %v2315_v45, 1  ;;  %v2362_v44 = vrot.slane %v2351_v2, 1 }
 0x2ea   : > { %17542 = vst [vmem:[#allocation17_spill] sm:$0xff] %v13592_v3  ;;  %17543 = vst [vmem:[#allocation18_spill] sm:$0xff] %v13596_v14  ;;  %11212 = vmatmul.mubr.f32.gmra.mrb[26].mxu1 %v13300_v38  ;;  %v13600_v58 = vsel %vm1584_vm2, %v1925_v18, %v1927_v32  ;;  %v2475_v6 = vrot.slane %v2463_v9, 2  ;;  %v13612_v16 = vmul.f32 %v13385_v34, %v13512_v17  ;;  %v13633_v9 = vstv %s13549_s29  ;;  %s14118_s29 = sld [smem:[#allocation6 + $0x186]] }
 0x2eb   : > { %11214 = vmatprep.mubr.msk.f32.mxu1 %vm12228_vm0, %v17544_v57  ;;  %v13605_v61 = vsel %vm1701_vm3, %v2073_v22, %v2075_v20  ;;  %v13608_v27 = vsel %vm1584_vm2, %v1960_v60, %v1962_v48  ;;  %v1952_v18 = vmul.f32 %v13403_v56, %v13512_v17  ;;  %v13620_v45 = vsel %vm1584_vm2, %v2325_v26, %v2327_v35 }
 0x2ec   : > { %17545 = vst [vmem:[#allocation19_spill] sm:$0xff] %v13612_v16  ;;  %1931 = vrot.lane.b32.xlu1 %v13495_v5, %s12231_s7  ;;  %2220 = vrot.lane.b32.xlu0 %v2210_v33, %s12230_s5  ;;  %v17546_v22 = vrot.slane %v13450_v1, 1  ;;  %v13628_v2 = vsel %vm1701_vm3, %v2473_v31, %v2475_v6  ;;  %v2100_v5 = vmul.f32 %v13411_v8, %v13512_v17 }
 0x2ed   : > { %17547 = vst [vmem:[#allocation20_spill] sm:$0xff] %v13628_v2  ;;  %v1964_v16 = vrot.slane %v1952_v18, 1  ;;  %v13639_v26 = vmul.f32 %v13389_v39, %v13512_v17  ;;  %v1916_v1 = vmul.f32 %v13393_v52, %v13551_v10  ;;  %v2064_v31 = vmul.f32 %v13395_v50, %v13551_v10 }
 0x2ee   : > { %v13625_v60 = vsel %vm1584_vm2, %v17546_v22, %v2362_v44  ;;  %11215 = vmatmul.mubr.f32.gmra.mrb[28].mxu1 %v13313_v63  ;;  %v2316_v33 = vmul.f32 %v13397_v53, %v13551_v10  ;;  %v2464_v18 = vmul.f32 %v13401_v55, %v13551_v10  ;;  %v1953_v22 = vmul.f32 %v13403_v56, %v13551_v10 }
 0x2ef   : > { %11221 = vmatprep.mubr.msk.f32.mxu1 %vm12228_vm0, %v17544_v57  ;;  %v13655_v14 = vsel %vm1584_vm2, %v1962_v48, %v1964_v16  ;;  %v2112_v52 = vrot.slane %v2100_v5, 2  ;;  %v17489_v47 = vrot.slane %v13639_v26, 1  ;;  %v1929_v3 = vrot.slane %v1916_v1, 1 }
 0x2f0   : > { %2079 = vrot.lane.b32.xlu1 %v13498_v7, %s12231_s7  ;;  %1933 = vrot.lane.b32.xlu0 %v13525_v62, %s12231_s7  ;;  %v2077_v50 = vrot.slane %v2064_v31, 2  ;;  %v2329_v53 = vrot.slane %v2316_v33, 1  ;;  %v2477_v55 = vrot.slane %v2464_v18, 2  ;;  %v1966_v56 = vrot.slane %v1953_v22, 1 }
 0x2f1   : > { %v13663_v2 = vsel %vm1701_vm3, %v2110_v0, %v2112_v52  ;;  %v13668_v48 = vsel %vm1584_vm2, %v2362_v44, %v17489_v47  ;;  %v13671_v5 = vsel %vm1584_vm2, %v1927_v32, %v1929_v3  ;;  %v2101_v7 = vmul.f32 %v13411_v8, %v13551_v10 }
 0x2f2   : > { %11222 = vmatmul.mubr.f32.vlgmr.msra.gmra.mrb[20].mxu1 %v13264_v21  ;;  %v13677_v62 = vsel %vm1701_vm3, %v2075_v20, %v2077_v50  ;;  %v13680_v0 = vsel %vm1584_vm2, %v2327_v35, %v2329_v53  ;;  %v13683_v1 = vsel %vm1701_vm3, %v2475_v6, %v2477_v55  ;;  %v13686_v44 = vsel %vm1584_vm2, %v1964_v16, %v1966_v56 }
 0x2f3   : > { %11592 = vmatpush3.bf16.msra.mxu1 %v12687_v25  ;;  %11224 = vmatprep.mubr.msk.f32.mxu1 %vm12228_vm0, %v17544_v57  ;;  %v13693_v3 = vmul.f32 %v13383_v30, %v13475_v49  ;;  %v2114_v21 = vrot.slane %v2101_v7, 2  ;;  %v1574_v8 = vmul.f32 %v13434_v23, %v13399_v54  ;;  %v1575_v6 = vmul.f32 %v13434_v23, %v13436_v24 }
 0x2f4   : > { %2331 = vrot.lane.b32.xlu1 %v13504_v19, %s12230_s5  ;;  %2081 = vrot.lane.b32.xlu0 %v13541_v46, %s12231_s7  ;;  %v1534_v32 = vmul.f32 %v13413_v11, %v13399_v54  ;;  %v1691_v30 = vmul.f32 %v13547_v4, %v13399_v54  ;;  %v1692_v20 = vmul.f32 %v13547_v4, %v13436_v24  ;;  %v13710_v35 = vstv %s13630_s9  ;;  %s14125_s9 = sld [smem:[#allocation6 + $0x185]] }
 0x2f5   : > { %v17548_v16 = vmov 0.0|0.0   ;;  %v13714_v31 = vsel %vm1701_vm3, %v2112_v52, %v2114_v21  ;;  %v1585_v19 = vrot.slane %v1574_v8, 1  ;;  %v1586_v33 = vrot.slane %v1575_v6, 1 }
 0x2f6   : > { %11593 = vmatprep.subr.bf16.mxu1 %v17548_v16  ;;  %v1604_v46 = vmul.f32 %v13568_v37, %v13399_v54  ;;  %11225 = vmatmul.mubr.f32.gmra.mrb[22].mxu1 %v13274_v29  ;;  %v1702_v18 = vrot.slane %v1691_v30, 2  ;;  %v1703_v22 = vrot.slane %v1692_v20, 2  ;;  %v1605_v50 = vmul.f32 %v13568_v37, %v13436_v24 }
 0x2f7   : > { %v1721_v53 = vmul.f32 %v13633_v9, %v13399_v54  ;;  %11227 = vmatprep.mubr.msk.f32.mxu1 %vm12228_vm0, %v17544_v57  ;;  %v1587_v52 = vsel %vm1584_vm2, %v1585_v19, %v1586_v33  ;;  %v1544_v55 = vmul.f32 %v13710_v35, %v13399_v54  ;;  %v1722_v29 = vmul.f32 %v13633_v9, %v13436_v24 }
 0x2f8   : > { %v1614_v56 = vrot.slane %v1604_v46, 1  ;;  %2479 = vrot.lane.b32.xlu1 %v13516_v13, %s12230_s5  ;;  %2333 = vrot.lane.b32.xlu0 %v13544_v51, %s12230_s5  ;;  %v1598_v7 = vadd.f32 %v1587_v52, %v1534_v32  ;;  %v1704_v21 = vsel %vm1701_vm3, %v1702_v18, %v1703_v22  ;;  %v1615_v8 = vrot.slane %v1605_v50, 1 }
 0x2f9   : > { %v1535_v6 = vmul.f32 %v13413_v11, %v13436_v24  ;;  %v1731_v30 = vrot.slane %v1721_v53, 2  ;;  %v1732_v20 = vrot.slane %v1722_v29, 2  ;;  %v13739_v19 = vmul.f32 %v13434_v23, %v13475_v49 }
 0x2fa   : > { %v13743_v46 = vmul.f32 %v13547_v4, %v13475_v49  ;;  %11228 = vmatmul.mubr.f32.gmra.mrb[24].mxu1 %v13287_v40  ;;  %v7916_v13 = vpop.f32.mrb[30].mxu0  ;;  %v13746_v51 = vadd.f32 %v1704_v21, %v1598_v7  ;;  %v1616_v32 = vsel %vm1584_vm2, %v1614_v56, %v1615_v8  ;;  %v13751_v18 = vmul.f32 %v13568_v37, %v13475_v49 }
 0x2fb   : > { %v13755_v50 = vmul.f32 %v13633_v9, %v13475_v49  ;;  %v7945_v53 = vsel %vm239_vm1, %v7916_v13, 0  ;;  %v11337_v52 = vpop.f32.mrb[31].mxu0  ;;  %11230 = vmatprep.mubr.msk.f32.mxu1 %vm12228_vm0, %v17544_v57  ;;  %v1627_v40 = vadd.f32 %v1616_v32, %v1544_v55  ;;  %v1733_v29 = vsel %vm1701_vm3, %v1731_v30, %v1732_v20 }
 0x2fc   : > { %v1588_v7 = vrot.slane %v13739_v19, 1  ;;  %v13762_v56 = vand.u32 4294901760, %v7945_v53  ;;  %1968 = vrot.lane.b32.xlu1 %v13554_v15, %s12231_s7  ;;  %2481 = vrot.lane.b32.xlu0 %v13557_v42, %s12230_s5  ;;  %v1705_v21 = vrot.slane %v13743_v46, 2  ;;  %v1617_v13 = vrot.slane %v13751_v18, 1 }
 0x2fd   : > { %v1734_v52 = vrot.slane %v13755_v50, 2  ;;  %v2237_v55 = vmul.f32 %v13387_v36, %v13512_v17  ;;  %v13773_v30 = vadd.f32 %v1733_v29, %v1627_v40  ;;  %v1545_v32 = vmul.f32 %v13710_v35, %v13436_v24 }
 0x2fe   : > { %v1589_v19 = vsel %vm1584_vm2, %v1586_v33, %v1588_v7  ;;  %v13779_v15 = vsub.f32 %v7945_v53, %v13762_v56  ;;  %11231 = vmatmul.mubr.f32.gmra.mrb[26].mxu1 %v13300_v38  ;;  %v7922_v42 = vpop.f32.mrb[32].mxu0  ;;  %v1706_v18 = vsel %vm1701_vm3, %v1703_v22, %v1705_v21  ;;  %v1618_v50 = vsel %vm1584_vm2, %v1615_v8, %v1617_v13 }
 0x2ff   : > { %17549 = vst [vmem:[#allocation21_spill] sm:$0xff] %v13773_v30  ;;  %v1599_v46 = vadd.f32 %v1589_v19, %v1535_v6  ;;  %v7948_v47 = vsel %vm239_vm1, %v7922_v42, 0  ;;  %v11340_v40 = vpop.f32.mrb[33].mxu0  ;;  %11233 = vmatprep.mubr.msk.f32.mxu1 %vm12228_vm0, %v17544_v57  ;;  %v1836_v33 = vmul.f32 %v13385_v34, %v13475_v49  ;;  %v1628_v29 = vadd.f32 %v1618_v50, %v1545_v32 }
 0x300   : > { %v1735_v53 = vsel %vm1701_vm3, %v1732_v20, %v1734_v52  ;;  %v17490_v38 = vand.u32 4294901760, %v13779_v15  ;;  %v13791_v30 = vand.u32 4294901760, %v7948_v47  ;;  %2116 = vrot.lane.b32.xlu1 %v13573_v12, %s12231_s7  ;;  %2118 = vrot.lane.b32.xlu0 %v13576_v59, %s12231_s7  ;;  %v1536_v8 = vmul.f32 %v13413_v11, %v13475_v49 }
 0x301   : > { %v13797_v22 = vadd.f32 %v1706_v18, %v1599_v46  ;;  %v13801_v6 = vadd.f32 %v1735_v53, %v1628_v29  ;;  %v1577_v34 = vmul.f32 %v13434_v23, %v13512_v17  ;;  %v13807_v20 = vmul.f32 %v13547_v4, %v13512_v17 }
 0x302   : > { %v1546_v12 = vmul.f32 %v13710_v35, %v13475_v49  ;;  %v8029_v59 = vsub.f32 %v13779_v15, %v17490_v38  ;;  %v13815_v19 = vsub.f32 %v7948_v47, %v13791_v30  ;;  %11234 = vmatmul.mubr.f32.gmra.mrb[28].mxu1 %v13313_v63  ;;  %v7928_v32 = vpop.f32.mrb[34].mxu0  ;;  %v13820_v42 = vmul.f32 %v13568_v37, %v13512_v17 }
 0x303   : > { %17550 = vst [vmem:[#allocation22_spill] sm:$0xff] %v13797_v22  ;;  %17551 = vst [vmem:[#allocation23_spill] sm:$0xff] %v13801_v6  ;;  %v13824_v46 = vmul.f32 %v13633_v9, %v13512_v17  ;;  %v7951_v18 = vsel %vm239_vm1, %v7928_v32, 0  ;;  %v11343_v50 = vpop.f32.mrb[35].mxu0  ;;  %11354 = vmatprep.mubr.msk.f32.mxu1 %vm12228_vm0, %v17544_v57  ;;  %v1590_v40 = vrot.slane %v1577_v34, 1  ;;  %v1707_v47 = vrot.slane %v13807_v20, 2 }
 0x304   : > { %v1537_v63 = vmul.f32 %v13413_v11, %v13512_v17  ;;  %v8030_v29 = vand.u32 4294901760, %v8029_v59  ;;  %v13833_v38 = vand.u32 4294901760, %v7951_v18  ;;  %1820 = vrot.lane.b32.xlu1 %v13693_v3, %s12231_s7  ;;  %2248 = vrot.lane.b32.xlu0 %v2237_v55, %s12230_s5  ;;  %v1619_v32 = vrot.slane %v13820_v42, 1 }
 0x305   : > { %v1591_v50 = vsel %vm1584_vm2, %v1588_v7, %v1590_v40  ;;  %v1708_v34 = vsel %vm1701_vm3, %v1705_v21, %v1707_v47  ;;  %v1736_v20 = vrot.slane %v13824_v46, 2  ;;  %v1578_v11 = vmul.f32 %v13434_v23, %v13551_v10 }
 0x306   : > { %v13845_v59 = vsub.f32 %v7951_v18, %v13833_v38  ;;  %v7934_v53 = vpop.f32.mrb[36].mxu0  ;;  %11355 = vmatmul.mubr.f32.vlgmr.msra.gmra.mrb[30].mxu1 %v8030_v29  ;;  %v17552_v3 = vand.u32 4294901760, %v13815_v19  ;;  %v1600_v6 = vadd.f32 %v1591_v50, %v1536_v8  ;;  %v1620_v42 = vsel %vm1584_vm2, %v1617_v13, %v1619_v32 }
 0x307   : > { %v7954_v7 = vsel %vm239_vm1, %v7934_v53, 0  ;;  %v11346_v21 = vpop.f32.mrb[37].mxu0  ;;  %11595 = vmatpush3.bf16.msra.mxu1 %v12708_v43  ;;  %11357 = vmatprep.mubr.msk.f32.mxu1 %vm12228_vm0, %v17544_v57  ;;  %v1629_v23 = vadd.f32 %v1620_v42, %v1546_v12  ;;  %v1737_v46 = vsel %vm1701_vm3, %v1734_v52, %v1736_v20  ;;  %v1592_v18 = vrot.slane %v1578_v11, 1 }
 0x308   : > { %v8039_v55 = vsub.f32 %v13815_v19, %v17552_v3  ;;  %v17493_v29 = vand.u32 4294901760, %v13845_v59  ;;  %v13857_v22 = vand.u32 4294901760, %v7954_v7  ;;  %1846 = vrot.lane.b32.xlu1 %v1836_v33, %s12231_s7  ;;  %1935 = vrot.lane.b32.xlu0 %v13600_v58, %s12231_s7  ;;  %v13862_v8 = vadd.f32 %v1708_v34, %v1600_v6 }
 0x309   : > { %v2236_v43 = vmul.f32 %v13387_v36, %v13475_v49  ;;  %11596 = vmatprep.subr.bf16.mxu1 %v17548_v16  ;;  %v13867_v12 = vadd.f32 %v1737_v46, %v1629_v23  ;;  %v1593_v52 = vsel %vm1584_vm2, %v1590_v40, %v1592_v18  ;;  %v1695_v53 = vmul.f32 %v13547_v4, %v13551_v10 }
 0x30a   : > { %v8040_v13 = vand.u32 4294901760, %v8039_v55  ;;  %v13873_v33 = vsub.f32 %v7954_v7, %v13857_v22  ;;  %v7940_v50 = vpop.f32.mrb[38].mxu0  ;;  %v8049_v58 = vsub.f32 %v13845_v59, %v17493_v29  ;;  %v1601_v6 = vadd.f32 %v1593_v52, %v1537_v63  ;;  %v17570_v29 = vld [vmem:[#allocation19_spill] sm:$0xff] }
 0x30b   : > { %17553 = vst [vmem:[#allocation24_spill] sm:$0xff] %v13867_v12  ;;  %v1608_v36 = vmul.f32 %v13568_v37, %v13551_v10  ;;  %v7957_v34 = vsel %vm239_vm1, %v7940_v50, 0  ;;  %v11349_v11 = vpop.f32.mrb[39].mxu0  ;;  %v1709_v4 = vrot.slane %v1695_v53, 2  ;;  %v1725_v40 = vmul.f32 %v13633_v9, %v13551_v10 }
 0x30c   : > { %11358 = vmatmul.mubr.f32.gmra.mrb[32].mxu1 %v8040_v13  ;;  %v17492_v3 = vand.u32 4294901760, %v13873_v33  ;;  %v13886_v55 = vand.u32 4294901760, %v7957_v34  ;;  %2246 = vrot.lane.b32.xlu1 %v2236_v43, %s12230_s5  ;;  %v8050_v37 = vand.u32 4294901760, %v8049_v58  ;;  %v1547_v7 = vmul.f32 %v13710_v35, %v13512_v17 }
 0x30d   : > { %11360 = vmatprep.mubr.msk.f32.mxu1 %vm12228_vm0, %v17544_v57  ;;  %2083 = vrot.lane.b32.xlu0 %v13605_v61, %s12231_s7  ;;  %v1621_v63 = vrot.slane %v1608_v36, 1  ;;  %v1710_v42 = vsel %vm1701_vm3, %v1707_v47, %v1709_v4  ;;  %v1738_v21 = vrot.slane %v1725_v40, 2  ;;  %v2353_v9 = vmul.f32 %v13389_v39, %v13551_v10 }
 0x30e   : > { %v13903_v23 = vsub.f32 %v7957_v34, %v13886_v55  ;;  %v8059_v61 = vsub.f32 %v13873_v33, %v17492_v3  ;;  %v13908_v47 = vadd.f32 %v1710_v42, %v1601_v6  ;;  %v2499_v13 = vmul.f32 %v13391_v41, %v13475_v49  ;;  %v17558_v34 = vld [vmem:[#allocation20_spill] sm:$0xff] }
 0x30f   : > { %v1622_v35 = vsel %vm1584_vm2, %v1619_v32, %v1621_v63  ;;  %v1739_v46 = vsel %vm1701_vm3, %v1736_v20, %v1738_v21  ;;  %v2366_v18 = vrot.slane %v2353_v9, 1  ;;  %v2500_v32 = vmul.f32 %v13391_v41, %v13512_v17 }
 0x310   : > { %11361 = vmatmul.mubr.f32.gmra.mrb[34].mxu1 %v8050_v37  ;;  %v1630_v39 = vadd.f32 %v1622_v35, %v1547_v7  ;;  %v17491_v43 = vand.u32 4294901760, %v13903_v23  ;;  %1970 = vrot.lane.b32.xlu1 %v13608_v27, %s12231_s7  ;;  %v8060_v52 = vand.u32 4294901760, %v8059_v61  ;;  %v2501_v53 = vmul.f32 %v13391_v41, %v13551_v10  ;;  %v17561_v35 = vld [vmem:[#allocation17_spill] sm:$0xff] }
 0x311   : > { %11363 = vmatprep.mubr.msk.f32.mxu1 %vm12228_vm0, %v17544_v57  ;;  %2335 = vrot.lane.b32.xlu0 %v13620_v45, %s12230_s5  ;;  %v17555_v50 = vrot.slane %v13639_v26, 1  ;;  %v2510_v27 = vrot.slane %v2499_v13, 2  ;;  %v2512_v6 = vrot.slane %v2500_v32, 2  ;;  %v17556_v26 = vrot.slane %v13458_v28, 2 }
 0x312   : > { %v13925_v20 = vadd.f32 %v1739_v46, %v1630_v39  ;;  %v8069_v45 = vsub.f32 %v13903_v23, %v17491_v43  ;;  %v2514_v41 = vrot.slane %v2501_v53, 2  ;;  %v1985_v37 = vstv %s13891_s26  ;;  %s14131_s26 = sld [smem:[#allocation6 + $0x188]] }
 0x313   : > { %v13930_v58 = vsel %vm1584_vm2, %v17555_v50, %v2366_v18  ;;  %v13942_v36 = vsel %vm1701_vm3, %v17556_v26, %v2510_v27  ;;  %v13952_v40 = vsel %vm1701_vm3, %v2510_v27, %v2512_v6  ;;  %v2133_v63 = vstv %s13898_s20  ;;  %v17564_v26 = vld [vmem:[#allocation11_spill] sm:$0xff]  ;;  %s14290_s20 = sld [smem:[#allocation6 + $0xb]] }
 0x314   : > { %17554 = vst [vmem:[#allocation25_spill] sm:$0xff] %v13925_v20  ;;  %11364 = vmatmul.mubr.f32.gmra.mrb[36].mxu1 %v8060_v52  ;;  %17557 = vst [vmem:[#allocation26_spill] sm:$0xff] %v13942_v36  ;;  %2370 = vrot.lane.b32.xlu1 %v13625_v60, %s12230_s5  ;;  %v8070_v11 = vand.u32 4294901760, %v8069_v45  ;;  %v13949_v4 = vsel %vm1701_vm3, %v2512_v6, %v2514_v41  ;;  %v13957_v42 = vstv %s13900_s25  ;;  %v13987_v50 = vstv %s13932_s30  ;;  %s14297_s25 = sld [smem:[#allocation6 + $0xa]]  ;;  %s14309_s30 = sld [smem:[#allocation6 + $0xd]] }
 0x315   : > { %11366 = vmatprep.mubr.msk.f32.mxu1 %vm12228_vm0, %v17544_v57  ;;  %2483 = vrot.lane.b32.xlu0 %v17558_v34, %s12230_s5  ;;  %17559 = vst [vmem:[#allocation20_spill] sm:$0xff] %v13949_v4  ;;  %17560 = vst [vmem:[#allocation27_spill] sm:$0xff] %v13952_v40  ;;  %v1988_v28 = vmul.f32 %v1985_v37, %v13475_v49  ;;  %v13961_v60 = vmul.f32 %v1985_v37, %v13512_v17  ;;  %v14037_v3 = vstv %s13974_s12  ;;  %s14311_s12 = sld [smem:[#allocation6 + $0x10]] }
 0x316   : > { %v2135_v7 = vmul.f32 %v2133_v63, %v13436_v24  ;;  %v2136_v21 = vmul.f32 %v2133_v63, %v13475_v49  ;;  %v13968_v9 = vmul.f32 %v2133_v63, %v13512_v17  ;;  %v13972_v61 = vmul.f32 %v13957_v42, %v13436_v24 }
 0x317   : > { %v1999_v39 = vrot.slane %v1988_v28, 1  ;;  %v2001_v46 = vrot.slane %v13961_v60, 1  ;;  %v2388_v32 = vmul.f32 %v13957_v42, %v13475_v49  ;;  %v13984_v53 = vmul.f32 %v13957_v42, %v13512_v17 }
 0x318   : > { %11367 = vmatmul.mubr.f32.gmra.mrb[38].mxu1 %v8070_v11  ;;  %1822 = vrot.lane.b32.xlu1 %v17561_v35, %s12231_s7  ;;  %v2145_v18 = vrot.slane %v2135_v7, 2  ;;  %v2147_v13 = vrot.slane %v2136_v21, 2  ;;  %v2149_v52 = vrot.slane %v13968_v9, 2  ;;  %v2535_v6 = vmul.f32 %v13987_v50, %v13436_v24  ;;  %v17566_v7 = vld [vmem:[#allocation18_spill] sm:$0xff] }
 0x319   : > { %11373 = vmatprep.mubr.msk.f32.mxu1 %vm12228_vm0, %v17544_v57  ;;  %v13993_v27 = vsel %vm1584_vm2, %v1999_v39, %v2001_v46  ;;  %v2536_v41 = vmul.f32 %v13987_v50, %v13475_v49  ;;  %v2397_v11 = vrot.slane %v13972_v61, 1  ;;  %v2399_v28 = vrot.slane %v2388_v32, 1 }
 0x31a   : > { %17562 = vst [vmem:[#allocation17_spill] sm:$0xff] %v13993_v27  ;;  %v13996_v45 = vsel %vm1701_vm3, %v2145_v18, %v2147_v13  ;;  %v14006_v34 = vsel %vm1701_vm3, %v2147_v13, %v2149_v52  ;;  %v2401_v60 = vrot.slane %v13984_v53, 1  ;;  %v2545_v21 = vrot.slane %v2535_v6, 2 }
 0x31b   : > { %17563 = vst [vmem:[#allocation28_spill] sm:$0xff] %v13996_v45  ;;  %17565 = vst [vmem:[#allocation11_spill] sm:$0xff] %v14006_v34  ;;  %v2547_v9 = vrot.slane %v2536_v41, 2  ;;  %v14017_v35 = vmul.f32 %v13987_v50, %v13512_v17  ;;  %v14020_v13 = vsel %vm1584_vm2, %v2397_v11, %v2399_v28  ;;  %v1986_v32 = vmul.f32 %v1985_v37, %v13399_v54 }
 0x31c   : > { %11374 = vmatmul.mubr.f32.vlgmr.msra.gmra.mrb[30].mxu1 %v13762_v56  ;;  %2222 = vrot.lane.b32.xlu1 %v17566_v7, %s12230_s5  ;;  %17567 = vst [vmem:[#allocation18_spill] sm:$0xff] %v14020_v13  ;;  %v14023_v61 = vsel %vm1584_vm2, %v2399_v28, %v2401_v60  ;;  %v1987_v53 = vmul.f32 %v1985_v37, %v13436_v24 }
 0x31d   : > { %11598 = vmatpush3.bf16.msra.mxu1 %v17564_v26  ;;  %11376 = vmatprep.mubr.msk.f32.mxu1 %vm12228_vm0, %v17544_v57  ;;  %17568 = vst [vmem:[#allocation29_spill] sm:$0xff] %v14023_v61  ;;  %v14029_v26 = vsel %vm1701_vm3, %v2545_v21, %v2547_v9  ;;  %v17494_v6 = vrot.slane %v14017_v35, 2  ;;  %v2134_v41 = vmul.f32 %v2133_v63, %v13399_v54  ;;  %v1996_v7 = vrot.slane %v1986_v32, 1 }
 0x31e   : > { %11599 = vmatprep.subr.bf16.mxu1 %v17548_v16  ;;  %17569 = vst [vmem:[#allocation30_spill] sm:$0xff] %v14029_v26  ;;  %v1997_v28 = vrot.slane %v1987_v53, 1  ;;  %v1990_v43 = vmul.f32 %v1985_v37, %v13551_v10  ;;  %v2138_v13 = vmul.f32 %v2133_v63, %v13551_v10  ;;  %v2386_v32 = vmul.f32 %v13957_v42, %v13399_v54 }
 0x31f   : > { %v14044_v26 = vsel %vm1701_vm3, %v2547_v9, %v17494_v6  ;;  %v2144_v61 = vrot.slane %v2134_v41, 2  ;;  %v2534_v63 = vmul.f32 %v13987_v50, %v13399_v54 }
 0x320   : > { %11377 = vmatmul.mubr.f32.gmra.mrb[32].mxu1 %v13791_v30  ;;  %1848 = vrot.lane.b32.xlu1 %v17570_v29, %s12231_s7  ;;  %17571 = vst [vmem:[#allocation19_spill] sm:$0xff] %v14044_v26  ;;  %v14050_v53 = vsel %vm1584_vm2, %v1996_v7, %v1997_v28  ;;  %v14053_v37 = vsel %vm1584_vm2, %v1997_v28, %v1999_v39  ;;  %v2003_v34 = vrot.slane %v1990_v43, 1  ;;  %v1632_v29 = vstv %s13989_s8  ;;  %s14326_s8 = sld [smem:[#allocation6 + $0xe]] }
 0x321   : > { %11379 = vmatprep.mubr.msk.f32.mxu1 %vm12228_vm0, %v17544_v57  ;;  %17572 = vst [vmem:[#allocation31_spill] sm:$0xff] %v14050_v53  ;;  %17573 = vst [vmem:[#allocation32_spill] sm:$0xff] %v14053_v37  ;;  %v14058_v9 = vsel %vm1701_vm3, %v2144_v61, %v2145_v18  ;;  %v2151_v41 = vrot.slane %v2138_v13, 2  ;;  %v2396_v6 = vrot.slane %v2386_v32, 1  ;;  %v2390_v43 = vmul.f32 %v13957_v42, %v13551_v10 }
 0x322   : > { %17574 = vst [vmem:[#allocation33_spill] sm:$0xff] %v14058_v9  ;;  %v14065_v7 = vsel %vm1584_vm2, %v2001_v46, %v2003_v34  ;;  %v1634_v39 = vmul.f32 %v1632_v29, %v13436_v24  ;;  %v1749_v28 = vstv %s14010_s13  ;;  %v2544_v61 = vrot.slane %v2534_v63, 2  ;;  %s14328_s13 = sld [smem:[#allocation6 + $0x11]] }
 0x323   : > { %17575 = vst [vmem:[#allocation34_spill] sm:$0xff] %v14065_v7  ;;  %v14074_v18 = vsel %vm1701_vm3, %v2149_v52, %v2151_v41  ;;  %v14077_v13 = vsel %vm1584_vm2, %v2396_v6, %v2397_v11  ;;  %v1635_v32 = vmul.f32 %v1632_v29, %v13475_v49  ;;  %v2403_v46 = vrot.slane %v2390_v43, 1 }
 0x324   : > { %11380 = vmatmul.mubr.f32.gmra.mrb[34].mxu1 %v13833_v38  ;;  %1972 = vrot.lane.b32.xlu1 %v13655_v14, %s12231_s7  ;;  %17576 = vst [vmem:[#allocation35_spill] sm:$0xff] %v14074_v18  ;;  %17577 = vst [vmem:[#allocation36_spill] sm:$0xff] %v14077_v13  ;;  %v1555_v34 = vmul.f32 %v14037_v3, %v13436_v24  ;;  %v1751_v42 = vmul.f32 %v1749_v28, %v13436_v24  ;;  %v1644_v52 = vrot.slane %v1634_v39, 1 }
 0x325   : > { %11382 = vmatprep.mubr.msk.f32.mxu1 %vm12228_vm0, %v17544_v57  ;;  %v1752_v7 = vmul.f32 %v1749_v28, %v13475_v49  ;;  %v14086_v14 = vsel %vm1701_vm3, %v2544_v61, %v2545_v21  ;;  %v1646_v41 = vrot.slane %v1635_v32, 1  ;;  %v1633_v11 = vmul.f32 %v1632_v29, %v13399_v54 }
 0x326   : > { %17578 = vst [vmem:[#allocation37_spill] sm:$0xff] %v14086_v14  ;;  %v14092_v6 = vsel %vm1584_vm2, %v2401_v60, %v2403_v46  ;;  %v1761_v63 = vrot.slane %v1751_v42, 2  ;;  %v1750_v13 = vmul.f32 %v1749_v28, %v13399_v54  ;;  %v1554_v39 = vmul.f32 %v14037_v3, %v13399_v54 }
 0x327   : > { %17579 = vst [vmem:[#allocation38_spill] sm:$0xff] %v14092_v6  ;;  %v1763_v43 = vrot.slane %v1752_v7, 2  ;;  %v1647_v21 = vsel %vm1584_vm2, %v1644_v52, %v1646_v41  ;;  %v1643_v61 = vrot.slane %v1633_v11, 1  ;;  %v1636_v32 = vmul.f32 %v1632_v29, %v13512_v17 }
 0x328   : > { %11383 = vmatmul.mubr.f32.gmra.mrb[36].mxu1 %v13857_v22  ;;  %2120 = vrot.lane.b32.xlu1 %v13663_v2, %s12231_s7  ;;  %v1657_v60 = vadd.f32 %v1647_v21, %v1555_v34  ;;  %v1760_v46 = vrot.slane %v1750_v13, 2  ;;  %v1753_v42 = vmul.f32 %v1749_v28, %v13512_v17  ;;  %v1556_v11 = vmul.f32 %v14037_v3, %v13475_v49 }
 0x329   : > { %11385 = vmatprep.mubr.msk.f32.mxu1 %vm12228_vm0, %v17544_v57  ;;  %v1764_v7 = vsel %vm1701_vm3, %v1761_v63, %v1763_v43  ;;  %v1645_v2 = vsel %vm1584_vm2, %v1643_v61, %v1644_v52  ;;  %v1648_v6 = vrot.slane %v1636_v32, 1  ;;  %v1637_v14 = vmul.f32 %v1632_v29, %v13551_v10 }
 0x32a   : > { %v14122_v13 = vadd.f32 %v1764_v7, %v1657_v60  ;;  %v1656_v34 = vadd.f32 %v1645_v2, %v1554_v39  ;;  %v1762_v21 = vsel %vm1701_vm3, %v1760_v46, %v1761_v63  ;;  %v1765_v18 = vrot.slane %v1753_v42, 2 }
 0x32b   : > { %v1649_v52 = vsel %vm1584_vm2, %v1646_v41, %v1648_v6  ;;  %v1650_v29 = vrot.slane %v1637_v14, 1  ;;  %v1754_v61 = vmul.f32 %v1749_v28, %v13551_v10  ;;  %v1557_v60 = vmul.f32 %v14037_v3, %v13512_v17 }
 0x32c   : > { %11386 = vmatmul.mubr.f32.gmra.mrb[38].mxu1 %v13886_v55  ;;  %17580 = vst [vmem:[#allocation39_spill] sm:$0xff] %v14122_v13  ;;  %2372 = vrot.lane.b32.xlu1 %v13668_v48, %s12230_s5  ;;  %v14133_v32 = vadd.f32 %v1762_v21, %v1656_v34  ;;  %v1658_v39 = vadd.f32 %v1649_v52, %v1556_v11  ;;  %v2022_v3 = vstv %s14095_s14  ;;  %v14153_v7 = vstv %s14103_s22  ;;  %s14344_s14 = sld [smem:[#allocation6 + $0xc]]  ;;  %s14349_s22 = sld [smem:[#allocation6 + $0xf]] }
 0x32d   : > { %11392 = vmatprep.mubr.msk.f32.mxu1 %vm12228_vm0, %v17544_v57  ;;  %v1766_v63 = vsel %vm1701_vm3, %v1763_v43, %v1765_v18  ;;  %v1651_v48 = vsel %vm1584_vm2, %v1648_v6, %v1650_v29  ;;  %v1767_v14 = vrot.slane %v1754_v61, 2  ;;  %v2538_v43 = vmul.f32 %v13987_v50, %v13551_v10  ;;  %17583 = vst [vmem:[#allocation42_spill] sm:$0xff] %v14153_v7 }
 0x32e   : > { %17581 = vst [vmem:[#allocation40_spill] sm:$0xff] %v14133_v32  ;;  %v14143_v28 = vadd.f32 %v1766_v63, %v1658_v39  ;;  %v1659_v41 = vadd.f32 %v1651_v48, %v1557_v60  ;;  %v14156_v46 = vstv %s14105_s23  ;;  %v14161_v11 = vstv %s14109_s10  ;;  %s14429_s23 = sld [smem:[#allocation6 + $0x9]]  ;;  %s14565_s10 = sld [smem:[#allocation6 + $0x8d]] }
 0x32f   : > { %v1768_v6 = vsel %vm1701_vm3, %v1765_v18, %v1767_v14  ;;  %v2551_v2 = vrot.slane %v2538_v43, 2  ;;  %v1661_v50 = vstv %s14111_s11  ;;  %v2024_v34 = vmul.f32 %v2022_v3, %v13436_v24  ;;  %s14572_s11 = sld [smem:[#allocation6 + $0x90]] }
 0x330   : > { %11393 = vmatmul.mubr.f32.vlgmr.msra.gmra.mrb[30].mxu1 %v13779_v15  ;;  %17582 = vst [vmem:[#allocation41_spill] sm:$0xff] %v14143_v28  ;;  %1937 = vrot.lane.b32.xlu1 %v13671_v5, %s12231_s7  ;;  %v14158_v42 = vadd.f32 %v1768_v6, %v1659_v41  ;;  %v2023_v5 = vmul.f32 %v2022_v3, %v13399_v54  ;;  %v1778_v21 = vstv %s14118_s29  ;;  %v17585_v52 = vrot.slane %v14017_v35, 2  ;;  %s14584_s29 = sld [smem:[#allocation6 + $0x8e]] }
 0x331   : > { %11601 = vmatpush3.bf16.msra.mxu1 %v12687_v25  ;;  %11395 = vmatprep.mubr.msk.f32.mxu1 %vm12228_vm0, %v17544_v57  ;;  %v14168_v18 = vmul.f32 %v2022_v3, %v13475_v49  ;;  %v2171_v61 = vmul.f32 %v14156_v46, %v13399_v54  ;;  %v14182_v39 = vmul.f32 %v14156_v46, %v13436_v24  ;;  %v14185_v63 = vstv %s14125_s9  ;;  %s14678_s9 = sld [smem:[#allocation6 + $0x91]] }
 0x332   : > { %11602 = vmatprep.subr.bf16.mxu1 %v17548_v16  ;;  %17584 = vst [vmem:[#allocation43_spill] sm:$0xff] %v14158_v42  ;;  %v14176_v29 = vsel %vm1701_vm3, %v17585_v52, %v2551_v2  ;;  %v2033_v60 = vrot.slane %v2023_v5, 1  ;;  %v2034_v48 = vrot.slane %v2024_v34, 1  ;;  %v14191_v35 = vstv %s14131_s26  ;;  %s14744_s26 = sld [smem:[#allocation6 + $0x89]] }
 0x333   : > { %17586 = vst [vmem:[#allocation44_spill] sm:$0xff] %v14176_v29  ;;  %v2036_v14 = vrot.slane %v14168_v18, 1  ;;  %v2181_v41 = vrot.slane %v2171_v61, 2  ;;  %v17495_v43 = vrot.slane %v14182_v39, 2  ;;  %v1662_v6 = vmul.f32 %v1661_v50, %v13399_v54 }
 0x334   : > { %11396 = vmatmul.mubr.f32.gmra.mrb[32].mxu1 %v13815_v19  ;;  %2085 = vrot.lane.b32.xlu1 %v13677_v62, %s12231_s7  ;;  %v14196_v2 = vmul.f32 %v1661_v50, %v13436_v24  ;;  %v14200_v52 = vsel %vm1584_vm2, %v2033_v60, %v2034_v48  ;;  %v1779_v5 = vmul.f32 %v1778_v21, %v13399_v54 }
 0x335   : > { %11398 = vmatprep.mubr.msk.f32.mxu1 %vm12228_vm0, %v17544_v57  ;;  %17587 = vst [vmem:[#allocation45_spill] sm:$0xff] %v14200_v52  ;;  %v14203_v62 = vsel %vm1584_vm2, %v2034_v48, %v2036_v14  ;;  %v14207_v34 = vmul.f32 %v1778_v21, %v13436_v24  ;;  %v14214_v18 = vsel %vm1701_vm3, %v2181_v41, %v17495_v43  ;;  %v1672_v60 = vrot.slane %v1662_v6, 1 }
 0x336   : > { %17588 = vst [vmem:[#allocation46_spill] sm:$0xff] %v14203_v62  ;;  %17589 = vst [vmem:[#allocation47_spill] sm:$0xff] %v14214_v18  ;;  %v1564_v61 = vmul.f32 %v14161_v11, %v13399_v54  ;;  %v17496_v48 = vrot.slane %v14196_v2, 1  ;;  %v1789_v62 = vrot.slane %v1779_v5, 2  ;;  %v14223_v42 = vmul.f32 %v1661_v50, %v13475_v49 }
 0x337   : > { %v17497_v52 = vrot.slane %v14207_v34, 2  ;;  %v1665_v29 = vmul.f32 %v1661_v50, %v13512_v17  ;;  %v1566_v6 = vmul.f32 %v14161_v11, %v13475_v49  ;;  %v14232_v43 = vmul.f32 %v1778_v21, %v13475_v49 }
 0x338   : > { %11399 = vmatmul.mubr.f32.gmra.mrb[34].mxu1 %v13845_v59  ;;  %2337 = vrot.lane.b32.xlu1 %v13680_v0, %s12230_s5  ;;  %v1674_v41 = vsel %vm1584_vm2, %v1672_v60, %v17496_v48  ;;  %v1782_v0 = vmul.f32 %v1778_v21, %v13512_v17  ;;  %v17498_v32 = vrot.slane %v14223_v42, 1  ;;  %v1666_v28 = vmul.f32 %v1661_v50, %v13551_v10 }
 0x339   : > { %11401 = vmatprep.mubr.msk.f32.mxu1 %vm12228_vm0, %v17544_v57  ;;  %v1685_v5 = vadd.f32 %v1674_v41, %v1564_v61  ;;  %v1791_v18 = vsel %vm1701_vm3, %v1789_v62, %v17497_v52  ;;  %v1677_v13 = vrot.slane %v1665_v29, 1  ;;  %v17499_v60 = vrot.slane %v14232_v43, 2 }
 0x33a   : > { %v1794_v48 = vrot.slane %v1782_v0, 2  ;;  %v1783_v9 = vmul.f32 %v1778_v21, %v13551_v10  ;;  %v2026_v29 = vmul.f32 %v2022_v3, %v13512_v17  ;;  %v2027_v41 = vmul.f32 %v2022_v3, %v13551_v10 }
 0x33b   : > { %v14247_v61 = vadd.f32 %v1791_v18, %v1685_v5  ;;  %v1678_v62 = vsel %vm1584_vm2, %v17498_v32, %v1677_v13  ;;  %v1679_v0 = vrot.slane %v1666_v28, 1  ;;  %v14262_v32 = vmul.f32 %v14153_v7, %v13436_v24 }
 0x33c   : > { %11402 = vmatmul.mubr.f32.gmra.mrb[36].mxu1 %v13873_v33  ;;  %2485 = vrot.lane.b32.xlu1 %v13683_v1, %s12230_s5  ;;  %v1687_v52 = vadd.f32 %v1678_v62, %v1566_v6  ;;  %v1795_v50 = vsel %vm1701_vm3, %v17499_v60, %v1794_v48  ;;  %v1796_v21 = vrot.slane %v1783_v9, 2  ;;  %v1567_v1 = vmul.f32 %v14161_v11, %v13512_v17 }
 0x33d   : > { %11404 = vmatprep.mubr.msk.f32.mxu1 %vm12228_vm0, %v17544_v57  ;;  %17590 = vst [vmem:[#allocation48_spill] sm:$0xff] %v14247_v61  ;;  %v2038_v18 = vrot.slane %v2026_v29, 1  ;;  %v2040_v5 = vrot.slane %v2027_v41, 1  ;;  %17591 = vst [vmem:[#allocation49_spill] sm:$0xff] %v14262_v32  ;;  %v1680_v6 = vsel %vm1584_vm2, %v1677_v13, %v1679_v0  ;;  %v2174_v28 = vmul.f32 %v14156_v46, %v13512_v17 }
 0x33e   : > { %v14266_v3 = vadd.f32 %v1795_v50, %v1687_v52  ;;  %v1797_v9 = vsel %vm1701_vm3, %v1794_v48, %v1796_v21  ;;  %v1688_v62 = vadd.f32 %v1680_v6, %v1567_v1  ;;  %v2175_v52 = vmul.f32 %v14156_v46, %v13551_v10  ;;  %v17597_v1 = vld [vmem:[#allocation12_spill] sm:$0xff] }
 0x33f   : > { %v14275_v29 = vsel %vm1584_vm2, %v2038_v18, %v2040_v5  ;;  %v14278_v41 = vsel %vm1584_vm2, %v2036_v14, %v2038_v18  ;;  %v2186_v50 = vrot.slane %v2174_v28, 2  ;;  %v2173_v13 = vmul.f32 %v14156_v46, %v13475_v49 }
 0x340   : > { %11405 = vmatmul.mubr.f32.gmra.mrb[38].mxu1 %v13903_v23  ;;  %17592 = vst [vmem:[#allocation50_spill] sm:$0xff] %v14266_v3  ;;  %1974 = vrot.lane.b32.xlu1 %v13686_v44, %s12231_s7  ;;  %17593 = vst [vmem:[#allocation51_spill] sm:$0xff] %v14275_v29  ;;  %v2423_v48 = vmul.f32 %v14185_v63, %v13399_v54  ;;  %v2424_v44 = vmul.f32 %v14185_v63, %v13436_v24  ;;  %v17595_v0 = vand.u32 4294901760, %v13779_v15 }
 0x341   : > { %11411 = vmatprep.mubr.msk.f32.mxu1 %vm12228_vm0, %v17544_v57  ;;  %17594 = vst [vmem:[#allocation52_spill] sm:$0xff] %v14278_v41  ;;  %v14292_v14 = vadd.f32 %v1797_v9, %v1688_v62  ;;  %v2188_v21 = vrot.slane %v2175_v52, 2  ;;  %v2184_v46 = vrot.slane %v2173_v13, 2  ;;  %v2571_v6 = vmul.f32 %v14191_v35, %v13399_v54 }
 0x342   : > { %v2433_v18 = vrot.slane %v2423_v48, 1  ;;  %v2434_v5 = vrot.slane %v2424_v44, 1  ;;  %v2572_v9 = vmul.f32 %v14191_v35, %v13436_v24  ;;  %v17599_v28 = vrot.slane %v14182_v39, 2 }
 0x343   : > { %17596 = vst [vmem:[#allocation53_spill] sm:$0xff] %v14292_v14  ;;  %v14305_v15 = vsel %vm1701_vm3, %v2186_v50, %v2188_v21  ;;  %v17603_v13 = vand.u32 4294901760, %v13815_v19  ;;  %v2426_v39 = vmul.f32 %v14185_v63, %v13512_v17  ;;  %v2427_v44 = vmul.f32 %v14185_v63, %v13551_v10 }
 0x344   : > { %11412 = vmatmul.mubr.f32.vlgmr.msra.gmra.mrb[30].mxu1 %v17595_v0  ;;  %2122 = vrot.lane.b32.xlu1 %v13714_v31, %s12231_s7  ;;  %17598 = vst [vmem:[#allocation12_spill] sm:$0xff] %v14305_v15  ;;  %v14316_v62 = vsel %vm1701_vm3, %v17599_v28, %v2184_v46  ;;  %v14319_v52 = vsel %vm1584_vm2, %v2433_v18, %v2434_v5  ;;  %v2581_v31 = vrot.slane %v2571_v6, 2  ;;  %v2582_v48 = vrot.slane %v2572_v9, 2 }
 0x345   : > { %11604 = vmatpush3.bf16.msra.mxu1 %v17597_v1  ;;  %11414 = vmatprep.mubr.msk.f32.mxu1 %vm12228_vm0, %v17544_v57  ;;  %17600 = vst [vmem:[#allocation54_spill] sm:$0xff] %v14316_v62  ;;  %17601 = vst [vmem:[#allocation55_spill] sm:$0xff] %v14319_v52  ;;  %v2425_v0 = vmul.f32 %v14185_v63, %v13475_v49  ;;  %v2574_v19 = vmul.f32 %v14191_v35, %v13512_v17  ;;  %v2438_v63 = vrot.slane %v2426_v39, 1 }
 0x346   : > { %11605 = vmatprep.subr.bf16.mxu1 %v17548_v16  ;;  %v14322_v16 = vsel %vm1701_vm3, %v2184_v46, %v2186_v50  ;;  %v2575_v50 = vmul.f32 %v14191_v35, %v13551_v10  ;;  %v2573_v21 = vmul.f32 %v14191_v35, %v13475_v49  ;;  %v14347_v1 = vsel %vm1701_vm3, %v2581_v31, %v2582_v48 }
 0x347   : > { %17602 = vst [vmem:[#allocation56_spill] sm:$0xff] %v14322_v16  ;;  %17604 = vst [vmem:[#allocation57_spill] sm:$0xff] %v14347_v1  ;;  %v2440_v46 = vrot.slane %v2427_v44, 1  ;;  %v2436_v18 = vrot.slane %v2425_v0, 1  ;;  %v2586_v6 = vrot.slane %v2574_v19, 2  ;;  %v17605_v35 = vand.u32 4294901760, %v13845_v59 }
 0x348   : > { %11415 = vmatmul.mubr.f32.gmra.mrb[32].mxu1 %v17603_v13  ;;  %v2588_v9 = vrot.slane %v2575_v50, 2  ;;  %v2584_v28 = vrot.slane %v2573_v21, 2  ;;  %v14358_v31 = vstv %s14290_s20  ;;  %v14372_v19 = vstv %s14297_s25  ;;  %s14756_s20 = sld [smem:[#allocation6 + $0x8c]]  ;;  %s14764_s25 = sld [smem:[#allocation6 + $0x8f]] }
 0x349   : > { %11417 = vmatprep.mubr.msk.f32.mxu1 %vm12228_vm0, %v17544_v57  ;;  %v14361_v39 = vsel %vm1584_vm2, %v2438_v63, %v2440_v46  ;;  %v14364_v44 = vsel %vm1584_vm2, %v2434_v5, %v2436_v18  ;;  %v14367_v0 = vsel %vm1584_vm2, %v2436_v18, %v2438_v63  ;;  %v17612_v5 = vrot.slane %v14223_v42, 1 }
 0x34a   : > { %v14351_v10 = vpop.permute.xlu1 %2216  ;;  %v14353_v13 = vpop.permute.xlu0 %1816  ;;  %17606 = vst [vmem:[#allocation58_spill] sm:$0xff] %v14361_v39  ;;  %17607 = vst [vmem:[#allocation59_spill] sm:$0xff] %v14364_v44  ;;  %v14375_v59 = vsel %vm1701_vm3, %v2586_v6, %v2588_v9  ;;  %v14378_v50 = vsel %vm1701_vm3, %v2582_v48, %v2584_v28  ;;  %v14381_v21 = vsel %vm1701_vm3, %v2584_v28, %v2586_v6  ;;  %v17613_v63 = vrot.slane %v14196_v2, 1 }
 0x34b   : > { %17608 = vst [vmem:[#allocation60_spill] sm:$0xff] %v14367_v0  ;;  %17609 = vst [vmem:[#allocation61_spill] sm:$0xff] %v14375_v59  ;;  %v14396_v60 = vstv %s14311_s12  ;;  %v17615_v9 = vrot.slane %v14232_v43, 2  ;;  %v17616_v48 = vrot.slane %v14207_v34, 2  ;;  %v17617_v28 = vand.u32 4294901760, %v13873_v33  ;;  %s14821_s12 = sld [smem:[#allocation6 + $0x110]] }
 0x34c   : > { %11418 = vmatmul.mubr.f32.gmra.mrb[34].mxu1 %v17605_v35  ;;  %17610 = vst [vmem:[#allocation62_spill] sm:$0xff] %v14378_v50  ;;  %17611 = vst [vmem:[#allocation63_spill] sm:$0xff] %v14381_v21  ;;  %v14388_v46 = vsel %vm1584_vm2, %v17613_v63, %v17612_v5  ;;  %v14393_v35 = vstv %s14309_s30  ;;  %v14416_v63 = vstv %s14326_s8  ;;  %v14419_v34 = vstv %s14328_s13  ;;  %s14819_s30 = sld [smem:[#allocation6 + $0x10d]]  ;;  %s10115_s8 = sld [smem:[#allocation6 + $0x10e]] }
 0x34d   : > { %11420 = vmatprep.mubr.msk.f32.mxu1 %vm12228_vm0, %v17544_v57  ;;  %v14390_v18 = vpop.f32.mrb[10].mxu1  ;;  %v14403_v6 = vsel %vm1701_vm3, %v17616_v48, %v17615_v9  ;;  %v14441_v21 = vstv %s14349_s22  ;;  %v17618_v0 = vand.u32 4294901760, %v13903_v23  ;;  %s10119_s13 = sld [smem:[#allocation6 + $0x111]]  ;;  %s10095_s22 = sld [smem:[#allocation6 + $0x10f]] }
 0x34e   : > { %17614 = vst [vmem:[#allocation64_spill] sm:$0xff] %v14390_v18  ;;  %v14405_v42 = vpop.permute.xlu1 %1842  ;;  %v14407_v2 = vpop.permute.xlu0 %1818  ;;  %v4560_v5 = vmul.f32 %v14358_v31, %v14390_v18  ;;  %v4160_v43 = vmul.f32 %v14372_v19, %v14390_v18  ;;  %v4264_v33 = vmul.f32 %v14393_v35, %v14390_v18  ;;  %v4412_v48 = vmul.f32 %v14396_v60, %v14390_v18 }
 0x34f   : > { %v10995_v9 = vpop.f32.mrb[11].mxu1 }
 0x350   : > { %11421 = vmatmul.mubr.f32.gmra.mrb[36].mxu1 %v17617_v28  ;;  %4568 = vrot.lane.b32.xlu1 %v4560_v5, %s12230_s5  ;;  %v14432_v28 = vstv %s14344_s14  ;;  %v4664_v9 = vmul.f32 %v14416_v63, %v14390_v18  ;;  %v4812_v5 = vmul.f32 %v14419_v34, %v14390_v18  ;;  %v4422_v41 = vrot.slane %v4412_v48, 2  ;;  %s10091_s14 = sld [smem:[#allocation6 + $0x10c]] }
 0x351   : > { %11423 = vmatprep.mubr.msk.f32.mxu1 %vm12228_vm0, %v17544_v57  ;;  %4168 = vrot.lane.b32.xlu0 %v4160_v43, %s12231_s7  ;;  %v14434_v3 = vpop.f32.mrb[12].mxu1  ;;  %v3928_v52 = vmul.f32 %v14432_v28, %v14390_v18 }
 0x352   : > { %v14443_v43 = vpop.permute.xlu1 %2242  ;;  %v14445_v50 = vpop.permute.xlu0 %2218  ;;  %v4561_v59 = vmul.f32 %v14358_v31, %v14434_v3  ;;  %v4161_v44 = vmul.f32 %v14372_v19, %v14434_v3  ;;  %v4265_v39 = vmul.f32 %v14393_v35, %v14434_v3  ;;  %v4413_v1 = vmul.f32 %v14396_v60, %v14434_v3 }
 0x353   : > { %v10998_v16 = vpop.f32.mrb[13].mxu1  ;;  %v4665_v23 = vmul.f32 %v14416_v63, %v14434_v3  ;;  %v14467_v62 = vmul.f32 %v14432_v28, %v14434_v3  ;;  %v4674_v14 = vrot.slane %v4664_v9, 1 }
 0x354   : > { %11424 = vmatmul.mubr.f32.gmra.mrb[38].mxu1 %v17618_v0  ;;  %v4813_v0 = vmul.f32 %v14419_v34, %v14434_v3  ;;  %4170 = vrot.lane.b32.xlu1 %v4161_v44, %s12231_s7  ;;  %v4274_v16 = vrot.slane %v4264_v33, 1  ;;  %v4275_v15 = vrot.slane %v4265_v39, 1  ;;  %v4423_v32 = vrot.slane %v4413_v1, 2 }
 0x355   : > { %11430 = vmatprep.mubr.msk.f32.mxu1 %vm12228_vm0, %v17544_v57  ;;  %4570 = vrot.lane.b32.xlu0 %v4561_v59, %s12230_s5  ;;  %v14471_v29 = vpop.f32.mrb[14].mxu1  ;;  %v4675_v61 = vrot.slane %v4665_v23, 1  ;;  %v17508_v17 = vrot.slane %v14467_v62, 1  ;;  %v4822_v44 = vrot.slane %v4812_v5, 2  ;;  %v3938_v23 = vrot.slane %v3928_v52, 1 }
 0x356   : > { %v4823_v7 = vrot.slane %v4813_v0, 2  ;;  %v14474_v37 = vpop.permute.xlu1 %1844  ;;  %v14476_v53 = vpop.permute.xlu0 %2368  ;;  %v4276_v59 = vsel %vm1584_vm2, %v4274_v16, %v4275_v15  ;;  %v4162_v39 = vmul.f32 %v14372_v19, %v14471_v29  ;;  %v4424_v1 = vsel %vm1701_vm3, %v4422_v41, %v4423_v32 }
 0x357   : > { %17619 = vst [vmem:[#allocation65_spill] sm:$0xff] %v14474_v37  ;;  %v11001_v33 = vpop.f32.mrb[15].mxu1  ;;  %v4676_v48 = vsel %vm1584_vm2, %v4674_v14, %v4675_v61  ;;  %v4266_v9 = vmul.f32 %v14393_v35, %v14471_v29  ;;  %v14491_v0 = vmul.f32 %v14441_v21, %v14434_v3  ;;  %v4666_v14 = vmul.f32 %v14416_v63, %v14471_v29 }
 0x358   : > { %11431 = vmatmul.mubr.f32.vlgmr.msra.gmra.mrb[30].mxu1 %v13762_v56  ;;  %4283 = vrot.lane.b32.xlu1 %v4276_v59, %s12231_s7  ;;  %v14496_v41 = vsel %vm1701_vm3, %v4822_v44, %v4823_v7  ;;  %v14503_v5 = vstv %s14429_s23  ;;  %v1828_v52 = vadd.f32 %v14353_v13, %v13746_v51  ;;  %v4814_v59 = vmul.f32 %v14419_v34, %v14471_v29  ;;  %s14923_s23 = sld [smem:[#allocation6 + $0x18d]] }
 0x359   : > { %11607 = vmatpush3.bf16.msra.mxu1 %v12687_v25  ;;  %11433 = vmatprep.mubr.msk.f32.mxu1 %vm12228_vm0, %v17544_v57  ;;  %v4414_v25 = vmul.f32 %v14396_v60, %v14471_v29  ;;  %v14507_v16 = vpop.f32.mrb[16].mxu1  ;;  %v4277_v33 = vrot.slane %v4266_v9, 1  ;;  %v4562_v51 = vmul.f32 %v14358_v31, %v14471_v29  ;;  %v4677_v54 = vrot.slane %v4666_v14, 1 }
 0x35a   : > { %4172 = vrot.lane.b32.xlu0 %v4162_v39, %s12231_s7  ;;  %v14514_v39 = vsel %vm1584_vm2, %v3938_v23, %v17508_v17  ;;  %v14516_v44 = vpop.permute.xlu1 %2244  ;;  %v14518_v26 = vpop.permute.xlu0 %2516  ;;  %v4044_v9 = vmul.f32 %v14441_v21, %v14390_v18  ;;  %v4825_v17 = vrot.slane %v4814_v59, 2  ;;  %v4267_v45 = vmul.f32 %v14393_v35, %v14507_v16 }
 0x35b   : > { %17620 = vst [vmem:[#allocation66_spill] sm:$0xff] %v14516_v44  ;;  %v4425_v13 = vrot.slane %v4414_v25, 2  ;;  %v11004_v49 = vpop.f32.mrb[17].mxu1  ;;  %v4278_v23 = vsel %vm1584_vm2, %v4275_v15, %v4277_v33  ;;  %v4415_v27 = vmul.f32 %v14396_v60, %v14507_v16  ;;  %v4667_v14 = vmul.f32 %v14416_v63, %v14507_v16 }
 0x35c   : > { %11434 = vmatmul.mubr.f32.gmra.mrb[32].mxu1 %v13791_v30  ;;  %4431 = vrot.lane.b32.xlu1 %v4424_v1, %s12231_s7  ;;  %v14536_v49 = vsel %vm1584_vm2, %v4675_v61, %v4677_v54  ;;  %v14544_v44 = vsel %vm1701_vm3, %v4823_v7, %v4825_v17  ;;  %v4279_v20 = vrot.slane %v4267_v45, 1  ;;  %v4815_v1 = vmul.f32 %v14419_v34, %v14507_v16 }
 0x35d   : > { %11436 = vmatprep.mubr.msk.f32.mxu1 %vm12228_vm0, %v17544_v57  ;;  %v4426_v25 = vsel %vm1701_vm3, %v4423_v32, %v4425_v13  ;;  %v14541_v59 = vpop.f32.mrb[18].mxu1  ;;  %v4427_v12 = vrot.slane %v4415_v27, 2  ;;  %v4679_v37 = vrot.slane %v4667_v14, 1  ;;  %v4054_v36 = vrot.slane %v4044_v9, 2 }
 0x35e   : > { %4572 = vrot.lane.b32.xlu0 %v4562_v51, %s12230_s5  ;;  %v1932_v51 = vpop.permute.xlu1 %1931  ;;  %v14548_v32 = vpop.permute.xlu0 %2220  ;;  %v4268_v61 = vmul.f32 %v14393_v35, %v14541_v59  ;;  %v4416_v15 = vmul.f32 %v14396_v60, %v14541_v59  ;;  %v4668_v7 = vmul.f32 %v14416_v63, %v14541_v59  ;;  %v14560_v27 = vsel %vm1584_vm2, %v4277_v33, %v4279_v20 }
 0x35f   : > { %v11007_v45 = vpop.f32.mrb[19].mxu1  ;;  %v14563_v40 = vsel %vm1701_vm3, %v4425_v13, %v4427_v12  ;;  %v4827_v4 = vrot.slane %v4815_v1, 2  ;;  %v14570_v63 = vsel %vm1584_vm2, %v4677_v54, %v4679_v37  ;;  %v1943_v33 = vadd.f32 %v1932_v51, %v1828_v52 }
 0x360   : > { %11437 = vmatmul.mubr.f32.gmra.mrb[34].mxu1 %v13833_v38  ;;  %4683 = vrot.lane.b32.xlu1 %v4676_v48, %s12230_s5  ;;  %v4281_v60 = vrot.slane %v4268_v61, 1  ;;  %v4429_v35 = vrot.slane %v4416_v15, 2  ;;  %v4681_v14 = vrot.slane %v4668_v7, 1  ;;  %v4816_v9 = vmul.f32 %v14419_v34, %v14541_v59 }
 0x361   : > { %11439 = vmatprep.mubr.msk.f32.mxu1 %vm12228_vm0, %v17544_v57  ;;  %v14575_v13 = vsel %vm1701_vm3, %v4825_v17, %v4827_v4  ;;  %v17621_v1 = vrot.slane %v14491_v0, 2  ;;  %v3930_v34 = vmul.f32 %v14432_v28, %v14471_v29  ;;  %v4047_v45 = vmul.f32 %v14441_v21, %v14507_v16 }
 0x362   : > { %4285 = vrot.lane.b32.xlu0 %v4278_v23, %s12231_s7  ;;  %v2080_v23 = vpop.permute.xlu1 %2079  ;;  %v1934_v54 = vpop.permute.xlu0 %1933  ;;  %v14588_v15 = vsel %vm1584_vm2, %v4279_v20, %v4281_v60  ;;  %v14591_v17 = vsel %vm1701_vm3, %v4427_v12, %v4429_v35  ;;  %v14594_v52 = vsel %vm1584_vm2, %v4679_v37, %v4681_v14  ;;  %v4829_v7 = vrot.slane %v4816_v9, 2 }
 0x363   : > { %v14582_v48 = vsel %vm1701_vm3, %v4054_v36, %v17621_v1  ;;  %v17622_v36 = vld [vmem:[#allocation22_spill] sm:$0xff]  ;;  %v2091_v61 = vadd.f32 %v2080_v23, %v1943_v33  ;;  %v4046_v20 = vmul.f32 %v14441_v21, %v14471_v29  ;;  %v4163_v12 = vmul.f32 %v14372_v19, %v14507_v16 }
 0x364   : > { %11440 = vmatmul.mubr.f32.gmra.mrb[36].mxu1 %v13857_v22  ;;  %v1829_v51 = vadd.f32 %v14407_v2, %v17622_v36  ;;  %4831 = vrot.lane.b32.xlu1 %v14496_v41, %s12230_s5  ;;  %v3941_v37 = vrot.slane %v3930_v34, 1  ;;  %v3931_v2 = vmul.f32 %v14432_v28, %v14507_v16  ;;  %v14615_v14 = vsel %vm1701_vm3, %v4827_v4, %v4829_v7 }
 0x365   : > { %11442 = vmatprep.mubr.msk.f32.mxu1 %vm12228_vm0, %v17544_v57  ;;  %v2228_v35 = vadd.f32 %v14351_v10, %v2091_v61  ;;  %v4057_v41 = vrot.slane %v4046_v20, 2  ;;  %v17623_v19 = vrot.slane %v14467_v62, 1  ;;  %v4059_v23 = vrot.slane %v4047_v45, 2 }
 0x366   : > { %4433 = vrot.lane.b32.xlu0 %v4426_v25, %s12231_s7  ;;  %v1944_v60 = vadd.f32 %v1934_v54, %v1829_v51  ;;  %v2332_v33 = vpop.permute.xlu1 %2331  ;;  %v2082_v25 = vpop.permute.xlu0 %2081  ;;  %v3943_v1 = vrot.slane %v3931_v2, 1  ;;  %v3932_v10 = vmul.f32 %v14432_v28, %v14541_v59  ;;  %v17624_v4 = vrot.slane %v14491_v0, 2 }
 0x367   : > { %v14621_v9 = vsel %vm1584_vm2, %v17623_v19, %v3941_v37  ;;  %v4048_v62 = vmul.f32 %v14441_v21, %v14541_v59  ;;  %v4300_v36 = vstv %s14565_s10  ;;  %v14642_v51 = vsel %vm1701_vm3, %v4057_v41, %v4059_v23  ;;  %s14938_s10 = sld [smem:[#allocation6 + $0x190]] }
 0x368   : > { %11443 = vmatmul.mubr.f32.gmra.mrb[38].mxu1 %v13886_v55  ;;  %v2092_v54 = vadd.f32 %v2082_v25, %v1944_v60  ;;  %v14630_v34 = vsel %vm1701_vm3, %v17624_v4, %v4057_v41  ;;  %4174 = vrot.lane.b32.xlu1 %v4163_v12, %s12231_s7  ;;  %v14639_v28 = vsel %vm1584_vm2, %v3941_v37, %v3943_v1  ;;  %v3945_v61 = vrot.slane %v3932_v10, 1 }
 0x369   : > { %11449 = vmatprep.mubr.msk.f32.mxu1 %vm12228_vm0, %v17544_v57  ;;  %v14645_v0 = vstv %s14572_s11  ;;  %v2343_v7 = vadd.f32 %v2332_v33, %v2228_v35  ;;  %v4061_v2 = vrot.slane %v4048_v62, 2  ;;  %v14649_v21 = vstv %s14584_s29  ;;  %v17625_v35 = vld [vmem:[#allocation21_spill] sm:$0xff]  ;;  %s10116_s11 = sld [smem:[#allocation6 + $0x18e]]  ;;  %s10120_s29 = sld [smem:[#allocation6 + $0x191]] }
 0x36a   : > { %4685 = vrot.lane.b32.xlu0 %v14536_v49, %s12230_s5  ;;  %v2229_v20 = vadd.f32 %v14445_v50, %v2092_v54  ;;  %v2480_v45 = vpop.permute.xlu1 %2479  ;;  %v2334_v60 = vpop.permute.xlu0 %2333  ;;  %v4563_v49 = vmul.f32 %v14358_v31, %v14507_v16  ;;  %v14655_v12 = vsel %vm1584_vm2, %v3943_v1, %v3945_v61  ;;  %v4301_v37 = vmul.f32 %v4300_v36, %v14390_v18 }
 0x36b   : > { %v4302_v41 = vmul.f32 %v4300_v36, %v14434_v3  ;;  %v1854_v50 = vadd.f32 %v14405_v42, %v17625_v35  ;;  %v2491_v33 = vadd.f32 %v2480_v45, %v2343_v7  ;;  %v3888_v25 = vmul.f32 %v14503_v5, %v14390_v18 }
 0x36c   : > { %11450 = vmatmul.mubr.f32.vlgmr.msra.gmra.mrb[30].mxu1 %v13762_v56  ;;  %v14666_v56 = vsel %vm1701_vm3, %v4059_v23, %v4061_v2  ;;  %v2344_v31 = vadd.f32 %v2334_v60, %v2229_v20  ;;  %4574 = vrot.lane.b32.xlu1 %v4563_v49, %s12230_s5  ;;  %v3889_v19 = vmul.f32 %v14503_v5, %v14434_v3  ;;  %v4311_v42 = vrot.slane %v4301_v37, 1 }
 0x36d   : > { %11452 = vmatprep.mubr.msk.f32.mxu1 %vm12228_vm0, %v17544_v57  ;;  %v4312_v1 = vrot.slane %v4302_v41, 1  ;;  %v3892_v10 = vadd.f32 %v3888_v25, %v2491_v33  ;;  %v4303_v54 = vmul.f32 %v4300_v36, %v14471_v29  ;;  %v4449_v4 = vmul.f32 %v14645_v0, %v14390_v18 }
 0x36e   : > { %4833 = vrot.lane.b32.xlu0 %v14544_v44, %s12230_s5  ;;  %v4450_v23 = vmul.f32 %v14645_v0, %v14434_v3  ;;  %v1969_v62 = vpop.permute.xlu1 %1968  ;;  %v2482_v44 = vpop.permute.xlu0 %2481  ;;  %v4304_v7 = vmul.f32 %v4300_v36, %v14507_v16  ;;  %v4305_v20 = vmul.f32 %v4300_v36, %v14541_v59  ;;  %v4451_v2 = vmul.f32 %v14645_v0, %v14471_v29 }
 0x36f   : > { %v14682_v61 = vsel %vm1584_vm2, %v4311_v42, %v4312_v1  ;;  %v1980_v45 = vadd.f32 %v1969_v62, %v1854_v50  ;;  %v2492_v60 = vadd.f32 %v2482_v44, %v2344_v31  ;;  %v3951_v49 = vadd.f32 %v14514_v39, %v3892_v10 }
 0x370   : > { %11453 = vmatmul.mubr.f32.gmra.mrb[32].mxu1 %v13791_v30  ;;  %v4314_v37 = vrot.slane %v4303_v54, 1  ;;  %4289 = vrot.lane.b32.xlu1 %v14588_v15, %s12231_s7  ;;  %v4459_v30 = vrot.slane %v4449_v4, 2  ;;  %v4460_v41 = vrot.slane %v4450_v23, 2  ;;  %v4316_v36 = vrot.slane %v4304_v7, 1 }
 0x371   : > { %11455 = vmatprep.mubr.msk.f32.mxu1 %vm12228_vm0, %v17544_v57  ;;  %v4318_v35 = vrot.slane %v4305_v20, 1  ;;  %v3893_v33 = vadd.f32 %v3889_v19, %v2492_v60  ;;  %v14696_v50 = vadd.f32 %v14582_v48, %v3951_v49  ;;  %v4462_v31 = vrot.slane %v4451_v2, 2 }
 0x372   : > { %4287 = vrot.lane.b32.xlu0 %v14560_v27, %s12231_s7  ;;  %v14699_v25 = vsel %vm1584_vm2, %v4312_v1, %v4314_v37  ;;  %v2117_v39 = vpop.permute.xlu1 %2116  ;;  %v14701_v42 = vpop.permute.xlu0 %2118  ;;  %v14705_v27 = vsel %vm1701_vm3, %v4459_v30, %v4460_v41  ;;  %v14708_v15 = vsel %vm1584_vm2, %v4314_v37, %v4316_v36  ;;  %v4453_v54 = vmul.f32 %v14645_v0, %v14541_v59 }
 0x373   : > { %17626 = vst [vmem:[#allocation22_spill] sm:$0xff] %v14701_v42  ;;  %17627 = vst [vmem:[#allocation21_spill] sm:$0xff] %v14705_v27  ;;  %v14711_v19 = vsel %vm1584_vm2, %v4316_v36, %v4318_v35  ;;  %v2128_v48 = vadd.f32 %v2117_v39, %v1980_v45  ;;  %v3952_v1 = vadd.f32 %v14621_v9, %v3893_v33  ;;  %v4848_v44 = vstv %s14678_s9  ;;  %s10092_s9 = sld [smem:[#allocation6 + $0x18c]] }
 0x374   : > { %11456 = vmatmul.mubr.f32.gmra.mrb[34].mxu1 %v13833_v38  ;;  %17628 = vst [vmem:[#allocation67_spill] sm:$0xff] %v14708_v15  ;;  %17629 = vst [vmem:[#allocation68_spill] sm:$0xff] %v14711_v19  ;;  %v14717_v10 = vsel %vm1701_vm3, %v4460_v41, %v4462_v31  ;;  %v4452_v38 = vmul.f32 %v14645_v0, %v14507_v16  ;;  %4437 = vrot.lane.b32.xlu1 %v14591_v17, %s12231_s7  ;;  %v4466_v17 = vrot.slane %v4453_v54, 2 }
 0x375   : > { %11458 = vmatprep.mubr.msk.f32.mxu1 %vm12228_vm0, %v17544_v57  ;;  %17630 = vst [vmem:[#allocation69_spill] sm:$0xff] %v14717_v10  ;;  %v4701_v4 = vmul.f32 %v14649_v21, %v14390_v18  ;;  %v14730_v9 = vadd.f32 %v14630_v34, %v3952_v1  ;;  %v4702_v62 = vmul.f32 %v14649_v21, %v14434_v3 }
 0x376   : > { %4435 = vrot.lane.b32.xlu0 %v14563_v40, %s12231_s7  ;;  %v4464_v23 = vrot.slane %v4452_v38, 2  ;;  %v2254_v7 = vadd.f32 %v14443_v43, %v2128_v48  ;;  %v1821_v40 = vpop.permute.xlu1 %1820  ;;  %v14736_v20 = vpop.permute.xlu0 %2248  ;;  %v4850_v60 = vmul.f32 %v4848_v44, %v14434_v3  ;;  %v4705_v41 = vmul.f32 %v14649_v21, %v14541_v59 }
 0x377   : > { %17631 = vst [vmem:[#allocation70_spill] sm:$0xff] %v14736_v20  ;;  %v4711_v34 = vrot.slane %v4701_v4, 1  ;;  %v4712_v2 = vrot.slane %v4702_v62, 1  ;;  %v4851_v36 = vmul.f32 %v4848_v44, %v14471_v29  ;;  %v1830_v35 = vadd.f32 %v1821_v40, %v13862_v8 }
 0x378   : > { %11459 = vmatmul.mubr.f32.gmra.mrb[36].mxu1 %v13857_v22  ;;  %v14742_v0 = vsel %vm1701_vm3, %v4462_v31, %v4464_v23  ;;  %4689 = vrot.lane.b32.xlu1 %v14594_v52, %s12230_s5  ;;  %v14751_v43 = vsel %vm1701_vm3, %v4464_v23, %v4466_v17  ;;  %v4703_v22 = vmul.f32 %v14649_v21, %v14471_v29  ;;  %v4860_v31 = vrot.slane %v4850_v60, 2 }
 0x379   : > { %11461 = vmatprep.mubr.msk.f32.mxu1 %vm12228_vm0, %v17544_v57  ;;  %17632 = vst [vmem:[#allocation71_spill] sm:$0xff] %v14742_v0  ;;  %17633 = vst [vmem:[#allocation72_spill] sm:$0xff] %v14751_v43  ;;  %v4849_v57 = vmul.f32 %v4848_v44, %v14390_v18  ;;  %v14759_v45 = vsel %vm1584_vm2, %v4711_v34, %v4712_v2  ;;  %v2380_v52 = vadd.f32 %v14476_v53, %v2254_v7 }
 0x37a   : > { %4687 = vrot.lane.b32.xlu0 %v14570_v63, %s12230_s5  ;;  %17634 = vst [vmem:[#allocation73_spill] sm:$0xff] %v14759_v45  ;;  %v4704_v63 = vmul.f32 %v14649_v21, %v14507_v16  ;;  %v14767_v49 = vpop.permute.xlu1 %1846  ;;  %v1936_v37 = vpop.permute.xlu0 %1935  ;;  %v4714_v30 = vrot.slane %v4703_v22, 1  ;;  %v4718_v53 = vrot.slane %v4705_v41, 1  ;;  %v4862_v48 = vrot.slane %v4851_v36, 2 }
 0x37b   : > { %17635 = vst [vmem:[#allocation74_spill] sm:$0xff] %v14767_v49  ;;  %v4859_v33 = vrot.slane %v4849_v57, 2  ;;  %v4852_v21 = vmul.f32 %v4848_v44, %v14507_v16  ;;  %v1945_v1 = vadd.f32 %v1936_v37, %v1830_v35  ;;  %v14798_v17 = vstv %s14744_s26  ;;  %s10096_s26 = sld [smem:[#allocation6 + $0x18f]] }
 0x37c   : > { %11462 = vmatmul.mubr.f32.gmra.mrb[38].mxu1 %v13886_v55  ;;  %v4716_v39 = vrot.slane %v4704_v63, 1  ;;  %4837 = vrot.lane.b32.xlu1 %v14615_v14, %s12230_s5  ;;  %v14779_v55 = vsel %vm1584_vm2, %v4712_v2, %v4714_v30  ;;  %v14795_v23 = vsel %vm1701_vm3, %v4860_v31, %v4862_v48  ;;  %17642 = vst [vmem:[#allocation81_spill] sm:$0xff] %v14798_v17  ;;  %v4072_v63 = vstv %s14764_s25  ;;  %s15054_s25 = sld [smem:[#allocation6 + $0x13]] }
 0x37d   : > { %17636 = vst [vmem:[#allocation75_spill] sm:$0xff] %v14779_v55  ;;  %v14783_v8 = vsel %vm1701_vm3, %v4859_v33, %v4860_v31  ;;  %17641 = vst [vmem:[#allocation80_spill] sm:$0xff] %v14795_v23  ;;  %v4864_v62 = vrot.slane %v4852_v21, 2  ;;  %v2528_v34 = vadd.f32 %v14518_v26, %v2380_v52  ;;  %v4074_v36 = vmul.f32 %v4072_v63, %v14434_v3 }
 0x37e   : > { %4835 = vrot.lane.b32.xlu0 %v14575_v13, %s12230_s5  ;;  %17637 = vst [vmem:[#allocation76_spill] sm:$0xff] %v14783_v8  ;;  %v14786_v38 = vsel %vm1584_vm2, %v4714_v30, %v4716_v39  ;;  %v4853_v13 = vmul.f32 %v4848_v44, %v14541_v59  ;;  %v14789_v14 = vpop.permute.xlu1 %2246  ;;  %v14792_v4 = vsel %vm1584_vm2, %v4716_v39, %v4718_v53  ;;  %v3956_v44 = vstv %s14756_s20  ;;  %s15044_s20 = sld [smem:[#allocation6 + $0x14]] }
 0x37f   : > { %17638 = vst [vmem:[#allocation77_spill] sm:$0xff] %v14786_v38  ;;  %17639 = vst [vmem:[#allocation78_spill] sm:$0xff] %v14789_v14  ;;  %v2084_v54 = vpop.permute.xlu0 %2083  ;;  %v14802_v2 = vsel %vm1701_vm3, %v4862_v48, %v4864_v62  ;;  %v3958_v60 = vmul.f32 %v3956_v44, %v14434_v3  ;;  %v3959_v41 = vmul.f32 %v3956_v44, %v14471_v29  ;;  %v4084_v31 = vrot.slane %v4074_v36, 2 }
 0x380   : > { %17640 = vst [vmem:[#allocation79_spill] sm:$0xff] %v14792_v4  ;;  %v2093_v7 = vadd.f32 %v2084_v54, %v1945_v1  ;;  %v4866_v40 = vrot.slane %v4853_v13, 2  ;;  %17643 = vst [vmem:[#allocation82_spill] sm:$0xff] %v14802_v2  ;;  %v4075_v26 = vmul.f32 %v4072_v63, %v14471_v29  ;;  %v3898_v52 = vmul.f32 %v14798_v17, %v14390_v18 }
 0x381   : > { %v3968_v35 = vrot.slane %v3958_v60, 1  ;;  %v3970_v33 = vrot.slane %v3959_v41, 1  ;;  %v4073_v1 = vmul.f32 %v4072_v63, %v14390_v18  ;;  %v3960_v13 = vmul.f32 %v3956_v44, %v14507_v16 }
 0x382   : > { %v2230_v22 = vadd.f32 %v14548_v32, %v2093_v7  ;;  %v14807_v57 = vsel %vm1701_vm3, %v4864_v62, %v4866_v40  ;;  %v14811_v37 = vpop.permute.xlu1 %1970  ;;  %v3957_v32 = vmul.f32 %v3956_v44, %v14390_v18  ;;  %v4086_v39 = vrot.slane %v4075_v26, 2 }
 0x383   : > { %17644 = vst [vmem:[#allocation83_spill] sm:$0xff] %v14807_v57  ;;  %17645 = vst [vmem:[#allocation84_spill] sm:$0xff] %v14811_v37  ;;  %v2336_v30 = vpop.permute.xlu0 %2335  ;;  %v3902_v53 = vadd.f32 %v3898_v52, %v2528_v34  ;;  %v14828_v7 = vsel %vm1584_vm2, %v3968_v35, %v3970_v33  ;;  %v4076_v60 = vmul.f32 %v4072_v63, %v14507_v16  ;;  %v4083_v36 = vrot.slane %v4073_v1, 2 }
 0x384   : > { %v2345_v48 = vadd.f32 %v2336_v30, %v2230_v22  ;;  %v3967_v21 = vrot.slane %v3957_v32, 1  ;;  %17647 = vst [vmem:[#allocation86_spill] sm:$0xff] %v14828_v7  ;;  %v14831_v40 = vsel %vm1701_vm3, %v4084_v31, %v4086_v39  ;;  %v3961_v34 = vmul.f32 %v3956_v44, %v14541_v59 }
 0x385   : > { %17648 = vst [vmem:[#allocation87_spill] sm:$0xff] %v14831_v40  ;;  %v3890_v22 = vmul.f32 %v14503_v5, %v14471_v29  ;;  %v3972_v52 = vrot.slane %v3960_v13, 1  ;;  %v4088_v32 = vrot.slane %v4076_v60, 2  ;;  %v4085_v40 = vsel %vm1701_vm3, %v4083_v36, %v4084_v31 }
 0x386   : > { %v14825_v54 = vpop.permute.xlu1 %2370  ;;  %v3969_v30 = vsel %vm1584_vm2, %v3967_v21, %v3968_v35  ;;  %v3974_v7 = vrot.slane %v3961_v34, 1  ;;  %v4077_v20 = vmul.f32 %v4072_v63, %v14541_v59  ;;  %v4337_v31 = vstv %s14819_s30  ;;  %s15056_s30 = sld [smem:[#allocation6 + $0x16]] }
 0x387   : > { %17646 = vst [vmem:[#allocation85_spill] sm:$0xff] %v14825_v54  ;;  %v2484_v62 = vpop.permute.xlu0 %2483  ;;  %v3980_v26 = vadd.f32 %v3969_v30, %v3902_v53  ;;  %v14848_v35 = vsel %vm1701_vm3, %v4086_v39, %v4088_v32  ;;  %v4485_v63 = vstv %s14821_s12  ;;  %v4340_v39 = vmul.f32 %v4337_v31, %v14471_v29  ;;  %s15061_s12 = sld [smem:[#allocation6 + $0x19]] }
 0x388   : > { %v2493_v41 = vadd.f32 %v2484_v62, %v2345_v48  ;;  %v14845_v62 = vsel %vm1584_vm2, %v3970_v33, %v3972_v52  ;;  %17651 = vst [vmem:[#allocation90_spill] sm:$0xff] %v14848_v35  ;;  %v14851_v53 = vsel %vm1584_vm2, %v3972_v52, %v3974_v7  ;;  %v4090_v1 = vrot.slane %v4077_v20, 2 }
 0x389   : > { %v14842_v48 = vadd.f32 %v4085_v40, %v3980_v26  ;;  %17650 = vst [vmem:[#allocation89_spill] sm:$0xff] %v14845_v62  ;;  %17652 = vst [vmem:[#allocation91_spill] sm:$0xff] %v14851_v53  ;;  %v4339_v33 = vmul.f32 %v4337_v31, %v14434_v3  ;;  %v4341_v7 = vmul.f32 %v4337_v31, %v14507_v16 }
 0x38a   : > { %v3894_v17 = vadd.f32 %v3890_v22, %v2493_v41  ;;  %v14840_v44 = vpop.permute.xlu1 %1822  ;;  %v14860_v40 = vsel %vm1701_vm3, %v4088_v32, %v4090_v1  ;;  %v4488_v20 = vmul.f32 %v4485_v63, %v14471_v29  ;;  %v4338_v52 = vmul.f32 %v4337_v31, %v14390_v18 }
 0x38b   : > { %17649 = vst [vmem:[#allocation88_spill] sm:$0xff] %v14842_v48  ;;  %17653 = vst [vmem:[#allocation92_spill] sm:$0xff] %v14860_v40  ;;  %v4349_v34 = vrot.slane %v4339_v33, 1  ;;  %v4353_v41 = vrot.slane %v4341_v7, 1  ;;  %v4737_v32 = vstv %s10115_s8  ;;  %v4486_v40 = vmul.f32 %v4485_v63, %v14390_v18  ;;  %s15064_s8 = sld [smem:[#allocation6 + $0x12]] }
 0x38c   : > { %v3953_v21 = vadd.f32 %v14639_v28, %v3894_v17  ;;  %v4487_v28 = vmul.f32 %v4485_v63, %v14434_v3  ;;  %v4489_v17 = vmul.f32 %v4485_v63, %v14507_v16  ;;  %v4499_v30 = vrot.slane %v4488_v20, 2 }
 0x38d   : > { %v4348_v7 = vrot.slane %v4338_v52, 1  ;;  %v4885_v20 = vstv %s10119_s13  ;;  %s15066_s13 = sld [smem:[#allocation6 + $0x17]] }
 0x38e   : > { %v14857_v13 = vadd.f32 %v14642_v51, %v3953_v21  ;;  %v14864_v60 = vpop.permute.xlu1 %2222  ;;  %v4351_v51 = vrot.slane %v4340_v39, 1  ;;  %v4497_v22 = vrot.slane %v4487_v28, 2  ;;  %v4501_v36 = vrot.slane %v4489_v17, 2 }
 0x38f   : > { %v4739_v39 = vmul.f32 %v4737_v32, %v14434_v3  ;;  %v4740_v28 = vmul.f32 %v4737_v32, %v14471_v29  ;;  %v4889_v53 = vmul.f32 %v4885_v20, %v14507_v16 }
 0x390   : > { %v14871_v26 = vsel %vm1584_vm2, %v4349_v34, %v4351_v51  ;;  %v14877_v1 = vsel %vm1584_vm2, %v4351_v51, %v4353_v41  ;;  %v14880_v48 = vsel %vm1701_vm3, %v4497_v22, %v4499_v30  ;;  %v14883_v33 = vsel %vm1701_vm3, %v4499_v30, %v4501_v36 }
 0x391   : > { %17654 = vst [vmem:[#allocation93_spill] sm:$0xff] %v14871_v26  ;;  %17656 = vst [vmem:[#allocation95_spill] sm:$0xff] %v14877_v1  ;;  %v4749_v17 = vrot.slane %v4739_v39, 1  ;;  %v4741_v26 = vmul.f32 %v4737_v32, %v14507_v16  ;;  %v4887_v51 = vmul.f32 %v4885_v20, %v14434_v3  ;;  %v14891_v1 = vsel %vm1584_vm2, %v4348_v7, %v4349_v34 }
 0x392   : > { %v14874_v21 = vpop.permute.xlu1 %1848  ;;  %17657 = vst [vmem:[#allocation96_spill] sm:$0xff] %v14880_v48  ;;  %17658 = vst [vmem:[#allocation97_spill] sm:$0xff] %v14883_v33  ;;  %v4751_v48 = vrot.slane %v4740_v28, 1  ;;  %v4888_v30 = vmul.f32 %v4885_v20, %v14471_v29  ;;  %v4342_v33 = vmul.f32 %v4337_v31, %v14541_v59  ;;  %v4496_v39 = vrot.slane %v4486_v40, 2 }
 0x393   : > { %17655 = vst [vmem:[#allocation94_spill] sm:$0xff] %v14874_v21  ;;  %17659 = vst [vmem:[#allocation98_spill] sm:$0xff] %v14891_v1  ;;  %v4753_v35 = vrot.slane %v4741_v26, 1  ;;  %v4897_v14 = vrot.slane %v4887_v51, 2  ;;  %v4901_v31 = vrot.slane %v4889_v53, 2  ;;  %v4490_v26 = vmul.f32 %v4485_v63, %v14541_v59 }
 0x394   : > { %v14899_v62 = vsel %vm1584_vm2, %v4749_v17, %v4751_v48  ;;  %v4899_v54 = vrot.slane %v4888_v30, 2  ;;  %v4355_v21 = vrot.slane %v4342_v33, 1  ;;  %v14905_v7 = vsel %vm1701_vm3, %v4496_v39, %v4497_v22 }
 0x395   : > { %17661 = vst [vmem:[#allocation100_spill] sm:$0xff] %v14899_v62  ;;  %v14902_v34 = vsel %vm1584_vm2, %v4751_v48, %v4753_v35  ;;  %17663 = vst [vmem:[#allocation102_spill] sm:$0xff] %v14905_v7  ;;  %v4738_v48 = vmul.f32 %v4737_v32, %v14390_v18  ;;  %v4503_v33 = vrot.slane %v4490_v26, 2  ;;  %v4886_v22 = vmul.f32 %v4885_v20, %v14390_v18 }
 0x396   : > { %v14895_v52 = vpop.permute.xlu1 %1972  ;;  %17662 = vst [vmem:[#allocation101_spill] sm:$0xff] %v14902_v34  ;;  %v14908_v28 = vsel %vm1701_vm3, %v4897_v14, %v4899_v54  ;;  %v14911_v40 = vsel %vm1584_vm2, %v4353_v41, %v4355_v21  ;;  %v14917_v51 = vsel %vm1701_vm3, %v4899_v54, %v4901_v31  ;;  %v4742_v53 = vmul.f32 %v4737_v32, %v14541_v59 }
 0x397   : > { %17660 = vst [vmem:[#allocation99_spill] sm:$0xff] %v14895_v52  ;;  %17664 = vst [vmem:[#allocation103_spill] sm:$0xff] %v14908_v28  ;;  %v4748_v30 = vrot.slane %v4738_v48, 1  ;;  %v4890_v39 = vmul.f32 %v4885_v20, %v14541_v59  ;;  %v3985_v28 = vstv %s10091_s14  ;;  %v14926_v63 = vsel %vm1701_vm3, %v4501_v36, %v4503_v33  ;;  %s15076_s14 = sld [smem:[#allocation6 + $0x1a]] }
 0x398   : > { %17665 = vst [vmem:[#allocation104_spill] sm:$0xff] %v14911_v40  ;;  %17667 = vst [vmem:[#allocation106_spill] sm:$0xff] %v14917_v51  ;;  %v4896_v41 = vrot.slane %v4886_v22, 2  ;;  %v4101_v21 = vstv %s10095_s22  ;;  %v4755_v26 = vrot.slane %v4742_v53, 1  ;;  %v3986_v32 = vmul.f32 %v3985_v28, %v14390_v18  ;;  %s15087_s22 = sld [smem:[#allocation6 + $0x15]] }
 0x399   : > { %17668 = vst [vmem:[#allocation107_spill] sm:$0xff] %v14926_v63  ;;  %v14931_v51 = vsel %vm1584_vm2, %v4748_v30, %v4749_v17  ;;  %v4903_v40 = vrot.slane %v4890_v39, 2  ;;  %v3987_v20 = vmul.f32 %v3985_v28, %v14434_v3  ;;  %v4102_v17 = vmul.f32 %v4101_v21, %v14390_v18 }
 0x39a   : > { %v14914_v1 = vpop.permute.xlu1 %2120  ;;  %17670 = vst [vmem:[#allocation109_spill] sm:$0xff] %v14931_v51  ;;  %v14934_v48 = vsel %vm1701_vm3, %v4896_v41, %v4897_v14  ;;  %v14941_v36 = vsel %vm1584_vm2, %v4753_v35, %v4755_v26  ;;  %v4103_v22 = vmul.f32 %v4101_v21, %v14434_v3  ;;  %v3996_v30 = vrot.slane %v3986_v32, 1 }
 0x39b   : > { %17666 = vst [vmem:[#allocation105_spill] sm:$0xff] %v14914_v1  ;;  %17671 = vst [vmem:[#allocation110_spill] sm:$0xff] %v14934_v48  ;;  %v14944_v33 = vsel %vm1701_vm3, %v4901_v31, %v4903_v40  ;;  %v3997_v53 = vrot.slane %v3987_v20, 1  ;;  %v3988_v14 = vmul.f32 %v3985_v28, %v14471_v29  ;;  %v4112_v41 = vrot.slane %v4102_v17, 2 }
 0x39c   : > { %17672 = vst [vmem:[#allocation111_spill] sm:$0xff] %v14941_v36  ;;  %17673 = vst [vmem:[#allocation112_spill] sm:$0xff] %v14944_v33  ;;  %v4113_v48 = vrot.slane %v4103_v22, 2  ;;  %v3989_v51 = vmul.f32 %v3985_v28, %v14507_v16  ;;  %v4104_v35 = vmul.f32 %v4101_v21, %v14471_v29  ;;  %v1831_v31 = vadd.f32 %v14840_v44, %v13908_v47 }
 0x39d   : > { %v14954_v40 = vsel %vm1584_vm2, %v3996_v30, %v3997_v53  ;;  %v3999_v26 = vrot.slane %v3988_v14, 1  ;;  %v4105_v32 = vmul.f32 %v4101_v21, %v14507_v16  ;;  %v4374_v33 = vstv %s14923_s23  ;;  %s15089_s23 = sld [smem:[#allocation6 + $0x18]] }
 0x39e   : > { %v14928_v54 = vpop.permute.xlu1 %2372  ;;  %17674 = vst [vmem:[#allocation113_spill] sm:$0xff] %v14954_v40  ;;  %v14958_v20 = vsel %vm1701_vm3, %v4112_v41, %v4113_v48  ;;  %v4001_v17 = vrot.slane %v3989_v51, 1  ;;  %v4115_v22 = vrot.slane %v4104_v35, 2  ;;  %v3990_v47 = vmul.f32 %v3985_v28, %v14541_v59 }
 0x39f   : > { %17669 = vst [vmem:[#allocation108_spill] sm:$0xff] %v14928_v54  ;;  %17675 = vst [vmem:[#allocation114_spill] sm:$0xff] %v14958_v20  ;;  %v4117_v63 = vrot.slane %v4105_v32, 2  ;;  %v14962_v7 = vsel %vm1584_vm2, %v3997_v53, %v3999_v26  ;;  %v4106_v41 = vmul.f32 %v4101_v21, %v14541_v59  ;;  %v4522_v35 = vstv %s14938_s10  ;;  %s15263_s10 = sld [smem:[#allocation6 + $0x96]] }
 0x3a0   : > { %17676 = vst [vmem:[#allocation115_spill] sm:$0xff] %v14962_v7  ;;  %v14966_v30 = vsel %vm1584_vm2, %v3999_v26, %v4001_v17  ;;  %v14969_v14 = vsel %vm1701_vm3, %v4113_v48, %v4115_v22  ;;  %v4375_v53 = vmul.f32 %v4374_v33, %v14390_v18  ;;  %v4376_v26 = vmul.f32 %v4374_v33, %v14434_v3 }
 0x3a1   : > { %17677 = vst [vmem:[#allocation116_spill] sm:$0xff] %v14966_v30  ;;  %17678 = vst [vmem:[#allocation117_spill] sm:$0xff] %v14969_v14  ;;  %v14973_v51 = vsel %vm1701_vm3, %v4115_v22, %v4117_v63  ;;  %v4523_v21 = vmul.f32 %v4522_v35, %v14390_v18  ;;  %v4922_v22 = vstv %s10120_s29  ;;  %v4526_v20 = vmul.f32 %v4522_v35, %v14507_v16  ;;  %s15300_s29 = sld [smem:[#allocation6 + $0x97]] }
 0x3a2   : > { %v1938_v39 = vpop.permute.xlu1 %1937  ;;  %17679 = vst [vmem:[#allocation118_spill] sm:$0xff] %v14973_v51  ;;  %v4527_v14 = vmul.f32 %v4522_v35, %v14541_v59 }
 0x3a3   : > { %v1946_v36 = vadd.f32 %v1938_v39, %v1831_v31  ;;  %v4003_v39 = vrot.slane %v3990_v47, 1  ;;  %v4119_v31 = vrot.slane %v4106_v41, 2  ;;  %v3891_v47 = vmul.f32 %v14503_v5, %v14507_v16 }
 0x3a4   : > { %v4386_v41 = vrot.slane %v4376_v26, 1  ;;  %v4538_v7 = vrot.slane %v4526_v20, 2 }
 0x3a5   : > { %v14979_v32 = vsel %vm1584_vm2, %v4001_v17, %v4003_v39  ;;  %v14983_v62 = vsel %vm1701_vm3, %v4117_v63, %v4119_v31  ;;  %v4378_v17 = vmul.f32 %v4374_v33, %v14507_v16  ;;  %v4379_v39 = vmul.f32 %v4374_v33, %v14541_v59 }
 0x3a6   : > { %v2086_v44 = vpop.permute.xlu1 %2085  ;;  %17680 = vst [vmem:[#allocation119_spill] sm:$0xff] %v14979_v32  ;;  %17681 = vst [vmem:[#allocation120_spill] sm:$0xff] %v14983_v62  ;;  %v4377_v32 = vmul.f32 %v4374_v33, %v14471_v29  ;;  %v4533_v31 = vrot.slane %v4523_v21, 2  ;;  %v4525_v33 = vmul.f32 %v4522_v35, %v14471_v29 }
 0x3a7   : > { %v2094_v34 = vadd.f32 %v2086_v44, %v1946_v36  ;;  %v4774_v36 = vstv %s10116_s11  ;;  %v4385_v44 = vrot.slane %v4375_v53, 1  ;;  %v4390_v5 = vrot.slane %v4378_v17, 1  ;;  %s15273_s11 = sld [smem:[#allocation6 + $0x99]] }
 0x3a8   : > { %v4392_v53 = vrot.slane %v4379_v39, 1  ;;  %v4388_v26 = vrot.slane %v4377_v32, 1  ;;  %v4540_v17 = vrot.slane %v4527_v14, 2  ;;  %v4536_v39 = vrot.slane %v4525_v33, 2 }
 0x3a9   : > { %v2231_v28 = vadd.f32 %v14864_v60, %v2094_v34  ;;  %v4524_v60 = vmul.f32 %v4522_v35, %v14434_v3  ;;  %v14993_v63 = vsel %vm1584_vm2, %v4385_v44, %v4386_v41  ;;  %v4923_v35 = vmul.f32 %v4922_v22, %v14390_v18 }
 0x3aa   : > { %v2338_v48 = vpop.permute.xlu1 %2337  ;;  %17682 = vst [vmem:[#allocation121_spill] sm:$0xff] %v14993_v63  ;;  %v15002_v44 = vsel %vm1584_vm2, %v4390_v5, %v4392_v53  ;;  %v15005_v21 = vsel %vm1584_vm2, %v4386_v41, %v4388_v26  ;;  %v15013_v20 = vsel %vm1701_vm3, %v4538_v7, %v4540_v17  ;;  %v15021_v14 = vsel %vm1701_vm3, %v4536_v39, %v4538_v7 }
 0x3ab   : > { %v2346_v34 = vadd.f32 %v2338_v48, %v2231_v28  ;;  %v4534_v62 = vrot.slane %v4524_v60, 2  ;;  %17684 = vst [vmem:[#allocation123_spill] sm:$0xff] %v15002_v44  ;;  %17685 = vst [vmem:[#allocation124_spill] sm:$0xff] %v15005_v21  ;;  %v15008_v60 = vsel %vm1584_vm2, %v4388_v26, %v4390_v5  ;;  %v4778_v33 = vmul.f32 %v4774_v36, %v14507_v16 }
 0x3ac   : > { %17686 = vst [vmem:[#allocation125_spill] sm:$0xff] %v15008_v60  ;;  %17687 = vst [vmem:[#allocation126_spill] sm:$0xff] %v15013_v20  ;;  %v4779_v17 = vmul.f32 %v4774_v36, %v14541_v59  ;;  %v4926_v7 = vmul.f32 %v4922_v22, %v14507_v16  ;;  %v15160_v20 = vstv %s15089_s23  ;;  %s15558_s23 = sld [smem:[#allocation6 + $0x199]] }
 0x3ad   : > { %v14998_v48 = vsel %vm1701_vm3, %v4533_v31, %v4534_v62  ;;  %v15018_v41 = vsel %vm1701_vm3, %v4534_v62, %v4536_v39  ;;  %17689 = vst [vmem:[#allocation128_spill] sm:$0xff] %v15021_v14  ;;  %v4790_v39 = vrot.slane %v4778_v33, 1 }
 0x3ae   : > { %v2486_v40 = vpop.permute.xlu1 %2485  ;;  %17683 = vst [vmem:[#allocation122_spill] sm:$0xff] %v14998_v48  ;;  %17688 = vst [vmem:[#allocation127_spill] sm:$0xff] %v15018_v41  ;;  %v15133_v41 = vstv %s15066_s13  ;;  %s10129_s13 = sld [smem:[#allocation6 + $0x115]] }
 0x3af   : > { %v2494_v28 = vadd.f32 %v2486_v40, %v2346_v34  ;;  %v4775_v40 = vmul.f32 %v4774_v36, %v14390_v18  ;;  %v4776_v34 = vmul.f32 %v4774_v36, %v14434_v3 }
 0x3b1   : > { %v3895_v32 = vadd.f32 %v3891_v47, %v2494_v28  ;;  %v4785_v53 = vrot.slane %v4775_v40, 1  ;;  %v4786_v5 = vrot.slane %v4776_v34, 1  ;;  %v4924_v47 = vmul.f32 %v4922_v22, %v14434_v3 }
 0x3b2   : > { %v4933_v28 = vrot.slane %v4923_v35, 2  ;;  %v4792_v40 = vrot.slane %v4779_v17, 1  ;;  %v4927_v34 = vmul.f32 %v4922_v22, %v14541_v59 }
 0x3b3   : > { %v3954_v31 = vadd.f32 %v14655_v12, %v3895_v32  ;;  %v15030_v12 = vsel %vm1584_vm2, %v4785_v53, %v4786_v5  ;;  %v4934_v62 = vrot.slane %v4924_v47, 2  ;;  %v4777_v32 = vmul.f32 %v4774_v36, %v14471_v29 }
 0x3b4   : > { %17690 = vst [vmem:[#allocation129_spill] sm:$0xff] %v15030_v12  ;;  %v15041_v14 = vsel %vm1584_vm2, %v4790_v39, %v4792_v40  ;;  %v4938_v53 = vrot.slane %v4926_v7, 2  ;;  %v4940_v47 = vrot.slane %v4927_v34, 2  ;;  %v4925_v36 = vmul.f32 %v4922_v22, %v14471_v29 }
 0x3b5   : > { %v15025_v26 = vadd.f32 %v14666_v56, %v3954_v31  ;;  %v15035_v56 = vpop.permute.xlu1 %1974  ;;  %v15038_v35 = vsel %vm1701_vm3, %v4933_v28, %v4934_v62  ;;  %v4788_v31 = vrot.slane %v4777_v32, 1  ;;  %17693 = vst [vmem:[#allocation132_spill] sm:$0xff] %v15041_v14  ;;  %v1565_v28 = vmul.f32 %v14161_v11, %v13436_v24 }
 0x3b6   : > { %17691 = vst [vmem:[#allocation130_spill] sm:$0xff] %v15035_v56  ;;  %17692 = vst [vmem:[#allocation131_spill] sm:$0xff] %v15038_v35  ;;  %v15059_v32 = vsel %vm1701_vm3, %v4938_v53, %v4940_v47  ;;  %v4936_v7 = vrot.slane %v4925_v36, 2  ;;  %v15085_v36 = vstv %s10096_s26  ;;  %v15108_v14 = vstv %s15054_s25  ;;  %s10128_s26 = sld [smem:[#allocation6 + $0x95]]  ;;  %s15453_s25 = sld [smem:[#allocation6 + $0x116]] }
 0x3b7   : > { %v15047_v33 = vsel %vm1584_vm2, %v4786_v5, %v4788_v31  ;;  %v15050_v17 = vsel %vm1584_vm2, %v4788_v31, %v4790_v39  ;;  %17696 = vst [vmem:[#allocation135_spill] sm:$0xff] %v15059_v32  ;;  %v1686_v22 = vadd.f32 %v14388_v46, %v1565_v28  ;;  %v4014_v39 = vstv %s10092_s9  ;;  %s15358_s9 = sld [smem:[#allocation6 + $0x9a]] }
 0x3b8   : > { %17694 = vst [vmem:[#allocation133_spill] sm:$0xff] %v15047_v33  ;;  %17695 = vst [vmem:[#allocation134_spill] sm:$0xff] %v15050_v17  ;;  %v15069_v5 = vsel %vm1701_vm3, %v4934_v62, %v4936_v7  ;;  %v15072_v11 = vsel %vm1701_vm3, %v4936_v7, %v4938_v53  ;;  %v4016_v46 = vmul.f32 %v4014_v39, %v14434_v3  ;;  %v15101_v32 = vstv %s15044_s20  ;;  %s10132_s20 = sld [smem:[#allocation6 + $0x98]] }
 0x3b9   : > { %17697 = vst [vmem:[#allocation136_spill] sm:$0xff] %v15069_v5  ;;  %17698 = vst [vmem:[#allocation137_spill] sm:$0xff] %v15072_v11  ;;  %v15074_v40 = vpop.permute.xlu1 %2122  ;;  %v15079_v34 = vadd.f32 %v14403_v6, %v1686_v22  ;;  %v4017_v31 = vmul.f32 %v4014_v39, %v14471_v29  ;;  %v4018_v47 = vmul.f32 %v4014_v39, %v14507_v16  ;;  %v15130_v12 = vstv %s15064_s8  ;;  %s10157_s8 = sld [smem:[#allocation6 + $0x11a]] }
 0x3ba   : > { %17699 = vst [vmem:[#allocation138_spill] sm:$0xff] %v15074_v40  ;;  %v4019_v62 = vmul.f32 %v4014_v39, %v14541_v59  ;;  %v4026_v53 = vrot.slane %v4016_v46, 1  ;;  %v15093_v28 = vmul.f32 %v15085_v36, %v14507_v16  ;;  %v4135_v7 = vmul.f32 %v15085_v36, %v14541_v59 }
 0x3bb   : > { %17700 = vst [vmem:[#allocation139_spill] sm:$0xff] %v15079_v34  ;;  %v4028_v6 = vrot.slane %v4017_v31, 1  ;;  %v4030_v22 = vrot.slane %v4018_v47, 1  ;;  %v4015_v11 = vmul.f32 %v4014_v39, %v14390_v18  ;;  %v15111_v59 = vstv %s15056_s30  ;;  %s15456_s30 = sld [smem:[#allocation6 + $0x119]] }
 0x3bc   : > { %v4032_v34 = vrot.slane %v4019_v62, 1  ;;  %v17511_v31 = vrot.slane %v15093_v28, 2  ;;  %v4148_v33 = vrot.slane %v4135_v7, 2  ;;  %v15117_v62 = vstv %s15061_s12  ;;  %s10153_s12 = sld [smem:[#allocation6 + $0x117]] }
 0x3bd   : > { %v15104_v46 = vsel %vm1584_vm2, %v4026_v53, %v4028_v6  ;;  %v4025_v39 = vrot.slane %v4015_v11, 1 }
 0x3be   : > { %17701 = vst [vmem:[#allocation140_spill] sm:$0xff] %v15104_v46  ;;  %v15114_v47 = vsel %vm1584_vm2, %v4030_v22, %v4032_v34  ;;  %v15122_v35 = vsel %vm1701_vm3, %v17511_v31, %v4148_v33  ;;  %v15125_v46 = vsel %vm1584_vm2, %v4028_v6, %v4030_v22  ;;  %v15147_v31 = vstv %s15076_s14  ;;  %s10133_s14 = sld [smem:[#allocation6 + $0x118]] }
 0x3bf   : > { %17702 = vst [vmem:[#allocation141_spill] sm:$0xff] %v15114_v47  ;;  %17703 = vst [vmem:[#allocation142_spill] sm:$0xff] %v15122_v35  ;;  %v15136_v11 = vsel %vm1584_vm2, %v4025_v39, %v4026_v53 }
 0x3c0   : > { %17704 = vst [vmem:[#allocation143_spill] sm:$0xff] %v15125_v46  ;;  %17706 = vst [vmem:[#allocation145_spill] sm:$0xff] %v15136_v11  ;;  %v15157_v11 = vstv %s15087_s22  ;;  %s15556_s22 = sld [smem:[#allocation6 + $0x196]] }
 0x3c2   : > { %v15098_v5 = vpop.permute.xlu1 %4568 }
 0x3c3   : > { %v4169_v17 = vpop.permute.xlu0 %4168 }
 0x3c4   : > { %v4180_v53 = vadd.f32 %v4169_v17, %v14696_v50 }
 0x3c5   : > { %v15127_v7 = vpop.f32.mrb[20].mxu1 }
 0x3c6   : > { %17705 = vst [vmem:[#allocation144_spill] sm:$0xff] %v15127_v7  ;;  %v4171_v47 = vpop.permute.xlu1 %4170  ;;  %v6912_v33 = vmul.f32 %v15101_v32, %v15127_v7  ;;  %v6512_v6 = vmul.f32 %v15108_v14, %v15127_v7  ;;  %v6616_v22 = vmul.f32 %v15111_v59, %v15127_v7  ;;  %v11223_v46 = vpop.f32.mrb[21].mxu1  ;;  %v6764_v35 = vmul.f32 %v15117_v62, %v15127_v7 }
 0x3c7   : > { %v15138_v34 = vpop.permute.xlu0 %4570  ;;  %v7016_v39 = vmul.f32 %v15133_v41, %v15127_v7  ;;  %v4181_v60 = vadd.f32 %v4171_v47, %v14730_v9  ;;  %v15167_v44 = vmul.f32 %v15130_v12, %v15127_v7  ;;  %v7164_v50 = vmul.f32 %v15147_v31, %v15127_v7 }
 0x3c8   : > { %6920 = vrot.lane.b32.xlu1 %v6912_v33, %s12230_s5  ;;  %6520 = vrot.lane.b32.xlu0 %v6512_v6, %s12231_s7  ;;  %v6626_v46 = vrot.slane %v6616_v22, 1  ;;  %v6774_v63 = vrot.slane %v6764_v35, 2  ;;  %v15187_v24 = vmul.f32 %v15157_v11, %v15127_v7  ;;  %v15193_v35 = vmul.f32 %v15160_v20, %v15127_v7 }
 0x3c9   : > { %v15163_v21 = vpop.f32.mrb[22].mxu1  ;;  %v7026_v56 = vrot.slane %v7016_v39, 1  ;;  %v7174_v42 = vrot.slane %v7164_v50, 2 }
 0x3ca   : > { %17707 = vst [vmem:[#allocation146_spill] sm:$0xff] %v15163_v21  ;;  %v4284_v17 = vpop.permute.xlu1 %4283  ;;  %v6913_v6 = vmul.f32 %v15101_v32, %v15163_v21  ;;  %v6513_v48 = vmul.f32 %v15108_v14, %v15163_v21  ;;  %v6617_v9 = vmul.f32 %v15111_v59, %v15163_v21  ;;  %v6765_v47 = vmul.f32 %v15117_v62, %v15163_v21  ;;  %v11226_v22 = vpop.f32.mrb[23].mxu1 }
 0x3cb   : > { %v7017_v51 = vmul.f32 %v15133_v41, %v15163_v21  ;;  %v7165_v30 = vmul.f32 %v15147_v31, %v15163_v21  ;;  %v4295_v22 = vadd.f32 %v4284_v17, %v4180_v53 }
 0x3cc   : > { %v15171_v33 = vpop.permute.xlu0 %4172  ;;  %6922 = vrot.lane.b32.xlu0 %v6913_v6, %s12230_s5  ;;  %6522 = vrot.lane.b32.xlu1 %v6513_v48, %s12231_s7  ;;  %v6627_v54 = vrot.slane %v6617_v9, 1  ;;  %v6775_v40 = vrot.slane %v6765_v47, 2  ;;  %v15205_v9 = vmul.f32 %v15157_v11, %v15163_v21 }
 0x3cd   : > { %v15195_v1 = vpop.f32.mrb[24].mxu1  ;;  %v7027_v52 = vrot.slane %v7017_v51, 1  ;;  %v7175_v49 = vrot.slane %v7165_v30, 2 }
 0x3ce   : > { %17708 = vst [vmem:[#allocation147_spill] sm:$0xff] %v15195_v1  ;;  %v4432_v37 = vpop.permute.xlu1 %4431  ;;  %v6628_v6 = vsel %vm1584_vm2, %v6626_v46, %v6627_v54  ;;  %v6514_v48 = vmul.f32 %v15108_v14, %v15195_v1  ;;  %v6776_v39 = vsel %vm1701_vm3, %v6774_v63, %v6775_v40  ;;  %v11229_v17 = vpop.f32.mrb[25].mxu1  ;;  %v6618_v30 = vmul.f32 %v15111_v59, %v15195_v1 }
 0x3cf   : > { %v4443_v53 = vadd.f32 %v4432_v37, %v4295_v22  ;;  %v7028_v51 = vsel %vm1584_vm2, %v7026_v56, %v7027_v52  ;;  %v15211_v50 = vsel %vm1701_vm3, %v7174_v42, %v7175_v49  ;;  %v6766_v63 = vmul.f32 %v15117_v62, %v15195_v1 }
 0x3d0   : > { %v15197_v2 = vpop.permute.xlu0 %4572  ;;  %6635 = vrot.lane.b32.xlu1 %v6628_v6, %s12231_s7  ;;  %6524 = vrot.lane.b32.xlu0 %v6514_v48, %s12231_s7  ;;  %v7018_v46 = vmul.f32 %v15133_v41, %v15195_v1  ;;  %v15221_v37 = vmul.f32 %v15147_v31, %v15195_v1  ;;  %v6629_v42 = vrot.slane %v6618_v30, 1  ;;  %v6290_v22 = vrot.slane %v15187_v24, 1 }
 0x3d1   : > { %v15223_v56 = vpop.f32.mrb[26].mxu1  ;;  %v4580_v47 = vadd.f32 %v15098_v5, %v4443_v53  ;;  %v15229_v6 = vmul.f32 %v15160_v20, %v15163_v21  ;;  %v6914_v57 = vmul.f32 %v15101_v32, %v15195_v1  ;;  %v6777_v23 = vrot.slane %v6766_v63, 2 }
 0x3d2   : > { %17709 = vst [vmem:[#allocation148_spill] sm:$0xff] %v15223_v56  ;;  %v4684_v48 = vpop.permute.xlu1 %4683  ;;  %v7029_v4 = vrot.slane %v7018_v46, 1  ;;  %v7177_v38 = vrot.slane %v15221_v37, 2  ;;  %v11232_v45 = vpop.f32.mrb[27].mxu1  ;;  %v6630_v5 = vsel %vm1584_vm2, %v6627_v54, %v6629_v42  ;;  %v6406_v46 = vrot.slane %v15193_v35, 2 }
 0x3d3   : > { %v4695_v8 = vadd.f32 %v4684_v48, %v4580_v47  ;;  %v6778_v53 = vsel %vm1701_vm3, %v6775_v40, %v6777_v23  ;;  %v6619_v45 = vmul.f32 %v15111_v59, %v15223_v56  ;;  %v6767_v54 = vmul.f32 %v15117_v62, %v15223_v56 }
 0x3d4   : > { %v4286_v17 = vpop.permute.xlu0 %4285  ;;  %6783 = vrot.lane.b32.xlu1 %v6776_v39, %s12231_s7  ;;  %6924 = vrot.lane.b32.xlu0 %v6914_v57, %s12230_s5  ;;  %v7030_v30 = vsel %vm1584_vm2, %v7027_v52, %v7029_v4  ;;  %v15241_v63 = vsel %vm1701_vm3, %v7175_v49, %v7177_v38  ;;  %v7019_v57 = vmul.f32 %v15133_v41, %v15223_v56 }
 0x3d5   : > { %v4296_v55 = vadd.f32 %v4286_v17, %v4181_v60  ;;  %v15244_v37 = vpop.f32.mrb[28].mxu1  ;;  %v6407_v60 = vrot.slane %v15229_v6, 2  ;;  %v7167_v47 = vmul.f32 %v15147_v31, %v15223_v56  ;;  %v6631_v43 = vrot.slane %v6619_v45, 1 }
 0x3d6   : > { %v4832_v40 = vpop.permute.xlu1 %4831  ;;  %v6620_v49 = vmul.f32 %v15111_v59, %v15244_v37  ;;  %v6768_v35 = vmul.f32 %v15117_v62, %v15244_v37  ;;  %v7020_v39 = vmul.f32 %v15133_v41, %v15244_v37  ;;  %v11235_v24 = vpop.f32.mrb[29].mxu1  ;;  %v6779_v0 = vrot.slane %v6767_v54, 2 }
 0x3d7   : > { %v4843_v48 = vadd.f32 %v4832_v40, %v4695_v8  ;;  %v7031_v10 = vrot.slane %v7019_v57, 1  ;;  %v15268_v8 = vsel %vm1584_vm2, %v6629_v42, %v6631_v43  ;;  %v7179_v54 = vrot.slane %v7167_v47, 2 }
 0x3d8   : > { %v4434_v52 = vpop.permute.xlu0 %4433  ;;  %7035 = vrot.lane.b32.xlu1 %v7028_v51, %s12230_s5  ;;  %6637 = vrot.lane.b32.xlu0 %v6630_v5, %s12231_s7  ;;  %v6633_v6 = vrot.slane %v6620_v49, 1  ;;  %v6781_v59 = vrot.slane %v6768_v35, 2  ;;  %v7033_v19 = vrot.slane %v7020_v39, 1  ;;  %v7168_v57 = vmul.f32 %v15147_v31, %v15244_v37 }
 0x3d9   : > { %v4444_v17 = vadd.f32 %v4434_v52, %v4296_v55  ;;  %v6244_v41 = vadd.f32 %v15167_v44, %v4843_v48  ;;  %v15271_v55 = vsel %vm1701_vm3, %v6777_v23, %v6779_v0  ;;  %v15282_v44 = vsel %vm1584_vm2, %v7029_v4, %v7031_v10 }
 0x3da   : > { %v4175_v5 = vpop.permute.xlu1 %4174  ;;  %v15276_v24 = vsel %vm1584_vm2, %v6631_v43, %v6633_v6  ;;  %v15279_v45 = vsel %vm1701_vm3, %v6779_v0, %v6781_v59  ;;  %v6241_v23 = vmul.f32 %v15130_v12, %v15163_v21  ;;  %v17710_v0 = vrot.slane %v15205_v9, 1 }
 0x3db   : > { %v4581_v62 = vadd.f32 %v15138_v34, %v4444_v17  ;;  %v15285_v34 = vsel %vm1584_vm2, %v7031_v10, %v7033_v19  ;;  %v6408_v19 = vsel %vm1701_vm3, %v6406_v46, %v6407_v60  ;;  %v6282_v10 = vmul.f32 %v15157_v11, %v15195_v1 }
 0x3dc   : > { %v4686_v51 = vpop.permute.xlu0 %4685  ;;  %7183 = vrot.lane.b32.xlu1 %v15211_v50, %s12230_s5  ;;  %6785 = vrot.lane.b32.xlu0 %v6778_v53, %s12231_s7  ;;  %v6292_v43 = vsel %vm1584_vm2, %v6290_v22, %v17710_v0  ;;  %v15303_v4 = vsel %vm1701_vm3, %v7177_v38, %v7179_v54  ;;  %v7181_v31 = vrot.slane %v7168_v57, 2  ;;  %v6398_v50 = vmul.f32 %v15160_v20, %v15195_v1 }
 0x3dd   : > { %v4696_v42 = vadd.f32 %v4686_v51, %v4581_v62  ;;  %v6303_v40 = vadd.f32 %v6292_v43, %v6244_v41  ;;  %v6515_v22 = vmul.f32 %v15108_v14, %v15223_v56  ;;  %v6293_v46 = vrot.slane %v6282_v10, 1 }
 0x3de   : > { %v4575_v52 = vpop.permute.xlu1 %4574  ;;  %v6283_v49 = vmul.f32 %v15157_v11, %v15223_v56  ;;  %v6399_v38 = vmul.f32 %v15160_v20, %v15223_v56  ;;  %v15314_v39 = vsel %vm1701_vm3, %v7179_v54, %v7181_v31  ;;  %v6409_v48 = vrot.slane %v6398_v50, 2 }
 0x3df   : > { %v15316_v47 = vadd.f32 %v6408_v19, %v6303_v40  ;;  %v17711_v14 = vmov %v17710_v0  ;;  %v6652_v41 = vstv %s15263_s10  ;;  %v6800_v54 = vstv %s15273_s11  ;;  %s10154_s10 = sld [smem:[#allocation6 + $0x197]]  ;;  %s10158_s11 = sld [smem:[#allocation6 + $0x19a]] }
 0x3e0   : > { %v4834_v53 = vpop.permute.xlu0 %4833  ;;  %7037 = vrot.lane.b32.xlu0 %v7030_v30, %s12230_s5  ;;  %6526 = vrot.lane.b32.xlu1 %v6515_v22, %s12231_s7  ;;  %v6294_v17 = vsel %vm1584_vm2, %v17711_v14, %v6293_v46  ;;  %v6295_v6 = vrot.slane %v6283_v49, 1  ;;  %v6411_v59 = vrot.slane %v6399_v38, 2  ;;  %v6410_v51 = vsel %vm1701_vm3, %v6407_v60, %v6409_v48 }
 0x3e1   : > { %v4844_v35 = vadd.f32 %v4834_v53, %v4696_v42  ;;  %v6284_v42 = vmul.f32 %v15157_v11, %v15244_v37  ;;  %v6915_v30 = vmul.f32 %v15101_v32, %v15223_v56  ;;  %v4182_v60 = vadd.f32 %v15171_v33, %v14857_v13 }
 0x3e2   : > { %v4290_v0 = vpop.permute.xlu1 %4289  ;;  %v15331_v9 = vsel %vm1584_vm2, %v6293_v46, %v6295_v6  ;;  %v15334_v43 = vsel %vm1701_vm3, %v6409_v48, %v6411_v59  ;;  %v4183_v11 = vadd.f32 %v4175_v5, %v15025_v26  ;;  %v6653_v31 = vmul.f32 %v6652_v41, %v15127_v7 }
 0x3e3   : > { %v6245_v62 = vadd.f32 %v6241_v23, %v4844_v35  ;;  %v6400_v23 = vmul.f32 %v15160_v20, %v15244_v37  ;;  %v6297_v10 = vrot.slane %v6284_v42, 1  ;;  %v6654_v40 = vmul.f32 %v6652_v41, %v15163_v21 }
 0x3e4   : > { %v4288_v57 = vpop.permute.xlu0 %4287  ;;  %7185 = vrot.lane.b32.xlu0 %v15241_v63, %s12230_s5  ;;  %6926 = vrot.lane.b32.xlu1 %v6915_v30, %s12230_s5  ;;  %v15347_v50 = vstv %s15300_s29  ;;  %v4298_v53 = vadd.f32 %v4290_v0, %v4183_v11  ;;  %v6663_v5 = vrot.slane %v6653_v31, 1  ;;  %v6655_v49 = vmul.f32 %v6652_v41, %v15195_v1  ;;  %s10130_s29 = sld [smem:[#allocation6 + $0x195]] }
 0x3e5   : > { %v6304_v19 = vadd.f32 %v6294_v17, %v6245_v62  ;;  %v6413_v32 = vrot.slane %v6400_v23, 2  ;;  %v4297_v20 = vadd.f32 %v4288_v57, %v4182_v60  ;;  %v15352_v13 = vsel %vm1584_vm2, %v6295_v6, %v6297_v10 }
 0x3e6   : > { %v4438_v33 = vpop.permute.xlu1 %4437  ;;  %v6664_v46 = vrot.slane %v6654_v40, 1  ;;  %v6801_v48 = vmul.f32 %v6800_v54, %v15127_v7  ;;  %v6802_v14 = vmul.f32 %v6800_v54, %v15163_v21  ;;  %v6666_v6 = vrot.slane %v6655_v49, 1 }
 0x3e7   : > { %v15349_v22 = vadd.f32 %v6410_v51, %v6304_v19  ;;  %v15355_v63 = vsel %vm1701_vm3, %v6411_v59, %v6413_v32  ;;  %v4446_v35 = vadd.f32 %v4438_v33, %v4298_v53  ;;  %v6656_v59 = vmul.f32 %v6652_v41, %v15223_v56 }
 0x3e8   : > { %v4436_v26 = vpop.permute.xlu0 %4435  ;;  %6639 = vrot.lane.b32.xlu0 %v15268_v8, %s12231_s7  ;;  %6641 = vrot.lane.b32.xlu1 %v15276_v24, %s12231_s7  ;;  %v15367_v17 = vsel %vm1584_vm2, %v6663_v5, %v6664_v46  ;;  %v6657_v62 = vmul.f32 %v6652_v41, %v15244_v37  ;;  %v6811_v57 = vrot.slane %v6801_v48, 2  ;;  %v6812_v0 = vrot.slane %v6802_v14, 2 }
 0x3e9   : > { %v4445_v38 = vadd.f32 %v4436_v26, %v4297_v20  ;;  %17712 = vst [vmem:[#allocation149_spill] sm:$0xff] %v15367_v17  ;;  %v4583_v42 = vadd.f32 %v4575_v52, %v4446_v35  ;;  %v15373_v8 = vsel %vm1584_vm2, %v6664_v46, %v6666_v6  ;;  %v6668_v60 = vrot.slane %v6656_v59, 1 }
 0x3ea   : > { %v4690_v23 = vpop.permute.xlu1 %4689  ;;  %17713 = vst [vmem:[#allocation150_spill] sm:$0xff] %v15373_v8  ;;  %v6670_v24 = vrot.slane %v6657_v62, 1  ;;  %v6803_v11 = vmul.f32 %v6800_v54, %v15195_v1  ;;  %v15377_v10 = vsel %vm1701_vm3, %v6811_v57, %v6812_v0  ;;  %v6804_v32 = vmul.f32 %v6800_v54, %v15223_v56 }
 0x3eb   : > { %v4582_v51 = vadd.f32 %v15197_v2, %v4445_v38  ;;  %17714 = vst [vmem:[#allocation151_spill] sm:$0xff] %v15377_v10  ;;  %v15384_v2 = vsel %vm1584_vm2, %v6666_v6, %v6668_v60  ;;  %v4698_v31 = vadd.f32 %v4690_v23, %v4583_v42  ;;  %v6805_v40 = vmul.f32 %v6800_v54, %v15244_v37 }
 0x3ec   : > { %v4688_v30 = vpop.permute.xlu0 %4687  ;;  %6787 = vrot.lane.b32.xlu0 %v15271_v55, %s12231_s7  ;;  %6789 = vrot.lane.b32.xlu1 %v15279_v45, %s12231_s7  ;;  %17715 = vst [vmem:[#allocation152_spill] sm:$0xff] %v15384_v2  ;;  %v15387_v52 = vsel %vm1584_vm2, %v6668_v60, %v6670_v24  ;;  %v6814_v41 = vrot.slane %v6803_v11, 2  ;;  %v7053_v20 = vmul.f32 %v15347_v50, %v15127_v7  ;;  %v6816_v5 = vrot.slane %v6804_v32, 2 }
 0x3ed   : > { %v4697_v19 = vadd.f32 %v4688_v30, %v4582_v51  ;;  %17716 = vst [vmem:[#allocation153_spill] sm:$0xff] %v15387_v52  ;;  %v7054_v55 = vmul.f32 %v15347_v50, %v15163_v21  ;;  %v6242_v45 = vmul.f32 %v15130_v12, %v15195_v1  ;;  %v7200_v46 = vstv %s15358_s9  ;;  %s10134_s9 = sld [smem:[#allocation6 + $0x198]] }
 0x3ee   : > { %v4838_v26 = vpop.permute.xlu1 %4837  ;;  %v15398_v33 = vsel %vm1701_vm3, %v6812_v0, %v6814_v41  ;;  %v6243_v54 = vmul.f32 %v15130_v12, %v15223_v56  ;;  %v6818_v35 = vrot.slane %v6805_v40, 2  ;;  %v15408_v48 = vsel %vm1701_vm3, %v6814_v41, %v6816_v5 }
 0x3ef   : > { %17717 = vst [vmem:[#allocation154_spill] sm:$0xff] %v15398_v33  ;;  %v4846_v38 = vadd.f32 %v4838_v26, %v4698_v31  ;;  %17718 = vst [vmem:[#allocation155_spill] sm:$0xff] %v15408_v48  ;;  %v7063_v14 = vrot.slane %v7053_v20, 1  ;;  %v7064_v6 = vrot.slane %v7054_v55, 1  ;;  %v7055_v12 = vmul.f32 %v15347_v50, %v15195_v1 }
 0x3f0   : > { %v4836_v53 = vpop.permute.xlu0 %4835  ;;  %7039 = vrot.lane.b32.xlu0 %v15282_v44, %s12230_s5  ;;  %7041 = vrot.lane.b32.xlu1 %v15285_v34, %s12230_s5  ;;  %v15411_v51 = vsel %vm1701_vm3, %v6816_v5, %v6818_v35  ;;  %v7201_v34 = vmul.f32 %v7200_v46, %v15127_v7  ;;  %v7202_v42 = vmul.f32 %v7200_v46, %v15163_v21  ;;  %v6308_v55 = vstv %s10128_s26  ;;  %s15693_s26 = sld [smem:[#allocation6 + $0x1d]] }
 0x3f1   : > { %v4845_v49 = vadd.f32 %v4836_v53, %v4697_v19  ;;  %v6247_v62 = vadd.f32 %v6243_v54, %v4846_v38  ;;  %17719 = vst [vmem:[#allocation156_spill] sm:$0xff] %v15411_v51  ;;  %v15416_v44 = vsel %vm1584_vm2, %v7063_v14, %v7064_v6  ;;  %v7056_v57 = vmul.f32 %v15347_v50, %v15223_v56 }
 0x3f2   : > { %17720 = vst [vmem:[#allocation157_spill] sm:$0xff] %v15416_v44  ;;  %v7066_v23 = vrot.slane %v7055_v12, 1  ;;  %v7203_v60 = vmul.f32 %v7200_v46, %v15195_v1  ;;  %v7211_v24 = vrot.slane %v7201_v34, 2  ;;  %v7212_v11 = vrot.slane %v7202_v42, 2 }
 0x3f3   : > { %v6246_v59 = vadd.f32 %v6242_v45, %v4845_v49  ;;  %v6306_v30 = vadd.f32 %v15352_v13, %v6247_v62  ;;  %v7068_v19 = vrot.slane %v7056_v57, 1  ;;  %v7204_v41 = vmul.f32 %v7200_v46, %v15223_v56 }
 0x3f4   : > { %7187 = vrot.lane.b32.xlu0 %v15303_v4, %s12230_s5  ;;  %7189 = vrot.lane.b32.xlu1 %v15314_v39, %s12230_s5  ;;  %v15437_v13 = vsel %vm1584_vm2, %v7064_v6, %v7066_v23  ;;  %v7214_v31 = vrot.slane %v7203_v60, 2  ;;  %v15440_v4 = vsel %vm1701_vm3, %v7211_v24, %v7212_v11  ;;  %v7205_v53 = vmul.f32 %v7200_v46, %v15244_v37 }
 0x3f5   : > { %v6305_v0 = vadd.f32 %v15331_v9, %v6246_v59  ;;  %v15434_v9 = vadd.f32 %v15355_v63, %v6306_v30  ;;  %17721 = vst [vmem:[#allocation158_spill] sm:$0xff] %v15437_v13  ;;  %17722 = vst [vmem:[#allocation159_spill] sm:$0xff] %v15440_v4  ;;  %v15443_v39 = vsel %vm1584_vm2, %v7066_v23, %v7068_v19  ;;  %v7216_v40 = vrot.slane %v7204_v41, 2 }
 0x3f6   : > { %17723 = vst [vmem:[#allocation160_spill] sm:$0xff] %v15443_v39  ;;  %v15446_v20 = vsel %vm1701_vm3, %v7212_v11, %v7214_v31  ;;  %v7057_v63 = vmul.f32 %v15347_v50, %v15244_v37  ;;  %v6424_v45 = vstv %s10132_s20  ;;  %v6310_v5 = vmul.f32 %v6308_v55, %v15163_v21  ;;  %s15699_s20 = sld [smem:[#allocation6 + $0x1c]] }
 0x3f7   : > { %v15431_v32 = vadd.f32 %v15334_v43, %v6305_v0  ;;  %17724 = vst [vmem:[#allocation161_spill] sm:$0xff] %v15446_v20  ;;  %v15449_v43 = vsel %vm1701_vm3, %v7214_v31, %v7216_v40  ;;  %v6311_v49 = vmul.f32 %v6308_v55, %v15195_v1  ;;  %v7218_v38 = vrot.slane %v7205_v53, 2 }
 0x3f8   : > { %17725 = vst [vmem:[#allocation162_spill] sm:$0xff] %v15449_v43  ;;  %v7070_v26 = vrot.slane %v7057_v63, 1  ;;  %v6426_v54 = vmul.f32 %v6424_v45, %v15163_v21  ;;  %v6427_v35 = vmul.f32 %v6424_v45, %v15195_v1  ;;  %v6309_v50 = vmul.f32 %v6308_v55, %v15127_v7 }
 0x3f9   : > { %v6320_v6 = vrot.slane %v6310_v5, 1  ;;  %v6322_v46 = vrot.slane %v6311_v49, 1  ;;  %v6425_v59 = vmul.f32 %v6424_v45, %v15127_v7  ;;  %v15468_v62 = vsel %vm1701_vm3, %v7216_v40, %v7218_v38 }
 0x3fa   : > { %v15464_v14 = vsel %vm1584_vm2, %v7068_v19, %v7070_v26  ;;  %17727 = vst [vmem:[#allocation164_spill] sm:$0xff] %v15468_v62  ;;  %v6436_v12 = vrot.slane %v6426_v54, 2  ;;  %v6438_v34 = vrot.slane %v6427_v35, 2  ;;  %v6319_v42 = vrot.slane %v6309_v50, 1 }
 0x3fb   : > { %17726 = vst [vmem:[#allocation163_spill] sm:$0xff] %v15464_v14  ;;  %v15471_v57 = vsel %vm1584_vm2, %v6320_v6, %v6322_v46  ;;  %v6435_v0 = vrot.slane %v6425_v59, 2  ;;  %v6312_v30 = vmul.f32 %v6308_v55, %v15223_v56  ;;  %v6428_v23 = vmul.f32 %v6424_v45, %v15223_v56 }
 0x3fc   : > { %17728 = vst [vmem:[#allocation165_spill] sm:$0xff] %v15471_v57  ;;  %v15476_v60 = vsel %vm1701_vm3, %v6436_v12, %v6438_v34  ;;  %v15479_v24 = vsel %vm1584_vm2, %v6319_v42, %v6320_v6  ;;  %v6313_v11 = vmul.f32 %v6308_v55, %v15244_v37  ;;  %v6429_v19 = vmul.f32 %v6424_v45, %v15244_v37 }
 0x3fd   : > { %17729 = vst [vmem:[#allocation166_spill] sm:$0xff] %v15476_v60  ;;  %17730 = vst [vmem:[#allocation167_spill] sm:$0xff] %v15479_v24  ;;  %v15484_v41 = vsel %vm1701_vm3, %v6435_v0, %v6436_v12  ;;  %v6324_v31 = vrot.slane %v6312_v30, 1  ;;  %v6440_v40 = vrot.slane %v6428_v23, 2  ;;  %v6689_v63 = vstv %s15453_s25  ;;  %s15701_s25 = sld [smem:[#allocation6 + $0x1f]] }
 0x3fe   : > { %17731 = vst [vmem:[#allocation168_spill] sm:$0xff] %v15484_v41  ;;  %v6326_v53 = vrot.slane %v6313_v11, 1  ;;  %v6442_v26 = vrot.slane %v6429_v19, 2  ;;  %v6691_v5 = vmul.f32 %v6689_v63, %v15163_v21  ;;  %v6837_v49 = vstv %s15456_s30  ;;  %s15706_s30 = sld [smem:[#allocation6 + $0x22]] }
 0x3ff   : > { %v15490_v38 = vsel %vm1584_vm2, %v6322_v46, %v6324_v31  ;;  %v15493_v55 = vsel %vm1701_vm3, %v6438_v34, %v6440_v40  ;;  %v6692_v45 = vmul.f32 %v6689_v63, %v15195_v1  ;;  %v6693_v54 = vmul.f32 %v6689_v63, %v15223_v56 }
 0x400   : > { %17732 = vst [vmem:[#allocation169_spill] sm:$0xff] %v15490_v38  ;;  %17733 = vst [vmem:[#allocation170_spill] sm:$0xff] %v15493_v55  ;;  %v15498_v35 = vsel %vm1584_vm2, %v6324_v31, %v6326_v53  ;;  %v15501_v50 = vsel %vm1701_vm3, %v6440_v40, %v6442_v26  ;;  %v6839_v6 = vmul.f32 %v6837_v49, %v15163_v21  ;;  %v6701_v59 = vrot.slane %v6691_v5, 1 }
 0x401   : > { %17734 = vst [vmem:[#allocation171_spill] sm:$0xff] %v15498_v35  ;;  %17735 = vst [vmem:[#allocation172_spill] sm:$0xff] %v15501_v50  ;;  %v6703_v12 = vrot.slane %v6692_v45, 1  ;;  %v6705_v42 = vrot.slane %v6693_v54, 1  ;;  %v6840_v46 = vmul.f32 %v6837_v49, %v15195_v1  ;;  %v6841_v34 = vmul.f32 %v6837_v49, %v15223_v56 }
 0x402   : > { %v6849_v23 = vrot.slane %v6839_v6, 2  ;;  %v6690_v31 = vmul.f32 %v6689_v63, %v15127_v7  ;;  %v7089_v40 = vstv %s10153_s12  ;;  %v7237_v45 = vstv %s10157_s8  ;;  %s15708_s12 = sld [smem:[#allocation6 + $0x1b]]  ;;  %s10189_s8 = sld [smem:[#allocation6 + $0x20]] }
 0x403   : > { %v15507_v0 = vsel %vm1584_vm2, %v6701_v59, %v6703_v12  ;;  %v15510_v30 = vsel %vm1584_vm2, %v6703_v12, %v6705_v42  ;;  %v6851_v11 = vrot.slane %v6840_v46, 2  ;;  %v6853_v19 = vrot.slane %v6841_v34, 2 }
 0x404   : > { %17736 = vst [vmem:[#allocation173_spill] sm:$0xff] %v15507_v0  ;;  %17737 = vst [vmem:[#allocation174_spill] sm:$0xff] %v15510_v30  ;;  %v7091_v26 = vmul.f32 %v7089_v40, %v15163_v21  ;;  %v7092_v5 = vmul.f32 %v7089_v40, %v15195_v1  ;;  %v6700_v0 = vrot.slane %v6690_v31, 1  ;;  %v7093_v12 = vmul.f32 %v7089_v40, %v15223_v56 }
 0x405   : > { %v15514_v53 = vsel %vm1701_vm3, %v6849_v23, %v6851_v11  ;;  %v15519_v54 = vsel %vm1701_vm3, %v6851_v11, %v6853_v19  ;;  %v6838_v6 = vmul.f32 %v6837_v49, %v15127_v7  ;;  %v7239_v30 = vmul.f32 %v7237_v45, %v15163_v21 }
 0x406   : > { %17738 = vst [vmem:[#allocation175_spill] sm:$0xff] %v15514_v53  ;;  %17739 = vst [vmem:[#allocation176_spill] sm:$0xff] %v15519_v54  ;;  %v7101_v46 = vrot.slane %v7091_v26, 1  ;;  %v7103_v34 = vrot.slane %v7092_v5, 1  ;;  %v7240_v50 = vmul.f32 %v7237_v45, %v15195_v1  ;;  %v15526_v53 = vsel %vm1584_vm2, %v6700_v0, %v6701_v59 }
 0x407   : > { %17740 = vst [vmem:[#allocation177_spill] sm:$0xff] %v15526_v53  ;;  %v7105_v55 = vrot.slane %v7093_v12, 1  ;;  %v6848_v35 = vrot.slane %v6838_v6, 2  ;;  %v6694_v38 = vmul.f32 %v6689_v63, %v15244_v37  ;;  %v7249_v31 = vrot.slane %v7239_v30, 2 }
 0x408   : > { %v15530_v11 = vsel %vm1584_vm2, %v7101_v46, %v7103_v34  ;;  %v7251_v54 = vrot.slane %v7240_v50, 2  ;;  %v7241_v26 = vmul.f32 %v7237_v45, %v15223_v56  ;;  %v6842_v12 = vmul.f32 %v6837_v49, %v15244_v37 }
 0x409   : > { %17741 = vst [vmem:[#allocation178_spill] sm:$0xff] %v15530_v11  ;;  %v15534_v5 = vsel %vm1584_vm2, %v7103_v34, %v7105_v55  ;;  %v15537_v60 = vsel %vm1701_vm3, %v6848_v35, %v6849_v23  ;;  %v6707_v59 = vrot.slane %v6694_v38, 1  ;;  %v7090_v50 = vmul.f32 %v7089_v40, %v15127_v7 }
 0x40a   : > { %17742 = vst [vmem:[#allocation179_spill] sm:$0xff] %v15534_v5  ;;  %17743 = vst [vmem:[#allocation180_spill] sm:$0xff] %v15537_v60  ;;  %v15540_v0 = vsel %vm1701_vm3, %v7249_v31, %v7251_v54  ;;  %v7253_v63 = vrot.slane %v7241_v26, 2  ;;  %v6855_v34 = vrot.slane %v6842_v12, 2  ;;  %v7238_v5 = vmul.f32 %v7237_v45, %v15127_v7 }
 0x40b   : > { %17744 = vst [vmem:[#allocation181_spill] sm:$0xff] %v15540_v0  ;;  %v15544_v6 = vsel %vm1584_vm2, %v6705_v42, %v6707_v59  ;;  %v7100_v35 = vrot.slane %v7090_v50, 1  ;;  %v7094_v38 = vmul.f32 %v7089_v40, %v15244_v37  ;;  %v7242_v23 = vmul.f32 %v7237_v45, %v15244_v37 }
 0x40c   : > { %17745 = vst [vmem:[#allocation182_spill] sm:$0xff] %v15544_v6  ;;  %v15548_v30 = vsel %vm1701_vm3, %v7251_v54, %v7253_v63  ;;  %v15554_v26 = vsel %vm1701_vm3, %v6853_v19, %v6855_v34  ;;  %v7248_v49 = vrot.slane %v7238_v5, 2  ;;  %v6337_v12 = vstv %s10129_s13  ;;  %s10193_s13 = sld [smem:[#allocation6 + $0x23]] }
 0x40d   : > { %17746 = vst [vmem:[#allocation183_spill] sm:$0xff] %v15548_v30  ;;  %17747 = vst [vmem:[#allocation184_spill] sm:$0xff] %v15554_v26  ;;  %v15561_v42 = vsel %vm1584_vm2, %v7100_v35, %v7101_v46  ;;  %v7107_v54 = vrot.slane %v7094_v38, 1  ;;  %v7255_v59 = vrot.slane %v7242_v23, 2  ;;  %v6340_v40 = vmul.f32 %v6337_v12, %v15195_v1 }
 0x40e   : > { %17748 = vst [vmem:[#allocation185_spill] sm:$0xff] %v15561_v42  ;;  %v15564_v50 = vsel %vm1701_vm3, %v7248_v49, %v7249_v31  ;;  %v6341_v45 = vmul.f32 %v6337_v12, %v15223_v56  ;;  %v6453_v19 = vstv %s10133_s14  ;;  %v6338_v31 = vmul.f32 %v6337_v12, %v15127_v7  ;;  %s10165_s14 = sld [smem:[#allocation6 + $0x1e]] }
 0x40f   : > { %17749 = vst [vmem:[#allocation186_spill] sm:$0xff] %v15564_v50  ;;  %v15569_v5 = vsel %vm1584_vm2, %v7105_v55, %v7107_v54  ;;  %v15572_v34 = vsel %vm1701_vm3, %v7253_v63, %v7255_v59  ;;  %v6456_v46 = vmul.f32 %v6453_v19, %v15195_v1  ;;  %v6457_v35 = vmul.f32 %v6453_v19, %v15223_v56 }
 0x410   : > { %17750 = vst [vmem:[#allocation187_spill] sm:$0xff] %v15569_v5  ;;  %17751 = vst [vmem:[#allocation188_spill] sm:$0xff] %v15572_v34  ;;  %v6351_v38 = vrot.slane %v6340_v40, 1  ;;  %v6353_v23 = vrot.slane %v6341_v45, 1  ;;  %v6339_v42 = vmul.f32 %v6337_v12, %v15163_v21  ;;  %v6348_v63 = vrot.slane %v6338_v31, 1 }
 0x411   : > { %v6467_v49 = vrot.slane %v6456_v46, 2  ;;  %v6469_v50 = vrot.slane %v6457_v35, 2  ;;  %v6455_v54 = vmul.f32 %v6453_v19, %v15163_v21  ;;  %v6454_v59 = vmul.f32 %v6453_v19, %v15127_v7 }
 0x412   : > { %v15579_v55 = vsel %vm1584_vm2, %v6351_v38, %v6353_v23  ;;  %v6349_v45 = vrot.slane %v6339_v42, 1  ;;  %v6342_v34 = vmul.f32 %v6337_v12, %v15244_v37  ;;  %v6458_v46 = vmul.f32 %v6453_v19, %v15244_v37 }
 0x413   : > { %17752 = vst [vmem:[#allocation189_spill] sm:$0xff] %v15579_v55  ;;  %v15584_v40 = vsel %vm1701_vm3, %v6467_v49, %v6469_v50  ;;  %v6465_v35 = vrot.slane %v6455_v54, 2  ;;  %v6464_v5 = vrot.slane %v6454_v59, 2  ;;  %v6726_v26 = vstv %s15556_s22  ;;  %s10169_s22 = sld [smem:[#allocation6 + $0x21]] }
 0x414   : > { %17753 = vst [vmem:[#allocation190_spill] sm:$0xff] %v15584_v40  ;;  %v6874_v30 = vstv %s15558_s23  ;;  %v15591_v6 = vsel %vm1584_vm2, %v6348_v63, %v6349_v45  ;;  %v15594_v31 = vsel %vm1584_vm2, %v6349_v45, %v6351_v38  ;;  %v6355_v55 = vrot.slane %v6342_v34, 1  ;;  %s10178_s23 = sld [smem:[#allocation6 + $0x9f]] }
 0x415   : > { %17754 = vst [vmem:[#allocation191_spill] sm:$0xff] %v15591_v6  ;;  %17755 = vst [vmem:[#allocation192_spill] sm:$0xff] %v15594_v31  ;;  %v6471_v0 = vrot.slane %v6458_v46, 2  ;;  %v15597_v60 = vsel %vm1701_vm3, %v6465_v35, %v6467_v49  ;;  %v15600_v42 = vsel %vm1701_vm3, %v6464_v5, %v6465_v35  ;;  %v6727_v63 = vmul.f32 %v6726_v26, %v15127_v7 }
 0x416   : > { %17756 = vst [vmem:[#allocation193_spill] sm:$0xff] %v15597_v60  ;;  %17757 = vst [vmem:[#allocation194_spill] sm:$0xff] %v15600_v42  ;;  %v15603_v12 = vsel %vm1584_vm2, %v6353_v23, %v6355_v55  ;;  %v6728_v54 = vmul.f32 %v6726_v26, %v15163_v21  ;;  %v6875_v38 = vmul.f32 %v6874_v30, %v15127_v7  ;;  %v7126_v59 = vstv %s10154_s10  ;;  %s15880_s10 = sld [smem:[#allocation6 + $0xa2]] }
 0x417   : > { %17758 = vst [vmem:[#allocation195_spill] sm:$0xff] %v15603_v12  ;;  %v15606_v19 = vsel %vm1701_vm3, %v6469_v50, %v6471_v0  ;;  %v6876_v34 = vmul.f32 %v6874_v30, %v15163_v21  ;;  %v6737_v49 = vrot.slane %v6727_v63, 1  ;;  %v6730_v5 = vmul.f32 %v6726_v26, %v15223_v56 }
 0x418   : > { %17759 = vst [vmem:[#allocation196_spill] sm:$0xff] %v15606_v19  ;;  %v6738_v45 = vrot.slane %v6728_v54, 1  ;;  %v7274_v46 = vstv %s10158_s11  ;;  %v6885_v35 = vrot.slane %v6875_v38, 2  ;;  %v6731_v55 = vmul.f32 %v6726_v26, %v15244_v37  ;;  %s15941_s11 = sld [smem:[#allocation6 + $0xa0]] }
 0x419   : > { %v6886_v23 = vrot.slane %v6876_v34, 2  ;;  %v6729_v0 = vmul.f32 %v6726_v26, %v15195_v1  ;;  %v6742_v19 = vrot.slane %v6730_v5, 1  ;;  %v6878_v12 = vmul.f32 %v6874_v30, %v15223_v56 }
 0x41a   : > { %v15616_v50 = vsel %vm1584_vm2, %v6737_v49, %v6738_v45  ;;  %v4132_v42 = vmul.f32 %v15085_v36, %v14434_v3  ;;  %v6744_v54 = vrot.slane %v6731_v55, 1  ;;  %v6879_v38 = vmul.f32 %v6874_v30, %v15244_v37 }
 0x41b   : > { %17760 = vst [vmem:[#allocation197_spill] sm:$0xff] %v15616_v50  ;;  %v15622_v63 = vsel %vm1701_vm3, %v6885_v35, %v6886_v23  ;;  %v6740_v6 = vrot.slane %v6729_v0, 1  ;;  %v6890_v34 = vrot.slane %v6878_v12, 2  ;;  %v6877_v40 = vmul.f32 %v6874_v30, %v15195_v1 }
 0x41c   : > { %17761 = vst [vmem:[#allocation198_spill] sm:$0xff] %v15622_v63  ;;  %v7127_v26 = vmul.f32 %v7126_v59, %v15127_v7  ;;  %v7128_v49 = vmul.f32 %v7126_v59, %v15163_v21  ;;  %v15629_v5 = vsel %vm1584_vm2, %v6742_v19, %v6744_v54  ;;  %v6892_v55 = vrot.slane %v6879_v38, 2 }
 0x41d   : > { %17762 = vst [vmem:[#allocation199_spill] sm:$0xff] %v15629_v5  ;;  %v15632_v50 = vsel %vm1584_vm2, %v6738_v45, %v6740_v6  ;;  %v15635_v35 = vsel %vm1584_vm2, %v6740_v6, %v6742_v19  ;;  %v6888_v0 = vrot.slane %v6877_v40, 2  ;;  %v4131_v30 = vmul.f32 %v15085_v36, %v14390_v18 }
 0x41e   : > { %17763 = vst [vmem:[#allocation200_spill] sm:$0xff] %v15632_v50  ;;  %17764 = vst [vmem:[#allocation201_spill] sm:$0xff] %v15635_v35  ;;  %v7137_v63 = vrot.slane %v7127_v26, 1  ;;  %v7138_v60 = vrot.slane %v7128_v49, 1  ;;  %v15640_v12 = vsel %vm1701_vm3, %v6890_v34, %v6892_v55  ;;  %v7275_v31 = vmul.f32 %v7274_v46, %v15127_v7 }
 0x41f   : > { %17765 = vst [vmem:[#allocation202_spill] sm:$0xff] %v15640_v12  ;;  %v7276_v54 = vmul.f32 %v7274_v46, %v15163_v21  ;;  %v4142_v5 = vrot.slane %v4132_v42, 2  ;;  %v15645_v45 = vsel %vm1701_vm3, %v6886_v23, %v6888_v0  ;;  %v15651_v40 = vsel %vm1701_vm3, %v6888_v0, %v6890_v34 }
 0x420   : > { %17766 = vst [vmem:[#allocation203_spill] sm:$0xff] %v15645_v45  ;;  %v15648_v6 = vsel %vm1584_vm2, %v7137_v63, %v7138_v60  ;;  %17768 = vst [vmem:[#allocation205_spill] sm:$0xff] %v15651_v40  ;;  %v4133_v19 = vmul.f32 %v15085_v36, %v14471_v29  ;;  %v7285_v38 = vrot.slane %v7275_v31, 2  ;;  %v7130_v49 = vmul.f32 %v7126_v59, %v15223_v56 }
 0x421   : > { %17767 = vst [vmem:[#allocation204_spill] sm:$0xff] %v15648_v6  ;;  %v7286_v26 = vrot.slane %v7276_v54, 2  ;;  %v7131_v42 = vmul.f32 %v7126_v59, %v15244_v37  ;;  %v7129_v23 = vmul.f32 %v7126_v59, %v15195_v1  ;;  %v7278_v55 = vmul.f32 %v7274_v46, %v15223_v56 }
 0x422   : > { %v7279_v63 = vmul.f32 %v7274_v46, %v15244_v37  ;;  %v7277_v34 = vmul.f32 %v7274_v46, %v15195_v1  ;;  %v7142_v36 = vrot.slane %v7130_v49, 1  ;;  %v4141_v6 = vrot.slane %v4131_v30, 2 }
 0x423   : > { %v15662_v0 = vsel %vm1701_vm3, %v7285_v38, %v7286_v26  ;;  %v7144_v40 = vrot.slane %v7131_v42, 1  ;;  %v7140_v31 = vrot.slane %v7129_v23, 1  ;;  %v7290_v54 = vrot.slane %v7278_v55, 2 }
 0x424   : > { %17769 = vst [vmem:[#allocation206_spill] sm:$0xff] %v15662_v0  ;;  %v7292_v45 = vrot.slane %v7279_v63, 2  ;;  %v7288_v12 = vrot.slane %v7277_v34, 2  ;;  %v15668_v59 = vsel %vm1701_vm3, %v4141_v6, %v4142_v5  ;;  %v4144_v50 = vrot.slane %v4133_v19, 2 }
 0x425   : > { %v15665_v35 = vsel %vm1584_vm2, %v7142_v36, %v7144_v40  ;;  %17771 = vst [vmem:[#allocation208_spill] sm:$0xff] %v15668_v59  ;;  %v15671_v11 = vsel %vm1584_vm2, %v7138_v60, %v7140_v31  ;;  %v15677_v38 = vsel %vm1584_vm2, %v7140_v31, %v7142_v36  ;;  %v17776_v49 = vrot.slane %v15093_v28, 2 }
 0x426   : > { %17770 = vst [vmem:[#allocation207_spill] sm:$0xff] %v15665_v35  ;;  %17772 = vst [vmem:[#allocation209_spill] sm:$0xff] %v15671_v11  ;;  %v15674_v46 = vsel %vm1701_vm3, %v7290_v54, %v7292_v45  ;;  %v15680_v30 = vsel %vm1701_vm3, %v7286_v26, %v7288_v12  ;;  %v15688_v6 = vsel %vm1701_vm3, %v4142_v5, %v4144_v50  ;;  %v6366_v19 = vstv %s10130_s29  ;;  %s15965_s29 = sld [smem:[#allocation6 + $0xa3]] }
 0x427   : > { %17773 = vst [vmem:[#allocation210_spill] sm:$0xff] %v15674_v46  ;;  %17774 = vst [vmem:[#allocation211_spill] sm:$0xff] %v15677_v38  ;;  %v15685_v40 = vsel %vm1701_vm3, %v4144_v50, %v17776_v49  ;;  %v15691_v60 = vsel %vm1701_vm3, %v7288_v12, %v7290_v54  ;;  %v6482_v45 = vstv %s10134_s9  ;;  %v6368_v42 = vmul.f32 %v6366_v19, %v15163_v21  ;;  %s16045_s9 = sld [smem:[#allocation6 + $0x9e]] }
 0x428   : > { %17775 = vst [vmem:[#allocation212_spill] sm:$0xff] %v15680_v30  ;;  %17777 = vst [vmem:[#allocation213_spill] sm:$0xff] %v15685_v40  ;;  %v6369_v26 = vmul.f32 %v6366_v19, %v15195_v1  ;;  %v6370_v23 = vmul.f32 %v6366_v19, %v15223_v56  ;;  %v6371_v28 = vmul.f32 %v6366_v19, %v15244_v37  ;;  %v15778_v30 = vstv %s10178_s23  ;;  %s10180_s23 = sld [smem:[#allocation6 + $0x19f]] }
 0x429   : > { %17778 = vst [vmem:[#allocation214_spill] sm:$0xff] %v15688_v6  ;;  %17779 = vst [vmem:[#allocation215_spill] sm:$0xff] %v15691_v60  ;;  %v6486_v50 = vmul.f32 %v6482_v45, %v15223_v56  ;;  %v6487_v5 = vmul.f32 %v6482_v45, %v15244_v37  ;;  %v6367_v12 = vmul.f32 %v6366_v19, %v15127_v7  ;;  %v6378_v55 = vrot.slane %v6368_v42, 1 }
 0x42a   : > { %v6380_v63 = vrot.slane %v6369_v26, 1  ;;  %v6382_v34 = vrot.slane %v6370_v23, 1  ;;  %v6384_v36 = vrot.slane %v6371_v28, 1  ;;  %v6483_v40 = vmul.f32 %v6482_v45, %v15127_v7 }
 0x42b   : > { %v6498_v31 = vrot.slane %v6486_v50, 2  ;;  %v6500_v54 = vrot.slane %v6487_v5, 2  ;;  %v6377_v49 = vrot.slane %v6367_v12, 1  ;;  %v6484_v19 = vmul.f32 %v6482_v45, %v15163_v21 }
 0x42c   : > { %v15712_v6 = vsel %vm1584_vm2, %v6378_v55, %v6380_v63  ;;  %v15715_v37 = vsel %vm1584_vm2, %v6382_v34, %v6384_v36  ;;  %v15719_v42 = vsel %vm1584_vm2, %v6380_v63, %v6382_v34  ;;  %v6485_v28 = vmul.f32 %v6482_v45, %v15195_v1 }
 0x42d   : > { %17780 = vst [vmem:[#allocation216_spill] sm:$0xff] %v15712_v6  ;;  %17781 = vst [vmem:[#allocation217_spill] sm:$0xff] %v15715_v37  ;;  %v15722_v26 = vsel %vm1701_vm3, %v6498_v31, %v6500_v54  ;;  %v15725_v23 = vsel %vm1584_vm2, %v6377_v49, %v6378_v55  ;;  %v6493_v50 = vrot.slane %v6483_v40, 2  ;;  %v6494_v5 = vrot.slane %v6484_v19, 2 }
 0x42e   : > { %17782 = vst [vmem:[#allocation218_spill] sm:$0xff] %v15719_v42  ;;  %17783 = vst [vmem:[#allocation219_spill] sm:$0xff] %v15722_v26  ;;  %v6496_v12 = vrot.slane %v6485_v28, 2  ;;  %v15740_v49 = vstv %s15693_s26  ;;  %v15743_v45 = vstv %s15699_s20  ;;  %v15746_v40 = vstv %s15701_s25  ;;  %s16067_s26 = sld [smem:[#allocation6 + $0xa1]]  ;;  %s16071_s20 = sld [smem:[#allocation6 + $0x8a]] }
 0x42f   : > { %17784 = vst [vmem:[#allocation220_spill] sm:$0xff] %v15725_v23  ;;  %v15729_v63 = vsel %vm1701_vm3, %v6493_v50, %v6494_v5  ;;  %v15749_v19 = vstv %s15706_s30  ;;  %v15751_v28 = vstv %s10189_s8  ;;  %v15753_v50 = vstv %s10193_s13  ;;  %s16133_s25 = sld [smem:[#allocation6 + $0x11f]]  ;;  %s16141_s30 = sld [smem:[#allocation6 + $0x122]] }
 0x430   : > { %17785 = vst [vmem:[#allocation221_spill] sm:$0xff] %v15729_v63  ;;  %v15732_v34 = vsel %vm1701_vm3, %v6496_v12, %v6498_v31  ;;  %v15735_v36 = vsel %vm1701_vm3, %v6494_v5, %v6496_v12  ;;  %v15760_v5 = vstv %s10165_s14  ;;  %v15762_v12 = vstv %s10169_s22  ;;  %s16184_s8 = sld [smem:[#allocation6 + $0x123]]  ;;  %s16224_s13 = sld [smem:[#allocation6 + $0x11e]] }
 0x431   : > { %17786 = vst [vmem:[#allocation222_spill] sm:$0xff] %v15732_v34  ;;  %17787 = vst [vmem:[#allocation223_spill] sm:$0xff] %v15735_v36  ;;  %v15758_v34 = vstv %s15708_s12  ;;  %s16166_s12 = sld [smem:[#allocation6 + $0x120]]  ;;  %s16230_s14 = sld [smem:[#allocation6 + $0x8b]] }
 0x432   : > { %s16236_s22 = sld [smem:[#allocation6 + $0x121]] }
 0x43a   : > { %v15737_v54 = vpop.permute.xlu1 %6920  ;;  %v6521_v55 = vpop.permute.xlu0 %6520 }
 0x43b   : > { %v6532_v38 = vadd.f32 %v6521_v55, %v15316_v47 }
 0x43e   : > { %v15764_v42 = vpop.permute.xlu0 %6922  ;;  %v6523_v36 = vpop.permute.xlu1 %6522 }
 0x43f   : > { %v15755_v31 = vpop.f32.mrb[30].mxu1  ;;  %v6533_v46 = vadd.f32 %v6523_v36, %v15349_v22 }
 0x440   : > { %v9264_v6 = vmul.f32 %v15740_v49, %v15755_v31  ;;  %v8864_v26 = vmul.f32 %v15743_v45, %v15755_v31  ;;  %v8968_v37 = vmul.f32 %v15746_v40, %v15755_v31  ;;  %v9116_v63 = vmul.f32 %v15749_v19, %v15755_v31  ;;  %v11451_v23 = vpop.f32.mrb[31].mxu1 }
 0x441   : > { %v9368_v59 = vmul.f32 %v15751_v28, %v15755_v31  ;;  %v9516_v60 = vmul.f32 %v15753_v50, %v15755_v31  ;;  %v15786_v23 = vmul.f32 %v15758_v34, %v15755_v31  ;;  %v15792_v57 = vmul.f32 %v15760_v5, %v15755_v31 }
 0x442   : > { %9272 = vrot.lane.b32.xlu1 %v9264_v6, %s12230_s5  ;;  %8872 = vrot.lane.b32.xlu0 %v8864_v26, %s12231_s7  ;;  %v8978_v11 = vrot.slane %v8968_v37, 1  ;;  %v9126_v0 = vrot.slane %v9116_v63, 2  ;;  %v15796_v47 = vmul.f32 %v15762_v12, %v15755_v31  ;;  %v6636_v22 = vpop.permute.xlu1 %6635  ;;  %v6525_v6 = vpop.permute.xlu0 %6524  ;;  %v15812_v62 = vmul.f32 %v15778_v30, %v15755_v31 }
 0x443   : > { %v15788_v35 = vpop.f32.mrb[32].mxu1  ;;  %v9378_v53 = vrot.slane %v9368_v59, 1  ;;  %v9526_v24 = vrot.slane %v9516_v60, 2  ;;  %v6647_v14 = vadd.f32 %v6636_v22, %v6532_v38  ;;  %v15815_v43 = vadd.f32 %v6525_v6, %v15431_v32 }
 0x444   : > { %v9265_v37 = vmul.f32 %v15740_v49, %v15788_v35  ;;  %v8865_v26 = vmul.f32 %v15743_v45, %v15788_v35  ;;  %v8969_v63 = vmul.f32 %v15746_v40, %v15788_v35  ;;  %v9117_v59 = vmul.f32 %v15749_v19, %v15788_v35  ;;  %v11454_v36 = vpop.f32.mrb[33].mxu1 }
 0x445   : > { %v9369_v55 = vmul.f32 %v15751_v28, %v15788_v35  ;;  %v9517_v41 = vmul.f32 %v15753_v50, %v15788_v35  ;;  %v15823_v60 = vmul.f32 %v15758_v34, %v15788_v35  ;;  %v15827_v38 = vmul.f32 %v15760_v5, %v15788_v35 }
 0x446   : > { %9274 = vrot.lane.b32.xlu0 %v9265_v37, %s12230_s5  ;;  %8874 = vrot.lane.b32.xlu1 %v8865_v26, %s12231_s7  ;;  %v8979_v36 = vrot.slane %v8969_v63, 1  ;;  %v9127_v20 = vrot.slane %v9117_v59, 2  ;;  %v6784_v32 = vpop.permute.xlu1 %6783  ;;  %v15829_v22 = vpop.permute.xlu0 %6924 }
 0x447   : > { %v15819_v39 = vpop.f32.mrb[34].mxu1  ;;  %v9379_v4 = vrot.slane %v9369_v55, 1  ;;  %v9527_v13 = vrot.slane %v9517_v41, 2  ;;  %v15837_v41 = vmul.f32 %v15762_v12, %v15788_v35  ;;  %v6795_v63 = vadd.f32 %v6784_v32, %v6647_v14 }
 0x448   : > { %v8980_v6 = vsel %vm1584_vm2, %v8978_v11, %v8979_v36  ;;  %v8866_v37 = vmul.f32 %v15743_v45, %v15819_v39  ;;  %v9128_v26 = vsel %vm1701_vm3, %v9126_v0, %v9127_v20  ;;  %v11457_v59 = vpop.f32.mrb[35].mxu1  ;;  %v8970_v44 = vmul.f32 %v15746_v40, %v15819_v39 }
 0x449   : > { %v9380_v55 = vsel %vm1584_vm2, %v9378_v53, %v9379_v4  ;;  %v15843_v51 = vsel %vm1701_vm3, %v9526_v24, %v9527_v13  ;;  %v9118_v11 = vmul.f32 %v15749_v19, %v15819_v39  ;;  %v9370_v0 = vmul.f32 %v15751_v28, %v15819_v39 }
 0x44a   : > { %8987 = vrot.lane.b32.xlu1 %v8980_v6, %s12231_s7  ;;  %8876 = vrot.lane.b32.xlu0 %v8866_v37, %s12231_s7  ;;  %v15853_v14 = vmul.f32 %v15753_v50, %v15819_v39  ;;  %v6932_v24 = vadd.f32 %v15737_v54, %v6795_v63  ;;  %v9266_v6 = vmul.f32 %v15740_v49, %v15819_v39  ;;  %v8981_v37 = vrot.slane %v8970_v44, 1  ;;  %v7036_v48 = vpop.permute.xlu1 %7035  ;;  %v6638_v33 = vpop.permute.xlu0 %6637 }
 0x44b   : > { %v15856_v32 = vpop.f32.mrb[36].mxu1  ;;  %v9129_v52 = vrot.slane %v9118_v11, 2  ;;  %v9381_v2 = vrot.slane %v9370_v0, 1  ;;  %v15865_v8 = vmul.f32 %v15758_v34, %v15819_v39  ;;  %v6648_v56 = vadd.f32 %v6638_v33, %v6533_v46 }
 0x44c   : > { %v9529_v10 = vrot.slane %v15853_v14, 2  ;;  %v7047_v53 = vadd.f32 %v7036_v48, %v6932_v24  ;;  %v11460_v17 = vpop.f32.mrb[37].mxu1  ;;  %v8982_v54 = vsel %vm1584_vm2, %v8979_v36, %v8981_v37  ;;  %v15870_v44 = vmul.f32 %v15743_v45, %v15856_v32 }
 0x44d   : > { %v9130_v63 = vsel %vm1701_vm3, %v9127_v20, %v9129_v52  ;;  %v9382_v11 = vsel %vm1584_vm2, %v9379_v4, %v9381_v2  ;;  %v8758_v33 = vrot.slane %v15796_v47, 2  ;;  %v8971_v48 = vmul.f32 %v15746_v40, %v15856_v32 }
 0x44e   : > { %9135 = vrot.lane.b32.xlu1 %v9128_v26, %s12231_s7  ;;  %9276 = vrot.lane.b32.xlu0 %v9266_v6, %s12230_s5  ;;  %v15877_v0 = vsel %vm1701_vm3, %v9527_v13, %v9529_v10  ;;  %v9119_v46 = vmul.f32 %v15749_v19, %v15856_v32  ;;  %v9371_v20 = vmul.f32 %v15751_v28, %v15856_v32  ;;  %v7184_v45 = vpop.permute.xlu1 %7183  ;;  %v6786_v13 = vpop.permute.xlu0 %6785 }
 0x44f   : > { %v15882_v17 = vpop.f32.mrb[38].mxu1  ;;  %v9519_v14 = vmul.f32 %v15753_v50, %v15856_v32  ;;  %v7195_v24 = vadd.f32 %v7184_v45, %v7047_v53  ;;  %v6796_v6 = vadd.f32 %v6786_v13, %v6648_v56  ;;  %v8983_v1 = vrot.slane %v8971_v48, 1 }
 0x450   : > { %v8972_v47 = vmul.f32 %v15746_v40, %v15882_v17  ;;  %v9120_v36 = vmul.f32 %v15749_v19, %v15882_v17  ;;  %v9372_v26 = vmul.f32 %v15751_v28, %v15882_v17  ;;  %v11463_v59 = vpop.f32.mrb[39].mxu1  ;;  %v9131_v21 = vrot.slane %v9119_v46, 2 }
 0x451   : > { %v9383_v7 = vrot.slane %v9371_v20, 1  ;;  %v8596_v19 = vadd.f32 %v15786_v23, %v7195_v24  ;;  %v6933_v28 = vadd.f32 %v15764_v42, %v6796_v6  ;;  %v15904_v27 = vsel %vm1584_vm2, %v8981_v37, %v8983_v1 }
 0x452   : > { %9387 = vrot.lane.b32.xlu1 %v9380_v55, %s12230_s5  ;;  %8989 = vrot.lane.b32.xlu0 %v8982_v54, %s12231_s7  ;;  %v8985_v4 = vrot.slane %v8972_v47, 1  ;;  %v9133_v40 = vrot.slane %v9120_v36, 2  ;;  %v9385_v15 = vrot.slane %v9372_v26, 1  ;;  %v15907_v56 = vsel %vm1701_vm3, %v9129_v52, %v9131_v21  ;;  %v7038_v53 = vpop.permute.xlu0 %7037  ;;  %v6527_v59 = vpop.permute.xlu1 %6526 }
 0x453   : > { %v15916_v48 = vsel %vm1584_vm2, %v9381_v2, %v9383_v7  ;;  %v7048_v23 = vadd.f32 %v7038_v53, %v6933_v28  ;;  %v9267_v52 = vmul.f32 %v15740_v49, %v15856_v32  ;;  %v9531_v37 = vrot.slane %v9519_v14, 2 }
 0x454   : > { %v15910_v55 = vsel %vm1584_vm2, %v8983_v1, %v8985_v4  ;;  %v15913_v54 = vsel %vm1701_vm3, %v9131_v21, %v9133_v40  ;;  %v15919_v42 = vsel %vm1584_vm2, %v9383_v7, %v9385_v15  ;;  %v9520_v46 = vmul.f32 %v15753_v50, %v15882_v17 }
 0x455   : > { %v17788_v1 = vrot.slane %v15827_v38, 1  ;;  %v17789_v21 = vrot.slane %v15792_v57, 1  ;;  %v17790_v7 = vrot.slane %v15837_v41, 2  ;;  %v8634_v49 = vmul.f32 %v15760_v5, %v15819_v39 }
 0x456   : > { %9535 = vrot.lane.b32.xlu1 %v15843_v51, %s12230_s5  ;;  %9137 = vrot.lane.b32.xlu0 %v9130_v63, %s12231_s7  ;;  %v15939_v20 = vstv %s15880_s10  ;;  %v15944_v51 = vsel %vm1701_vm3, %v9529_v10, %v9531_v37  ;;  %v9533_v50 = vrot.slane %v9520_v46, 2  ;;  %v8750_v57 = vmul.f32 %v15762_v12, %v15819_v39  ;;  %v7186_v4 = vpop.permute.xlu0 %7185  ;;  %v6927_v45 = vpop.permute.xlu1 %6926  ;;  %s10184_s10 = sld [smem:[#allocation6 + $0x1a2]] }
 0x457   : > { %v8644_v15 = vsel %vm1584_vm2, %v17789_v21, %v17788_v1  ;;  %v8760_v2 = vsel %vm1701_vm3, %v8758_v33, %v17790_v7  ;;  %v8645_v13 = vrot.slane %v8634_v49, 1  ;;  %v8635_v33 = vmul.f32 %v15760_v5, %v15856_v32 }
 0x458   : > { %v8655_v63 = vadd.f32 %v8644_v15, %v8596_v19  ;;  %v8751_v47 = vmul.f32 %v15762_v12, %v15856_v32  ;;  %v8636_v36 = vmul.f32 %v15760_v5, %v15882_v17  ;;  %v7196_v26 = vadd.f32 %v7186_v4, %v7048_v23 }
 0x459   : > { %v15955_v10 = vsel %vm1701_vm3, %v9531_v37, %v9533_v50  ;;  %v8761_v24 = vrot.slane %v8750_v57, 2  ;;  %v17791_v6 = vmov %v17788_v1  ;;  %v8647_v19 = vrot.slane %v8635_v33, 1 }
 0x45a   : > { %v15957_v14 = vadd.f32 %v8760_v2, %v8655_v63  ;;  %9389 = vrot.lane.b32.xlu0 %v9382_v11, %s12230_s5  ;;  %8878 = vrot.lane.b32.xlu1 %v15870_v44, %s12231_s7  ;;  %v8646_v40 = vsel %vm1584_vm2, %v17791_v6, %v8645_v13  ;;  %v8763_v28 = vrot.slane %v8751_v47, 2  ;;  %v8649_v53 = vrot.slane %v8636_v36, 1  ;;  %v6640_v38 = vpop.permute.xlu0 %6639  ;;  %v6642_v46 = vpop.permute.xlu1 %6641 }
 0x45b   : > { %v6535_v5 = vadd.f32 %v6527_v59, %v15434_v9  ;;  %v8597_v23 = vadd.f32 %v15823_v60, %v7196_v26  ;;  %v17792_v37 = vmov %v17790_v7  ;;  %v8752_v44 = vmul.f32 %v15762_v12, %v15882_v17 }
 0x45c   : > { %v8762_v11 = vsel %vm1701_vm3, %v17792_v37, %v8761_v24  ;;  %v15975_v1 = vsel %vm1584_vm2, %v8645_v13, %v8647_v19  ;;  %v15978_v21 = vsel %vm1701_vm3, %v8761_v24, %v8763_v28  ;;  %v15981_v9 = vsel %vm1584_vm2, %v8647_v19, %v8649_v53 }
 0x45d   : > { %v15985_v60 = vmul.f32 %v15778_v30, %v15788_v35  ;;  %v6649_v41 = vadd.f32 %v6640_v38, %v15815_v43  ;;  %v6650_v59 = vadd.f32 %v6642_v46, %v6535_v5  ;;  %v8656_v12 = vadd.f32 %v8646_v40, %v8597_v23 }
 0x45e   : > { %v8765_v15 = vrot.slane %v8752_v44, 2  ;;  %9537 = vrot.lane.b32.xlu0 %v15877_v0, %s12230_s5  ;;  %9278 = vrot.lane.b32.xlu1 %v9267_v52, %s12230_s5  ;;  %v9007_v7 = vmul.f32 %v15778_v30, %v15819_v39  ;;  %v15995_v2 = vmul.f32 %v15778_v30, %v15856_v32  ;;  %v15999_v49 = vmul.f32 %v15939_v20, %v15788_v35  ;;  %v6788_v57 = vpop.permute.xlu0 %6787  ;;  %v6790_v4 = vpop.permute.xlu1 %6789 }
 0x45f   : > { %v16002_v43 = vstv %s15941_s11  ;;  %v16004_v50 = vadd.f32 %v8762_v11, %v8656_v12  ;;  %v9155_v0 = vmul.f32 %v15939_v20, %v15819_v39  ;;  %v16013_v52 = vmul.f32 %v15939_v20, %v15856_v32  ;;  %s10136_s11 = sld [smem:[#allocation6 + $0x93]] }
 0x460   : > { %v16007_v63 = vsel %vm1701_vm3, %v8763_v28, %v8765_v15  ;;  %v9016_v13 = vrot.slane %v15985_v60, 1  ;;  %v9018_v33 = vrot.slane %v9007_v7, 1  ;;  %v9020_v47 = vrot.slane %v15995_v2, 1 }
 0x461   : > { %v9164_v36 = vrot.slane %v15999_v49, 2  ;;  %v6797_v26 = vadd.f32 %v6788_v57, %v6649_v41  ;;  %v6798_v24 = vadd.f32 %v6790_v4, %v6650_v59  ;;  %v9166_v6 = vrot.slane %v9155_v0, 2 }
 0x462   : > { %v9168_v40 = vrot.slane %v16013_v52, 2  ;;  %8991 = vrot.lane.b32.xlu0 %v15904_v27, %s12231_s7  ;;  %8993 = vrot.lane.b32.xlu1 %v15910_v55, %s12231_s7  ;;  %v8595_v19 = vmul.f32 %v15758_v34, %v15856_v32  ;;  %v16026_v28 = vsel %vm1584_vm2, %v9016_v13, %v9018_v33  ;;  %v16031_v53 = vsel %vm1584_vm2, %v9018_v33, %v9020_v47  ;;  %v7040_v55 = vpop.permute.xlu0 %7039  ;;  %v7042_v11 = vpop.permute.xlu1 %7041  ;;  %v17794_v52 = vld [vmem:[#allocation26_spill] sm:$0xff] }
 0x463   : > { %v9552_v5 = vstv %s15965_s29  ;;  %v6934_v23 = vadd.f32 %v15829_v22, %v6797_v26  ;;  %v6935_v37 = vadd.f32 %v6927_v45, %v6798_v24  ;;  %v16038_v27 = vsel %vm1701_vm3, %v9164_v36, %v9166_v6  ;;  %s10192_s29 = sld [smem:[#allocation6 + $0x1a0]] }
 0x464   : > { %v16043_v34 = vsel %vm1701_vm3, %v9166_v6, %v9168_v40  ;;  %v16049_v44 = vmul.f32 %v16002_v43, %v15788_v35  ;;  %v9407_v22 = vmul.f32 %v16002_v43, %v15819_v39  ;;  %v9408_v45 = vmul.f32 %v16002_v43, %v15856_v32 }
 0x465   : > { %v16056_v38 = vmul.f32 %v9552_v5, %v15788_v35  ;;  %v7049_v46 = vadd.f32 %v7040_v55, %v6934_v23  ;;  %v9555_v60 = vmul.f32 %v9552_v5, %v15819_v39  ;;  %v9409_v41 = vmul.f32 %v16002_v43, %v15882_v17 }
 0x466   : > { %v9015_v59 = vrot.slane %v15812_v62, 1  ;;  %v7050_v12 = vadd.f32 %v7042_v11, %v6935_v37  ;;  %9139 = vrot.lane.b32.xlu0 %v15907_v56, %s12231_s7  ;;  %9141 = vrot.lane.b32.xlu1 %v15913_v54, %s12231_s7  ;;  %v9416_v15 = vrot.slane %v16049_v44, 1  ;;  %v9418_v7 = vrot.slane %v9407_v22, 1  ;;  %v7188_v62 = vpop.permute.xlu0 %7187  ;;  %v7190_v24 = vpop.permute.xlu1 %7189 }
 0x467   : > { %v9420_v0 = vrot.slane %v9408_v45, 1  ;;  %v9564_v57 = vrot.slane %v16056_v38, 2  ;;  %v9566_v4 = vrot.slane %v9555_v60, 2  ;;  %v9422_v33 = vrot.slane %v9409_v41, 1 }
 0x468   : > { %v9556_v26 = vmul.f32 %v9552_v5, %v15856_v32  ;;  %v16074_v56 = vsel %vm1584_vm2, %v9416_v15, %v9418_v7  ;;  %v9557_v6 = vmul.f32 %v9552_v5, %v15882_v17  ;;  %v16081_v23 = vsel %vm1584_vm2, %v9015_v59, %v9016_v13 }
 0x469   : > { %v16077_v54 = vsel %vm1584_vm2, %v9418_v7, %v9420_v0  ;;  %v7197_v37 = vadd.f32 %v7188_v62, %v7049_v46  ;;  %v7198_v55 = vadd.f32 %v7190_v24, %v7050_v12  ;;  %v16084_v11 = vsel %vm1701_vm3, %v9564_v57, %v9566_v4 }
 0x46a   : > { %v16087_v44 = vsel %vm1584_vm2, %v9420_v0, %v9422_v33  ;;  %9391 = vrot.lane.b32.xlu0 %v15916_v48, %s12230_s5  ;;  %9393 = vrot.lane.b32.xlu1 %v15919_v42, %s12230_s5  ;;  %v9568_v22 = vrot.slane %v9556_v26, 2  ;;  %v9570_v45 = vrot.slane %v9557_v6, 2  ;;  %v9153_v13 = vmul.f32 %v15939_v20, %v15755_v31 }
 0x46b   : > { %v8598_v38 = vadd.f32 %v15865_v8, %v7197_v37  ;;  %v8599_v46 = vadd.f32 %v8595_v19, %v7198_v55  ;;  %v9009_v60 = vmul.f32 %v15778_v30, %v15882_v17  ;;  %v8660_v41 = vstv %s16045_s9  ;;  %s10196_s9 = sld [smem:[#allocation6 + $0x1a3]] }
 0x46c   : > { %v16100_v59 = vsel %vm1701_vm3, %v9566_v4, %v9568_v22  ;;  %v16103_v48 = vsel %vm1701_vm3, %v9568_v22, %v9570_v45  ;;  %v9163_v42 = vrot.slane %v9153_v13, 2  ;;  %v9157_v12 = vmul.f32 %v15939_v20, %v15882_v17 }
 0x46d   : > { %v8657_v7 = vadd.f32 %v15975_v1, %v8598_v38  ;;  %v8658_v8 = vadd.f32 %v15981_v9, %v8599_v46  ;;  %v9022_v19 = vrot.slane %v9009_v60, 1  ;;  %v9405_v30 = vmul.f32 %v16002_v43, %v15755_v31  ;;  %v17797_v46 = vld [vmem:[#allocation20_spill] sm:$0xff]  ;;  %v17798_v60 = vld [vmem:[#allocation27_spill] sm:$0xff] }
 0x46e   : > { %9539 = vrot.lane.b32.xlu0 %v15944_v51, %s12230_s5  ;;  %9541 = vrot.lane.b32.xlu1 %v15955_v10, %s12230_s5  ;;  %v16118_v0 = vsel %vm1701_vm3, %v9163_v42, %v9164_v36  ;;  %v9170_v20 = vrot.slane %v9157_v12, 2  ;;  %v9553_v1 = vmul.f32 %v9552_v5, %v15755_v31  ;;  %v8776_v4 = vstv %s16067_s26  ;;  %s10168_s26 = sld [smem:[#allocation6 + $0x19e]] }
 0x46f   : > { %v16123_v9 = vadd.f32 %v15978_v21, %v8657_v7  ;;  %v16126_v43 = vadd.f32 %v16007_v63, %v8658_v8  ;;  %v16131_v51 = vsel %vm1584_vm2, %v9020_v47, %v9022_v19  ;;  %v9415_v10 = vrot.slane %v9405_v30, 1 }
 0x470   : > { %v4185_v49 = vstv %s16071_s20  ;;  %v16139_v36 = vsel %vm1701_vm3, %v9168_v40, %v9170_v20  ;;  %v9563_v5 = vrot.slane %v9553_v1, 2  ;;  %v8661_v2 = vmul.f32 %v8660_v41, %v15755_v31  ;;  %s10172_s20 = sld [smem:[#allocation6 + $0x1a1]] }
 0x471   : > { %v4187_v21 = vmul.f32 %v4185_v49, %v14434_v3  ;;  %v16145_v63 = vsel %vm1584_vm2, %v9415_v10, %v9416_v15  ;;  %v8662_v47 = vmul.f32 %v8660_v41, %v15788_v35  ;;  %v8777_v33 = vmul.f32 %v8776_v4, %v15755_v31 }
 0x472   : > { %17793 = vst [vmem:[#allocation224_spill] sm:$0xff] %v16145_v63  ;;  %2374 = vrot.lane.b32.xlu0 %v13930_v58, %s12230_s5  ;;  %2518 = vrot.lane.b32.xlu1 %v17794_v52, %s12230_s5  ;;  %v16154_v40 = vsel %vm1701_vm3, %v9563_v5, %v9564_v57  ;;  %v8778_v26 = vmul.f32 %v8776_v4, %v15788_v35  ;;  %v8671_v62 = vrot.slane %v8661_v2, 1  ;;  %v9041_v1 = vstv %s16133_s25  ;;  %s10148_s25 = sld [smem:[#allocation6 + $0x94]] }
 0x473   : > { %17795 = vst [vmem:[#allocation26_spill] sm:$0xff] %v16154_v40  ;;  %v8672_v15 = vrot.slane %v8662_v47, 1  ;;  %v8663_v24 = vmul.f32 %v8660_v41, %v15819_v39  ;;  %v8664_v6 = vmul.f32 %v8660_v41, %v15856_v32  ;;  %v8787_v37 = vrot.slane %v8777_v33, 2 }
 0x474   : > { %v8788_v55 = vrot.slane %v8778_v26, 2  ;;  %v8779_v58 = vmul.f32 %v8776_v4, %v15819_v39  ;;  %v8780_v22 = vmul.f32 %v8776_v4, %v15856_v32  ;;  %v4186_v57 = vmul.f32 %v4185_v49, %v14390_v18 }
 0x475   : > { %v16164_v45 = vsel %vm1584_vm2, %v8671_v62, %v8672_v15  ;;  %v8674_v13 = vrot.slane %v8663_v24, 1  ;;  %v8676_v38 = vrot.slane %v8664_v6, 1  ;;  %v8665_v8 = vmul.f32 %v8660_v41, %v15882_v17 }
 0x476   : > { %17796 = vst [vmem:[#allocation225_spill] sm:$0xff] %v16164_v45  ;;  %2522 = vrot.lane.b32.xlu0 %v17797_v46, %s12230_s5  ;;  %2520 = vrot.lane.b32.xlu1 %v17798_v60, %s12230_s5  ;;  %v16173_v42 = vsel %vm1701_vm3, %v8787_v37, %v8788_v55  ;;  %v8790_v12 = vrot.slane %v8779_v58, 2  ;;  %v8792_v7 = vrot.slane %v8780_v22, 2  ;;  %v8781_v20 = vmul.f32 %v8776_v4, %v15882_v17 }
 0x477   : > { %17799 = vst [vmem:[#allocation20_spill] sm:$0xff] %v16173_v42  ;;  %v16177_v19 = vsel %vm1584_vm2, %v8674_v13, %v8676_v38  ;;  %v16180_v30 = vsel %vm1584_vm2, %v8672_v15, %v8674_v13  ;;  %v8678_v2 = vrot.slane %v8665_v8, 1  ;;  %v9189_v47 = vstv %s16141_s30  ;;  %s10174_s30 = sld [smem:[#allocation6 + $0x9c]] }
 0x478   : > { %17800 = vst [vmem:[#allocation27_spill] sm:$0xff] %v16177_v19  ;;  %17801 = vst [vmem:[#allocation226_spill] sm:$0xff] %v16180_v30  ;;  %v16187_v10 = vsel %vm1701_vm3, %v8790_v12, %v8792_v7  ;;  %v16190_v5 = vsel %vm1701_vm3, %v8788_v55, %v8790_v12  ;;  %v8794_v41 = vrot.slane %v8781_v20, 2  ;;  %v9043_v52 = vmul.f32 %v9041_v1, %v15788_v35 }
 0x479   : > { %17802 = vst [vmem:[#allocation227_spill] sm:$0xff] %v16187_v10  ;;  %17803 = vst [vmem:[#allocation228_spill] sm:$0xff] %v16190_v5  ;;  %v9044_v33 = vmul.f32 %v9041_v1, %v15819_v39  ;;  %v9045_v26 = vmul.f32 %v9041_v1, %v15856_v32  ;;  %v16199_v4 = vsel %vm1584_vm2, %v8676_v38, %v8678_v2  ;;  %v9441_v60 = vstv %s16166_s12  ;;  %s10186_s12 = sld [smem:[#allocation6 + $0x9d]] }
 0x47a   : > { %4196 = vrot.lane.b32.xlu0 %v4187_v21, %s12231_s7  ;;  %4194 = vrot.lane.b32.xlu1 %v4186_v57, %s12231_s7  ;;  %17804 = vst [vmem:[#allocation229_spill] sm:$0xff] %v16199_v4  ;;  %v9191_v62 = vmul.f32 %v9189_v47, %v15788_v35  ;;  %v9192_v15 = vmul.f32 %v9189_v47, %v15819_v39  ;;  %v9053_v6 = vrot.slane %v9043_v52, 1  ;;  %v9589_v52 = vstv %s16184_s8  ;;  %v17850_v4 = vld [vmem:[#allocation83_spill] sm:$0xff]  ;;  %s10124_s8 = sld [smem:[#allocation6 + $0x92]] }
 0x47b   : > { %v16204_v24 = vsel %vm1701_vm3, %v8792_v7, %v8794_v41  ;;  %v9055_v37 = vrot.slane %v9044_v33, 1  ;;  %v9057_v55 = vrot.slane %v9045_v26, 1  ;;  %v4188_v58 = vmul.f32 %v4185_v49, %v14471_v29 }
 0x47c   : > { %17805 = vst [vmem:[#allocation230_spill] sm:$0xff] %v16204_v24  ;;  %v9201_v22 = vrot.slane %v9191_v62, 2  ;;  %v9203_v21 = vrot.slane %v9192_v15, 2  ;;  %v9193_v57 = vmul.f32 %v9189_v47, %v15856_v32  ;;  %v4189_v13 = vmul.f32 %v4185_v49, %v14507_v16 }
 0x47d   : > { %v16210_v38 = vsel %vm1584_vm2, %v9053_v6, %v9055_v37  ;;  %v16213_v46 = vsel %vm1584_vm2, %v9055_v37, %v9057_v55  ;;  %v9042_v8 = vmul.f32 %v9041_v1, %v15755_v31  ;;  %v9443_v49 = vmul.f32 %v9441_v60, %v15788_v35 }
 0x47e   : > { %17806 = vst [vmem:[#allocation231_spill] sm:$0xff] %v16210_v38  ;;  %17807 = vst [vmem:[#allocation232_spill] sm:$0xff] %v16213_v46  ;;  %4320 = vrot.lane.b32.xlu0 %v14682_v61, %s12231_s7  ;;  %4198 = vrot.lane.b32.xlu1 %v4188_v58, %s12231_s7  ;;  %v16220_v12 = vsel %vm1701_vm3, %v9201_v22, %v9203_v21  ;;  %v9205_v7 = vrot.slane %v9193_v57, 2  ;;  %v9444_v20 = vmul.f32 %v9441_v60, %v15819_v39 }
 0x47f   : > { %17808 = vst [vmem:[#allocation233_spill] sm:$0xff] %v16220_v12  ;;  %v9445_v2 = vmul.f32 %v9441_v60, %v15856_v32  ;;  %v9190_v41 = vmul.f32 %v9189_v47, %v15755_v31  ;;  %v9052_v33 = vrot.slane %v9042_v8, 1  ;;  %v9453_v26 = vrot.slane %v9443_v49, 1 }
 0x480   : > { %v16233_v61 = vsel %vm1701_vm3, %v9203_v21, %v9205_v7  ;;  %v9591_v62 = vmul.f32 %v9589_v52, %v15788_v35  ;;  %v9455_v15 = vrot.slane %v9444_v20, 1  ;;  %v9592_v57 = vmul.f32 %v9589_v52, %v15819_v39 }
 0x481   : > { %17809 = vst [vmem:[#allocation234_spill] sm:$0xff] %v16233_v61  ;;  %v9457_v37 = vrot.slane %v9445_v2, 1  ;;  %v9200_v58 = vrot.slane %v9190_v41, 2  ;;  %v16243_v12 = vsel %vm1584_vm2, %v9052_v33, %v9053_v6  ;;  %v9046_v8 = vmul.f32 %v9041_v1, %v15882_v17 }
 0x482   : > { %4200 = vrot.lane.b32.xlu0 %v4189_v13, %s12231_s7  ;;  %4322 = vrot.lane.b32.xlu1 %v14699_v25, %s12231_s7  ;;  %17810 = vst [vmem:[#allocation235_spill] sm:$0xff] %v16243_v12  ;;  %v9601_v21 = vrot.slane %v9591_v62, 2  ;;  %v9446_v49 = vmul.f32 %v9441_v60, %v15882_v17  ;;  %v16248_v61 = vsel %vm1584_vm2, %v9453_v26, %v9455_v15  ;;  %v9603_v2 = vrot.slane %v9592_v57, 2 }
 0x483   : > { %17811 = vst [vmem:[#allocation236_spill] sm:$0xff] %v16248_v61  ;;  %v16251_v20 = vsel %vm1584_vm2, %v9455_v15, %v9457_v37  ;;  %v16254_v13 = vsel %vm1701_vm3, %v9200_v58, %v9201_v22  ;;  %v9059_v25 = vrot.slane %v9046_v8, 1  ;;  %v9593_v6 = vmul.f32 %v9589_v52, %v15856_v32  ;;  %v17816_v22 = vld [vmem:[#allocation67_spill] sm:$0xff] }
 0x484   : > { %17812 = vst [vmem:[#allocation237_spill] sm:$0xff] %v16251_v20  ;;  %17813 = vst [vmem:[#allocation238_spill] sm:$0xff] %v16254_v13  ;;  %v9459_v41 = vrot.slane %v9446_v49, 1  ;;  %v16258_v1 = vsel %vm1701_vm3, %v9601_v21, %v9603_v2  ;;  %v9194_v33 = vmul.f32 %v9189_v47, %v15882_v17  ;;  %v9594_v62 = vmul.f32 %v9589_v52, %v15882_v17  ;;  %v17815_v20 = vld [vmem:[#allocation21_spill] sm:$0xff] }
 0x485   : > { %17814 = vst [vmem:[#allocation239_spill] sm:$0xff] %v16258_v1  ;;  %v9442_v15 = vmul.f32 %v9441_v60, %v15755_v31  ;;  %v16268_v58 = vsel %vm1584_vm2, %v9057_v55, %v9059_v25  ;;  %v9605_v8 = vrot.slane %v9593_v6, 2  ;;  %v8689_v49 = vstv %s16224_s13  ;;  %v17823_v6 = vld [vmem:[#allocation68_spill] sm:$0xff]  ;;  %s10061_s13 = sld [smem:[#allocation6 + $0x101]] }
 0x486   : > { %4468 = vrot.lane.b32.xlu0 %v17815_v20, %s12231_s7  ;;  %4324 = vrot.lane.b32.xlu1 %v17816_v22, %s12231_s7  ;;  %17817 = vst [vmem:[#allocation21_spill] sm:$0xff] %v16268_v58  ;;  %v16271_v57 = vsel %vm1584_vm2, %v9457_v37, %v9459_v41  ;;  %v9207_v47 = vrot.slane %v9194_v33, 2  ;;  %v9607_v1 = vrot.slane %v9594_v62, 2  ;;  %v9590_v61 = vmul.f32 %v9589_v52, %v15755_v31  ;;  %v17824_v52 = vld [vmem:[#allocation69_spill] sm:$0xff] }
 0x487   : > { %17818 = vst [vmem:[#allocation67_spill] sm:$0xff] %v16271_v57  ;;  %v9452_v13 = vrot.slane %v9442_v15, 1  ;;  %v4585_v60 = vstv %s16230_s14  ;;  %v16277_v12 = vsel %vm1701_vm3, %v9603_v2, %v9605_v8  ;;  %v8692_v20 = vmul.f32 %v8689_v49, %v15819_v39  ;;  %s10073_s14 = sld [smem:[#allocation6 + $0x102]] }
 0x488   : > { %17819 = vst [vmem:[#allocation240_spill] sm:$0xff] %v16277_v12  ;;  %v8805_v22 = vstv %s16236_s22  ;;  %v16282_v55 = vsel %vm1701_vm3, %v9205_v7, %v9207_v47  ;;  %v16285_v37 = vsel %vm1701_vm3, %v9605_v8, %v9607_v1  ;;  %v9600_v41 = vrot.slane %v9590_v61, 2  ;;  %s10162_s22 = sld [smem:[#allocation6 + $0x9b]] }
 0x489   : > { %17820 = vst [vmem:[#allocation241_spill] sm:$0xff] %v16282_v55  ;;  %17821 = vst [vmem:[#allocation242_spill] sm:$0xff] %v16285_v37  ;;  %v16288_v25 = vsel %vm1584_vm2, %v9452_v13, %v9453_v26  ;;  %v8693_v2 = vmul.f32 %v8689_v49, %v15856_v32  ;;  %v8808_v33 = vmul.f32 %v8805_v22, %v15819_v39  ;;  %v8703_v1 = vrot.slane %v8692_v20, 1 }
 0x48a   : > { %17822 = vst [vmem:[#allocation243_spill] sm:$0xff] %v16288_v25  ;;  %4326 = vrot.lane.b32.xlu0 %v17823_v6, %s12231_s7  ;;  %4470 = vrot.lane.b32.xlu1 %v17824_v52, %s12231_s7  ;;  %v8809_v7 = vmul.f32 %v8805_v22, %v15856_v32  ;;  %v16298_v62 = vsel %vm1701_vm3, %v9600_v41, %v9601_v21  ;;  %v17826_v21 = vld [vmem:[#allocation71_spill] sm:$0xff]  ;;  %v8718_v46 = vstv %s10168_s26  ;;  %s10137_s26 = sld [smem:[#allocation6 + $0x113]] }
 0x48b   : > { %17825 = vst [vmem:[#allocation68_spill] sm:$0xff] %v16298_v62  ;;  %v8690_v26 = vmul.f32 %v8689_v49, %v15755_v31  ;;  %v8691_v61 = vmul.f32 %v8689_v49, %v15788_v35  ;;  %v4586_v13 = vmul.f32 %v4585_v60, %v14390_v18  ;;  %v8705_v15 = vrot.slane %v8693_v2, 1 }
 0x48c   : > { %v8819_v8 = vrot.slane %v8808_v33, 2  ;;  %v8821_v47 = vrot.slane %v8809_v7, 2  ;;  %v8807_v25 = vmul.f32 %v8805_v22, %v15788_v35  ;;  %v8806_v37 = vmul.f32 %v8805_v22, %v15755_v31 }
 0x48d   : > { %v8700_v6 = vrot.slane %v8690_v26, 1  ;;  %v8701_v52 = vrot.slane %v8691_v61, 1  ;;  %v16309_v20 = vsel %vm1584_vm2, %v8703_v1, %v8705_v15  ;;  %v8694_v2 = vmul.f32 %v8689_v49, %v15882_v17  ;;  %v17833_v49 = vld [vmem:[#allocation72_spill] sm:$0xff] }
 0x48e   : > { %4594 = vrot.lane.b32.xlu0 %v4586_v13, %s12230_s5  ;;  %4472 = vrot.lane.b32.xlu1 %v17826_v21, %s12231_s7  ;;  %17827 = vst [vmem:[#allocation69_spill] sm:$0xff] %v16309_v20  ;;  %v16312_v41 = vsel %vm1701_vm3, %v8819_v8, %v8821_v47  ;;  %v8817_v26 = vrot.slane %v8807_v25, 2  ;;  %v8816_v61 = vrot.slane %v8806_v37, 2  ;;  %v4587_v13 = vmul.f32 %v4585_v60, %v14434_v3 }
 0x48f   : > { %17828 = vst [vmem:[#allocation71_spill] sm:$0xff] %v16312_v41  ;;  %v16316_v33 = vsel %vm1584_vm2, %v8700_v6, %v8701_v52  ;;  %v16319_v7 = vsel %vm1584_vm2, %v8701_v52, %v8703_v1  ;;  %v8707_v62 = vrot.slane %v8694_v2, 1  ;;  %v8810_v21 = vmul.f32 %v8805_v22, %v15882_v17  ;;  %v17837_v52 = vld [vmem:[#allocation75_spill] sm:$0xff] }
 0x490   : > { %17829 = vst [vmem:[#allocation244_spill] sm:$0xff] %v16316_v33  ;;  %17830 = vst [vmem:[#allocation245_spill] sm:$0xff] %v16319_v7  ;;  %v16324_v20 = vsel %vm1701_vm3, %v8817_v26, %v8819_v8  ;;  %v16327_v41 = vsel %vm1701_vm3, %v8816_v61, %v8817_v26  ;;  %v4588_v22 = vmul.f32 %v4585_v60, %v14471_v29  ;;  %v17836_v8 = vld [vmem:[#allocation73_spill] sm:$0xff]  ;;  %v16352_v2 = vstv %s10192_s29 }
 0x491   : > { %17831 = vst [vmem:[#allocation246_spill] sm:$0xff] %v16324_v20  ;;  %17832 = vst [vmem:[#allocation247_spill] sm:$0xff] %v16327_v41  ;;  %v16333_v1 = vsel %vm1584_vm2, %v8705_v15, %v8707_v62  ;;  %v8823_v37 = vrot.slane %v8810_v21, 2  ;;  %v4589_v6 = vmul.f32 %v4585_v60, %v14507_v16  ;;  %v16343_v62 = vstv %s10180_s23  ;;  %s10087_s23 = sld [smem:[#allocation6 + $0x109]] }
 0x492   : > { %4474 = vrot.lane.b32.xlu0 %v17833_v49, %s12231_s7  ;;  %4596 = vrot.lane.b32.xlu1 %v4587_v13, %s12230_s5  ;;  %17834 = vst [vmem:[#allocation72_spill] sm:$0xff] %v16333_v1  ;;  %v16345_v15 = vstv %s10184_s10  ;;  %v16354_v26 = vstv %s10196_s9  ;;  %v9479_v13 = vmul.f32 %v16352_v2, %v15755_v31  ;;  %v9080_v49 = vmul.f32 %v16343_v62, %v15788_v35  ;;  %s10099_s10 = sld [smem:[#allocation6 + $0x10a]]  ;;  %s10111_s9 = sld [smem:[#allocation6 + $0x10b]] }
 0x493   : > { %v16337_v25 = vsel %vm1701_vm3, %v8821_v47, %v8823_v37  ;;  %v9079_v47 = vmul.f32 %v16343_v62, %v15755_v31  ;;  %v16356_v61 = vstv %s10136_s11  ;;  %v9227_v60 = vmul.f32 %v16345_v15, %v15755_v31 }
 0x494   : > { %17835 = vst [vmem:[#allocation248_spill] sm:$0xff] %v16337_v25  ;;  %v9627_v21 = vmul.f32 %v16354_v26, %v15755_v31  ;;  %v9228_v37 = vmul.f32 %v16345_v15, %v15788_v35  ;;  %v9628_v41 = vmul.f32 %v16354_v26, %v15788_v35  ;;  %v9090_v33 = vrot.slane %v9080_v49, 1  ;;  %v17847_v49 = vld [vmem:[#allocation146_spill] sm:$0xff] }
 0x495   : > { %v9089_v1 = vrot.slane %v9079_v47, 1  ;;  %v9237_v20 = vrot.slane %v9227_v60, 2  ;;  %v9489_v12 = vrot.slane %v9479_v13, 1  ;;  %v9081_v47 = vmul.f32 %v16343_v62, %v15819_v39  ;;  %v17843_v60 = vld [vmem:[#allocation79_spill] sm:$0xff]  ;;  %v17844_v13 = vld [vmem:[#allocation80_spill] sm:$0xff] }
 0x496   : > { %4720 = vrot.lane.b32.xlu0 %v17836_v8, %s12230_s5  ;;  %4598 = vrot.lane.b32.xlu1 %v4588_v22, %s12230_s5  ;;  %v9480_v22 = vmul.f32 %v16352_v2, %v15788_v35  ;;  %v17838_v8 = vld [vmem:[#allocation76_spill] sm:$0xff]  ;;  %v9238_v7 = vrot.slane %v9228_v37, 2  ;;  %v9637_v57 = vrot.slane %v9627_v21, 2  ;;  %v9638_v58 = vrot.slane %v9628_v41, 2 }
 0x497   : > { %v16387_v38 = vmul.f32 %v8718_v46, %v15788_v35  ;;  %v9229_v41 = vmul.f32 %v16345_v15, %v15819_v39  ;;  %v16401_v21 = vstv %s10172_s20  ;;  %v6539_v37 = vmul.f32 %v16356_v61, %v17847_v49  ;;  %s10149_s20 = sld [smem:[#allocation6 + $0x114]] }
 0x498   : > { %v9490_v55 = vrot.slane %v9480_v22, 1  ;;  %v9092_v22 = vrot.slane %v9081_v47, 1  ;;  %v9230_v47 = vmul.f32 %v16345_v15, %v15856_v32  ;;  %v8835_v24 = vmul.f32 %v16401_v21, %v15755_v31 }
 0x499   : > { %v9630_v45 = vmul.f32 %v16354_v26, %v15856_v32 }
 0x49a   : > { %4600 = vrot.lane.b32.xlu0 %v4589_v6, %s12230_s5  ;;  %4722 = vrot.lane.b32.xlu1 %v17837_v52, %s12230_s5  ;;  %v17839_v6 = vld [vmem:[#allocation77_spill] sm:$0xff]  ;;  %v17840_v52 = vld [vmem:[#allocation144_spill] sm:$0xff]  ;;  %v16416_v18 = vsel %vm1584_vm2, %v9090_v33, %v9092_v22  ;;  %v9242_v30 = vrot.slane %v9230_v47, 2 }
 0x49b   : > { %v6538_v25 = vmul.f32 %v16356_v61, %v17840_v52  ;;  %17849 = vst [vmem:[#allocation144_spill] sm:$0xff] %v16416_v18  ;;  %v8730_v18 = vrot.slane %v16387_v38, 1  ;;  %v9231_v38 = vmul.f32 %v16345_v15, %v15882_v17  ;;  %v9631_v15 = vmul.f32 %v16354_v26, %v15882_v17 }
 0x49e   : > { %4868 = vrot.lane.b32.xlu0 %v17838_v8, %s12230_s5  ;;  %4724 = vrot.lane.b32.xlu1 %v17839_v6, %s12230_s5  ;;  %v16379_v8 = vsel %vm1584_vm2, %v9089_v1, %v9090_v33  ;;  %v16382_v6 = vsel %vm1701_vm3, %v9237_v20, %v9238_v7  ;;  %v16396_v1 = vsel %vm1584_vm2, %v9489_v12, %v9490_v55  ;;  %v9240_v12 = vrot.slane %v9229_v41, 2  ;;  %v17851_v41 = vld [vmem:[#allocation82_spill] sm:$0xff] }
 0x49f   : > { %17841 = vst [vmem:[#allocation73_spill] sm:$0xff] %v16379_v8  ;;  %17842 = vst [vmem:[#allocation75_spill] sm:$0xff] %v16382_v6  ;;  %v16399_v20 = vsel %vm1701_vm3, %v9637_v57, %v9638_v58  ;;  %v17848_v6 = vld [vmem:[#allocation147_spill] sm:$0xff]  ;;  %v8719_v57 = vmul.f32 %v8718_v46, %v15755_v31  ;;  %v9482_v33 = vmul.f32 %v16352_v2, %v15856_v32 }
 0x4a0   : > { %17845 = vst [vmem:[#allocation76_spill] sm:$0xff] %v16396_v1  ;;  %17846 = vst [vmem:[#allocation77_spill] sm:$0xff] %v16399_v20  ;;  %v6540_v8 = vmul.f32 %v16356_v61, %v17848_v6  ;;  %v8721_v1 = vmul.f32 %v8718_v46, %v15819_v39  ;;  %v9082_v20 = vmul.f32 %v16343_v62, %v15856_v32 }
 0x4a1   : > { %v16427_v10 = vsel %vm1701_vm3, %v9238_v7, %v9240_v12  ;;  %v9494_v40 = vrot.slane %v9482_v33, 1  ;;  %v8729_v63 = vrot.slane %v8719_v57, 1  ;;  %v9083_v7 = vmul.f32 %v16343_v62, %v15882_v17  ;;  %v17862_v33 = vld [vmem:[#allocation149_spill] sm:$0xff] }
 0x4a2   : > { %4726 = vrot.lane.b32.xlu0 %v17843_v60, %s12230_s5  ;;  %4870 = vrot.lane.b32.xlu1 %v17844_v13, %s12230_s5  ;;  %v9481_v60 = vmul.f32 %v16352_v2, %v15819_v39  ;;  %v9629_v13 = vmul.f32 %v16354_v26, %v15819_v39  ;;  %17852 = vst [vmem:[#allocation79_spill] sm:$0xff] %v16427_v10  ;;  %v9094_v5 = vrot.slane %v9082_v20, 1  ;;  %v9244_v57 = vrot.slane %v9231_v38, 2  ;;  %v17864_v38 = vld [vmem:[#allocation148_spill] sm:$0xff] }
 0x4a3   : > { %v16445_v20 = vsel %vm1701_vm3, %v9240_v12, %v9242_v30  ;;  %v9483_v62 = vmul.f32 %v16352_v2, %v15882_v17  ;;  %v9644_v2 = vrot.slane %v9631_v15, 2  ;;  %v8838_v26 = vmul.f32 %v16401_v21, %v15856_v32 }
 0x4a4   : > { %v9492_v19 = vrot.slane %v9481_v60, 1  ;;  %v9640_v42 = vrot.slane %v9629_v13, 2  ;;  %v16440_v60 = vsel %vm1584_vm2, %v9092_v22, %v9094_v5  ;;  %17855 = vst [vmem:[#allocation147_spill] sm:$0xff] %v16445_v20  ;;  %v9642_v22 = vrot.slane %v9630_v45, 2 }
 0x4a5   : > { %17854 = vst [vmem:[#allocation146_spill] sm:$0xff] %v16440_v60  ;;  %v9096_v13 = vrot.slane %v9083_v7, 1  ;;  %v16471_v45 = vsel %vm1701_vm3, %v9242_v30, %v9244_v57  ;;  %v6541_v30 = vmul.f32 %v16356_v61, %v17864_v38  ;;  %v8850_v57 = vrot.slane %v8838_v26, 2 }
 0x4a6   : > { %4874 = vrot.lane.b32.xlu0 %v17850_v4, %s12230_s5  ;;  %4872 = vrot.lane.b32.xlu1 %v17851_v41, %s12230_s5  ;;  %v16435_v4 = vsel %vm1584_vm2, %v9490_v55, %v9492_v19  ;;  %v8732_v41 = vrot.slane %v8721_v1, 1  ;;  %v16450_v55 = vsel %vm1584_vm2, %v9492_v19, %v9494_v40  ;;  %v16453_v1 = vsel %vm1701_vm3, %v9638_v58, %v9640_v42 }
 0x4a7   : > { %17853 = vst [vmem:[#allocation80_spill] sm:$0xff] %v16435_v4  ;;  %17856 = vst [vmem:[#allocation83_spill] sm:$0xff] %v16450_v55  ;;  %v8722_v19 = vmul.f32 %v8718_v46, %v15856_v32  ;;  %v8723_v58 = vmul.f32 %v8718_v46, %v15882_v17  ;;  %v16468_v47 = vsel %vm1584_vm2, %v9094_v5, %v9096_v13 }
 0x4a8   : > { %17857 = vst [vmem:[#allocation82_spill] sm:$0xff] %v16453_v1  ;;  %v16460_v12 = vsel %vm1584_vm2, %v8730_v18, %v8732_v41  ;;  %17860 = vst [vmem:[#allocation251_spill] sm:$0xff] %v16468_v47  ;;  %v8839_v5 = vmul.f32 %v16401_v21, %v15882_v17  ;;  %v16489_v13 = vsel %vm1584_vm2, %v8729_v63, %v8730_v18  ;;  %v8845_v17 = vrot.slane %v8835_v24, 2  ;;  %v17869_v18 = vld [vmem:[#allocation150_spill] sm:$0xff]  ;;  %v17886_v1 = vld [vmem:[#allocation65_spill] sm:$0xff] }
 0x4a9   : > { %17858 = vst [vmem:[#allocation249_spill] sm:$0xff] %v16460_v12  ;;  %17861 = vst [vmem:[#allocation252_spill] sm:$0xff] %v16471_v45  ;;  %v8734_v7 = vrot.slane %v8722_v19, 1  ;;  %v8736_v46 = vrot.slane %v8723_v58, 1  ;;  %v17882_v12 = vld [vmem:[#allocation159_spill] sm:$0xff] }
 0x4aa   : > { %6548 = vrot.lane.b32.xlu0 %v6539_v37, %s12231_s7  ;;  %6546 = vrot.lane.b32.xlu1 %v6538_v25, %s12231_s7  ;;  %v9496_v37 = vrot.slane %v9483_v62, 1  ;;  %v16463_v25 = vsel %vm1701_vm3, %v9640_v42, %v9642_v22  ;;  %v16486_v62 = vsel %vm1701_vm3, %v9642_v22, %v9644_v2  ;;  %17866 = vst [vmem:[#allocation253_spill] sm:$0xff] %v16489_v13  ;;  %v8852_v15 = vrot.slane %v8839_v5, 2 }
 0x4ab   : > { %17859 = vst [vmem:[#allocation250_spill] sm:$0xff] %v16463_v25  ;;  %17865 = vst [vmem:[#allocation148_spill] sm:$0xff] %v16486_v62  ;;  %v8837_v22 = vmul.f32 %v16401_v21, %v15819_v39  ;;  %v6937_v5 = vstv %s10148_s25  ;;  %s10175_s25 = sld [smem:[#allocation6 + $0x11c]] }
 0x4ac   : > { %v16479_v42 = vsel %vm1584_vm2, %v9494_v40, %v9496_v37  ;;  %v16494_v40 = vsel %vm1584_vm2, %v8734_v7, %v8736_v46  ;;  %v16497_v37 = vsel %vm1584_vm2, %v8732_v41, %v8734_v7  ;;  %v16505_v63 = vsel %vm1701_vm3, %v8850_v57, %v8852_v15 }
 0x4ad   : > { %17863 = vst [vmem:[#allocation149_spill] sm:$0xff] %v16479_v42  ;;  %17867 = vst [vmem:[#allocation254_spill] sm:$0xff] %v16494_v40  ;;  %v8848_v58 = vrot.slane %v8837_v22, 2  ;;  %v17885_v42 = vld [vmem:[#allocation23_spill] sm:$0xff] }
 0x4ae   : > { %6672 = vrot.lane.b32.xlu0 %v17862_v33, %s12231_s7  ;;  %6550 = vrot.lane.b32.xlu1 %v6540_v8, %s12231_s7  ;;  %v8836_v8 = vmul.f32 %v16401_v21, %v15788_v35  ;;  %17868 = vst [vmem:[#allocation255_spill] sm:$0xff] %v16497_v37  ;;  %17870 = vst [vmem:[#allocation150_spill] sm:$0xff] %v16505_v63  ;;  %v17874_v21 = vld [vmem:[#allocation151_spill] sm:$0xff]  ;;  %v17875_v33 = vld [vmem:[#allocation152_spill] sm:$0xff]  ;;  %v6941_v37 = vmul.f32 %v6937_v5, %v17864_v38 }
 0x4af   : > { %v16511_v24 = vsel %vm1701_vm3, %v8848_v58, %v8850_v57  ;;  %v17883_v63 = vld [vmem:[#allocation160_spill] sm:$0xff] }
 0x4b0   : > { %v8846_v61 = vrot.slane %v8836_v8, 2  ;;  %17872 = vst [vmem:[#allocation257_spill] sm:$0xff] %v16511_v24  ;;  %v17877_v8 = vld [vmem:[#allocation154_spill] sm:$0xff]  ;;  %v17880_v24 = vld [vmem:[#allocation157_spill] sm:$0xff] }
 0x4b2   : > { %6552 = vrot.lane.b32.xlu0 %v6541_v30, %s12231_s7  ;;  %6674 = vrot.lane.b32.xlu1 %v17869_v18, %s12231_s7  ;;  %v16508_v19 = vsel %vm1701_vm3, %v8845_v17, %v8846_v61  ;;  %v16514_v26 = vsel %vm1701_vm3, %v8846_v61, %v8848_v58  ;;  %v17876_v30 = vld [vmem:[#allocation153_spill] sm:$0xff]  ;;  %v6938_v17 = vmul.f32 %v6937_v5, %v17840_v52  ;;  %v17878_v61 = vld [vmem:[#allocation155_spill] sm:$0xff] }
 0x4b3   : > { %17871 = vst [vmem:[#allocation256_spill] sm:$0xff] %v16508_v19  ;;  %17873 = vst [vmem:[#allocation258_spill] sm:$0xff] %v16514_v26  ;;  %v6939_v58 = vmul.f32 %v6937_v5, %v17847_v49  ;;  %v17881_v26 = vld [vmem:[#allocation158_spill] sm:$0xff] }
 0x4b4   : > { %v9273_v41 = vpop.permute.xlu1 %9272  ;;  %v8873_v2 = vpop.permute.xlu0 %8872 }
 0x4b6   : > { %6820 = vrot.lane.b32.xlu0 %v17874_v21, %s12231_s7  ;;  %6676 = vrot.lane.b32.xlu1 %v17875_v33, %s12231_s7  ;;  %v17879_v21 = vld [vmem:[#allocation156_spill] sm:$0xff] }
 0x4b8   : > { %v9275_v7 = vpop.permute.xlu0 %9274  ;;  %v8875_v46 = vpop.permute.xlu1 %8874 }
 0x4ba   : > { %6678 = vrot.lane.b32.xlu0 %v17876_v30, %s12231_s7  ;;  %6822 = vrot.lane.b32.xlu1 %v17877_v8, %s12231_s7  ;;  %v6940_v8 = vmul.f32 %v6937_v5, %v17848_v6  ;;  %v8884_v5 = vadd.f32 %v8873_v2, %v15957_v14  ;;  %v17888_v14 = vld [vmem:[#allocation84_spill] sm:$0xff] }
 0x4bc   : > { %v8988_v57 = vpop.permute.xlu1 %8987  ;;  %v8877_v15 = vpop.permute.xlu0 %8876 }
 0x4bd   : > { %v8886_v55 = vadd.f32 %v8877_v15, %v16123_v9  ;;  %v17889_v15 = vld [vmem:[#allocation24_spill] sm:$0xff] }
 0x4be   : > { %6946 = vrot.lane.b32.xlu0 %v6938_v17, %s12230_s5  ;;  %6824 = vrot.lane.b32.xlu1 %v17878_v61, %s12231_s7 }
 0x4c0   : > { %v9136_v22 = vpop.permute.xlu1 %9135  ;;  %v9277_v18 = vpop.permute.xlu0 %9276 }
 0x4c2   : > { %6826 = vrot.lane.b32.xlu0 %v17879_v21, %s12231_s7  ;;  %6948 = vrot.lane.b32.xlu1 %v6939_v58, %s12230_s5 }
 0x4c4   : > { %v9388_v33 = vpop.permute.xlu1 %9387  ;;  %v8990_v30 = vpop.permute.xlu0 %8989 }
 0x4c6   : > { %7072 = vrot.lane.b32.xlu0 %v17880_v24, %s12230_s5  ;;  %6950 = vrot.lane.b32.xlu1 %v6940_v8, %s12230_s5  ;;  %v8885_v24 = vadd.f32 %v8875_v46, %v16004_v50  ;;  %v17887_v46 = vld [vmem:[#allocation162_spill] sm:$0xff] }
 0x4c8   : > { %v9536_v17 = vpop.permute.xlu1 %9535  ;;  %v9138_v61 = vpop.permute.xlu0 %9137  ;;  %v9000_v19 = vadd.f32 %v8990_v30, %v8885_v24 }
 0x4ca   : > { %6952 = vrot.lane.b32.xlu0 %v6941_v37, %s12230_s5  ;;  %7074 = vrot.lane.b32.xlu1 %v17881_v26, %s12230_s5  ;;  %v17884_v37 = vld [vmem:[#allocation161_spill] sm:$0xff]  ;;  %v8999_v26 = vadd.f32 %v8988_v57, %v8884_v5  ;;  %v9148_v13 = vadd.f32 %v9138_v61, %v9000_v19 }
 0x4cc   : > { %v9390_v21 = vpop.permute.xlu0 %9389  ;;  %v8879_v58 = vpop.permute.xlu1 %8878  ;;  %v9147_v50 = vadd.f32 %v9136_v22, %v8999_v26  ;;  %v9285_v24 = vadd.f32 %v9275_v7, %v9148_v13  ;;  %v17890_v22 = vld [vmem:[#allocation74_spill] sm:$0xff] }
 0x4cd   : > { %v8887_v57 = vadd.f32 %v8879_v58, %v16126_v43  ;;  %v17891_v26 = vld [vmem:[#allocation22_spill] sm:$0xff]  ;;  %v17892_v58 = vld [vmem:[#allocation25_spill] sm:$0xff] }
 0x4ce   : > { %7220 = vrot.lane.b32.xlu0 %v17882_v12, %s12230_s5  ;;  %7076 = vrot.lane.b32.xlu1 %v17883_v63, %s12230_s5  ;;  %v1855_v12 = vadd.f32 %v17886_v1, %v17885_v42  ;;  %v16551_v63 = vstv %s10174_s30  ;;  %v9284_v42 = vadd.f32 %v9273_v41, %v9147_v50  ;;  %v17894_v41 = vld [vmem:[#allocation99_spill] sm:$0xff]  ;;  %s10187_s30 = sld [smem:[#allocation6 + $0x11d]] }
 0x4cf   : > { %v8890_v5 = vmul.f32 %v16551_v63, %v15755_v31  ;;  %v8892_v7 = vmul.f32 %v16551_v63, %v15819_v39 }
 0x4d0   : > { %v9538_v8 = vpop.permute.xlu0 %9537  ;;  %v9279_v40 = vpop.permute.xlu1 %9278  ;;  %v1981_v2 = vadd.f32 %v17888_v14, %v1855_v12  ;;  %v17893_v14 = vld [vmem:[#allocation94_spill] sm:$0xff]  ;;  %v9399_v50 = vadd.f32 %v9388_v33, %v9284_v42  ;;  %v17899_v42 = vld [vmem:[#allocation85_spill] sm:$0xff] }
 0x4d2   : > { %7222 = vrot.lane.b32.xlu1 %v17884_v37, %s12230_s5  ;;  %v1856_v37 = vadd.f32 %v17890_v22, %v17889_v15 }
 0x4d4   : > { %v8992_v62 = vpop.permute.xlu0 %8991  ;;  %v8994_v25 = vpop.permute.xlu1 %8993 }
 0x4d5   : > { %v9001_v30 = vadd.f32 %v8992_v62, %v8886_v55  ;;  %v9002_v9 = vadd.f32 %v8994_v25, %v8887_v57  ;;  %v9400_v55 = vadd.f32 %v9390_v21, %v9285_v24  ;;  %v1982_v25 = vadd.f32 %v17894_v41, %v1856_v37  ;;  %v17897_v24 = vld [vmem:[#allocation130_spill] sm:$0xff]  ;;  %v17902_v41 = vld [vmem:[#allocation81_spill] sm:$0xff] }
 0x4d6   : > { %7224 = vrot.lane.b32.xlu1 %v17887_v46, %s12230_s5  ;;  %v2129_v46 = vadd.f32 %v17891_v26, %v1981_v2  ;;  %v17898_v26 = vld [vmem:[#allocation138_spill] sm:$0xff] }
 0x4d7   : > { %v16568_v57 = vadd.f32 %v9538_v8, %v9400_v55 }
 0x4d8   : > { %v9140_v19 = vpop.permute.xlu0 %9139  ;;  %v9142_v61 = vpop.permute.xlu1 %9141 }
 0x4d9   : > { %v9149_v1 = vadd.f32 %v9140_v19, %v9001_v30  ;;  %v9150_v62 = vadd.f32 %v9142_v61, %v9002_v9  ;;  %v1857_v30 = vadd.f32 %v17893_v14, %v17892_v58  ;;  %v17895_v19 = vld [vmem:[#allocation66_spill] sm:$0xff]  ;;  %v9664_v8 = vsel %vm9662_vm4, %v16568_v57, 0.0 }
 0x4da   : > { %8898 = vrot.lane.b32.xlu1 %v8890_v5, %s12231_s7  ;;  %v2255_v2 = vadd.f32 %v17895_v19, %v2129_v46  ;;  %v17900_v46 = vld [vmem:[#allocation78_spill] sm:$0xff]  ;;  %v17903_v19 = vld [vmem:[#allocation108_spill] sm:$0xff] }
 0x4db   : > { %v9286_v12 = vadd.f32 %v9277_v18, %v9149_v1  ;;  %v17896_v18 = vld [vmem:[#allocation105_spill] sm:$0xff]  ;;  %v1983_v61 = vadd.f32 %v17897_v24, %v1857_v30  ;;  %v16574_v1 = vadd.f32 %v9536_v17, %v9399_v50  ;;  %v9287_v9 = vadd.f32 %v9279_v40, %v9150_v62  ;;  %v17901_v14 = vld [vmem:[#allocation70_spill] sm:$0xff] }
 0x4dc   : > { %v9392_v13 = vpop.permute.xlu0 %9391  ;;  %v9394_v43 = vpop.permute.xlu1 %9393  ;;  %v2130_v21 = vadd.f32 %v17896_v18, %v1982_v25  ;;  %v2381_v37 = vadd.f32 %v17899_v42, %v2255_v2  ;;  %v3899_v25 = vmul.f32 %v17902_v41, %v14434_v3  ;;  %v3901_v24 = vmul.f32 %v17902_v41, %v14507_v16 }
 0x4dd   : > { %v9401_v5 = vadd.f32 %v9392_v13, %v9286_v12  ;;  %v2131_v58 = vadd.f32 %v17898_v26, %v1983_v61  ;;  %v9663_v40 = vsel %vm9662_vm4, %v16574_v1, 0.0  ;;  %v9402_v17 = vadd.f32 %v9394_v43, %v9287_v9  ;;  %v17904_v26 = vld [vmem:[#allocation86_spill] sm:$0xff] }
 0x4de   : > { %8902 = vrot.lane.b32.xlu1 %v8892_v7, %s12231_s7  ;;  %v2256_v12 = vadd.f32 %v17900_v46, %v2130_v21  ;;  %v9665_v7 = vadd.f32 %v9664_v8, %v9663_v40 }
 0x4df   : > { %v2257_v30 = vadd.f32 %v17901_v14, %v2131_v58  ;;  %v17908_v14 = vld [vmem:[#allocation90_spill] sm:$0xff] }
 0x4e0   : > { %v9540_v15 = vpop.permute.xlu0 %9539  ;;  %v9542_v22 = vpop.permute.xlu1 %9541  ;;  %v2382_v2 = vadd.f32 %v17903_v19, %v2256_v12 }
 0x4e1   : > { %v16577_v33 = vadd.f32 %v9540_v15, %v9401_v5  ;;  %v16592_v50 = vadd.f32 %v9542_v22, %v9402_v17  ;;  %v3900_v15 = vmul.f32 %v17902_v41, %v14471_v29  ;;  %v16612_v41 = vstv %s10186_s12  ;;  %s10125_s12 = sld [smem:[#allocation6 + $0x112]] }
 0x4e2   : > { %9026 = vrot.lane.b32.xlu1 %v16026_v28, %s12231_s7 }
 0x4e3   : > { %v9666_v55 = vsel %vm9662_vm4, %v16577_v33, 0.0 }
 0x4e4   : > { %v2375_v62 = vpop.permute.xlu0 %2374  ;;  %v2519_v13 = vpop.permute.xlu1 %2518  ;;  %v9667_v43 = vadd.f32 %v9666_v55, %v9665_v7  ;;  %v17906_v55 = vld [vmem:[#allocation89_spill] sm:$0xff] }
 0x4e5   : > { %v2529_v28 = vadd.f32 %v2519_v13, %v2381_v37  ;;  %v2383_v18 = vadd.f32 %v2375_v62, %v2257_v30  ;;  %v17905_v37 = vld [vmem:[#allocation87_spill] sm:$0xff] }
 0x4e6   : > { %9028 = vrot.lane.b32.xlu1 %v16031_v53, %s12231_s7  ;;  %v9668_v53 = vsel %vm9662_vm4, %v16592_v50, 0.0  ;;  %v17907_v13 = vld [vmem:[#allocation91_spill] sm:$0xff] }
 0x4e7   : > { %v3903_v21 = vadd.f32 %v3899_v25, %v2529_v28  ;;  %v9669_v12 = vadd.f32 %v9668_v53, %v9667_v43 }
 0x4e8   : > { %v2523_v61 = vpop.permute.xlu0 %2522  ;;  %v2521_v5 = vpop.permute.xlu1 %2520 }
 0x4e9   : > { %v2531_v9 = vadd.f32 %v2523_v61, %v2383_v18  ;;  %v2530_v22 = vadd.f32 %v2521_v5, %v2382_v2  ;;  %v3981_v58 = vadd.f32 %v17904_v26, %v3903_v21  ;;  %v9291_v2 = vmul.f32 %v16612_v41, %v15788_v35 }
 0x4ea   : > { %9174 = vrot.lane.b32.xlu1 %v16038_v27, %s12231_s7  ;;  %v17909_v27 = vld [vmem:[#allocation92_spill] sm:$0xff]  ;;  %v9292_v21 = vmul.f32 %v16612_v41, %v15819_v39 }
 0x4eb   : > { %v3905_v8 = vadd.f32 %v3901_v24, %v2531_v9  ;;  %v3904_v42 = vadd.f32 %v3900_v15, %v2530_v22  ;;  %v4097_v46 = vadd.f32 %v17905_v37, %v3981_v58  ;;  %v17910_v22 = vld [vmem:[#allocation163_spill] sm:$0xff] }
 0x4ec   : > { %v4197_v40 = vpop.permute.xlu0 %4196  ;;  %v4195_v17 = vpop.permute.xlu1 %4194 }
 0x4ed   : > { %9670 = vadd.xlane.f32.xlu0 %v9669_v12  ;;  %v3982_v62 = vadd.f32 %v17906_v55, %v3904_v42  ;;  %v3983_v7 = vadd.f32 %v17907_v13, %v3905_v8  ;;  %v17912_v8 = vld [vmem:[#allocation164_spill] sm:$0xff]  ;;  %v4207_v12 = vadd.f32 %v4197_v40, %v4097_v46 }
 0x4ee   : > { %9176 = vrot.lane.b32.xlu1 %v16043_v34, %s12231_s7 }
 0x4ef   : > { %v4098_v30 = vadd.f32 %v17908_v14, %v3982_v62  ;;  %v4099_v25 = vadd.f32 %v17909_v27, %v3983_v7  ;;  %v6249_v7 = vstv %s10124_s8  ;;  %v16641_v14 = vstv %s10061_s13 }
 0x4f0   : > { %v4321_v28 = vpop.permute.xlu0 %4320  ;;  %v4199_v19 = vpop.permute.xlu1 %4198 }
 0x4f1   : > { %v4208_v27 = vadd.f32 %v4199_v19, %v4098_v30 }
 0x4f2   : > { %9300 = vrot.lane.b32.xlu1 %v9291_v2, %s12230_s5 }
 0x4f4   : > { %v4201_v43 = vpop.permute.xlu0 %4200  ;;  %v4323_v18 = vpop.permute.xlu1 %4322 }
 0x4f5   : > { %v4333_v13 = vadd.f32 %v4323_v18, %v4207_v12 }
 0x4f6   : > { %9302 = vrot.lane.b32.xlu1 %v9292_v21, %s12230_s5 }
 0x4f8   : > { %v4469_v34 = vpop.permute.xlu0 %4468  ;;  %v4325_v24 = vpop.permute.xlu1 %4324 }
 0x4fa   : > { %9426 = vrot.lane.b32.xlu1 %v16074_v56, %s12230_s5  ;;  %v17911_v56 = vld [vmem:[#allocation88_spill] sm:$0xff] }
 0x4fb   : > { %v4206_v53 = vadd.f32 %v4195_v17, %v17911_v56 }
 0x4fc   : > { %v4327_v61 = vpop.permute.xlu0 %4326  ;;  %v4471_v5 = vpop.permute.xlu1 %4470 }
 0x4fd   : > { %v4332_v37 = vadd.f32 %v4321_v28, %v4206_v53  ;;  %v4209_v28 = vadd.f32 %v4201_v43, %v4099_v25  ;;  %v4481_v2 = vadd.f32 %v4471_v5, %v4333_v13  ;;  %v6251_v53 = vmul.f32 %v6249_v7, %v17847_v49 }
 0x4fe   : > { %9428 = vrot.lane.b32.xlu1 %v16077_v54, %s12230_s5 }
 0x4ff   : > { %v4480_v55 = vadd.f32 %v4469_v34, %v4332_v37  ;;  %v17913_v34 = vld [vmem:[#allocation14_spill] sm:$0xff] }
 0x500   : > { %v4595_v9 = vpop.permute.xlu0 %4594  ;;  %v4473_v15 = vpop.permute.xlu1 %4472  ;;  %v1861_v18 = vmul.f32 %v16641_v14, %v17913_v34 }
 0x501   : > { %v4606_v17 = vadd.f32 %v4595_v9, %v4480_v55  ;;  %v8893_v9 = vmul.f32 %v16551_v63, %v15856_v32 }
 0x502   : > { %9574 = vrot.lane.b32.xlu1 %v16084_v11, %s12230_s5  ;;  %v8891_v11 = vmul.f32 %v16551_v63, %v15788_v35  ;;  %v17914_v63 = vld [vmem:[#allocation167_spill] sm:$0xff] }
 0x503   : > { %7078 = vrot.lane.b32.xlu0 %v17910_v22, %s12230_s5  ;;  %v4335_v22 = vadd.f32 %v4327_v61, %v4209_v28  ;;  %v17915_v61 = vld [vmem:[#allocation17_spill] sm:$0xff] }
 0x504   : > { %v4475_v26 = vpop.permute.xlu0 %4474  ;;  %v4597_v58 = vpop.permute.xlu1 %4596  ;;  %v17917_v28 = vld [vmem:[#allocation165_spill] sm:$0xff] }
 0x505   : > { %v4607_v56 = vadd.f32 %v4597_v58, %v4481_v2  ;;  %v4483_v19 = vadd.f32 %v4475_v26, %v4335_v22  ;;  %v17916_v26 = vld [vmem:[#allocation168_spill] sm:$0xff]  ;;  %v17920_v22 = vld [vmem:[#allocation169_spill] sm:$0xff] }
 0x506   : > { %9430 = vrot.lane.b32.xlu1 %v16087_v44, %s12230_s5 }
 0x507   : > { %7226 = vrot.lane.b32.xlu0 %v17912_v8, %s12230_s5 }
 0x508   : > { %v4721_v54 = vpop.permute.xlu0 %4720  ;;  %v4599_v42 = vpop.permute.xlu1 %4598 }
 0x509   : > { %v4732_v21 = vadd.f32 %v4721_v54, %v4606_v17  ;;  %v6252_v17 = vmul.f32 %v6249_v7, %v17848_v6 }
 0x50a   : > { %9576 = vrot.lane.b32.xlu1 %v16100_v59, %s12230_s5  ;;  %v6250_v59 = vmul.f32 %v6249_v7, %v17840_v52 }
 0x50b   : > { %8900 = vrot.lane.b32.xlu0 %v8891_v11, %s12231_s7 }
 0x50c   : > { %v4601_v44 = vpop.permute.xlu0 %4600  ;;  %v4723_v62 = vpop.permute.xlu1 %4722 }
 0x50d   : > { %v4733_v43 = vadd.f32 %v4723_v62, %v4607_v56  ;;  %v4609_v37 = vadd.f32 %v4601_v44, %v4483_v19  ;;  %v6253_v62 = vmul.f32 %v6249_v7, %v17864_v38  ;;  %v17921_v56 = vld [vmem:[#allocation171_spill] sm:$0xff]  ;;  %v17923_v19 = vld [vmem:[#allocation170_spill] sm:$0xff] }
 0x50e   : > { %9578 = vrot.lane.b32.xlu1 %v16103_v48, %s12230_s5  ;;  %v4334_v48 = vadd.f32 %v4325_v24, %v4208_v27 }
 0x50f   : > { %9024 = vrot.lane.b32.xlu0 %v16081_v23, %s12231_s7 }
 0x510   : > { %v4869_v46 = vpop.permute.xlu0 %4868  ;;  %v4725_v40 = vpop.permute.xlu1 %4724  ;;  %v4482_v25 = vadd.f32 %v4473_v15, %v4334_v48  ;;  %v9290_v48 = vmul.f32 %v16612_v41, %v15755_v31 }
 0x511   : > { %v4880_v30 = vadd.f32 %v4869_v46, %v4732_v21  ;;  %v17918_v21 = vld [vmem:[#allocation28_spill] sm:$0xff] }
 0x512   : > { %1870 = vrot.lane.b32.xlu1 %v1861_v18, %s12231_s7  ;;  %v4608_v54 = vadd.f32 %v4599_v42, %v4482_v25  ;;  %v17922_v25 = vld [vmem:[#allocation11_spill] sm:$0xff] }
 0x513   : > { %v6254_v23 = vadd.f32 %v6250_v59, %v4880_v30  ;;  %8904 = vrot.lane.b32.xlu0 %v8893_v9, %s12231_s7 }
 0x514   : > { %v4727_v5 = vpop.permute.xlu0 %4726  ;;  %v4871_v8 = vpop.permute.xlu1 %4870  ;;  %v4734_v58 = vadd.f32 %v4725_v40, %v4608_v54 }
 0x515   : > { %v4881_v11 = vadd.f32 %v4871_v8, %v4733_v43  ;;  %v6332_v24 = vadd.f32 %v17914_v63, %v6254_v23  ;;  %v4735_v12 = vadd.f32 %v4727_v5, %v4609_v37  ;;  %v16675_v23 = vstv %s10073_s14  ;;  %v17925_v63 = vld [vmem:[#allocation15_spill] sm:$0xff] }
 0x516   : > { %2009 = vrot.lane.b32.xlu1 %v17915_v61, %s12231_s7  ;;  %v2261_v54 = vmul.f32 %v16675_v23, %v17913_v34  ;;  %v17926_v61 = vld [vmem:[#allocation224_spill] sm:$0xff] }
 0x517   : > { %v6255_v15 = vadd.f32 %v6251_v53, %v4881_v11  ;;  %9172 = vrot.lane.b32.xlu0 %v16118_v0, %s12231_s7  ;;  %v6448_v55 = vadd.f32 %v17916_v26, %v6332_v24  ;;  %v17919_v0 = vld [vmem:[#allocation166_spill] sm:$0xff]  ;;  %v2262_v24 = vmul.f32 %v16675_v23, %v17925_v63 }
 0x518   : > { %v4875_v13 = vpop.permute.xlu0 %4874  ;;  %v4873_v42 = vpop.permute.xlu1 %4872  ;;  %v17927_v26 = vld [vmem:[#allocation18_spill] sm:$0xff] }
 0x519   : > { %v4883_v44 = vadd.f32 %v4875_v13, %v4735_v12  ;;  %v4882_v27 = vadd.f32 %v4873_v42, %v4734_v58  ;;  %v6333_v2 = vadd.f32 %v17917_v28, %v6255_v15  ;;  %v9293_v15 = vmul.f32 %v16612_v41, %v15856_v32  ;;  %v17928_v13 = vld [vmem:[#allocation29_spill] sm:$0xff]  ;;  %v17929_v42 = vld [vmem:[#allocation26_spill] sm:$0xff] }
 0x51a   : > { %2155 = vrot.lane.b32.xlu1 %v17918_v21, %s12231_s7  ;;  %v17931_v41 = vld [vmem:[#allocation30_spill] sm:$0xff] }
 0x51b   : > { %v6257_v59 = vadd.f32 %v6253_v62, %v4883_v44  ;;  %v6256_v46 = vadd.f32 %v6252_v17, %v4882_v27  ;;  %9030 = vrot.lane.b32.xlu0 %v16131_v51, %s12231_s7  ;;  %v6449_v40 = vadd.f32 %v17919_v0, %v6333_v2  ;;  %v17924_v51 = vld [vmem:[#allocation172_spill] sm:$0xff]  ;;  %v17930_v27 = vld [vmem:[#allocation13_spill] sm:$0xff] }
 0x51c   : > { %v6549_v18 = vpop.permute.xlu0 %6548  ;;  %v6547_v9 = vpop.permute.xlu1 %6546  ;;  %v1860_v28 = vmul.f32 %v16641_v14, %v17930_v27 }
 0x51d   : > { %v6334_v7 = vadd.f32 %v17920_v22, %v6256_v46  ;;  %v6335_v30 = vadd.f32 %v17921_v56, %v6257_v59  ;;  %v1862_v59 = vmul.f32 %v16641_v14, %v17925_v63  ;;  %v17932_v46 = vld [vmem:[#allocation19_spill] sm:$0xff]  ;;  %v6558_v0 = vadd.f32 %v6547_v9, %v6448_v55  ;;  %v17934_v9 = vld [vmem:[#allocation32_spill] sm:$0xff] }
 0x51e   : > { %2157 = vrot.lane.b32.xlu1 %v17922_v25, %s12231_s7  ;;  %v6559_v56 = vadd.f32 %v6549_v18, %v6449_v40  ;;  %v17933_v25 = vld [vmem:[#allocation31_spill] sm:$0xff]  ;;  %v17935_v40 = vld [vmem:[#allocation16_spill] sm:$0xff] }
 0x51f   : > { %9298 = vrot.lane.b32.xlu0 %v9290_v48, %s12230_s5  ;;  %v6450_v43 = vadd.f32 %v17923_v19, %v6334_v7  ;;  %v16678_v5 = vadd.f32 %v17924_v51, %v6335_v30  ;;  %v1863_v18 = vmul.f32 %v16641_v14, %v17935_v40 }
 0x520   : > { %v6673_v53 = vpop.permute.xlu0 %6672  ;;  %v6551_v8 = vpop.permute.xlu1 %6550 }
 0x521   : > { %v6684_v7 = vadd.f32 %v6673_v53, %v6558_v0  ;;  %v17936_v0 = vld [vmem:[#allocation225_spill] sm:$0xff] }
 0x522   : > { %2270 = vrot.lane.b32.xlu1 %v2261_v54, %s12230_s5 }
 0x523   : > { %9178 = vrot.lane.b32.xlu0 %v16139_v36, %s12231_s7 }
 0x524   : > { %v16685_v37 = vpop.permute.xlu0 %6552  ;;  %v6675_v11 = vpop.permute.xlu1 %6674 }
 0x525   : > { %v6685_v54 = vadd.f32 %v6675_v11, %v6559_v56 }
 0x526   : > { %2272 = vrot.lane.b32.xlu1 %v2262_v24, %s12230_s5 }
 0x527   : > { %9424 = vrot.lane.b32.xlu0 %v17926_v61, %s12230_s5  ;;  %v16719_v61 = vstv %s10162_s22  ;;  %s10163_s22 = sld [smem:[#allocation6 + $0x11b]] }
 0x528   : > { %v6821_v58 = vpop.permute.xlu0 %6820  ;;  %v6677_v12 = vpop.permute.xlu1 %6676 }
 0x529   : > { %v6832_v30 = vadd.f32 %v6821_v58, %v6684_v7  ;;  %v17938_v7 = vld [vmem:[#allocation20_spill] sm:$0xff] }
 0x52a   : > { %2407 = vrot.lane.b32.xlu1 %v17927_v26, %s12230_s5 }
 0x52b   : > { %9304 = vrot.lane.b32.xlu0 %v9293_v15, %s12230_s5  ;;  %v6560_v15 = vadd.f32 %v6551_v8, %v6450_v43 }
 0x52c   : > { %v16697_v36 = vpop.permute.xlu0 %6678  ;;  %v6823_v62 = vpop.permute.xlu1 %6822 }
 0x52d   : > { %v6833_v26 = vadd.f32 %v6823_v62, %v6685_v54  ;;  %v6686_v58 = vadd.f32 %v6677_v12, %v6560_v15  ;;  %v8603_v62 = vmul.f32 %v16719_v61, %v15788_v35  ;;  %v17941_v15 = vld [vmem:[#allocation228_spill] sm:$0xff] }
 0x52e   : > { %2409 = vrot.lane.b32.xlu1 %v17928_v13, %s12230_s5 }
 0x52f   : > { %9572 = vrot.lane.b32.xlu0 %v17929_v42, %s12230_s5 }
 0x530   : > { %v6947_v44 = vpop.permute.xlu0 %6946  ;;  %v6825_v17 = vpop.permute.xlu1 %6824 }
 0x531   : > { %v6958_v24 = vadd.f32 %v6947_v44, %v6832_v30  ;;  %v6834_v44 = vadd.f32 %v6825_v17, %v6686_v58  ;;  %v8604_v30 = vmul.f32 %v16719_v61, %v15819_v39 }
 0x532   : > { %2555 = vrot.lane.b32.xlu1 %v17931_v41, %s12230_s5 }
 0x533   : > { %1868 = vrot.lane.b32.xlu0 %v1860_v28, %s12231_s7  ;;  %v8602_v28 = vmul.f32 %v16719_v61, %v15755_v31 }
 0x534   : > { %v16708_v2 = vpop.permute.xlu0 %6826  ;;  %v6949_v21 = vpop.permute.xlu1 %6948 }
 0x535   : > { %v6959_v42 = vadd.f32 %v6949_v21, %v6833_v26  ;;  %v17937_v21 = vld [vmem:[#allocation33_spill] sm:$0xff] }
 0x536   : > { %2557 = vrot.lane.b32.xlu1 %v17932_v46, %s12230_s5 }
 0x537   : > { %1872 = vrot.lane.b32.xlu0 %v1862_v59, %s12231_s7 }
 0x538   : > { %v7073_v48 = vpop.permute.xlu0 %7072  ;;  %v6951_v22 = vpop.permute.xlu1 %6950 }
 0x539   : > { %v7084_v55 = vadd.f32 %v7073_v48, %v6958_v24  ;;  %v6960_v8 = vadd.f32 %v6951_v22, %v6834_v44  ;;  %v17939_v22 = vld [vmem:[#allocation226_spill] sm:$0xff]  ;;  %v17945_v44 = vld [vmem:[#allocation36_spill] sm:$0xff] }
 0x53a   : > { %v17940_v24 = vld [vmem:[#allocation34_spill] sm:$0xff] }
 0x53b   : > { %2005 = vrot.lane.b32.xlu0 %v17933_v25, %s12231_s7 }
 0x53c   : > { %v16717_v19 = vpop.permute.xlu0 %6952  ;;  %v7075_v51 = vpop.permute.xlu1 %7074 }
 0x53d   : > { %v7085_v41 = vadd.f32 %v7075_v51, %v6959_v42 }
 0x53f   : > { %2007 = vrot.lane.b32.xlu0 %v17934_v9, %s12231_s7  ;;  %v2260_v9 = vmul.f32 %v16675_v23, %v17930_v27 }
 0x540   : > { %v7221_v13 = vpop.permute.xlu0 %7220  ;;  %v7077_v53 = vpop.permute.xlu1 %7076 }
 0x541   : > { %v7232_v11 = vadd.f32 %v7221_v13, %v7084_v55  ;;  %v7086_v14 = vadd.f32 %v7077_v53, %v6960_v8  ;;  %v17942_v13 = vld [vmem:[#allocation27_spill] sm:$0xff]  ;;  %v17946_v8 = vld [vmem:[#allocation37_spill] sm:$0xff] }
 0x543   : > { %v8606_v59 = vadd.f32 %v8602_v28, %v7232_v11  ;;  %1874 = vrot.lane.b32.xlu0 %v1863_v18, %s12231_s7  ;;  %v17943_v18 = vld [vmem:[#allocation227_spill] sm:$0xff] }
 0x544   : > { %v7223_v43 = vpop.permute.xlu1 %7222  ;;  %v17944_v28 = vld [vmem:[#allocation35_spill] sm:$0xff] }
 0x545   : > { %v7233_v46 = vadd.f32 %v7223_v43, %v7085_v41  ;;  %v8684_v48 = vadd.f32 %v17936_v0, %v8606_v59  ;;  %v2263_v59 = vmul.f32 %v16675_v23, %v17935_v40 }
 0x547   : > { %v8607_v12 = vadd.f32 %v8603_v62, %v7233_v46  ;;  %2153 = vrot.lane.b32.xlu0 %v17937_v21, %s12231_s7  ;;  %v16734_v56 = vadd.f32 %v17938_v7, %v8684_v48  ;;  %v17947_v46 = vld [vmem:[#allocation38_spill] sm:$0xff] }
 0x548   : > { %v7225_v17 = vpop.permute.xlu1 %7224 }
 0x549   : > { %v7234_v25 = vadd.f32 %v7225_v17, %v7086_v14  ;;  %v8685_v51 = vadd.f32 %v17939_v22, %v8607_v12  ;;  %v6561_v17 = vadd.f32 %v16685_v37, %v16678_v5 }
 0x54b   : > { %v8608_v54 = vadd.f32 %v8604_v30, %v7234_v25  ;;  %2011 = vrot.lane.b32.xlu0 %v17940_v24, %s12231_s7  ;;  %v8801_v26 = vadd.f32 %v17941_v15, %v8685_v51  ;;  %v6687_v30 = vadd.f32 %v16697_v36, %v6561_v17 }
 0x54c   : > { %v8899_v55 = vpop.permute.xlu1 %8898 }
 0x54d   : > { %v8686_v53 = vadd.f32 %v17942_v13, %v8608_v54  ;;  %v6835_v51 = vadd.f32 %v16708_v2, %v6687_v30  ;;  %v17948_v2 = vld [vmem:[#allocation229_spill] sm:$0xff] }
 0x54f   : > { %2268 = vrot.lane.b32.xlu0 %v2260_v9, %s12230_s5  ;;  %v8802_v58 = vadd.f32 %v17943_v18, %v8686_v53  ;;  %v6961_v15 = vadd.f32 %v16717_v19, %v6835_v51 }
 0x550   : > { %v8903_v42 = vpop.permute.xlu1 %8902 }
 0x553   : > { %2159 = vrot.lane.b32.xlu0 %v17944_v28, %s12231_s7 }
 0x554   : > { %v9027_v11 = vpop.permute.xlu1 %9026 }
 0x557   : > { %2405 = vrot.lane.b32.xlu0 %v17945_v44, %s12230_s5  ;;  %v8605_v44 = vmul.f32 %v16719_v61, %v15856_v32 }
 0x558   : > { %v9029_v41 = vpop.permute.xlu1 %9028 }
 0x55b   : > { %2274 = vrot.lane.b32.xlu0 %v2263_v59, %s12230_s5 }
 0x55c   : > { %v9175_v43 = vpop.permute.xlu1 %9174 }
 0x55f   : > { %2553 = vrot.lane.b32.xlu0 %v17946_v8, %s12230_s5 }
 0x560   : > { %v9177_v62 = vpop.permute.xlu1 %9176 }
 0x563   : > { %2411 = vrot.lane.b32.xlu0 %v17947_v46, %s12230_s5 }
 0x564   : > { %v9301_v0 = vpop.permute.xlu1 %9300 }
 0x568   : > { %v9303_v48 = vpop.permute.xlu1 %9302 }
 0x56c   : > { %v9427_v14 = vpop.permute.xlu1 %9426 }
 0x570   : > { %v9429_v12 = vpop.permute.xlu1 %9428 }
 0x574   : > { %v9575_v21 = vpop.permute.xlu1 %9574 }
 0x578   : > { %v9431_v7 = vpop.permute.xlu1 %9430 }
 0x57a   : > { %v9671_v23 = vpop.xlane.xlu0 %9670 }
 0x57b   : > { %v9672_v25 = vrot.slane %v9671_v23, 4 }
 0x57c   : > { %v9577_v22 = vpop.permute.xlu1 %9576 }
 0x57d   : > { %v9673_v54 = vadd.f32 %v9672_v25, %v9671_v23  ;;  %v17949_v23 = vld [vmem:[#allocation230_spill] sm:$0xff] }
 0x57e   : > { %v7079_v24 = vpop.permute.xlu0 %7078 }
 0x57f   : > { %v9674_v9 = vrot.slane %v9673_v54, 2  ;;  %v7087_v53 = vadd.f32 %v7079_v24, %v6961_v15 }
 0x580   : > { %v9579_v13 = vpop.permute.xlu1 %9578 }
 0x581   : > { %v9675_v18 = vadd.f32 %v9674_v9, %v9673_v54 }
 0x582   : > { %v7227_v28 = vpop.permute.xlu0 %7226 }
 0x583   : > { %v7235_v5 = vadd.f32 %v7227_v28, %v7087_v53  ;;  %v9676_v37 = vrot.slane %v9675_v18, 1 }
 0x584   : > { %v16765_v8 = vpop.permute.xlu1 %1870 }
 0x585   : > { %v8609_v59 = vadd.f32 %v8605_v44, %v7235_v5  ;;  %v9677_v36 = vadd.f32 %v9676_v37, %v9675_v18  ;;  %v8910_v37 = vadd.f32 %v8899_v55, %v16734_v56 }
 0x586   : > { %v8901_v46 = vpop.permute.xlu0 %8900 }
 0x587   : > { %12008 = vpush %v9677_v36  ;;  %v8687_v17 = vadd.f32 %v17948_v2, %v8609_v59  ;;  %v8911_v15 = vadd.f32 %v8901_v46, %v8801_v26  ;;  %v8912_v59 = vadd.f32 %v8903_v42, %v8802_v58 }
 0x588   : > { %v2010_v25 = vpop.permute.xlu1 %2009 }
 0x589   : > { %v8803_v19 = vadd.f32 %v17949_v23, %v8687_v17  ;;  %v9037_v53 = vadd.f32 %v9027_v11, %v8911_v15  ;;  %v9038_v23 = vadd.f32 %v9029_v41, %v8912_v59 }
 0x58a   : > { %v9025_v30 = vpop.permute.xlu0 %9024 }
 0x58b   : > { %v9185_v18 = vadd.f32 %v9175_v43, %v9037_v53  ;;  %v9036_v4 = vadd.f32 %v9025_v30, %v8910_v37  ;;  %v9186_v45 = vadd.f32 %v9177_v62, %v9038_v23  ;;  %v17951_v30 = vld [vmem:[#allocation39_spill] sm:$0xff]  ;;  %v16795_v37 = vstv %s10087_s23 }
 0x58c   : > { %v16769_v54 = vpop.permute.xlu1 %2155 }
 0x58d   : > { %v9311_v36 = vadd.f32 %v9301_v0, %v9185_v18  ;;  %v9312_v15 = vadd.f32 %v9303_v48, %v9186_v45 }
 0x58e   : > { %v8905_v51 = vpop.permute.xlu0 %8904 }
 0x58f   : > { %v8913_v2 = vadd.f32 %v8905_v51, %v8803_v19  ;;  %v9437_v60 = vadd.f32 %v9427_v14, %v9311_v36  ;;  %v9438_v47 = vadd.f32 %v9429_v12, %v9312_v15  ;;  %v17950_v12 = vld [vmem:[#allocation41_spill] sm:$0xff]  ;;  %v1881_v51 = vadd.f32 %v16765_v8, %v17951_v30  ;;  %v17955_v30 = vld [vmem:[#allocation115_spill] sm:$0xff] }
 0x590   : > { %v2158_v9 = vpop.permute.xlu1 %2157 }
 0x591   : > { %v16774_v56 = vadd.f32 %v9575_v21, %v9437_v60  ;;  %v16776_v42 = vadd.f32 %v9577_v22, %v9438_v47 }
 0x592   : > { %v9173_v24 = vpop.permute.xlu0 %9172 }
 0x593   : > { %v9184_v26 = vadd.f32 %v9173_v24, %v9036_v4  ;;  %v9732_v4 = vsel %vm9662_vm4, %v16774_v56, 0.0  ;;  %v9734_v60 = vsel %vm9662_vm4, %v16776_v42, 0.0 }
 0x594   : > { %v16771_v44 = vpop.permute.xlu1 %2270 }
 0x596   : > { %v9031_v61 = vpop.permute.xlu0 %9030 }
 0x597   : > { %v9039_v20 = vadd.f32 %v9031_v61, %v8913_v2  ;;  %v3910_v2 = vmul.f32 %v16795_v37, %v14471_v29 }
 0x598   : > { %v2273_v10 = vpop.permute.xlu1 %2272 }
 0x59a   : > { %v9299_v28 = vpop.permute.xlu0 %9298 }
 0x59b   : > { %v9310_v43 = vadd.f32 %v9299_v28, %v9184_v26  ;;  %v4211_v26 = vstv %s10099_s10 }
 0x59c   : > { %v2408_v55 = vpop.permute.xlu1 %2407 }
 0x59e   : > { %v9179_v5 = vpop.permute.xlu0 %9178 }
 0x59f   : > { %v9187_v46 = vadd.f32 %v9179_v5, %v9039_v20 }
 0x5a0   : > { %v2410_v48 = vpop.permute.xlu1 %2409 }
 0x5a2   : > { %v9425_v17 = vpop.permute.xlu0 %9424 }
 0x5a3   : > { %v9436_v34 = vadd.f32 %v9425_v17, %v9310_v43 }
 0x5a4   : > { %v2556_v22 = vpop.permute.xlu1 %2555 }
 0x5a6   : > { %v9305_v11 = vpop.permute.xlu0 %9304 }
 0x5a7   : > { %v9313_v53 = vadd.f32 %v9305_v11, %v9187_v46 }
 0x5a8   : > { %v2558_v59 = vpop.permute.xlu1 %2557 }
 0x5a9   : > { %v9439_v40 = vadd.f32 %v9431_v7, %v9313_v53 }
 0x5aa   : > { %v9573_v58 = vpop.permute.xlu0 %9572 }
 0x5ab   : > { %v16778_v41 = vadd.f32 %v9573_v58, %v9436_v34  ;;  %v16780_v0 = vadd.f32 %v9579_v13, %v9439_v40  ;;  %v17952_v58 = vld [vmem:[#allocation116_spill] sm:$0xff] }
 0x5ad   : > { %v9731_v20 = vsel %vm9662_vm4, %v16778_v41, 0.0  ;;  %v9736_v47 = vsel %vm9662_vm4, %v16780_v0, 0.0 }
 0x5ae   : > { %v9733_v45 = vadd.f32 %v9732_v4, %v9731_v20  ;;  %v16786_v62 = vpop.permute.xlu0 %1868 }
 0x5b0   : > { %v9735_v14 = vadd.f32 %v9734_v60, %v9733_v45  ;;  %v17953_v45 = vld [vmem:[#allocation64_spill] sm:$0xff] }
 0x5b1   : > { %v4212_v60 = vmul.f32 %v4211_v26, %v17953_v45 }
 0x5b2   : > { %v1873_v34 = vpop.permute.xlu0 %1872  ;;  %v9737_v40 = vadd.f32 %v9736_v47, %v9735_v14 }
 0x5b3   : > { %v1882_v21 = vadd.f32 %v1873_v34, %v17950_v12 }
 0x5b4   : > { %9738 = vadd.xlane.f32.xlu1 %v9737_v40  ;;  %v3909_v40 = vmul.f32 %v16795_v37, %v14434_v3 }
 0x5b5   : > { %v2019_v7 = vadd.f32 %v2010_v25, %v1882_v21 }
 0x5b6   : > { %v2006_v13 = vpop.permute.xlu0 %2005 }
 0x5b7   : > { %v2167_v19 = vadd.f32 %v2158_v9, %v2019_v7 }
 0x5b8   : > { %s12009_s11 = spop %12008 }
 0x5b9   : > { %v2282_v24 = vadd.f32 %v2273_v10, %v2167_v19  ;;  %s9681_s29 = smul.f32 0.0009765625, %s12009_s11  ;;  %v4214_v19 = vmul.f32 %v4211_v26, %v14471_v29  ;;  %s10047_s11 = sshll.u32 %s12387_s6, 7 }
 0x5ba   : > { %v2008_v61 = vpop.permute.xlu0 %2007 }
 0x5bb   : > { %v2419_v28 = vadd.f32 %v2410_v48, %v2282_v24  ;;  %v9682_v18 = vstv %s9681_s29  ;;  %v2018_v5 = vadd.f32 %v2008_v61, %v1881_v51  ;;  %v17956_v24 = vld [vmem:[#allocation117_spill] sm:$0xff] }
 0x5bc   : > { %v16798_v36 = vsub.f32 %v16574_v1, %v9682_v18  ;;  %v16801_v25 = vsub.f32 %v16568_v57, %v9682_v18  ;;  %v16804_v9 = vsub.f32 %v16577_v33, %v9682_v18  ;;  %v16807_v8 = vsub.f32 %v16592_v50, %v9682_v18 }
 0x5bd   : > { %v2166_v10 = vadd.f32 %v16769_v54, %v2018_v5  ;;  %v2567_v17 = vadd.f32 %v2558_v59, %v2419_v28  ;;  %v17957_v28 = vld [vmem:[#allocation93_spill] sm:$0xff]  ;;  %v17958_v5 = vld [vmem:[#allocation40_spill] sm:$0xff] }
 0x5be   : > { %v9687_v23 = vmul.f32 %v16798_v36, %v16798_v36  ;;  %v9688_v1 = vmul.f32 %v16801_v25, %v16801_v25  ;;  %v9689_v57 = vmul.f32 %v16804_v9, %v16804_v9  ;;  %v16818_v33 = vpop.permute.xlu0 %1874  ;;  %v9690_v54 = vmul.f32 %v16807_v8, %v16807_v8 }
 0x5bf   : > { %v2281_v50 = vadd.f32 %v16771_v44, %v2166_v10  ;;  %v3914_v46 = vadd.f32 %v3910_v2, %v2567_v17  ;;  %v17954_v44 = vld [vmem:[#allocation118_spill] sm:$0xff]  ;;  %v1880_v59 = vadd.f32 %v16786_v62, %v17958_v5  ;;  %v17959_v10 = vld [vmem:[#allocation95_spill] sm:$0xff]  ;;  %v3908_v62 = vmul.f32 %v16795_v37, %v17953_v45 }
 0x5c0   : > { %v9691_v11 = vsel %vm9662_vm4, %v9687_v23, 0.0  ;;  %v9692_v15 = vsel %vm9662_vm4, %v9688_v1, 0.0  ;;  %v9694_v48 = vsel %vm9662_vm4, %v9689_v57, 0.0  ;;  %v9696_v12 = vsel %vm9662_vm4, %v9690_v54, 0.0  ;;  %v17960_v1 = vld [vmem:[#allocation96_spill] sm:$0xff]  ;;  %v17961_v54 = vld [vmem:[#allocation97_spill] sm:$0xff] }
 0x5c1   : > { %v2418_v43 = vadd.f32 %v2408_v55, %v2281_v50  ;;  %v9693_v53 = vadd.f32 %v9692_v15, %v9691_v11  ;;  %v4011_v4 = vadd.f32 %v17952_v58, %v3914_v46  ;;  %v2017_v17 = vadd.f32 %v2006_v13, %v1880_v59  ;;  %v17962_v58 = vld [vmem:[#allocation44_spill] sm:$0xff]  ;;  %v17972_v5 = vld [vmem:[#allocation107_spill] sm:$0xff]  ;;  %v17973_v59 = vld [vmem:[#allocation109_spill] sm:$0xff] }
 0x5c2   : > { %v2154_v20 = vpop.permute.xlu0 %2153  ;;  %v4611_v15 = vstv %s10111_s9  ;;  %s17081_s9 = scalar_lea.vmem [#allocation7], %s10047_s11 }
 0x5c3   : > { %v9695_v14 = vadd.f32 %v9694_v48, %v9693_v53  ;;  %v16829_v47 = vadd.f32 %v17954_v44, %v4011_v4  ;;  %v2566_v34 = vadd.f32 %v2556_v22, %v2418_v43  ;;  %v2165_v23 = vadd.f32 %v2154_v20, %v2017_v17  ;;  %v17975_v17 = vld [vmem:[#allocation174_spill] sm:$0xff] }
 0x5c4   : > { %v4613_v53 = vmul.f32 %v4611_v15, %v14434_v3  ;;  %v4213_v4 = vmul.f32 %v4211_v26, %v14434_v3  ;;  %v4614_v20 = vmul.f32 %v4611_v15, %v14471_v29 }
 0x5c5   : > { %4220 = vrot.lane.b32.xlu1 %v4212_v60, %s12231_s7  ;;  %v9697_v55 = vadd.f32 %v9696_v12, %v9695_v14  ;;  %v3913_v21 = vadd.f32 %v3909_v40, %v2566_v34  ;;  %v17963_v60 = vld [vmem:[#allocation113_spill] sm:$0xff]  ;;  %v17964_v14 = vld [vmem:[#allocation114_spill] sm:$0xff]  ;;  %v17966_v40 = vld [vmem:[#allocation100_spill] sm:$0xff]  ;;  %v4215_v12 = vmul.f32 %v4211_v26, %v14507_v16  ;;  %v4612_v26 = vmul.f32 %v4611_v15, %v17953_v45 }
 0x5c6   : > { %v16835_v7 = vpop.permute.xlu0 %2011  ;;  %v17965_v34 = vld [vmem:[#allocation98_spill] sm:$0xff] }
 0x5c7   : > { %9698 = vadd.xlane.f32.xlu0 %v9697_v55  ;;  %v4010_v51 = vadd.f32 %v17955_v30, %v3913_v21  ;;  %v17967_v55 = vld [vmem:[#allocation101_spill] sm:$0xff]  ;;  %v17968_v21 = vld [vmem:[#allocation102_spill] sm:$0xff]  ;;  %v6563_v30 = vstv %s10137_s26  ;;  %s10074_s26 = sld [smem:[#allocation6 + $0x182]] }
 0x5c9   : > { %4224 = vrot.lane.b32.xlu1 %v4214_v19, %s12231_s7  ;;  %v16841_v22 = vadd.f32 %v17956_v24, %v4010_v51  ;;  %v17969_v19 = vld [vmem:[#allocation103_spill] sm:$0xff]  ;;  %v17970_v51 = vld [vmem:[#allocation104_spill] sm:$0xff]  ;;  %v17971_v24 = vld [vmem:[#allocation106_spill] sm:$0xff] }
 0x5ca   : > { %v2269_v61 = vpop.permute.xlu0 %2268 }
 0x5cb   : > { %v2280_v50 = vadd.f32 %v2269_v61, %v2165_v23  ;;  %v6564_v61 = vmul.f32 %v6563_v30, %v17840_v52  ;;  %v17976_v23 = vld [vmem:[#allocation110_spill] sm:$0xff] }
 0x5cd   : > { %4359 = vrot.lane.b32.xlu1 %v17957_v28, %s12231_s7  ;;  %v6566_v28 = vmul.f32 %v6563_v30, %v17848_v6 }
 0x5ce   : > { %v16845_v18 = vpop.permute.xlu0 %2159 }
 0x5d1   : > { %4361 = vrot.lane.b32.xlu1 %v17959_v10, %s12231_s7  ;;  %v17974_v10 = vld [vmem:[#allocation173_spill] sm:$0xff] }
 0x5d2   : > { %v2406_v2 = vpop.permute.xlu0 %2405 }
 0x5d3   : > { %v2417_v46 = vadd.f32 %v2406_v2, %v2280_v50  ;;  %v4615_v2 = vmul.f32 %v4611_v15, %v14507_v16  ;;  %v17978_v50 = vld [vmem:[#allocation111_spill] sm:$0xff]  ;;  %v17980_v15 = vld [vmem:[#allocation112_spill] sm:$0xff] }
 0x5d5   : > { %4507 = vrot.lane.b32.xlu1 %v17960_v1, %s12231_s7  ;;  %v17977_v1 = vld [vmem:[#allocation175_spill] sm:$0xff] }
 0x5d6   : > { %v16853_v57 = vpop.permute.xlu0 %2274 }
 0x5d9   : > { %4509 = vrot.lane.b32.xlu1 %v17961_v54, %s12231_s7  ;;  %v6963_v54 = vstv %s10149_s20  ;;  %s10100_s20 = sld [smem:[#allocation6 + $0x18a]] }
 0x5da   : > { %v2554_v11 = vpop.permute.xlu0 %2553 }
 0x5db   : > { %v2565_v43 = vadd.f32 %v2554_v11, %v2417_v46  ;;  %v17979_v46 = vld [vmem:[#allocation176_spill] sm:$0xff]  ;;  %v6965_v11 = vmul.f32 %v6963_v54, %v17847_v49 }
 0x5dd   : > { %v3912_v13 = vadd.f32 %v3908_v62, %v2565_v43  ;;  %2559 = vrot.lane.b32.xlu0 %v17962_v58, %s12230_s5  ;;  %4622 = vrot.lane.b32.xlu1 %v4613_v53, %s12230_s5  ;;  %v6565_v62 = vmul.f32 %v6563_v30, %v17847_v49  ;;  %v6966_v43 = vmul.f32 %v6963_v54, %v17848_v6  ;;  %v17981_v53 = vld [vmem:[#allocation177_spill] sm:$0xff] }
 0x5de   : > { %v6567_v58 = vmul.f32 %v6563_v30, %v17864_v38  ;;  %v17990_v30 = vld [vmem:[#allocation231_spill] sm:$0xff] }
 0x5df   : > { %v4009_v48 = vadd.f32 %v17963_v60, %v3912_v13  ;;  %v17982_v13 = vld [vmem:[#allocation178_spill] sm:$0xff]  ;;  %v17985_v60 = vld [vmem:[#allocation181_spill] sm:$0xff] }
 0x5e1   : > { %4222 = vrot.lane.b32.xlu0 %v4213_v4, %s12231_s7  ;;  %4624 = vrot.lane.b32.xlu1 %v4614_v20, %s12230_s5  ;;  %v16869_v44 = vadd.f32 %v17964_v14, %v4009_v48  ;;  %v17983_v4 = vld [vmem:[#allocation179_spill] sm:$0xff]  ;;  %v17984_v20 = vld [vmem:[#allocation180_spill] sm:$0xff]  ;;  %v8915_v48 = vstv %s10175_s25  ;;  %v17986_v14 = vld [vmem:[#allocation182_spill] sm:$0xff]  ;;  %s10112_s25 = sld [smem:[#allocation6 + $0x18b]] }
 0x5e5   : > { %4357 = vrot.lane.b32.xlu0 %v17965_v34, %s12231_s7  ;;  %4759 = vrot.lane.b32.xlu1 %v17966_v40, %s12230_s5  ;;  %v17987_v34 = vld [vmem:[#allocation183_spill] sm:$0xff]  ;;  %v6964_v40 = vmul.f32 %v6963_v54, %v17840_v52 }
 0x5e9   : > { %4226 = vrot.lane.b32.xlu0 %v4215_v12, %s12231_s7  ;;  %4761 = vrot.lane.b32.xlu1 %v17967_v55, %s12230_s5  ;;  %v8916_v12 = vmul.f32 %v8915_v48, %v15755_v31  ;;  %v8918_v55 = vmul.f32 %v8915_v48, %v15819_v39 }
 0x5ed   : > { %4505 = vrot.lane.b32.xlu0 %v17968_v21, %s12231_s7  ;;  %4907 = vrot.lane.b32.xlu1 %v17969_v19, %s12230_s5  ;;  %v17988_v21 = vld [vmem:[#allocation184_spill] sm:$0xff]  ;;  %v17989_v19 = vld [vmem:[#allocation185_spill] sm:$0xff] }
 0x5f1   : > { %4363 = vrot.lane.b32.xlu0 %v17970_v51, %s12231_s7  ;;  %4909 = vrot.lane.b32.xlu1 %v17971_v24, %s12230_s5  ;;  %v6967_v51 = vmul.f32 %v6963_v54, %v17864_v38  ;;  %v17991_v24 = vld [vmem:[#allocation232_spill] sm:$0xff] }
 0x5f5   : > { %4620 = vrot.lane.b32.xlu0 %v4612_v26, %s12230_s5  ;;  %6572 = vrot.lane.b32.xlu1 %v6564_v61, %s12231_s7  ;;  %v17992_v26 = vld [vmem:[#allocation186_spill] sm:$0xff]  ;;  %v17993_v61 = vld [vmem:[#allocation233_spill] sm:$0xff] }
 0x5f9   : > { %4511 = vrot.lane.b32.xlu0 %v17972_v5, %s12231_s7  ;;  %6576 = vrot.lane.b32.xlu1 %v6566_v28, %s12231_s7  ;;  %v17994_v28 = vld [vmem:[#allocation187_spill] sm:$0xff]  ;;  %v17995_v5 = vld [vmem:[#allocation234_spill] sm:$0xff] }
 0x5fd   : > { %4757 = vrot.lane.b32.xlu0 %v17973_v59, %s12230_s5  ;;  %6711 = vrot.lane.b32.xlu1 %v17974_v10, %s12231_s7  ;;  %v9315_v59 = vstv %s10187_s30  ;;  %s10138_s30 = sld [smem:[#allocation6 + $0x193]] }
 0x5fe   : > { %v9317_v10 = vmul.f32 %v9315_v59, %v15788_v35 }
 0x601   : > { %4626 = vrot.lane.b32.xlu0 %v4615_v2, %s12230_s5  ;;  %6713 = vrot.lane.b32.xlu1 %v17975_v17, %s12231_s7  ;;  %v17996_v2 = vld [vmem:[#allocation188_spill] sm:$0xff]  ;;  %v8917_v17 = vmul.f32 %v8915_v48, %v15788_v35 }
 0x605   : > { %4905 = vrot.lane.b32.xlu0 %v17976_v23, %s12230_s5  ;;  %6859 = vrot.lane.b32.xlu1 %v17977_v1, %s12231_s7  ;;  %v9318_v23 = vmul.f32 %v9315_v59, %v15819_v39 }
 0x609   : > { %4763 = vrot.lane.b32.xlu0 %v17978_v50, %s12230_s5  ;;  %6861 = vrot.lane.b32.xlu1 %v17979_v46, %s12231_s7  ;;  %v17997_v50 = vld [vmem:[#allocation235_spill] sm:$0xff]  ;;  %v17998_v46 = vld [vmem:[#allocation236_spill] sm:$0xff] }
 0x60d   : > { %4911 = vrot.lane.b32.xlu0 %v17980_v15, %s12230_s5  ;;  %6974 = vrot.lane.b32.xlu1 %v6965_v11, %s12230_s5  ;;  %v8919_v11 = vmul.f32 %v8915_v48, %v15856_v32  ;;  %v17999_v15 = vld [vmem:[#allocation237_spill] sm:$0xff] }
 0x60e   : > { %v18003_v48 = vld [vmem:[#allocation21_spill] sm:$0xff] }
 0x611   : > { %6574 = vrot.lane.b32.xlu0 %v6565_v62, %s12231_s7  ;;  %6976 = vrot.lane.b32.xlu1 %v6966_v43, %s12230_s5  ;;  %v18000_v43 = vld [vmem:[#allocation238_spill] sm:$0xff] }
 0x615   : > { %6709 = vrot.lane.b32.xlu0 %v17981_v53, %s12231_s7  ;;  %7111 = vrot.lane.b32.xlu1 %v17982_v13, %s12230_s5  ;;  %v18001_v53 = vld [vmem:[#allocation239_spill] sm:$0xff] }
 0x619   : > { %6578 = vrot.lane.b32.xlu0 %v6567_v58, %s12231_s7  ;;  %7113 = vrot.lane.b32.xlu1 %v17983_v4, %s12230_s5  ;;  %v18002_v58 = vld [vmem:[#allocation43_spill] sm:$0xff] }
 0x61a   : > { %v1883_v4 = vadd.f32 %v16818_v33, %v18002_v58  ;;  %v18005_v33 = vld [vmem:[#allocation240_spill] sm:$0xff] }
 0x61b   : > { %v18010_v58 = vld [vmem:[#allocation120_spill] sm:$0xff] }
 0x61d   : > { %6857 = vrot.lane.b32.xlu0 %v17984_v20, %s12231_s7  ;;  %7259 = vrot.lane.b32.xlu1 %v17985_v60, %s12230_s5  ;;  %v2412_v20 = vpop.permute.xlu0 %2411  ;;  %v2020_v60 = vadd.f32 %v16835_v7, %v1883_v4 }
 0x621   : > { %6715 = vrot.lane.b32.xlu0 %v17986_v14, %s12231_s7  ;;  %7261 = vrot.lane.b32.xlu1 %v17987_v34, %s12230_s5  ;;  %v18004_v14 = vld [vmem:[#allocation67_spill] sm:$0xff] }
 0x625   : > { %6972 = vrot.lane.b32.xlu0 %v6964_v40, %s12230_s5  ;;  %8924 = vrot.lane.b32.xlu1 %v8916_v12, %s12231_s7  ;;  %v2168_v40 = vadd.f32 %v16845_v18, %v2020_v60  ;;  %v9316_v12 = vmul.f32 %v9315_v59, %v15755_v31  ;;  %v18006_v18 = vld [vmem:[#allocation241_spill] sm:$0xff] }
 0x629   : > { %6863 = vrot.lane.b32.xlu0 %v17988_v21, %s12231_s7  ;;  %8928 = vrot.lane.b32.xlu1 %v8918_v55, %s12231_s7  ;;  %v2283_v21 = vadd.f32 %v16853_v57, %v2168_v40 }
 0x62d   : > { %7109 = vrot.lane.b32.xlu0 %v17989_v19, %s12230_s5  ;;  %9063 = vrot.lane.b32.xlu1 %v17990_v30, %s12231_s7  ;;  %v2420_v30 = vadd.f32 %v2412_v20, %v2283_v21 }
 0x631   : > { %6978 = vrot.lane.b32.xlu0 %v6967_v51, %s12230_s5  ;;  %9065 = vrot.lane.b32.xlu1 %v17991_v24, %s12231_s7 }
 0x635   : > { %7257 = vrot.lane.b32.xlu0 %v17992_v26, %s12230_s5  ;;  %9211 = vrot.lane.b32.xlu1 %v17993_v61, %s12231_s7  ;;  %v3911_v26 = vmul.f32 %v16795_v37, %v14507_v16  ;;  %v18009_v37 = vld [vmem:[#allocation119_spill] sm:$0xff] }
 0x639   : > { %7115 = vrot.lane.b32.xlu0 %v17994_v28, %s12230_s5  ;;  %9213 = vrot.lane.b32.xlu1 %v17995_v5, %s12231_s7  ;;  %v18007_v28 = vld [vmem:[#allocation242_spill] sm:$0xff] }
 0x63d   : > { %7263 = vrot.lane.b32.xlu0 %v17996_v2, %s12230_s5  ;;  %9326 = vrot.lane.b32.xlu1 %v9317_v10, %s12230_s5 }
 0x641   : > { %8926 = vrot.lane.b32.xlu0 %v8917_v17, %s12231_s7  ;;  %9328 = vrot.lane.b32.xlu1 %v9318_v23, %s12230_s5  ;;  %v16967_v1 = vpop.xlane.xlu1 %9738 }
 0x645   : > { %9061 = vrot.lane.b32.xlu0 %v17997_v50, %s12231_s7  ;;  %9463 = vrot.lane.b32.xlu1 %v17998_v46, %s12230_s5  ;;  %v16973_v54 = vpop.permute.xlu1 %4220  ;;  %v18008_v50 = vld [vmem:[#allocation243_spill] sm:$0xff] }
 0x649   : > { %8930 = vrot.lane.b32.xlu0 %v8919_v11, %s12231_s7  ;;  %9465 = vrot.lane.b32.xlu1 %v17999_v15, %s12230_s5  ;;  %v4225_v62 = vpop.permute.xlu1 %4224 }
 0x64d   : > { %9209 = vrot.lane.b32.xlu0 %v18000_v43, %s12231_s7  ;;  %9611 = vrot.lane.b32.xlu1 %v18001_v53, %s12230_s5  ;;  %v4360_v13 = vpop.permute.xlu1 %4359  ;;  %v9319_v43 = vmul.f32 %v9315_v59, %v15856_v32  ;;  %v4234_v59 = vadd.f32 %v4225_v62, %v16829_v47 }
 0x651   : > { %9067 = vrot.lane.b32.xlu0 %v18003_v48, %s12231_s7  ;;  %9467 = vrot.lane.b32.xlu1 %v18004_v14, %s12230_s5  ;;  %v4362_v34 = vpop.permute.xlu1 %4361 }
 0x654   : > { %v9699_v55 = vpop.xlane.xlu0 %9698 }
 0x655   : > { %v9700_v19 = vrot.slane %v9699_v55, 4  ;;  %9324 = vrot.lane.b32.xlu0 %v9316_v12, %s12230_s5  ;;  %9613 = vrot.lane.b32.xlu1 %v18005_v33, %s12230_s5  ;;  %v4508_v7 = vpop.permute.xlu1 %4507  ;;  %v18011_v12 = vld [vmem:[#allocation68_spill] sm:$0xff] }
 0x657   : > { %v9701_v51 = vadd.f32 %v9700_v19, %v9699_v55  ;;  %v18012_v55 = vld [vmem:[#allocation42_spill] sm:$0xff] }
 0x658   : > { %v2560_v24 = vpop.permute.xlu0 %2559  ;;  %v1886_v21 = vmul.f32 %v18012_v55, %v17930_v27 }
 0x659   : > { %v2568_v61 = vadd.f32 %v2560_v24, %v2420_v30  ;;  %9215 = vrot.lane.b32.xlu0 %v18006_v18, %s12231_s7  ;;  %9615 = vrot.lane.b32.xlu1 %v18007_v28, %s12230_s5  ;;  %v4510_v57 = vpop.permute.xlu1 %4509  ;;  %v9702_v5 = vrot.slane %v9701_v51, 2  ;;  %v4371_v30 = vadd.f32 %v4362_v34, %v4234_v59  ;;  %v18013_v34 = vld [vmem:[#allocation45_spill] sm:$0xff]  ;;  %v18019_v59 = vld [vmem:[#allocation190_spill] sm:$0xff] }
 0x65b   : > { %v3915_v10 = vadd.f32 %v3911_v26, %v2568_v61  ;;  %v9703_v2 = vadd.f32 %v9702_v5, %v9701_v51  ;;  %v4519_v51 = vadd.f32 %v4510_v57, %v4371_v30  ;;  %v6259_v61 = vstv %s10125_s12  ;;  %s10150_s12 = sld [smem:[#allocation6 + $0x194]] }
 0x65c   : > { %v4223_v17 = vpop.permute.xlu0 %4222  ;;  %v6261_v5 = vmul.f32 %v6259_v61, %v17847_v49 }
 0x65d   : > { %v4233_v23 = vadd.f32 %v4223_v17, %v16841_v22  ;;  %9461 = vrot.lane.b32.xlu0 %v18008_v50, %s12230_s5  ;;  %v4623_v46 = vpop.permute.xlu1 %4622  ;;  %v9704_v11 = vrot.slane %v9703_v2, 1  ;;  %v4012_v15 = vadd.f32 %v18009_v37, %v3915_v10  ;;  %v18014_v50 = vld [vmem:[#allocation192_spill] sm:$0xff] }
 0x65f   : > { %v9705_v53 = vadd.f32 %v9704_v11, %v9703_v2  ;;  %v4128_v4 = vadd.f32 %v18010_v58, %v4012_v15  ;;  %v4370_v20 = vadd.f32 %v4360_v13, %v4233_v23  ;;  %v6262_v23 = vmul.f32 %v6259_v61, %v17848_v6  ;;  %v18015_v15 = vld [vmem:[#allocation193_spill] sm:$0xff]  ;;  %v18016_v58 = vld [vmem:[#allocation46_spill] sm:$0xff] }
 0x660   : > { %v4358_v60 = vpop.permute.xlu0 %4357 }
 0x661   : > { %9330 = vrot.lane.b32.xlu0 %v9319_v43, %s12230_s5  ;;  %v4625_v48 = vpop.permute.xlu1 %4624  ;;  %12010 = vpush %v9705_v53  ;;  %v4518_v14 = vadd.f32 %v4508_v7, %v4370_v20  ;;  %v1888_v7 = vmul.f32 %v18012_v55, %v17925_v63  ;;  %v18017_v20 = vld [vmem:[#allocation189_spill] sm:$0xff] }
 0x662   : > { %v4634_v28 = vadd.f32 %v4625_v48, %v4519_v51 }
 0x663   : > { %v4633_v19 = vadd.f32 %v4623_v46, %v4518_v14  ;;  %v4232_v14 = vadd.f32 %v16973_v54, %v16869_v44 }
 0x664   : > { %v4227_v22 = vpop.permute.xlu0 %4226 }
 0x665   : > { %v4760_v40 = vpop.permute.xlu1 %4759  ;;  %9609 = vrot.lane.b32.xlu0 %v18011_v12, %s12230_s5 }
 0x666   : > { %v4770_v24 = vadd.f32 %v4760_v40, %v4633_v19  ;;  %v18018_v40 = vld [vmem:[#allocation16_spill] sm:$0xff] }
 0x667   : > { %v1889_v12 = vmul.f32 %v18012_v55, %v18018_v40  ;;  %v6260_v55 = vmul.f32 %v6259_v61, %v17840_v52 }
 0x668   : > { %v4506_v33 = vpop.permute.xlu0 %4505 }
 0x669   : > { %v4762_v13 = vpop.permute.xlu1 %4761  ;;  %1894 = vrot.lane.b32.xlu0 %v1886_v21, %s12231_s7 }
 0x66a   : > { %v4771_v62 = vadd.f32 %v4762_v13, %v4634_v28  ;;  %v4369_v13 = vadd.f32 %v4358_v60, %v4232_v14  ;;  %v18020_v28 = vld [vmem:[#allocation47_spill] sm:$0xff] }
 0x66c   : > { %v4364_v26 = vpop.permute.xlu0 %4363 }
 0x66d   : > { %v4908_v18 = vpop.permute.xlu1 %4907  ;;  %1898 = vrot.lane.b32.xlu0 %v1888_v7, %s12231_s7  ;;  %v4517_v7 = vadd.f32 %v4506_v33, %v4369_v13 }
 0x66e   : > { %v4918_v47 = vadd.f32 %v4908_v18, %v4770_v24 }
 0x670   : > { %v6265_v10 = vadd.f32 %v6261_v5, %v4918_v47  ;;  %v4621_v2 = vpop.permute.xlu0 %4620  ;;  %v4235_v5 = vadd.f32 %v4227_v22, %v4128_v4  ;;  %v6263_v4 = vmul.f32 %v6259_v61, %v17864_v38 }
 0x671   : > { %v4910_v17 = vpop.permute.xlu1 %4909  ;;  %2042 = vrot.lane.b32.xlu0 %v18013_v34, %s12231_s7  ;;  %v4632_v24 = vadd.f32 %v4621_v2, %v4517_v7 }
 0x672   : > { %v4919_v57 = vadd.f32 %v4910_v17, %v4771_v62  ;;  %v6362_v46 = vadd.f32 %v18014_v50, %v6265_v10  ;;  %v4372_v54 = vadd.f32 %v4364_v26, %v4235_v5 }
 0x674   : > { %v6266_v11 = vadd.f32 %v6262_v23, %v4919_v57  ;;  %v4512_v37 = vpop.permute.xlu0 %4511  ;;  %v6478_v43 = vadd.f32 %v18015_v15, %v6362_v46  ;;  %v18021_v57 = vld [vmem:[#allocation191_spill] sm:$0xff]  ;;  %v18022_v46 = vld [vmem:[#allocation194_spill] sm:$0xff] }
 0x675   : > { %v17024_v53 = vpop.permute.xlu1 %6572  ;;  %2044 = vrot.lane.b32.xlu0 %v18016_v58, %s12231_s7  ;;  %v4520_v17 = vadd.f32 %v4512_v37, %v4372_v54 }
 0x676   : > { %v6363_v48 = vadd.f32 %v18017_v20, %v6266_v11 }
 0x678   : > { %v4758_v21 = vpop.permute.xlu0 %4757  ;;  %v6479_v19 = vadd.f32 %v18019_v59, %v6363_v48  ;;  %v18024_v59 = vld [vmem:[#allocation196_spill] sm:$0xff] }
 0x679   : > { %v6577_v30 = vpop.permute.xlu1 %6576  ;;  %1900 = vrot.lane.b32.xlu0 %v1889_v12, %s12231_s7  ;;  %v4769_v47 = vadd.f32 %v4758_v21, %v4632_v24  ;;  %v18023_v12 = vld [vmem:[#allocation195_spill] sm:$0xff]  ;;  %v9740_v21 = vrot.slane %v16967_v1, 4 }
 0x67a   : > { %v6586_v54 = vadd.f32 %v6577_v30, %v6479_v19 }
 0x67c   : > { %v4627_v51 = vpop.permute.xlu0 %4626 }
 0x67d   : > { %v6712_v18 = vpop.permute.xlu1 %6711  ;;  %2190 = vrot.lane.b32.xlu0 %v18020_v28, %s12231_s7  ;;  %v4635_v23 = vadd.f32 %v4627_v51, %v4520_v17  ;;  %v9741_v28 = vadd.f32 %v9740_v21, %v16967_v1  ;;  %v8611_v1 = vstv %s10163_s22  ;;  %v18026_v21 = vld [vmem:[#allocation246_spill] sm:$0xff]  ;;  %s10126_s22 = sld [smem:[#allocation6 + $0x192]] }
 0x680   : > { %v4906_v44 = vpop.permute.xlu0 %4905 }
 0x681   : > { %v4917_v62 = vadd.f32 %v4906_v44, %v4769_v47  ;;  %v6714_v10 = vpop.permute.xlu1 %6713 }
 0x683   : > { %v6264_v60 = vadd.f32 %v6260_v55, %v4917_v62 }
 0x684   : > { %v4764_v34 = vpop.permute.xlu0 %4763 }
 0x685   : > { %v6361_v33 = vadd.f32 %v18021_v57, %v6264_v60  ;;  %v6860_v50 = vpop.permute.xlu1 %6859  ;;  %v4772_v2 = vadd.f32 %v4764_v34, %v4635_v23  ;;  %v6723_v60 = vadd.f32 %v6714_v10, %v6586_v54 }
 0x687   : > { %v6477_v11 = vadd.f32 %v18022_v46, %v6361_v33 }
 0x688   : > { %v4912_v15 = vpop.permute.xlu0 %4911 }
 0x689   : > { %v4920_v22 = vadd.f32 %v4912_v15, %v4772_v2  ;;  %v6862_v58 = vpop.permute.xlu1 %6861 }
 0x68a   : > { %v6871_v34 = vadd.f32 %v6862_v58, %v6723_v60 }
 0x68b   : > { %v6267_v26 = vadd.f32 %v6263_v4, %v4920_v22 }
 0x68c   : > { %v6575_v20 = vpop.permute.xlu0 %6574 }
 0x68d   : > { %v6585_v48 = vadd.f32 %v6575_v20, %v6478_v43  ;;  %v6975_v14 = vpop.permute.xlu1 %6974  ;;  %v6364_v37 = vadd.f32 %v18023_v12, %v6267_v26  ;;  %v9742_v43 = vrot.slane %v9741_v28, 2  ;;  %v8614_v20 = vmul.f32 %v8611_v1, %v15819_v39 }
 0x68f   : > { %v6480_v13 = vadd.f32 %v18024_v59, %v6364_v37  ;;  %v6722_v7 = vadd.f32 %v6712_v18, %v6585_v48  ;;  %v9743_v18 = vadd.f32 %v9742_v43, %v9741_v28  ;;  %v18028_v43 = vld [vmem:[#allocation71_spill] sm:$0xff] }
 0x690   : > { %v6710_v51 = vpop.permute.xlu0 %6709 }
 0x691   : > { %v6977_v24 = vpop.permute.xlu1 %6976  ;;  %v6870_v61 = vadd.f32 %v6860_v50, %v6722_v7  ;;  %v8613_v50 = vmul.f32 %v8611_v1, %v15788_v35  ;;  %v9744_v15 = vrot.slane %v9743_v18, 1 }
 0x692   : > { %s12011_s8 = spop %12010  ;;  %v6986_v2 = vadd.f32 %v6977_v24, %v6871_v34  ;;  %v18027_v24 = vld [vmem:[#allocation69_spill] sm:$0xff] }
 0x693   : > { %s9709_s13 = smul.f32 0.0009765625, %s12011_s8  ;;  %v6985_v55 = vadd.f32 %v6975_v14, %v6870_v61  ;;  %v9745_v10 = vadd.f32 %v9744_v15, %v9743_v18  ;;  %v18025_v14 = vld [vmem:[#allocation245_spill] sm:$0xff]  ;;  %v6584_v61 = vadd.f32 %v17024_v53, %v6477_v11  ;;  %s10176_s8 = sld [smem:[#allocation6 + $0x19c]] }
 0x694   : > { %v6579_v5 = vpop.permute.xlu0 %6578 }
 0x695   : > { %s9710_s14 = sadd.f32 1e-05, %s9709_s13  ;;  %v7112_v47 = vpop.permute.xlu1 %7111  ;;  %v6721_v54 = vadd.f32 %v6710_v51, %v6584_v61  ;;  %s10088_s13 = sld [smem:[#allocation6 + $0x189]] }
 0x696   : > { %v7122_v23 = vadd.f32 %v7112_v47, %v6985_v55 }
 0x697   : > { %v9711_v44 = vstv %s9710_s14  ;;  %s10188_s14 = sld [smem:[#allocation6 + $0x19d]] }
 0x698   : > { %12098 = vrsqrt.f32 %v9711_v44  ;;  %v6858_v62 = vpop.permute.xlu0 %6857 }
 0x699   : > { %v7114_v17 = vpop.permute.xlu1 %7113 }
 0x69a   : > { %v7123_v4 = vadd.f32 %v7114_v17, %v6986_v2  ;;  %v6869_v17 = vadd.f32 %v6858_v62, %v6721_v54  ;;  %v18030_v62 = vld [vmem:[#allocation247_spill] sm:$0xff] }
 0x69c   : > { %v6716_v57 = vpop.permute.xlu0 %6715 }
 0x69d   : > { %v7260_v33 = vpop.permute.xlu1 %7259 }
 0x69e   : > { %v7270_v46 = vadd.f32 %v7260_v33, %v7122_v23  ;;  %v6587_v23 = vadd.f32 %v6579_v5, %v6480_v13  ;;  %v8615_v13 = vmul.f32 %v8611_v1, %v15856_v32 }
 0x6a0   : > { %v8617_v22 = vadd.f32 %v8613_v50, %v7270_v46  ;;  %v6973_v26 = vpop.permute.xlu0 %6972  ;;  %v6724_v50 = vadd.f32 %v6716_v57, %v6587_v23  ;;  %v8612_v46 = vmul.f32 %v8611_v1, %v15755_v31 }
 0x6a1   : > { %v7262_v19 = vpop.permute.xlu1 %7261  ;;  %v6984_v18 = vadd.f32 %v6973_v26, %v6869_v17 }
 0x6a2   : > { %v12099_v30 = vpop.eup %12098  ;;  %v7271_v48 = vadd.f32 %v7262_v19, %v7123_v4  ;;  %v8714_v58 = vadd.f32 %v18025_v14, %v8617_v22 }
 0x6a3   : > { %12012 = vpush %v12099_v30  ;;  %v18029_v30 = vld [vmem:[#allocation244_spill] sm:$0xff] }
 0x6a4   : > { %v8618_v12 = vadd.f32 %v8614_v20, %v7271_v48  ;;  %12014 = vpush %v9745_v10  ;;  %v6864_v37 = vpop.permute.xlu0 %6863  ;;  %v8830_v59 = vadd.f32 %v18026_v21, %v8714_v58  ;;  %v18031_v21 = vld [vmem:[#allocation72_spill] sm:$0xff] }
 0x6a5   : > { %v8925_v7 = vpop.permute.xlu1 %8924  ;;  %v6872_v22 = vadd.f32 %v6864_v37, %v6724_v50  ;;  %v18032_v37 = vld [vmem:[#allocation248_spill] sm:$0xff] }
 0x6a6   : > { %v8715_v28 = vadd.f32 %v18027_v24, %v8618_v12 }
 0x6a8   : > { %v7110_v47 = vpop.permute.xlu0 %7109  ;;  %v8831_v44 = vadd.f32 %v18028_v43, %v8715_v28 }
 0x6a9   : > { %v8929_v55 = vpop.permute.xlu1 %8928  ;;  %v7121_v33 = vadd.f32 %v7110_v47, %v6984_v18 }
 0x6aa   : > { %v8938_v50 = vadd.f32 %v8929_v55, %v8831_v44 }
 0x6ac   : > { %v6979_v60 = vpop.permute.xlu0 %6978 }
 0x6ad   : > { %v9064_v34 = vpop.permute.xlu1 %9063  ;;  %v6987_v11 = vadd.f32 %v6979_v60, %v6872_v22 }
 0x6b0   : > { %v7258_v2 = vpop.permute.xlu0 %7257 }
 0x6b1   : > { %v7269_v15 = vadd.f32 %v7258_v2, %v7121_v33  ;;  %v9066_v4 = vpop.permute.xlu1 %9065 }
 0x6b3   : > { %v8616_v19 = vadd.f32 %v8612_v46, %v7269_v15 }
 0x6b4   : > { %v7116_v53 = vpop.permute.xlu0 %7115 }
 0x6b5   : > { %v8713_v20 = vadd.f32 %v18029_v30, %v8616_v19  ;;  %v9212_v51 = vpop.permute.xlu1 %9211  ;;  %v7124_v48 = vadd.f32 %v7116_v53, %v6987_v11  ;;  %v9075_v53 = vadd.f32 %v9066_v4, %v8938_v50 }
 0x6b7   : > { %v8829_v10 = vadd.f32 %v18030_v62, %v8713_v20 }
 0x6b8   : > { %v7264_v26 = vpop.permute.xlu0 %7263 }
 0x6b9   : > { %v7272_v5 = vadd.f32 %v7264_v26, %v7124_v48  ;;  %v9214_v14 = vpop.permute.xlu1 %9213  ;;  %v8936_v15 = vadd.f32 %v8925_v7, %v8829_v10 }
 0x6ba   : > { %v9223_v7 = vadd.f32 %v9214_v14, %v9075_v53 }
 0x6bb   : > { %v8619_v57 = vadd.f32 %v8615_v13, %v7272_v5 }
 0x6bc   : > { %v8927_v58 = vpop.permute.xlu0 %8926 }
 0x6bd   : > { %v9327_v12 = vpop.permute.xlu1 %9326  ;;  %v8716_v24 = vadd.f32 %v18031_v21, %v8619_v57  ;;  %v8937_v18 = vadd.f32 %v8927_v58, %v8830_v59 }
 0x6bf   : > { %v8832_v28 = vadd.f32 %v18032_v37, %v8716_v24  ;;  %v9074_v33 = vadd.f32 %v9064_v34, %v8937_v18 }
 0x6c0   : > { %v9062_v61 = vpop.permute.xlu0 %9061 }
 0x6c1   : > { %v9329_v47 = vpop.permute.xlu1 %9328  ;;  %v9222_v46 = vadd.f32 %v9212_v51, %v9074_v33  ;;  %v9073_v11 = vadd.f32 %v9062_v61, %v8936_v15 }
 0x6c3   : > { %v9337_v55 = vadd.f32 %v9327_v12, %v9222_v46 }
 0x6c4   : > { %v8931_v43 = vpop.permute.xlu0 %8930 }
 0x6c5   : > { %v9464_v54 = vpop.permute.xlu1 %9463  ;;  %v8939_v22 = vadd.f32 %v8931_v43, %v8832_v28  ;;  %v9338_v28 = vadd.f32 %v9329_v47, %v9223_v7 }
 0x6c6   : > { %v9474_v61 = vadd.f32 %v9464_v54, %v9337_v55 }
 0x6c8   : > { %v9210_v17 = vpop.permute.xlu0 %9209 }
 0x6c9   : > { %v9466_v60 = vpop.permute.xlu1 %9465  ;;  %v9221_v51 = vadd.f32 %v9210_v17, %v9073_v11 }
 0x6cc   : > { %v9068_v23 = vpop.permute.xlu0 %9067 }
 0x6cd   : > { %v9612_v1 = vpop.permute.xlu1 %9611  ;;  %v9076_v30 = vadd.f32 %v9068_v23, %v8939_v22  ;;  %v9475_v23 = vadd.f32 %v9466_v60, %v9338_v28  ;;  %v18038_v28 = vld [vmem:[#allocation12_spill] sm:$0xff] }
 0x6d0   : > { %v9325_v2 = vpop.permute.xlu0 %9324 }
 0x6d1   : > { %v9468_v48 = vpop.permute.xlu1 %9467 }
 0x6d4   : > { %s12013_s23 = spop %12012  ;;  %v9216_v19 = vpop.permute.xlu0 %9215 }
 0x6d5   : > { %v9714_v20 = vstv %s12013_s23  ;;  %s12015_s10 = spop %12014  ;;  %v9224_v10 = vadd.f32 %v9216_v19, %v9076_v30 }
 0x6d6   : > { %v9715_v59 = vmul.f32 %v9714_v20, %v16798_v36  ;;  %v9716_v62 = vmul.f32 %v9714_v20, %v16801_v25  ;;  %v9717_v34 = vmul.f32 %v9714_v20, %v16804_v9  ;;  %v9718_v44 = vmul.f32 %v9714_v20, %v16807_v8  ;;  %s9749_s29 = smul.f32 0.0009765625, %s12015_s10 }
 0x6d8   : > { %v9719_v4 = vmul.f32 0.2, %v9715_v59  ;;  %v9720_v26 = vmul.f32 0.2, %v9716_v62  ;;  %v9721_v13 = vmul.f32 0.2, %v9717_v34  ;;  %v9750_v5 = vstv %s9749_s29  ;;  %v9462_v57 = vpop.permute.xlu0 %9461 }
 0x6d9   : > { %v9722_v58 = vmul.f32 0.2, %v9718_v44  ;;  %v17064_v21 = vsub.f32 %v16778_v41, %v9750_v5  ;;  %v17067_v36 = vsub.f32 %v16774_v56, %v9750_v5  ;;  %v17070_v25 = vsub.f32 %v16776_v42, %v9750_v5 }
 0x6da   : > { %v9723_v9 = vmax.f32 %v9715_v59, %v9719_v4  ;;  %v9724_v8 = vmax.f32 %v9716_v62, %v9720_v26  ;;  %v9725_v14 = vmax.f32 %v9717_v34, %v9721_v13  ;;  %v17073_v12 = vsub.f32 %v16780_v0, %v9750_v5  ;;  %v9614_v0 = vpop.permute.xlu1 %9613  ;;  %v18033_v4 = vld [vmem:[#allocation48_spill] sm:$0xff] }
 0x6db   : > { %v9726_v24 = vmax.f32 %v9718_v44, %v9722_v58  ;;  %v9755_v37 = vmul.f32 %v17064_v21, %v17064_v21  ;;  %v9756_v41 = vmul.f32 %v17067_v36, %v17067_v36  ;;  %v9757_v56 = vmul.f32 %v17070_v25, %v17070_v25 }
 0x6dc   : > { %v9336_v42 = vadd.f32 %v9325_v2, %v9221_v51  ;;  %9727 = vst.msk [vmem:[%s17081_s9] sm:$0xff] %vm9662_vm4, %v9723_v9  ;;  %9728 = vst.msk [vmem:[%s17081_s9 + $0x8] sm:$0xff] %vm9662_vm4, %v9724_v8  ;;  %v9331_v43 = vpop.permute.xlu0 %9330  ;;  %v9758_v47 = vmul.f32 %v17073_v12, %v17073_v12  ;;  %v17095_v2 = vadd.f32 %v9612_v1, %v9474_v61  ;;  %v18034_v9 = vld [vmem:[#allocation53_spill] sm:$0xff]  ;;  %v18039_v61 = vld [vmem:[#allocation54_spill] sm:$0xff] }
 0x6dd   : > { %9729 = vst.msk [vmem:[%s17081_s9 + $0x10] sm:$0xff] %vm9662_vm4, %v9725_v14  ;;  %9730 = vst.msk [vmem:[%s17081_s9 + $0x18] sm:$0xff] %vm9662_vm4, %v9726_v24  ;;  %v9339_v17 = vadd.f32 %v9331_v43, %v9224_v10  ;;  %v9759_v54 = vsel %vm9662_vm4, %v9755_v37, 0.0  ;;  %v9760_v18 = vsel %vm9662_vm4, %v9756_v41, 0.0  ;;  %v9762_v15 = vsel %vm9662_vm4, %v9757_v56, 0.0  ;;  %v18035_v24 = vld [vmem:[#allocation51_spill] sm:$0xff] }
 0x6de   : > { %v9761_v33 = vadd.f32 %v9760_v18, %v9759_v54  ;;  %v9473_v50 = vadd.f32 %v9462_v57, %v9336_v42  ;;  %v17098_v53 = vadd.f32 %v9614_v0, %v9475_v23  ;;  %v9764_v30 = vsel %vm9662_vm4, %v9758_v47, 0.0  ;;  %v9616_v20 = vpop.permute.xlu1 %9615  ;;  %v18036_v37 = vld [vmem:[#allocation49_spill] sm:$0xff]  ;;  %v18037_v56 = vld [vmem:[#allocation52_spill] sm:$0xff]  ;;  %v18040_v42 = vld [vmem:[#allocation55_spill] sm:$0xff] }
 0x6df   : > { %v9476_v46 = vadd.f32 %v9468_v48, %v9339_v17  ;;  %v9801_v60 = vsel %vm9662_vm4, %v17095_v2, 0.0  ;;  %v2285_v14 = vstv %s10074_s26  ;;  %v18041_v0 = vld [vmem:[#allocation56_spill] sm:$0xff]  ;;  %v18043_v54 = vld [vmem:[#allocation57_spill] sm:$0xff]  ;;  %v18044_v18 = vld [vmem:[#allocation58_spill] sm:$0xff] }
 0x6e0   : > { %v9610_v22 = vpop.permute.xlu0 %9609  ;;  %v9763_v19 = vadd.f32 %v9762_v15, %v9761_v33  ;;  %v9803_v44 = vsel %vm9662_vm4, %v17098_v53, 0.0  ;;  %v2286_v41 = vmul.f32 %v2285_v14, %v17930_v27  ;;  %v2289_v43 = vmul.f32 %v2285_v14, %v18018_v40  ;;  %v18042_v27 = vld [vmem:[#allocation14_spill] sm:$0xff]  ;;  %v18045_v23 = vld [vmem:[#allocation59_spill] sm:$0xff]  ;;  %v18046_v40 = vld [vmem:[#allocation61_spill] sm:$0xff] }
 0x6e1   : > { %v17100_v11 = vadd.f32 %v9610_v22, %v9473_v50  ;;  %v17105_v62 = vadd.f32 %v9616_v20, %v9476_v46  ;;  %v2287_v17 = vmul.f32 %v2285_v14, %v18042_v27  ;;  %v2288_v47 = vmul.f32 %v2285_v14, %v17925_v63  ;;  %v18047_v33 = vld [vmem:[#allocation60_spill] sm:$0xff]  ;;  %v18048_v46 = vld [vmem:[#allocation62_spill] sm:$0xff]  ;;  %v18049_v15 = vld [vmem:[#allocation121_spill] sm:$0xff] }
 0x6e2   : > { %v9765_v59 = vadd.f32 %v9764_v30, %v9763_v19  ;;  %v4237_v50 = vstv %s10100_s20  ;;  %v18050_v22 = vld [vmem:[#allocation63_spill] sm:$0xff]  ;;  %v18060_v14 = vld [vmem:[#allocation132_spill] sm:$0xff] }
 0x6e3   : > { %v9800_v1 = vsel %vm9662_vm4, %v17100_v11, 0.0  ;;  %v9805_v55 = vsel %vm9662_vm4, %v17105_v62, 0.0  ;;  %v4239_v63 = vmul.f32 %v4237_v50, %v14434_v3  ;;  %v4241_v19 = vmul.f32 %v4237_v50, %v14507_v16 }
 0x6e4   : > { %v9802_v48 = vadd.f32 %v9801_v60, %v9800_v1  ;;  %9766 = vadd.xlane.f32.xlu0 %v9765_v59  ;;  %v1895_v34 = vpop.permute.xlu0 %1894  ;;  %v4238_v30 = vmul.f32 %v4237_v50, %v17953_v45  ;;  %v4240_v20 = vmul.f32 %v4237_v50, %v14471_v29  ;;  %v18051_v59 = vld [vmem:[#allocation122_spill] sm:$0xff]  ;;  %v4637_v60 = vstv %s10112_s25  ;;  %v18052_v1 = vld [vmem:[#allocation123_spill] sm:$0xff] }
 0x6e5   : > { %v1906_v26 = vadd.f32 %v1895_v34, %v18033_v4  ;;  %v4638_v34 = vmul.f32 %v4637_v60, %v17953_v45  ;;  %v18058_v4 = vld [vmem:[#allocation128_spill] sm:$0xff]  ;;  %v18071_v50 = vld [vmem:[#allocation202_spill] sm:$0xff] }
 0x6e6   : > { %v9804_v7 = vadd.f32 %v9803_v44, %v9802_v48  ;;  %v18053_v48 = vld [vmem:[#allocation124_spill] sm:$0xff]  ;;  %v18054_v44 = vld [vmem:[#allocation125_spill] sm:$0xff] }
 0x6e8   : > { %v17113_v51 = vpop.permute.xlu0 %1898  ;;  %v9806_v10 = vadd.f32 %v9805_v55, %v9804_v7  ;;  %v18055_v7 = vld [vmem:[#allocation126_spill] sm:$0xff]  ;;  %v18056_v55 = vld [vmem:[#allocation127_spill] sm:$0xff] }
 0x6ea   : > { %9807 = vadd.xlane.f32.xlu1 %v9806_v10  ;;  %v18057_v10 = vld [vmem:[#allocation129_spill] sm:$0xff] }
 0x6ec   : > { %v2043_v13 = vpop.permute.xlu0 %2042 }
 0x6ed   : > { %v17116_v5 = vadd.f32 %v2043_v13, %v1906_v26  ;;  %v4641_v26 = vmul.f32 %v4637_v60, %v14507_v16  ;;  %v4639_v13 = vmul.f32 %v4637_v60, %v14434_v3 }
 0x6f0   : > { %v17118_v57 = vpop.permute.xlu0 %2044 }
 0x6f4   : > { %v1901_v58 = vpop.permute.xlu0 %1900 }
 0x6f5   : > { %v17121_v8 = vadd.f32 %v1901_v58, %v18034_v9  ;;  %v4640_v58 = vmul.f32 %v4637_v60, %v14471_v29  ;;  %v18059_v9 = vld [vmem:[#allocation131_spill] sm:$0xff] }
 0x6fa   : > { %2048 = vrot.lane.b32.xlu0 %v18035_v24, %s12231_s7  ;;  %v18061_v24 = vld [vmem:[#allocation133_spill] sm:$0xff] }
 0x6fb   : > { %1896 = vrot.lane.b32.xlu1 %v18036_v37, %s12231_s7  ;;  %v18062_v37 = vld [vmem:[#allocation135_spill] sm:$0xff] }
 0x6fe   : > { %2294 = vrot.lane.b32.xlu0 %v2286_v41, %s12230_s5  ;;  %v18063_v41 = vld [vmem:[#allocation134_spill] sm:$0xff] }
 0x6ff   : > { %2046 = vrot.lane.b32.xlu1 %v18037_v56, %s12231_s7  ;;  %v6589_v56 = vstv %s10138_s30 }
 0x700   : > { %v6590_v27 = vmul.f32 %v6589_v56, %v17840_v52 }
 0x702   : > { %2196 = vrot.lane.b32.xlu0 %v18038_v28, %s12231_s7  ;;  %v6591_v28 = vmul.f32 %v6589_v56, %v17847_v49 }
 0x703   : > { %2192 = vrot.lane.b32.xlu1 %v18039_v61, %s12231_s7  ;;  %v18064_v61 = vld [vmem:[#allocation136_spill] sm:$0xff] }
 0x706   : > { %2442 = vrot.lane.b32.xlu0 %v18040_v42, %s12230_s5  ;;  %v18065_v42 = vld [vmem:[#allocation197_spill] sm:$0xff] }
 0x707   : > { %2194 = vrot.lane.b32.xlu1 %v18041_v0, %s12231_s7  ;;  %v18066_v0 = vld [vmem:[#allocation137_spill] sm:$0xff] }
 0x70a   : > { %2300 = vrot.lane.b32.xlu0 %v2289_v43, %s12230_s5  ;;  %v6593_v43 = vmul.f32 %v6589_v56, %v17864_v38 }
 0x70b   : > { %2296 = vrot.lane.b32.xlu1 %v2287_v17, %s12230_s5  ;;  %v6592_v17 = vmul.f32 %v6589_v56, %v17848_v6 }
 0x70e   : > { %2590 = vrot.lane.b32.xlu0 %v18043_v54, %s12230_s5  ;;  %v6989_v54 = vstv %s10150_s12 }
 0x70f   : > { %2298 = vrot.lane.b32.xlu1 %v2288_v47, %s12230_s5  ;;  %v18067_v47 = vld [vmem:[#allocation198_spill] sm:$0xff] }
 0x712   : > { %2448 = vrot.lane.b32.xlu0 %v18044_v18, %s12230_s5  ;;  %v18068_v18 = vld [vmem:[#allocation199_spill] sm:$0xff] }
 0x713   : > { %2444 = vrot.lane.b32.xlu1 %v18045_v23, %s12230_s5  ;;  %v18069_v23 = vld [vmem:[#allocation200_spill] sm:$0xff] }
 0x716   : > { %2596 = vrot.lane.b32.xlu0 %v18046_v40, %s12230_s5  ;;  %v6990_v40 = vmul.f32 %v6989_v54, %v17840_v52 }
 0x717   : > { %2446 = vrot.lane.b32.xlu1 %v18047_v33, %s12230_s5  ;;  %v18070_v33 = vld [vmem:[#allocation201_spill] sm:$0xff] }
 0x71a   : > { %4248 = vrot.lane.b32.xlu0 %v4239_v63, %s12231_s7  ;;  %v18072_v63 = vld [vmem:[#allocation203_spill] sm:$0xff] }
 0x71b   : > { %2592 = vrot.lane.b32.xlu1 %v18048_v46, %s12230_s5  ;;  %v18073_v46 = vld [vmem:[#allocation204_spill] sm:$0xff] }
 0x71e   : > { %4394 = vrot.lane.b32.xlu0 %v18049_v15, %s12231_s7  ;;  %v18074_v15 = vld [vmem:[#allocation205_spill] sm:$0xff] }
 0x71f   : > { %2594 = vrot.lane.b32.xlu1 %v18050_v22, %s12230_s5  ;;  %v6993_v22 = vmul.f32 %v6989_v54, %v17864_v38 }
 0x722   : > { %4252 = vrot.lane.b32.xlu0 %v4241_v19, %s12231_s7  ;;  %v6991_v19 = vmul.f32 %v6989_v54, %v17847_v49 }
 0x723   : > { %4246 = vrot.lane.b32.xlu1 %v4238_v30, %s12231_s7  ;;  %v2191_v30 = vpop.permute.xlu0 %2190 }
 0x726   : > { %4542 = vrot.lane.b32.xlu0 %v18051_v59, %s12231_s7  ;;  %v18075_v59 = vld [vmem:[#allocation206_spill] sm:$0xff] }
 0x727   : > { %4250 = vrot.lane.b32.xlu1 %v4240_v20, %s12231_s7  ;;  %v6992_v20 = vmul.f32 %v6989_v54, %v17848_v6  ;;  %v18084_v54 = vld [vmem:[#allocation215_spill] sm:$0xff] }
 0x72a   : > { %4400 = vrot.lane.b32.xlu0 %v18052_v1, %s12231_s7 }
 0x72b   : > { %4396 = vrot.lane.b32.xlu1 %v18053_v48, %s12231_s7  ;;  %v18076_v48 = vld [vmem:[#allocation207_spill] sm:$0xff] }
 0x72e   : > { %4646 = vrot.lane.b32.xlu0 %v4638_v34, %s12230_s5  ;;  %v18077_v34 = vld [vmem:[#allocation209_spill] sm:$0xff] }
 0x72f   : > { %4398 = vrot.lane.b32.xlu1 %v18054_v44, %s12231_s7 }
 0x732   : > { %4548 = vrot.lane.b32.xlu0 %v18055_v7, %s12231_s7 }
 0x733   : > { %4544 = vrot.lane.b32.xlu1 %v18056_v55, %s12231_s7 }
 0x736   : > { %4794 = vrot.lane.b32.xlu0 %v18057_v10, %s12230_s5 }
 0x737   : > { %4546 = vrot.lane.b32.xlu1 %v18058_v4, %s12231_s7  ;;  %v18078_v4 = vld [vmem:[#allocation210_spill] sm:$0xff] }
 0x73a   : > { %4652 = vrot.lane.b32.xlu0 %v4641_v26, %s12230_s5  ;;  %v18079_v26 = vld [vmem:[#allocation211_spill] sm:$0xff] }
 0x73b   : > { %4648 = vrot.lane.b32.xlu1 %v4639_v13, %s12230_s5 }
 0x73e   : > { %4942 = vrot.lane.b32.xlu0 %v18059_v9, %s12230_s5  ;;  %v2202_v9 = vadd.f32 %v2191_v30, %v17116_v5 }
 0x73f   : > { %4650 = vrot.lane.b32.xlu1 %v4640_v58, %s12230_s5  ;;  %v8941_v58 = vstv %s10176_s8 }
 0x742   : > { %4800 = vrot.lane.b32.xlu0 %v18060_v14, %s12230_s5  ;;  %v8943_v14 = vmul.f32 %v8941_v58, %v15788_v35 }
 0x743   : > { %4796 = vrot.lane.b32.xlu1 %v18061_v24, %s12230_s5 }
 0x746   : > { %4948 = vrot.lane.b32.xlu0 %v18062_v37, %s12230_s5 }
 0x747   : > { %4798 = vrot.lane.b32.xlu1 %v18063_v41, %s12230_s5 }
 0x74a   : > { %6600 = vrot.lane.b32.xlu0 %v6591_v28, %s12231_s7 }
 0x74b   : > { %4944 = vrot.lane.b32.xlu1 %v18064_v61, %s12230_s5  ;;  %v18081_v61 = vld [vmem:[#allocation139_spill] sm:$0xff] }
 0x74e   : > { %6746 = vrot.lane.b32.xlu0 %v18065_v42, %s12231_s7 }
 0x74f   : > { %4946 = vrot.lane.b32.xlu1 %v18066_v0, %s12230_s5 }
 0x752   : > { %6604 = vrot.lane.b32.xlu0 %v6593_v43, %s12231_s7 }
 0x753   : > { %6598 = vrot.lane.b32.xlu1 %v6590_v27, %s12231_s7  ;;  %v18082_v27 = vld [vmem:[#allocation50_spill] sm:$0xff] }
 0x756   : > { %6894 = vrot.lane.b32.xlu0 %v18067_v47, %s12231_s7  ;;  %v18083_v47 = vld [vmem:[#allocation73_spill] sm:$0xff] }
 0x757   : > { %6602 = vrot.lane.b32.xlu1 %v6592_v17, %s12231_s7  ;;  %v1908_v17 = vadd.f32 %v17113_v51, %v18082_v27  ;;  %v18092_v27 = vld [vmem:[#allocation79_spill] sm:$0xff] }
 0x75a   : > { %6752 = vrot.lane.b32.xlu0 %v18068_v18, %s12231_s7 }
 0x75b   : > { %6748 = vrot.lane.b32.xlu1 %v18069_v23, %s12231_s7 }
 0x75e   : > { %6998 = vrot.lane.b32.xlu0 %v6990_v40, %s12230_s5  ;;  %v8945_v40 = vmul.f32 %v8941_v58, %v15856_v32 }
 0x75f   : > { %6750 = vrot.lane.b32.xlu1 %v18070_v33, %s12231_s7 }
 0x762   : > { %6900 = vrot.lane.b32.xlu0 %v18071_v50, %s12231_s7  ;;  %v8942_v50 = vmul.f32 %v8941_v58, %v15755_v31 }
 0x763   : > { %6896 = vrot.lane.b32.xlu1 %v18072_v63, %s12231_s7 }
 0x766   : > { %7146 = vrot.lane.b32.xlu0 %v18073_v46, %s12230_s5 }
 0x767   : > { %6898 = vrot.lane.b32.xlu1 %v18074_v15, %s12231_s7 }
 0x76a   : > { %7004 = vrot.lane.b32.xlu0 %v6993_v22, %s12230_s5 }
 0x76b   : > { %7000 = vrot.lane.b32.xlu1 %v6991_v19, %s12230_s5  ;;  %v8944_v19 = vmul.f32 %v8941_v58, %v15819_v39 }
 0x76e   : > { %7294 = vrot.lane.b32.xlu0 %v18075_v59, %s12230_s5 }
 0x76f   : > { %7002 = vrot.lane.b32.xlu1 %v6992_v20, %s12230_s5  ;;  %v18085_v20 = vld [vmem:[#allocation75_spill] sm:$0xff] }
 0x771   : > { %v9767_v60 = vpop.xlane.xlu0 %9766 }
 0x772   : > { %v9768_v1 = vrot.slane %v9767_v60, 4  ;;  %7152 = vrot.lane.b32.xlu0 %v18076_v48, %s12230_s5 }
 0x773   : > { %7148 = vrot.lane.b32.xlu1 %v18077_v34, %s12230_s5  ;;  %v9341_v34 = vstv %s10188_s14 }
 0x774   : > { %v9769_v44 = vadd.f32 %v9768_v1, %v9767_v60  ;;  %v3917_v60 = vstv %s10088_s13  ;;  %v9342_v58 = vmul.f32 %v9341_v34, %v15755_v31 }
 0x775   : > { %v2049_v7 = vpop.permute.xlu0 %2048 }
 0x776   : > { %v9770_v55 = vrot.slane %v9769_v44, 2  ;;  %v2057_v10 = vadd.f32 %v2049_v7, %v17121_v8  ;;  %7300 = vrot.lane.b32.xlu0 %v18078_v4, %s12230_s5  ;;  %v18080_v8 = vld [vmem:[#allocation212_spill] sm:$0xff]  ;;  %v18086_v7 = vld [vmem:[#allocation251_spill] sm:$0xff] }
 0x777   : > { %7150 = vrot.lane.b32.xlu1 %v18079_v26, %s12230_s5  ;;  %v17252_v13 = vpop.xlane.xlu1 %9807 }
 0x778   : > { %v9771_v24 = vadd.f32 %v9770_v55, %v9769_v44  ;;  %v18087_v55 = vld [vmem:[#allocation144_spill] sm:$0xff] }
 0x779   : > { %v2295_v37 = vpop.permute.xlu0 %2294 }
 0x77a   : > { %v2306_v41 = vadd.f32 %v2295_v37, %v2202_v9  ;;  %8952 = vrot.lane.b32.xlu0 %v8943_v14, %s12231_s7  ;;  %v9772_v56 = vrot.slane %v9771_v24, 1 }
 0x77b   : > { %7296 = vrot.lane.b32.xlu1 %v18080_v8, %s12230_s5  ;;  %v1897_v28 = vpop.permute.xlu1 %1896  ;;  %v18090_v8 = vld [vmem:[#allocation208_spill] sm:$0xff] }
 0x77c   : > { %v1907_v42 = vadd.f32 %v1897_v28, %v18081_v61  ;;  %v9773_v0 = vadd.f32 %v9772_v56, %v9771_v24  ;;  %v18088_v24 = vld [vmem:[#allocation145_spill] sm:$0xff] }
 0x77d   : > { %v2197_v43 = vpop.permute.xlu0 %2196 }
 0x77e   : > { %v2205_v5 = vadd.f32 %v2197_v43, %v2057_v10  ;;  %9098 = vrot.lane.b32.xlu0 %v18083_v47, %s12231_s7  ;;  %12016 = vpush %v9773_v0  ;;  %v2055_v51 = vadd.f32 %v17118_v57, %v1907_v42  ;;  %v3918_v57 = vmul.f32 %v3917_v60, %v17953_v45  ;;  %v18089_v45 = vld [vmem:[#allocation146_spill] sm:$0xff]  ;;  %v18091_v43 = vld [vmem:[#allocation252_spill] sm:$0xff] }
 0x77f   : > { %7298 = vrot.lane.b32.xlu1 %v18084_v54, %s12230_s5  ;;  %v2047_v18 = vpop.permute.xlu1 %2046  ;;  %v3921_v42 = vmul.f32 %v3917_v60, %v14507_v16 }
 0x780   : > { %v2056_v23 = vadd.f32 %v2047_v18, %v1908_v17  ;;  %v18093_v18 = vld [vmem:[#allocation76_spill] sm:$0xff] }
 0x781   : > { %v2443_v33 = vpop.permute.xlu0 %2442 }
 0x782   : > { %v2454_v63 = vadd.f32 %v2443_v33, %v2306_v41  ;;  %8956 = vrot.lane.b32.xlu0 %v8945_v40, %s12231_s7  ;;  %v18095_v33 = vld [vmem:[#allocation147_spill] sm:$0xff] }
 0x783   : > { %8950 = vrot.lane.b32.xlu1 %v8942_v50, %s12231_s7  ;;  %v2193_v46 = vpop.permute.xlu1 %2192 }
 0x784   : > { %v2203_v15 = vadd.f32 %v2193_v46, %v2055_v51  ;;  %v18096_v51 = vld [vmem:[#allocation142_spill] sm:$0xff] }
 0x785   : > { %v2301_v22 = vpop.permute.xlu0 %2300 }
 0x786   : > { %v2309_v30 = vadd.f32 %v2301_v22, %v2205_v5  ;;  %9246 = vrot.lane.b32.xlu0 %v18085_v20, %s12231_s7  ;;  %v9343_v22 = vmul.f32 %v9341_v34, %v15788_v35 }
 0x787   : > { %8954 = vrot.lane.b32.xlu1 %v8944_v19, %s12231_s7  ;;  %v2195_v59 = vpop.permute.xlu1 %2194 }
 0x788   : > { %v2204_v1 = vadd.f32 %v2195_v59, %v2056_v23  ;;  %v18094_v23 = vld [vmem:[#allocation141_spill] sm:$0xff] }
 0x789   : > { %v2591_v48 = vpop.permute.xlu0 %2590 }
 0x78a   : > { %v2602_v44 = vadd.f32 %v2591_v48, %v2454_v63  ;;  %9104 = vrot.lane.b32.xlu0 %v18086_v7, %s12231_s7  ;;  %v9345_v63 = vmul.f32 %v9341_v34, %v15856_v32 }
 0x78b   : > { %9100 = vrot.lane.b32.xlu1 %v18087_v55, %s12231_s7  ;;  %v2297_v10 = vpop.permute.xlu1 %2296  ;;  %v18098_v55 = vld [vmem:[#allocation140_spill] sm:$0xff] }
 0x78c   : > { %v3922_v4 = vadd.f32 %v3918_v57, %v2602_v44  ;;  %v2307_v26 = vadd.f32 %v2297_v10, %v2203_v15  ;;  %v18097_v44 = vld [vmem:[#allocation77_spill] sm:$0xff] }
 0x78d   : > { %v2449_v9 = vpop.permute.xlu0 %2448 }
 0x78e   : > { %v2457_v14 = vadd.f32 %v2449_v9, %v2309_v30  ;;  %9350 = vrot.lane.b32.xlu0 %v9342_v58, %s12230_s5  ;;  %v4038_v37 = vadd.f32 %v18088_v24, %v3922_v4  ;;  %v3919_v30 = vmul.f32 %v3917_v60, %v14434_v3  ;;  %v3920_v4 = vmul.f32 %v3917_v60, %v14471_v29  ;;  %v18099_v3 = vld [vmem:[#allocation214_spill] sm:$0xff]  ;;  %v18100_v24 = vld [vmem:[#allocation80_spill] sm:$0xff]  ;;  %v18103_v29 = vld [vmem:[#allocation83_spill] sm:$0xff] }
 0x78f   : > { %9102 = vrot.lane.b32.xlu1 %v18089_v45, %s12231_s7  ;;  %v2299_v41 = vpop.permute.xlu1 %2298  ;;  %v18101_v45 = vld [vmem:[#allocation143_spill] sm:$0xff] }
 0x790   : > { %v2308_v56 = vadd.f32 %v2299_v41, %v2204_v1  ;;  %v4154_v28 = vadd.f32 %v18090_v8, %v4038_v37  ;;  %v9344_v1 = vmul.f32 %v9341_v34, %v15819_v39 }
 0x791   : > { %v2597_v61 = vpop.permute.xlu0 %2596 }
 0x792   : > { %v2605_v0 = vadd.f32 %v2597_v61, %v2457_v14  ;;  %9252 = vrot.lane.b32.xlu0 %v18091_v43, %s12231_s7 }
 0x793   : > { %9248 = vrot.lane.b32.xlu1 %v18092_v27, %s12231_s7  ;;  %v2445_v17 = vpop.permute.xlu1 %2444 }
 0x794   : > { %v3925_v5 = vadd.f32 %v3921_v42, %v2605_v0  ;;  %v2455_v47 = vadd.f32 %v2445_v17, %v2307_v26  ;;  %v18102_v0 = vld [vmem:[#allocation213_spill] sm:$0xff] }
 0x795   : > { %v4249_v54 = vpop.permute.xlu0 %4248 }
 0x796   : > { %9498 = vrot.lane.b32.xlu0 %v18093_v18, %s12230_s5  ;;  %v4041_v40 = vadd.f32 %v18094_v23, %v3925_v5  ;;  %v9809_v18 = vrot.slane %v17252_v13, 4 }
 0x797   : > { %9250 = vrot.lane.b32.xlu1 %v18095_v33, %s12231_s7  ;;  %v2447_v16 = vpop.permute.xlu1 %2446 }
 0x798   : > { %v2456_v50 = vadd.f32 %v2447_v16, %v2308_v56  ;;  %v4157_v46 = vadd.f32 %v18096_v51, %v4041_v40  ;;  %v9810_v16 = vadd.f32 %v9809_v18, %v17252_v13 }
 0x799   : > { %v4395_v15 = vpop.permute.xlu0 %4394 }
 0x79a   : > { %9356 = vrot.lane.b32.xlu0 %v9345_v63, %s12230_s5 }
 0x79b   : > { %9352 = vrot.lane.b32.xlu1 %v9343_v22, %s12230_s5  ;;  %v2593_v19 = vpop.permute.xlu1 %2592  ;;  %v18106_v22 = vld [vmem:[#allocation250_spill] sm:$0xff] }
 0x79c   : > { %v2603_v20 = vadd.f32 %v2593_v19, %v2455_v47 }
 0x79d   : > { %v4253_v59 = vpop.permute.xlu0 %4252 }
 0x79e   : > { %v3923_v48 = vadd.f32 %v3919_v30, %v2603_v20  ;;  %v4261_v57 = vadd.f32 %v4253_v59, %v4157_v46  ;;  %9646 = vrot.lane.b32.xlu0 %v18097_v44, %s12230_s5  ;;  %v9811_v30 = vrot.slane %v9810_v16, 2  ;;  %v6269_v44 = vstv %s10126_s22 }
 0x79f   : > { %9354 = vrot.lane.b32.xlu1 %v9344_v1, %s12230_s5  ;;  %v2595_v7 = vpop.permute.xlu1 %2594 }
 0x7a0   : > { %v4039_v10 = vadd.f32 %v18098_v55, %v3923_v48  ;;  %v2604_v26 = vadd.f32 %v2595_v7, %v2456_v50  ;;  %v18105_v50 = vld [vmem:[#allocation149_spill] sm:$0xff]  ;;  %v18107_v48 = vld [vmem:[#allocation148_spill] sm:$0xff]  ;;  %v9812_v7 = vadd.f32 %v9811_v30, %v9810_v16 }
 0x7a1   : > { %v4543_v58 = vpop.permute.xlu0 %4542 }
 0x7a2   : > { %v3924_v9 = vadd.f32 %v3920_v4, %v2604_v26  ;;  %v4155_v14 = vadd.f32 %v18099_v3, %v4039_v10  ;;  %v6270_v4 = vmul.f32 %v6269_v44, %v17840_v52  ;;  %v6273_v52 = vmul.f32 %v6269_v44, %v17864_v38  ;;  %v18112_v38 = vld [vmem:[#allocation216_spill] sm:$0xff] }
 0x7a3   : > { %9500 = vrot.lane.b32.xlu1 %v18100_v24, %s12230_s5  ;;  %v4247_v34 = vpop.permute.xlu1 %4246 }
 0x7a4   : > { %v4258_v37 = vadd.f32 %v4247_v34, %v4154_v28  ;;  %v4040_v41 = vadd.f32 %v18101_v45, %v3924_v9  ;;  %v4259_v56 = vadd.f32 %v4249_v54, %v4155_v14  ;;  %v18104_v28 = vld [vmem:[#allocation82_spill] sm:$0xff]  ;;  %v9813_v9 = vrot.slane %v9812_v7, 1  ;;  %v18108_v34 = vld [vmem:[#allocation220_spill] sm:$0xff] }
 0x7a5   : > { %v4401_v8 = vpop.permute.xlu0 %4400 }
 0x7a6   : > { %v4406_v61 = vadd.f32 %v4395_v15, %v4258_v37  ;;  %v4409_v42 = vadd.f32 %v4401_v8, %v4261_v57  ;;  %v4156_v43 = vadd.f32 %v18102_v0, %v4040_v41 }
 0x7a7   : > { %9502 = vrot.lane.b32.xlu1 %v18103_v29, %s12230_s5  ;;  %v4251_v60 = vpop.permute.xlu1 %4250 }
 0x7a8   : > { %v4260_v27 = vadd.f32 %v4251_v60, %v4156_v43  ;;  %v4554_v17 = vadd.f32 %v4543_v58, %v4406_v61 }
 0x7a9   : > { %v4647_v5 = vpop.permute.xlu0 %4646 }
 0x7aa   : > { %v4658_v47 = vadd.f32 %v4647_v5, %v4554_v17 }
 0x7ab   : > { %9648 = vrot.lane.b32.xlu1 %v18104_v28, %s12230_s5  ;;  %v4397_v23 = vpop.permute.xlu1 %4396 }
 0x7ac   : > { %v4407_v54 = vadd.f32 %v4397_v23, %v4259_v56  ;;  %v9814_v56 = vadd.f32 %v9813_v9, %v9812_v7  ;;  %v18114_v7 = vld [vmem:[#allocation218_spill] sm:$0xff] }
 0x7ad   : > { %v4549_v40 = vpop.permute.xlu0 %4548 }
 0x7ae   : > { %v4557_v33 = vadd.f32 %v4549_v40, %v4409_v42  ;;  %v18109_v42 = vld [vmem:[#allocation221_spill] sm:$0xff] }
 0x7af   : > { %s12017_s7 = spop %12016  ;;  %9504 = vrot.lane.b32.xlu1 %v18105_v50, %s12230_s5  ;;  %v4399_v63 = vpop.permute.xlu1 %4398  ;;  %v6271_v50 = vmul.f32 %v6269_v44, %v17847_v49 }
 0x7b0   : > { %s9777_s23 = smul.f32 0.0009765625, %s12017_s7  ;;  %v4408_v51 = vadd.f32 %v4399_v63, %v4260_v27 }
 0x7b1   : > { %v4795_v46 = vpop.permute.xlu0 %4794 }
 0x7b2   : > { %s9778_s10 = sadd.f32 1e-05, %s9777_s23  ;;  %v4806_v15 = vadd.f32 %v4795_v46, %v4658_v47  ;;  %v18110_v47 = vld [vmem:[#allocation217_spill] sm:$0xff] }
 0x7b3   : > { %9650 = vrot.lane.b32.xlu1 %v18106_v22, %s12230_s5  ;;  %v4545_v19 = vpop.permute.xlu1 %4544 }
 0x7b4   : > { %v9779_v20 = vstv %s9778_s10  ;;  %v4555_v59 = vadd.f32 %v4545_v19, %v4407_v54  ;;  %v18111_v54 = vld [vmem:[#allocation219_spill] sm:$0xff]  ;;  %v6272_v19 = vmul.f32 %v6269_v44, %v17848_v6  ;;  %s10215_s10 = sshll.u32 %s12281_s19, 11  ;;  %s9939_s19 = scalar_lea.sflag [#allocation4], %s12387_s6 }
 0x7b5   : > { %12100 = vrsqrt.f32 %v9779_v20  ;;  %v4653_v13 = vpop.permute.xlu0 %4652 }
 0x7b6   : > { %v4661_v1 = vadd.f32 %v4653_v13, %v4557_v33  ;;  %v18113_v13 = vld [vmem:[#allocation223_spill] sm:$0xff] }
 0x7b7   : > { %9652 = vrot.lane.b32.xlu1 %v18107_v48, %s12230_s5  ;;  %v4547_v57 = vpop.permute.xlu1 %4546  ;;  %s10164_s5 = sld [smem:[#allocation6 + $0x19b]] }
 0x7b8   : > { %v4556_v55 = vadd.f32 %v4547_v57, %v4408_v51 }
 0x7b9   : > { %v4943_v10 = vpop.permute.xlu0 %4942 }
 0x7ba   : > { %v4954_v26 = vadd.f32 %v4943_v10, %v4806_v15 }
 0x7bb   : > { %v4649_v58 = vpop.permute.xlu1 %4648 }
 0x7bc   : > { %v6274_v3 = vadd.f32 %v6270_v4, %v4954_v26  ;;  %v4659_v14 = vadd.f32 %v4649_v58, %v4555_v59  ;;  %v18115_v4 = vld [vmem:[#allocation222_spill] sm:$0xff] }
 0x7bd   : > { %v4801_v24 = vpop.permute.xlu0 %4800 }
 0x7be   : > { %v6390_v37 = vadd.f32 %v18108_v34, %v6274_v3  ;;  %v4809_v8 = vadd.f32 %v4801_v24, %v4661_v1 }
 0x7bf   : > { %v12101_v45 = vpop.eup %12100  ;;  %v4651_v41 = vpop.permute.xlu1 %4650 }
 0x7c0   : > { %v4660_v61 = vadd.f32 %v4651_v41, %v4556_v55  ;;  %12018 = vpush %v12101_v45  ;;  %v6506_v0 = vadd.f32 %v18109_v42, %v6390_v37 }
 0x7c1   : > { %12020 = vpush %v9814_v56  ;;  %v4949_v43 = vpop.permute.xlu0 %4948 }
 0x7c2   : > { %v4957_v29 = vadd.f32 %v4949_v43, %v4809_v8  ;;  %v17337_v8 = vstv %s10164_s5  ;;  %s9952_s5 = sshll.u32 %s17081_s9, 4  ;;  %s17421_s5 = int_to_ptr.vmem [resolvable:$true] %s9952_s5 }
 0x7c3   : > { %v4797_v60 = vpop.permute.xlu1 %4796 }
 0x7c4   : > { %v6277_v27 = vadd.f32 %v6273_v52, %v4957_v29  ;;  %v4807_v17 = vadd.f32 %v4797_v60, %v4659_v14  ;;  %v8622_v52 = vmul.f32 %v17337_v8, %v15755_v31  ;;  %v8625_v31 = vmul.f32 %v17337_v8, %v15856_v32 }
 0x7c5   : > { %v6601_v5 = vpop.permute.xlu0 %6600 }
 0x7c6   : > { %v6393_v18 = vadd.f32 %v18110_v47, %v6277_v27 }
 0x7c7   : > { %v4799_v28 = vpop.permute.xlu1 %4798 }
 0x7c8   : > { %v4808_v23 = vadd.f32 %v4799_v28, %v4660_v61  ;;  %v6509_v40 = vadd.f32 %v18111_v54, %v6393_v18 }
 0x7c9   : > { %v6747_v33 = vpop.permute.xlu0 %6746 }
 0x7cb   : > { %v4945_v16 = vpop.permute.xlu1 %4944 }
 0x7cc   : > { %v4955_v63 = vadd.f32 %v4945_v16, %v4807_v17 }
 0x7cd   : > { %v6605_v51 = vpop.permute.xlu0 %6604 }
 0x7ce   : > { %v6275_v46 = vadd.f32 %v6271_v50, %v4955_v63  ;;  %v6613_v61 = vadd.f32 %v6605_v51, %v6509_v40  ;;  %v18117_v63 = vld [vmem:[#allocation256_spill] sm:$0xff] }
 0x7cf   : > { %v4947_v15 = vpop.permute.xlu1 %4946 }
 0x7d0   : > { %v6391_v22 = vadd.f32 %v18112_v38, %v6275_v46  ;;  %v4956_v30 = vadd.f32 %v4947_v15, %v4808_v23  ;;  %v18116_v23 = vld [vmem:[#allocation253_spill] sm:$0xff] }
 0x7d1   : > { %v6895_v20 = vpop.permute.xlu0 %6894 }
 0x7d2   : > { %v6276_v59 = vadd.f32 %v6272_v19, %v4956_v30  ;;  %v6507_v1 = vadd.f32 %v18113_v13, %v6391_v22 }
 0x7d3   : > { %v6599_v48 = vpop.permute.xlu1 %6598 }
 0x7d4   : > { %v6610_v57 = vadd.f32 %v6599_v48, %v6506_v0  ;;  %v6392_v55 = vadd.f32 %v18114_v7, %v6276_v59  ;;  %v6611_v18 = vadd.f32 %v6601_v5, %v6507_v1 }
 0x7d5   : > { %v6753_v10 = vpop.permute.xlu0 %6752 }
 0x7d6   : > { %v6508_v49 = vadd.f32 %v18115_v4, %v6392_v55  ;;  %v6758_v24 = vadd.f32 %v6747_v33, %v6610_v57  ;;  %v6761_v43 = vadd.f32 %v6753_v10, %v6613_v61 }
 0x7d7   : > { %v6603_v26 = vpop.permute.xlu1 %6602 }
 0x7d8   : > { %v6612_v58 = vadd.f32 %v6603_v26, %v6508_v49  ;;  %v6906_v44 = vadd.f32 %v6895_v20, %v6758_v24 }
 0x7d9   : > { %v6999_v9 = vpop.permute.xlu0 %6998 }
 0x7da   : > { %v7010_v41 = vadd.f32 %v6999_v9, %v6906_v44 }
 0x7db   : > { %v6749_v3 = vpop.permute.xlu1 %6748 }
 0x7dc   : > { %v6759_v16 = vadd.f32 %v6749_v3, %v6611_v18  ;;  %v18118_v3 = vld [vmem:[#allocation254_spill] sm:$0xff] }
 0x7dd   : > { %v6901_v14 = vpop.permute.xlu0 %6900 }
 0x7de   : > { %v6909_v27 = vadd.f32 %v6901_v14, %v6761_v43 }
 0x7df   : > { %v6751_v34 = vpop.permute.xlu1 %6750 }
 0x7e0   : > { %v6760_v59 = vadd.f32 %v6751_v34, %v6612_v58 }
 0x7e1   : > { %v7147_v6 = vpop.permute.xlu0 %7146 }
 0x7e2   : > { %v7158_v42 = vadd.f32 %v7147_v6, %v7010_v41 }
 0x7e3   : > { %v6897_v37 = vpop.permute.xlu1 %6896 }
 0x7e4   : > { %v6907_v46 = vadd.f32 %v6897_v37, %v6759_v16 }
 0x7e5   : > { %v7005_v45 = vpop.permute.xlu0 %7004 }
 0x7e6   : > { %v7013_v28 = vadd.f32 %v7005_v45, %v6909_v27  ;;  %v18119_v45 = vld [vmem:[#allocation150_spill] sm:$0xff] }
 0x7e7   : > { %v6899_v56 = vpop.permute.xlu1 %6898 }
 0x7e9   : > { %v7295_v0 = vpop.permute.xlu0 %7294 }
 0x7ea   : > { %v7306_v29 = vadd.f32 %v7295_v0, %v7158_v42  ;;  %v8623_v42 = vmul.f32 %v17337_v8, %v15788_v35  ;;  %v18121_v35 = vld [vmem:[#allocation258_spill] sm:$0xff] }
 0x7eb   : > { %v7001_v60 = vpop.permute.xlu1 %7000 }
 0x7ec   : > { %v8626_v17 = vadd.f32 %v8622_v52, %v7306_v29  ;;  %v7011_v13 = vadd.f32 %v7001_v60, %v6907_v46 }
 0x7ed   : > { %v7153_v47 = vpop.permute.xlu0 %7152 }
 0x7ee   : > { %v8742_v54 = vadd.f32 %v18116_v23, %v8626_v17  ;;  %v7161_v50 = vadd.f32 %v7153_v47, %v7013_v28  ;;  %v18120_v28 = vld [vmem:[#allocation249_spill] sm:$0xff] }
 0x7ef   : > { %v7003_v33 = vpop.permute.xlu1 %7002 }
 0x7f0   : > { %v17343_v40 = vadd.f32 %v18117_v63, %v8742_v54  ;;  %v8624_v54 = vmul.f32 %v17337_v8, %v15819_v39 }
 0x7f1   : > { %s12019_s11 = spop %12018  ;;  %v7301_v51 = vpop.permute.xlu0 %7300 }
 0x7f2   : > { %v9782_v15 = vstv %s12019_s11  ;;  %s12021_s29 = spop %12020  ;;  %v7309_v38 = vadd.f32 %v7301_v51, %v7161_v50  ;;  %v18122_v51 = vld [vmem:[#allocation255_spill] sm:$0xff] }
 0x7f3   : > { %v9783_v5 = vmul.f32 %v9782_v15, %v17064_v21  ;;  %v9784_v22 = vmul.f32 %v9782_v15, %v17067_v36  ;;  %v9785_v19 = vmul.f32 %v9782_v15, %v17070_v25  ;;  %v9786_v30 = vmul.f32 %v9782_v15, %v17073_v12  ;;  %s9818_s26 = smul.f32 0.0009765625, %s12021_s29  ;;  %v7149_v20 = vpop.permute.xlu1 %7148 }
 0x7f4   : > { %v8629_v1 = vadd.f32 %v8625_v31, %v7309_v38  ;;  %v7159_v24 = vadd.f32 %v7149_v20, %v7011_v13  ;;  %v18123_v31 = vld [vmem:[#allocation257_spill] sm:$0xff] }
 0x7f5   : > { %v9787_v48 = vmul.f32 0.2, %v9783_v5  ;;  %v9788_v57 = vmul.f32 0.2, %v9784_v22  ;;  %v9789_v7 = vmul.f32 0.2, %v9785_v19  ;;  %v9819_v55 = vstv %s9818_s26  ;;  %s17419_s26 = scalar_lea.hbm %s17477_s4, %s10215_s10 }
 0x7f6   : > { %v9790_v32 = vmul.f32 0.2, %v9786_v30  ;;  %v17352_v21 = vsub.f32 %v17100_v11, %v9819_v55  ;;  %v17355_v36 = vsub.f32 %v17095_v2, %v9819_v55  ;;  %v17358_v25 = vsub.f32 %v17098_v53, %v9819_v55 }
 0x7f7   : > { %v9791_v12 = vmax.f32 %v9783_v5, %v9787_v48  ;;  %v9792_v10 = vmax.f32 %v9784_v22, %v9788_v57  ;;  %v9793_v4 = vmax.f32 %v9785_v19, %v9789_v7  ;;  %v17361_v49 = vsub.f32 %v17105_v62, %v9819_v55  ;;  %v7151_v26 = vpop.permute.xlu1 %7150  ;;  %v8953_v62 = vpop.permute.xlu0 %8952 }
 0x7f8   : > { %v9794_v58 = vmax.f32 %v9786_v30, %v9790_v32  ;;  %v9824_v9 = vmul.f32 %v17352_v21, %v17352_v21  ;;  %v9825_v11 = vmul.f32 %v17355_v36, %v17355_v36  ;;  %v9826_v2 = vmul.f32 %v17358_v25, %v17358_v25 }
 0x7f9   : > { %v6908_v53 = vadd.f32 %v6899_v56, %v6760_v59  ;;  %10197 = vst.msk [vmem:[%s17081_s9 + $0x20] sm:$0xff] %vm9662_vm4, %v9791_v12  ;;  %10198 = vst.msk [vmem:[%s17081_s9 + $0x28] sm:$0xff] %vm9662_vm4, %v9792_v10  ;;  %v8745_v14 = vadd.f32 %v18118_v3, %v8629_v1  ;;  %v9827_v34 = vmul.f32 %v17361_v49, %v17361_v49 }
 0x7fa   : > { %10199 = vst.msk [vmem:[%s17081_s9 + $0x30] sm:$0xff] %vm9662_vm4, %v9793_v4  ;;  %10200 = vst.msk [vmem:[%s17081_s9 + $0x38] sm:$0xff] %vm9662_vm4, %v9794_v58  ;;  %v9828_v6 = vsel %vm9662_vm4, %v9824_v9, 0.0  ;;  %v9829_v44 = vsel %vm9662_vm4, %v9825_v11, 0.0  ;;  %v9831_v43 = vsel %vm9662_vm4, %v9826_v2, 0.0 }
 0x7fb   : > { %v7297_v37 = vpop.permute.xlu1 %7296  ;;  %v8861_v41 = vadd.f32 %v18119_v45, %v8745_v14  ;;  %v9830_v56 = vadd.f32 %v9829_v44, %v9828_v6  ;;  %v7012_v61 = vadd.f32 %v7003_v33, %v6908_v53  ;;  %v9833_v27 = vsel %vm9662_vm4, %v9827_v34, 0.0  ;;  %v9099_v17 = vpop.permute.xlu0 %9098 }
 0x7fc   : > { %v7307_v0 = vadd.f32 %v7297_v37, %v7159_v24 }
 0x7fd   : > { %v9832_v52 = vadd.f32 %v9831_v43, %v9830_v56  ;;  %v7160_v29 = vadd.f32 %v7151_v26, %v7012_v61 }
 0x7fe   : > { %v8627_v60 = vadd.f32 %v8623_v42, %v7307_v0 }
 0x7ff   : > { %v7299_v47 = vpop.permute.xlu1 %7298  ;;  %v9834_v18 = vadd.f32 %v9833_v27, %v9832_v52  ;;  %v8957_v15 = vpop.permute.xlu0 %8956 }
 0x800   : > { %v8743_v23 = vadd.f32 %v18120_v28, %v8627_v60  ;;  %v7308_v33 = vadd.f32 %v7299_v47, %v7160_v29  ;;  %v8965_v14 = vadd.f32 %v8957_v15, %v8861_v41 }
 0x801   : > { %9835 = vadd.xlane.f32.xlu0 %v9834_v18 }
 0x802   : > { %v8628_v16 = vadd.f32 %v8624_v54, %v7308_v33  ;;  %v8859_v50 = vadd.f32 %v18121_v35, %v8743_v23 }
 0x803   : > { %v8951_v63 = vpop.permute.xlu1 %8950  ;;  %v9247_v22 = vpop.permute.xlu0 %9246 }
 0x804   : > { %v8744_v46 = vadd.f32 %v18122_v51, %v8628_v16  ;;  %v8962_v57 = vadd.f32 %v8951_v63, %v17343_v40  ;;  %v8963_v12 = vadd.f32 %v8953_v62, %v8859_v50 }
 0x806   : > { %v8860_v38 = vadd.f32 %v18123_v31, %v8744_v46  ;;  %v9110_v32 = vadd.f32 %v9099_v17, %v8962_v57 }
 0x807   : > { %v8955_v5 = vpop.permute.xlu1 %8954  ;;  %v9105_v20 = vpop.permute.xlu0 %9104 }
 0x808   : > { %v8964_v58 = vadd.f32 %v8955_v5, %v8860_v38  ;;  %v9258_v9 = vadd.f32 %v9247_v22, %v9110_v32  ;;  %v9113_v40 = vadd.f32 %v9105_v20, %v8965_v14 }
 0x80b   : > { %v9101_v19 = vpop.permute.xlu1 %9100  ;;  %v9351_v13 = vpop.permute.xlu0 %9350 }
 0x80c   : > { %v9111_v4 = vadd.f32 %v9101_v19, %v8963_v12  ;;  %v9362_v24 = vadd.f32 %v9351_v13, %v9258_v9 }
 0x80f   : > { %v9103_v30 = vpop.permute.xlu1 %9102  ;;  %v9253_v8 = vpop.permute.xlu0 %9252 }
 0x810   : > { %v9112_v53 = vadd.f32 %v9103_v30, %v8964_v58  ;;  %v9261_v62 = vadd.f32 %v9253_v8, %v9113_v40 }
 0x813   : > { %v9249_v59 = vpop.permute.xlu1 %9248  ;;  %v9499_v7 = vpop.permute.xlu0 %9498 }
 0x814   : > { %v9259_v11 = vadd.f32 %v9249_v59, %v9111_v4  ;;  %v9510_v45 = vadd.f32 %v9499_v7, %v9362_v24 }
 0x817   : > { %v9251_v1 = vpop.permute.xlu1 %9250  ;;  %v9357_v26 = vpop.permute.xlu0 %9356 }
 0x818   : > { %v9260_v34 = vadd.f32 %v9251_v1, %v9112_v53  ;;  %v9365_v52 = vadd.f32 %v9357_v26, %v9261_v62 }
 0x81b   : > { %v9353_v39 = vpop.permute.xlu1 %9352  ;;  %v9647_v44 = vpop.permute.xlu0 %9646 }
 0x81c   : > { %v9363_v3 = vadd.f32 %v9353_v39, %v9259_v11  ;;  %v9658_v42 = vadd.f32 %v9647_v44, %v9510_v45 }
 0x81e   : > { %v9869_v27 = vsel %vm9662_vm4, %v9658_v42, 0.0 }
 0x81f   : > { %v9355_v48 = vpop.permute.xlu1 %9354 }
 0x820   : > { %v9364_v56 = vadd.f32 %v9355_v48, %v9260_v34 }
 0x823   : > { %v9501_v55 = vpop.permute.xlu1 %9500 }
 0x824   : > { %v9511_v6 = vadd.f32 %v9501_v55, %v9363_v3 }
 0x827   : > { %v9503_v10 = vpop.permute.xlu1 %9502 }
 0x828   : > { %v9512_v0 = vadd.f32 %v9503_v10, %v9364_v56 }
 0x82b   : > { %v9649_v2 = vpop.permute.xlu1 %9648 }
 0x82c   : > { %v9659_v61 = vadd.f32 %v9649_v2, %v9511_v6 }
 0x82e   : > { %v9870_v29 = vsel %vm9662_vm4, %v9659_v61, 0.0 }
 0x82f   : > { %v9505_v37 = vpop.permute.xlu1 %9504  ;;  %v9871_v47 = vadd.f32 %v9870_v29, %v9869_v27 }
 0x830   : > { %v9513_v41 = vadd.f32 %v9505_v37, %v9365_v52 }
 0x833   : > { %v9651_v43 = vpop.permute.xlu1 %9650 }
 0x834   : > { %v9660_v60 = vadd.f32 %v9651_v43, %v9512_v0 }
 0x836   : > { %v9872_v17 = vsel %vm9662_vm4, %v9660_v60, 0.0 }
 0x837   : > { %v9653_v18 = vpop.permute.xlu1 %9652  ;;  %v9873_v23 = vadd.f32 %v9872_v17, %v9871_v47 }
 0x838   : > { %v9661_v28 = vadd.f32 %v9653_v18, %v9513_v41 }
 0x83a   : > { %v9874_v54 = vsel %vm9662_vm4, %v9661_v28, 0.0 }
 0x83b   : > { %v9875_v33 = vadd.f32 %v9874_v54, %v9873_v23 }
 0x83d   : > { %9876 = vadd.xlane.f32.xlu1 %v9875_v33 }
 0x88e   : > { %v9836_v16 = vpop.xlane.xlu0 %9835 }
 0x88f   : > { %v9837_v35 = vrot.slane %v9836_v16, 4 }
 0x891   : > { %v9838_v50 = vadd.f32 %v9837_v35, %v9836_v16 }
 0x893   : > { %v9839_v63 = vrot.slane %v9838_v50, 2 }
 0x895   : > { %v9840_v51 = vadd.f32 %v9839_v63, %v9838_v50 }
 0x897   : > { %v9841_v46 = vrot.slane %v9840_v51, 1 }
 0x899   : > { %v9842_v15 = vadd.f32 %v9841_v46, %v9840_v51 }
 0x89b   : > { %12022 = vpush %v9842_v15 }
 0x8ca   : > { %v9877_v31 = vpop.xlane.xlu1 %9876 }
 0x8cb   : > { %v9878_v38 = vrot.slane %v9877_v31, 4 }
 0x8cc   : > { %s12023_s20 = spop %12022 }
 0x8cd   : > { %v9879_v5 = vadd.f32 %v9878_v38, %v9877_v31  ;;  %s9846_s25 = smul.f32 0.0009765625, %s12023_s20  ;;  %s12151_s20 = scalar_lea.vmem %s17421_s5, 2048 }
 0x8ce   : > { %p12152_p5 = scmp.ne.s32.totalorder %s17421_s5, %s12151_s20 }
 0x8cf   : > { %s9847_s30 = sadd.f32 1e-05, %s9846_s25  ;;  %v9880_v22 = vrot.slane %v9879_v5, 2  ;;  %s12232_s25 = smov [#allocation7]  }
 0x8d0   : > { %p12153_p8 = pnand %p12152_p5, %p18124_p12 }
 0x8d1   : > { %v9848_v19 = vstv %s9847_s30  ;;  %v9881_v30 = vadd.f32 %v9880_v22, %v9879_v5  ;;  %s12155_s30 = sshll.u32 %s12232_s25, 4  ;;  %s12156_s30 = int_to_ptr.vmem [resolvable:$false] %s12155_s30 }
 0x8d2   : > { %12102 = vrsqrt.f32 %v9848_v19  ;;  %p12154_p9 = pneg %p12153_p8  ;;  %p12158_p10 = scmp.lt.s32.totalorder %s17421_s5, %s12156_s30 }
 0x8d3   : > { %v9882_v20 = vrot.slane %v9881_v30, 1 }
 0x8d5   : > { %v9883_v13 = vadd.f32 %v9882_v20, %v9881_v30 }
 0x8dc   : > { %v12103_v59 = vpop.eup %12102 }
 0x8dd   : > { %12024 = vpush %v12103_v59 }
 0x8de   : > { %12026 = vpush %v9883_v13 }
 0x90e   : > { %s12025_s12 = spop %12024 }
 0x90f   : > { %v9851_v1 = vstv %s12025_s12  ;;  %s12027_s8 = spop %12026  ;;  %s12157_s12 = scalar_lea.vmem %s12156_s30, 4096 }
 0x910   : > { %v9852_v39 = vmul.f32 %v9851_v1, %v17352_v21  ;;  %v9853_v8 = vmul.f32 %v9851_v1, %v17355_v36  ;;  %v9854_v48 = vmul.f32 %v9851_v1, %v17358_v25  ;;  %v9855_v57 = vmul.f32 %v9851_v1, %v17361_v49  ;;  %s9887_s13 = smul.f32 0.0009765625, %s12027_s8  ;;  %p12159_p1 = scmp.lt.s32.totalorder %s12157_s12, %s12151_s20 }
 0x912   : > { %v9856_v7 = vmul.f32 0.2, %v9852_v39  ;;  %v9857_v55 = vmul.f32 0.2, %v9853_v8  ;;  %v9858_v32 = vmul.f32 0.2, %v9854_v48  ;;  %v9888_v12 = vstv %s9887_s13  ;;  %p12160_p4 = por %p12159_p1, %p12158_p10 }
 0x913   : > { %v9859_v10 = vmul.f32 0.2, %v9855_v57  ;;  %v9889_v4 = vsub.f32 %v9658_v42, %v9888_v12  ;;  %v9890_v26 = vsub.f32 %v9659_v61, %v9888_v12  ;;  %v9891_v58 = vsub.f32 %v9660_v60, %v9888_v12 }
 0x914   : > { %v9860_v21 = vmax.f32 %v9852_v39, %v9856_v7  ;;  %v9861_v9 = vmax.f32 %v9853_v8, %v9857_v55  ;;  %v9862_v36 = vmax.f32 %v9854_v48, %v9858_v32  ;;  %v9892_v11 = vsub.f32 %v9661_v28, %v9888_v12  ;;  %p12161_p11 = pnand %p12160_p4, %p12154_p9 }
 0x915   : > { %v9863_v25 = vmax.f32 %v9855_v57, %v9859_v10  ;;  %v9893_v2 = vmul.f32 %v9889_v4, %v9889_v4  ;;  %v9894_v49 = vmul.f32 %v9890_v26, %v9890_v26  ;;  %v9895_v53 = vmul.f32 %v9891_v58, %v9891_v58 }
 0x916   : > { %10201 = vst.msk [vmem:[%s17081_s9 + $0x40] sm:$0xff] %vm9662_vm4, %v9860_v21  ;;  %10202 = vst.msk [vmem:[%s17081_s9 + $0x48] sm:$0xff] %vm9662_vm4, %v9861_v9  ;;  %v9896_v3 = vmul.f32 %v9892_v11, %v9892_v11 }
 0x917   : > { %10203 = vst.msk [vmem:[%s17081_s9 + $0x50] sm:$0xff] %vm9662_vm4, %v9862_v36  ;;  %10204 = vst.msk [vmem:[%s17081_s9 + $0x58] sm:$0xff] %vm9662_vm4, %v9863_v25  ;;  %v9897_v14 = vsel %vm9662_vm4, %v9893_v2, 0.0  ;;  %v9898_v24 = vsel %vm9662_vm4, %v9894_v49, 0.0  ;;  %v9900_v6 = vsel %vm9662_vm4, %v9895_v53, 0.0 }
 0x918   : > { %v9899_v34 = vadd.f32 %v9898_v24, %v9897_v14  ;;  %v9902_v37 = vsel %vm9662_vm4, %v9896_v3, 0.0 }
 0x91a   : > { %v9901_v44 = vadd.f32 %v9900_v6, %v9899_v34 }
 0x91c   : > { %v9903_v40 = vadd.f32 %v9902_v37, %v9901_v44 }
 0x91e   : > { %9904 = vadd.xlane.f32.xlu0 %v9903_v40 }
 0x9ab   : > { %v9905_v45 = vpop.xlane.xlu0 %9904 }
 0x9ac   : > { %v9906_v56 = vrot.slane %v9905_v45, 4 }
 0x9ae   : > { %v9907_v61 = vadd.f32 %v9906_v56, %v9905_v45 }
 0x9b0   : > { %v9908_v62 = vrot.slane %v9907_v61, 2 }
 0x9b2   : > { %v9909_v42 = vadd.f32 %v9908_v62, %v9907_v61 }
 0x9b4   : > { %v9910_v0 = vrot.slane %v9909_v42, 1 }
 0x9b6   : > { %v9911_v43 = vadd.f32 %v9910_v0, %v9909_v42 }
 0x9b8   : > { %12028 = vpush %v9911_v43 }
 0x9e9   : > { %s12029_s14 = spop %12028 }
 0x9ea   : > { %s9915_s7 = smul.f32 0.0009765625, %s12029_s14 }
 0x9ec   : > { %s9916_s22 = sadd.f32 1e-05, %s9915_s7 }
 0x9ee   : > { %v9917_v52 = vstv %s9916_s22 }
 0x9ef   : > { %12104 = vrsqrt.f32 %v9917_v52 }
 0x9f9   : > { %v12105_v29 = vpop.eup %12104 }
 0x9fa   : > { %12030 = vpush %v12105_v29 }
 0xa2b   : > { %s12031_s23 = spop %12030 }
 0xa2c   : > { %v9920_v60 = vstv %s12031_s23 }
 0xa2d   : > { %v9921_v27 = vmul.f32 %v9920_v60, %v9889_v4  ;;  %v9922_v41 = vmul.f32 %v9920_v60, %v9890_v26  ;;  %v9923_v17 = vmul.f32 %v9920_v60, %v9891_v58  ;;  %v9924_v47 = vmul.f32 %v9920_v60, %v9892_v11 }
 0xa2f   : > { %v9925_v18 = vmul.f32 0.2, %v9921_v27  ;;  %v9926_v28 = vmul.f32 0.2, %v9922_v41  ;;  %v9927_v23 = vmul.f32 0.2, %v9923_v17 }
 0xa30   : > { %v9928_v54 = vmul.f32 0.2, %v9924_v47 }
 0xa31   : > { %v9929_v33 = vmax.f32 %v9921_v27, %v9925_v18  ;;  %v9930_v16 = vmax.f32 %v9922_v41, %v9926_v28  ;;  %v9931_v35 = vmax.f32 %v9923_v17, %v9927_v23 }
 0xa32   : > { %v9932_v50 = vmax.f32 %v9924_v47, %v9928_v54 }
 0xa33   : > { %10205 = vst.msk [vmem:[%s17081_s9 + $0x60] sm:$0xff] %vm9662_vm4, %v9929_v33  ;;  %10206 = vst.msk [vmem:[%s17081_s9 + $0x68] sm:$0xff] %vm9662_vm4, %v9930_v16 }
 0xa34   : > { %10207 = vst.msk [vmem:[%s17081_s9 + $0x70] sm:$0xff] %vm9662_vm4, %v9931_v35  ;;  %10208 = vst.msk [vmem:[%s17081_s9 + $0x78] sm:$0xff] %vm9662_vm4, %v9932_v50 }
 0xa35   : > { %12164 = shalt.err (!%p12161_p11)
}
 0xa36   : > { %s12165_s9 = scalar_lea.hbm %s17419_s26, 2048  ;;  %s12169_s14 = scalar_lea.hbm %s17477_s4, 4096 }
 0xa37   : > { %p12166_p0 = scmp.ne.s32.totalorder %s17419_s26, %s12165_s9  ;;  %p12170_p6 = scmp.lt.u32.totalorder %s17419_s26, %s17477_s4 }
 0xa38   : > { %p12171_p3 = scmp.lt.u32.totalorder %s12169_s14, %s12165_s9  ;;  %p12173_p5 = scmp.lt.u32.totalorder %s12165_s9, %s17419_s26 }
 0xa39   : > { %p12167_p2 = pnand %p12166_p0, %p18124_p12 }
 0xa3a   : > { %p12172_p13 = por %p12171_p3, %p12170_p6 }
 0xa3b   : > { %p12168_p7 = pneg %p12167_p2 }
 0xa3c   : > { %p12174_p8 = por %p12173_p5, %p12172_p13 }
 0xa3e   : > { %p12175_p9 = pnand %p12174_p8, %p12168_p7 }
 0xa40   : > { %12178 = shalt.err (!%p12175_p9)
}
 0xa41   : > { %s12233_s23 = smov 128   ;;  %s12234_s10 = smov 8  }
 0xa42   : > { %12038 = dma.vmem_to_hbm [thread:$0]  (%p18124_p12), %s17421_s5, 2048, %s17419_s26, %s9939_s19, %s12233_s23, %s12233_s23, %s12234_s10  }
 0xa43 PF: > { %s9967_s11 = sand.u32 1, %s12209_s15   ;;  %p18125_p10 = scmp.ne.s32.totalorder %s17529_s28, 0 }
 0xa44   : > { %p18126_p1 = scmp.ge.s32.totalorder %s12221_s18, 2  ;;  %s9968_s29 = scalar_lea.sflag [#allocation4], %s9967_s11 }
 0xa46   : > { %p12049_p4 = pnand %p18126_p1, %p18125_p10 }
 0xa48   : > { %12204 = dma.done.wait (!%p12049_p4), %s9968_s29, 2048  }
 0xa49   : > { %12206 = vsyncadd (!%p12049_p4), %s9968_s29, 4294965248  ;;  %p18_p11 = scmp.ge.s32.totalorder %s12285_s21, 4   ;;  %s18127_s15 = smov %s12213_s16 }
 0xa4a   : > { %s18128_s16 = smov %s12217_s17  ;;  %s18129_s17 = smov %s12297_s24 }
 0xa4b   : > { %s18130_s18 = smov %s12285_s21  ;;  %20 = sbr.rel (!%p18_p11) target bundleno = 6 (0x6), region = 92 }
 0xa52   :  { %9973 = vsyncpa [#allocation3], 1 }
 0xa53   :  { %9975 = vsyncpa [#allocation3 + $0x1], 1 }
 0xa54   :  { %9976 = vsyncpa [#allocation4], 1 }
 0xa55   :  { %9978 = vsyncpa [#allocation4 + $0x1], 1 }
 0xa56   :  { %9979 = vsyncpa [#allocation5], 1 }
 0xa57   :  { %9981 = vsyncpa [#allocation5 + $0x1], 1 }

</bundles_post_ra>
